<compile_context>
chip_gen: v6e
topology: v6e:2x2x1
jax: 0.10.0
libtpu: 0.0.40
codegen_flags: <defaults>
</compile_context>

<pallas_src>
import jax
import jax.numpy as jnp
import numpy as np
from jax.experimental import pallas as pl
from jax.experimental.pallas import tpu as pltpu

LEAKY_SLOPE = 0.01   # torch.nn.functional.leaky_relu default
LN_EPS = 1e-5        # LayerNorm eps

SEQ_MULT = 3
# (cin, cout, kernel, stride)
BLOCK_CFG = [
    (1, 16, (1, 12), (1, 12)),
    (16, 16, (4 * SEQ_MULT, 1), (4 * SEQ_MULT, 1)),
    (16, 64, (1, 3), (1, 1)),
    (64, 64, (1, 4), (1, 4)),
    (64, 128, (4, 1), (4, 1)),
    (128, 128, (2, 1), (1, 1)),
    (128, 256, (3, 1), (3, 1)),
]

H_IN, W_IN = 192, 72          # minimal spatial size the conv stack accepts (ends 1x1)

# Tap configuration for blocks 1..6 given the chosen activation row orderings.
#   block k: out = sum_t  act[t*off : t*off + p_out, :] @ W_k[t]
_TAP_CFG = (
    (12, 96, 96),   # block 1: conv (12,1)/(12,1), 16 -> 16   (act0 rows: (i1, wo, i4, ho4))
    (3, 16, 64),    # block 2: conv (1,3)/(1,1),  16 -> 64   (act1 rows: (wo, i4, ho4))
    (4, 16, 16),    # block 3: conv (1,4)/(1,4),  64 -> 64   (act2 rows: (wo2, i4, ho4))
    (4, 4, 4),      # block 4: conv (4,1)/(4,1),  64 -> 128  (act3 rows: (i4, ho4))
    (2, 1, 3),      # block 5: conv (2,1)/(1,1), 128 -> 128  (act4 rows: ho4)
    (3, 1, 1),      # block 6: conv (3,1)/(3,1), 128 -> 256  (act5 rows: h5)
)


# ---------------- fused Pallas kernel ----------------

def _ln_leaky(y, gamma, beta):
    """Per-sample LayerNorm (unbiased std, /(std+eps)) + channel affine + leaky relu."""
    m = y.shape[0] * y.shape[1]
    mean = jnp.sum(y) * (1.0 / m)
    d = y - mean
    var = jnp.sum(d * d) * (1.0 / (m - 1))      # unbiased, matches torch .std() default
    inv = 1.0 / (jnp.sqrt(var) + LN_EPS)        # one scalar divide, then array multiply
    yn = gamma * (d * inv) + beta               # per-channel affine
    return jnp.where(yn >= 0, yn, LEAKY_SLOPE * yn)


def _disc_kernel(*refs):
    # refs = (a0, [w,b,gamma,beta] * 7, dense_w, dense_b, out)
    a0_ref = refs[0]
    o_ref = refs[-1]
    p = refs[1:-1]

    # ---- Block 0: input arrives already im2col'ed -> one matmul ----
    y = jnp.dot(a0_ref[...], p[0][...],
                preferred_element_type=jnp.float32) + p[1][...]
    y = _ln_leaky(y, p[2][...], p[3][...])

    # ---- Blocks 1..6: tap-accumulated matmuls over contiguous row windows ----
    for k, (taps, off, p_out) in enumerate(_TAP_CFG, start=1):
        w, b, g, be = p[4 * k], p[4 * k + 1], p[4 * k + 2], p[4 * k + 3]
        acc = None
        for t in range(taps):
            term = jnp.dot(y[t * off:t * off + p_out, :], w[t],
                           preferred_element_type=jnp.float32)
            acc = term if acc is None else acc + term
        y = _ln_leaky(acc + b[...], g[...], be[...])

    # ---- Final Linear(256, 1), fused into the same kernel ----
    o_ref[...] = jnp.dot(y, p[28][...],
                         preferred_element_type=jnp.float32) + p[29][...]


# ---------------- parameter / input preparation (wrapper-side, free-ish XLA) ----------------

def _prepare_params(params, dense_params):
    """Re-layout PyTorch-style weights into per-tap (T, Cin, Cout) matrices."""
    arrs = []
    for bi, ((w, b, gamma, beta), (cin, cout, (kh, kw), _s)) in enumerate(
            zip(params, BLOCK_CFG)):
        w = w.astype(jnp.float32)
        if bi == 0:
            wk = w.reshape(cout, kh * kw).T                   # (12, 16): K = j (cin == 1)
        elif kw == 1:                                         # conv along H
            wk = jnp.transpose(w[:, :, :, 0], (2, 1, 0))      # (kh, cin, cout)
        else:                                                 # conv along W
            wk = jnp.transpose(w[:, :, 0, :], (2, 1, 0))      # (kw, cin, cout)
        arrs += [wk,
                 b.reshape(1, cout).astype(jnp.float32),
                 gamma.reshape(1, cout).astype(jnp.float32),
                 beta.reshape(1, cout).astype(jnp.float32)]
    dw, db = dense_params
    arrs += [dw.T.astype(jnp.float32),                        # (256, 1)
             db.reshape(1, 1).astype(jnp.float32)]
    return arrs


def _full_spec(shape):
    nd = len(shape)
    return pl.BlockSpec(shape, lambda n, _nd=nd: (0,) * _nd)


def discriminator_forward(x_nchw, params, dense_params):
    N, C, H, W = x_nchw.shape
    assert (C, H, W) == (1, H_IN, W_IN), (C, H, W)

    # Input row permutation: h = ho4*48 + i4*12 + i1, w = wo*12 + j.
    # A0 rows ordered (i1, wo, i4, ho4), columns j -> block 0's im2col is free and
    # every later block's tap windows become contiguous row slices.
    x = x_nchw.reshape(N, H_IN, W_IN).astype(jnp.float32)
    x6 = x.reshape(N, 4, 4, 12, 6, 12)                        # (n, ho4, i4, i1, wo, j)
    a0 = jnp.transpose(x6, (0, 3, 4, 2, 1, 5)).reshape(N, 1152, 12)

    flat_inputs = [a0]
    in_specs = [pl.BlockSpec((None, 1152, 12), lambda n: (n, 0, 0))]
    for arr in _prepare_params(params, dense_params):
        flat_inputs.append(arr)
        in_specs.append(_full_spec(arr.shape))

    out = pl.pallas_call(
        _disc_kernel,
        out_shape=jax.ShapeDtypeStruct((N, 1, 1), jnp.float32),
        grid_spec=pltpu.PrefetchScalarGridSpec(
            num_scalar_prefetch=0,
            grid=(N,),
            in_specs=in_specs,
            out_specs=pl.BlockSpec((None, 1, 1), lambda n: (n, 0, 0)),
        ),
        compiler_params=pltpu.CompilerParams(
            dimension_semantics=("parallel",)),   # megacore sharding on v7x, neutral elsewhere
    )(*flat_inputs)
    return out.reshape(N, 1)


# ---------------- init + pure-JAX reference (for self-check) ----------------

def init_params(key):
    params = []
    for (cin, cout, k, _s) in BLOCK_CFG:
        key, k1, k2, k3 = jax.random.split(key, 4)
        fan_in = cin * k[0] * k[1]
        bound = 1.0 / (fan_in ** 0.5)
        w = jax.random.uniform(k1, (cout, cin, k[0], k[1]), jnp.float32, -bound, bound)
        b = jax.random.uniform(k2, (cout,), jnp.float32, -bound, bound)
        gamma = jax.random.uniform(k3, (cout,), jnp.float32, 0.0, 1.0)  # .uniform_()
        beta = jnp.zeros((cout,), jnp.float32)
        params.append((w, b, gamma, beta))
    key, k1, k2 = jax.random.split(key, 3)
    bound = 1.0 / (256 ** 0.5)
    dw = jax.random.uniform(k1, (1, 256), jnp.float32, -bound, bound)
    db = jax.random.uniform(k2, (1,), jnp.float32, -bound, bound)
    return params, (dw, db)


def _reference_forward(x_nchw, params, dense_params):
    x = x_nchw.astype(jnp.float32)
    for (w, b, gamma, beta), (cin, cout, k, s) in zip(params, BLOCK_CFG):
        x = jax.lax.conv_general_dilated(
            x, w.astype(jnp.float32), window_strides=s, padding="VALID",
            dimension_numbers=("NCHW", "OIHW", "NCHW"),
            precision=jax.lax.Precision.HIGHEST)
        x = x + b.reshape(1, cout, 1, 1)
        n = x.shape[0]
        flat = x.reshape(n, -1)
        mean = jnp.mean(flat, axis=1)
        var = jnp.sum((flat - mean[:, None]) ** 2, axis=1) / (flat.shape[1] - 1)
        std = jnp.sqrt(var)
        y = (x - mean.reshape(n, 1, 1, 1)) / (std.reshape(n, 1, 1, 1) + LN_EPS)
        y = gamma.reshape(1, cout, 1, 1) * y + beta.reshape(1, cout, 1, 1)
        x = jnp.where(y >= 0, y, LEAKY_SLOPE * y)
    dw, db = dense_params
    x = x.reshape(-1, 256)
    return jnp.dot(x, dw.T.astype(jnp.float32),
                   precision=jax.lax.Precision.HIGHEST) + db.astype(jnp.float32)


if __name__ == "__main__":
    key = jax.random.PRNGKey(0)
    kx, kp = jax.random.split(key)
    # minimal spatial input consistent with the conv stack: (N, 1, 192, 72) NCHW
    x = jax.random.normal(kx, (2, 1, H_IN, W_IN), jnp.float32)
    params, dense_params = init_params(kp)

    fwd = jax.jit(discriminator_forward)
    out = jax.block_until_ready(fwd(x, params, dense_params))
    assert out.shape == (2, 1), out.shape

    ref = jax.block_until_ready(_reference_forward(x, params, dense_params))
    np.testing.assert_allclose(np.asarray(out), np.asarray(ref), rtol=5e-2, atol=5e-2)
    print("KERNEL_OK")
</pallas_src>

<mosaic_0001>
module attributes {stable_mosaic.version = 11 : i64} {
  func.func @_disc_kernel(%arg0: i32, %arg1: memref<1x1152x12xf32, #tpu.memory_space<vmem>>, %arg2: memref<12x16xf32, #tpu.memory_space<vmem>>, %arg3: memref<1x16xf32, #tpu.memory_space<vmem>>, %arg4: memref<1x16xf32, #tpu.memory_space<vmem>>, %arg5: memref<1x16xf32, #tpu.memory_space<vmem>>, %arg6: memref<12x16x16xf32, #tpu.memory_space<vmem>>, %arg7: memref<1x16xf32, #tpu.memory_space<vmem>>, %arg8: memref<1x16xf32, #tpu.memory_space<vmem>>, %arg9: memref<1x16xf32, #tpu.memory_space<vmem>>, %arg10: memref<3x16x64xf32, #tpu.memory_space<vmem>>, %arg11: memref<1x64xf32, #tpu.memory_space<vmem>>, %arg12: memref<1x64xf32, #tpu.memory_space<vmem>>, %arg13: memref<1x64xf32, #tpu.memory_space<vmem>>, %arg14: memref<4x64x64xf32, #tpu.memory_space<vmem>>, %arg15: memref<1x64xf32, #tpu.memory_space<vmem>>, %arg16: memref<1x64xf32, #tpu.memory_space<vmem>>, %arg17: memref<1x64xf32, #tpu.memory_space<vmem>>, %arg18: memref<4x64x128xf32, #tpu.memory_space<vmem>>, %arg19: memref<1x128xf32, #tpu.memory_space<vmem>>, %arg20: memref<1x128xf32, #tpu.memory_space<vmem>>, %arg21: memref<1x128xf32, #tpu.memory_space<vmem>>, %arg22: memref<2x128x128xf32, #tpu.memory_space<vmem>>, %arg23: memref<1x128xf32, #tpu.memory_space<vmem>>, %arg24: memref<1x128xf32, #tpu.memory_space<vmem>>, %arg25: memref<1x128xf32, #tpu.memory_space<vmem>>, %arg26: memref<3x128x256xf32, #tpu.memory_space<vmem>>, %arg27: memref<1x256xf32, #tpu.memory_space<vmem>>, %arg28: memref<1x256xf32, #tpu.memory_space<vmem>>, %arg29: memref<1x256xf32, #tpu.memory_space<vmem>>, %arg30: memref<256x1xf32, #tpu.memory_space<vmem>>, %arg31: memref<1x1xf32, #tpu.memory_space<vmem>>, %arg32: memref<1x1x1xf32, #tpu.memory_space<vmem>>) attributes {dimension_semantics = [#tpu.dimension_semantics<parallel>], iteration_bounds = array<i64: 2>, scalar_prefetch = 0 : i64, scratch_operands = 0 : i64, tpu.core_type = #tpu.core_type<tc>, window_params = [{transform_indices = @transform_0, window_bounds = array<i64: 1, 1152, 12>}, {pipeline_mode = #tpu.pipeline_mode<synchronous>, transform_indices = @transform_1, window_bounds = array<i64: 12, 16>}, {pipeline_mode = #tpu.pipeline_mode<synchronous>, transform_indices = @transform_2, window_bounds = array<i64: 1, 16>}, {pipeline_mode = #tpu.pipeline_mode<synchronous>, transform_indices = @transform_3, window_bounds = array<i64: 1, 16>}, {pipeline_mode = #tpu.pipeline_mode<synchronous>, transform_indices = @transform_4, window_bounds = array<i64: 1, 16>}, {pipeline_mode = #tpu.pipeline_mode<synchronous>, transform_indices = @transform_5, window_bounds = array<i64: 12, 16, 16>}, {pipeline_mode = #tpu.pipeline_mode<synchronous>, transform_indices = @transform_6, window_bounds = array<i64: 1, 16>}, {pipeline_mode = #tpu.pipeline_mode<synchronous>, transform_indices = @transform_7, window_bounds = array<i64: 1, 16>}, {pipeline_mode = #tpu.pipeline_mode<synchronous>, transform_indices = @transform_8, window_bounds = array<i64: 1, 16>}, {pipeline_mode = #tpu.pipeline_mode<synchronous>, transform_indices = @transform_9, window_bounds = array<i64: 3, 16, 64>}, {pipeline_mode = #tpu.pipeline_mode<synchronous>, transform_indices = @transform_10, window_bounds = array<i64: 1, 64>}, {pipeline_mode = #tpu.pipeline_mode<synchronous>, transform_indices = @transform_11, window_bounds = array<i64: 1, 64>}, {pipeline_mode = #tpu.pipeline_mode<synchronous>, transform_indices = @transform_12, window_bounds = array<i64: 1, 64>}, {pipeline_mode = #tpu.pipeline_mode<synchronous>, transform_indices = @transform_13, window_bounds = array<i64: 4, 64, 64>}, {pipeline_mode = #tpu.pipeline_mode<synchronous>, transform_indices = @transform_14, window_bounds = array<i64: 1, 64>}, {pipeline_mode = #tpu.pipeline_mode<synchronous>, transform_indices = @transform_15, window_bounds = array<i64: 1, 64>}, {pipeline_mode = #tpu.pipeline_mode<synchronous>, transform_indices = @transform_16, window_bounds = array<i64: 1, 64>}, {pipeline_mode = #tpu.pipeline_mode<synchronous>, transform_indices = @transform_17, window_bounds = array<i64: 4, 64, 128>}, {pipeline_mode = #tpu.pipeline_mode<synchronous>, transform_indices = @transform_18, window_bounds = array<i64: 1, 128>}, {pipeline_mode = #tpu.pipeline_mode<synchronous>, transform_indices = @transform_19, window_bounds = array<i64: 1, 128>}, {pipeline_mode = #tpu.pipeline_mode<synchronous>, transform_indices = @transform_20, window_bounds = array<i64: 1, 128>}, {pipeline_mode = #tpu.pipeline_mode<synchronous>, transform_indices = @transform_21, window_bounds = array<i64: 2, 128, 128>}, {pipeline_mode = #tpu.pipeline_mode<synchronous>, transform_indices = @transform_22, window_bounds = array<i64: 1, 128>}, {pipeline_mode = #tpu.pipeline_mode<synchronous>, transform_indices = @transform_23, window_bounds = array<i64: 1, 128>}, {pipeline_mode = #tpu.pipeline_mode<synchronous>, transform_indices = @transform_24, window_bounds = array<i64: 1, 128>}, {pipeline_mode = #tpu.pipeline_mode<synchronous>, transform_indices = @transform_25, window_bounds = array<i64: 3, 128, 256>}, {pipeline_mode = #tpu.pipeline_mode<synchronous>, transform_indices = @transform_26, window_bounds = array<i64: 1, 256>}, {pipeline_mode = #tpu.pipeline_mode<synchronous>, transform_indices = @transform_27, window_bounds = array<i64: 1, 256>}, {pipeline_mode = #tpu.pipeline_mode<synchronous>, transform_indices = @transform_28, window_bounds = array<i64: 1, 256>}, {pipeline_mode = #tpu.pipeline_mode<synchronous>, transform_indices = @transform_29, window_bounds = array<i64: 256, 1>}, {pipeline_mode = #tpu.pipeline_mode<synchronous>, transform_indices = @transform_30, window_bounds = array<i64: 1, 1>}, {transform_indices = @transform_31, window_bounds = array<i64: 1, 1, 1>}]} {
    %c0 = arith.constant 0 : index
    %c0_0 = arith.constant 0 : index
    %c0_1 = arith.constant 0 : index
    %0 = vector.load %arg1[%c0, %c0_0, %c0_1] : memref<1x1152x12xf32, #tpu.memory_space<vmem>>, vector<1x1152x12xf32>
    %1 = vector.shape_cast %0 : vector<1x1152x12xf32> to vector<1152x12xf32>
    %c0_2 = arith.constant 0 : index
    %c0_3 = arith.constant 0 : index
    %2 = vector.load %arg2[%c0_2, %c0_3] : memref<12x16xf32, #tpu.memory_space<vmem>>, vector<12x16xf32>
    %cst = arith.constant dense<0.000000e+00> : vector<1152x16xf32>
    %3 = tpu.matmul %1, %2, %cst {dimension_numbers = #tpu.dot_dimension_numbers<[1], [0], [0], [1], [0, 0, 1, 1], [], []>} : vector<1152x12xf32>, vector<12x16xf32>, vector<1152x16xf32> -> vector<1152x16xf32>
    %c0_4 = arith.constant 0 : index
    %c0_5 = arith.constant 0 : index
    %4 = vector.load %arg3[%c0_4, %c0_5] : memref<1x16xf32, #tpu.memory_space<vmem>>, vector<1x16xf32>
    %5 = vector.broadcast %4 : vector<1x16xf32> to vector<1152x16xf32>
    %6 = arith.addf %3, %5 : vector<1152x16xf32>
    %c0_6 = arith.constant 0 : index
    %c0_7 = arith.constant 0 : index
    %7 = vector.load %arg4[%c0_6, %c0_7] : memref<1x16xf32, #tpu.memory_space<vmem>>, vector<1x16xf32>
    %c0_8 = arith.constant 0 : index
    %c0_9 = arith.constant 0 : index
    %8 = vector.load %arg5[%c0_8, %c0_9] : memref<1x16xf32, #tpu.memory_space<vmem>>, vector<1x16xf32>
    %9 = vector.shape_cast %6 : vector<1152x16xf32> to vector<1x1152x16xf32>
    %cst_10 = arith.constant dense<0.000000e+00> : vector<1xf32>
    %10 = vector.multi_reduction <add>, %9, %cst_10 [1, 2] : vector<1x1152x16xf32> to vector<1xf32>
    %11 = vector.shape_cast %10 : vector<1xf32> to vector<1x1x1xf32>
    %12 = vector.extract %11[0, 0, 0] : f32 from vector<1x1x1xf32>
    %cst_11 = arith.constant 5.42534726E-5 : f32
    %13 = arith.mulf %12, %cst_11 : f32
    %14 = vector.broadcast %13 : f32 to vector<1152x16xf32>
    %15 = arith.subf %6, %14 : vector<1152x16xf32>
    %16 = arith.mulf %15, %15 : vector<1152x16xf32>
    %17 = vector.shape_cast %16 : vector<1152x16xf32> to vector<1x1152x16xf32>
    %cst_12 = arith.constant dense<0.000000e+00> : vector<1xf32>
    %18 = vector.multi_reduction <add>, %17, %cst_12 [1, 2] : vector<1x1152x16xf32> to vector<1xf32>
    %19 = vector.shape_cast %18 : vector<1xf32> to vector<1x1x1xf32>
    %20 = vector.extract %19[0, 0, 0] : f32 from vector<1x1x1xf32>
    %cst_13 = arith.constant 5.42564158E-5 : f32
    %21 = arith.mulf %20, %cst_13 : f32
    %22 = math.sqrt %21 : f32
    %cst_14 = arith.constant 9.99999974E-6 : f32
    %23 = arith.addf %22, %cst_14 : f32
    %cst_15 = arith.constant 1.000000e+00 : f32
    %24 = arith.divf %cst_15, %23 : f32
    %25 = vector.broadcast %24 : f32 to vector<1152x16xf32>
    %26 = arith.mulf %15, %25 : vector<1152x16xf32>
    %27 = vector.broadcast %7 : vector<1x16xf32> to vector<1152x16xf32>
    %28 = arith.mulf %27, %26 : vector<1152x16xf32>
    %29 = vector.broadcast %8 : vector<1x16xf32> to vector<1152x16xf32>
    %30 = arith.addf %28, %29 : vector<1152x16xf32>
    %cst_16 = arith.constant 0.000000e+00 : f32
    %31 = vector.broadcast %cst_16 : f32 to vector<1152x16xf32>
    %32 = arith.cmpf oge, %30, %31 : vector<1152x16xf32>
    %cst_17 = arith.constant 0.00999999977 : f32
    %33 = vector.broadcast %cst_17 : f32 to vector<1152x16xf32>
    %34 = arith.mulf %33, %30 : vector<1152x16xf32>
    %35 = arith.select %32, %30, %34 : vector<1152x16xi1>, vector<1152x16xf32>
    %36 = vector.extract_strided_slice %35 {offsets = [0, 0], sizes = [96, 16], strides = [1, 1]} : vector<1152x16xf32> to vector<96x16xf32>
    %c0_18 = arith.constant 0 : index
    %c0_19 = arith.constant 0 : index
    %c0_20 = arith.constant 0 : index
    %37 = vector.load %arg6[%c0_18, %c0_19, %c0_20] : memref<12x16x16xf32, #tpu.memory_space<vmem>>, vector<1x16x16xf32>
    %38 = vector.shape_cast %37 : vector<1x16x16xf32> to vector<16x16xf32>
    %cst_21 = arith.constant dense<0.000000e+00> : vector<96x16xf32>
    %39 = tpu.matmul %36, %38, %cst_21 {dimension_numbers = #tpu.dot_dimension_numbers<[1], [0], [0], [1], [0, 0, 1, 1], [], []>} : vector<96x16xf32>, vector<16x16xf32>, vector<96x16xf32> -> vector<96x16xf32>
    %40 = vector.extract_strided_slice %35 {offsets = [96, 0], sizes = [96, 16], strides = [1, 1]} : vector<1152x16xf32> to vector<96x16xf32>
    %c1 = arith.constant 1 : index
    %c0_22 = arith.constant 0 : index
    %c0_23 = arith.constant 0 : index
    %41 = vector.load %arg6[%c1, %c0_22, %c0_23] : memref<12x16x16xf32, #tpu.memory_space<vmem>>, vector<1x16x16xf32>
    %42 = vector.shape_cast %41 : vector<1x16x16xf32> to vector<16x16xf32>
    %cst_24 = arith.constant dense<0.000000e+00> : vector<96x16xf32>
    %43 = tpu.matmul %40, %42, %cst_24 {dimension_numbers = #tpu.dot_dimension_numbers<[1], [0], [0], [1], [0, 0, 1, 1], [], []>} : vector<96x16xf32>, vector<16x16xf32>, vector<96x16xf32> -> vector<96x16xf32>
    %44 = arith.addf %39, %43 : vector<96x16xf32>
    %45 = vector.extract_strided_slice %35 {offsets = [192, 0], sizes = [96, 16], strides = [1, 1]} : vector<1152x16xf32> to vector<96x16xf32>
    %c2 = arith.constant 2 : index
    %c0_25 = arith.constant 0 : index
    %c0_26 = arith.constant 0 : index
    %46 = vector.load %arg6[%c2, %c0_25, %c0_26] : memref<12x16x16xf32, #tpu.memory_space<vmem>>, vector<1x16x16xf32>
    %47 = vector.shape_cast %46 : vector<1x16x16xf32> to vector<16x16xf32>
    %cst_27 = arith.constant dense<0.000000e+00> : vector<96x16xf32>
    %48 = tpu.matmul %45, %47, %cst_27 {dimension_numbers = #tpu.dot_dimension_numbers<[1], [0], [0], [1], [0, 0, 1, 1], [], []>} : vector<96x16xf32>, vector<16x16xf32>, vector<96x16xf32> -> vector<96x16xf32>
    %49 = arith.addf %44, %48 : vector<96x16xf32>
    %50 = vector.extract_strided_slice %35 {offsets = [288, 0], sizes = [96, 16], strides = [1, 1]} : vector<1152x16xf32> to vector<96x16xf32>
    %c3 = arith.constant 3 : index
    %c0_28 = arith.constant 0 : index
    %c0_29 = arith.constant 0 : index
    %51 = vector.load %arg6[%c3, %c0_28, %c0_29] : memref<12x16x16xf32, #tpu.memory_space<vmem>>, vector<1x16x16xf32>
    %52 = vector.shape_cast %51 : vector<1x16x16xf32> to vector<16x16xf32>
    %cst_30 = arith.constant dense<0.000000e+00> : vector<96x16xf32>
    %53 = tpu.matmul %50, %52, %cst_30 {dimension_numbers = #tpu.dot_dimension_numbers<[1], [0], [0], [1], [0, 0, 1, 1], [], []>} : vector<96x16xf32>, vector<16x16xf32>, vector<96x16xf32> -> vector<96x16xf32>
    %54 = arith.addf %49, %53 : vector<96x16xf32>
    %55 = vector.extract_strided_slice %35 {offsets = [384, 0], sizes = [96, 16], strides = [1, 1]} : vector<1152x16xf32> to vector<96x16xf32>
    %c4 = arith.constant 4 : index
    %c0_31 = arith.constant 0 : index
    %c0_32 = arith.constant 0 : index
    %56 = vector.load %arg6[%c4, %c0_31, %c0_32] : memref<12x16x16xf32, #tpu.memory_space<vmem>>, vector<1x16x16xf32>
    %57 = vector.shape_cast %56 : vector<1x16x16xf32> to vector<16x16xf32>
    %cst_33 = arith.constant dense<0.000000e+00> : vector<96x16xf32>
    %58 = tpu.matmul %55, %57, %cst_33 {dimension_numbers = #tpu.dot_dimension_numbers<[1], [0], [0], [1], [0, 0, 1, 1], [], []>} : vector<96x16xf32>, vector<16x16xf32>, vector<96x16xf32> -> vector<96x16xf32>
    %59 = arith.addf %54, %58 : vector<96x16xf32>
    %60 = vector.extract_strided_slice %35 {offsets = [480, 0], sizes = [96, 16], strides = [1, 1]} : vector<1152x16xf32> to vector<96x16xf32>
    %c5 = arith.constant 5 : index
    %c0_34 = arith.constant 0 : index
    %c0_35 = arith.constant 0 : index
    %61 = vector.load %arg6[%c5, %c0_34, %c0_35] : memref<12x16x16xf32, #tpu.memory_space<vmem>>, vector<1x16x16xf32>
    %62 = vector.shape_cast %61 : vector<1x16x16xf32> to vector<16x16xf32>
    %cst_36 = arith.constant dense<0.000000e+00> : vector<96x16xf32>
    %63 = tpu.matmul %60, %62, %cst_36 {dimension_numbers = #tpu.dot_dimension_numbers<[1], [0], [0], [1], [0, 0, 1, 1], [], []>} : vector<96x16xf32>, vector<16x16xf32>, vector<96x16xf32> -> vector<96x16xf32>
    %64 = arith.addf %59, %63 : vector<96x16xf32>
    %65 = vector.extract_strided_slice %35 {offsets = [576, 0], sizes = [96, 16], strides = [1, 1]} : vector<1152x16xf32> to vector<96x16xf32>
    %c6 = arith.constant 6 : index
    %c0_37 = arith.constant 0 : index
    %c0_38 = arith.constant 0 : index
    %66 = vector.load %arg6[%c6, %c0_37, %c0_38] : memref<12x16x16xf32, #tpu.memory_space<vmem>>, vector<1x16x16xf32>
    %67 = vector.shape_cast %66 : vector<1x16x16xf32> to vector<16x16xf32>
    %cst_39 = arith.constant dense<0.000000e+00> : vector<96x16xf32>
    %68 = tpu.matmul %65, %67, %cst_39 {dimension_numbers = #tpu.dot_dimension_numbers<[1], [0], [0], [1], [0, 0, 1, 1], [], []>} : vector<96x16xf32>, vector<16x16xf32>, vector<96x16xf32> -> vector<96x16xf32>
    %69 = arith.addf %64, %68 : vector<96x16xf32>
    %70 = vector.extract_strided_slice %35 {offsets = [672, 0], sizes = [96, 16], strides = [1, 1]} : vector<1152x16xf32> to vector<96x16xf32>
    %c7 = arith.constant 7 : index
    %c0_40 = arith.constant 0 : index
    %c0_41 = arith.constant 0 : index
    %71 = vector.load %arg6[%c7, %c0_40, %c0_41] : memref<12x16x16xf32, #tpu.memory_space<vmem>>, vector<1x16x16xf32>
    %72 = vector.shape_cast %71 : vector<1x16x16xf32> to vector<16x16xf32>
    %cst_42 = arith.constant dense<0.000000e+00> : vector<96x16xf32>
    %73 = tpu.matmul %70, %72, %cst_42 {dimension_numbers = #tpu.dot_dimension_numbers<[1], [0], [0], [1], [0, 0, 1, 1], [], []>} : vector<96x16xf32>, vector<16x16xf32>, vector<96x16xf32> -> vector<96x16xf32>
    %74 = arith.addf %69, %73 : vector<96x16xf32>
    %75 = vector.extract_strided_slice %35 {offsets = [768, 0], sizes = [96, 16], strides = [1, 1]} : vector<1152x16xf32> to vector<96x16xf32>
    %c8 = arith.constant 8 : index
    %c0_43 = arith.constant 0 : index
    %c0_44 = arith.constant 0 : index
    %76 = vector.load %arg6[%c8, %c0_43, %c0_44] : memref<12x16x16xf32, #tpu.memory_space<vmem>>, vector<1x16x16xf32>
    %77 = vector.shape_cast %76 : vector<1x16x16xf32> to vector<16x16xf32>
    %cst_45 = arith.constant dense<0.000000e+00> : vector<96x16xf32>
    %78 = tpu.matmul %75, %77, %cst_45 {dimension_numbers = #tpu.dot_dimension_numbers<[1], [0], [0], [1], [0, 0, 1, 1], [], []>} : vector<96x16xf32>, vector<16x16xf32>, vector<96x16xf32> -> vector<96x16xf32>
    %79 = arith.addf %74, %78 : vector<96x16xf32>
    %80 = vector.extract_strided_slice %35 {offsets = [864, 0], sizes = [96, 16], strides = [1, 1]} : vector<1152x16xf32> to vector<96x16xf32>
    %c9 = arith.constant 9 : index
    %c0_46 = arith.constant 0 : index
    %c0_47 = arith.constant 0 : index
    %81 = vector.load %arg6[%c9, %c0_46, %c0_47] : memref<12x16x16xf32, #tpu.memory_space<vmem>>, vector<1x16x16xf32>
    %82 = vector.shape_cast %81 : vector<1x16x16xf32> to vector<16x16xf32>
    %cst_48 = arith.constant dense<0.000000e+00> : vector<96x16xf32>
    %83 = tpu.matmul %80, %82, %cst_48 {dimension_numbers = #tpu.dot_dimension_numbers<[1], [0], [0], [1], [0, 0, 1, 1], [], []>} : vector<96x16xf32>, vector<16x16xf32>, vector<96x16xf32> -> vector<96x16xf32>
    %84 = arith.addf %79, %83 : vector<96x16xf32>
    %85 = vector.extract_strided_slice %35 {offsets = [960, 0], sizes = [96, 16], strides = [1, 1]} : vector<1152x16xf32> to vector<96x16xf32>
    %c10 = arith.constant 10 : index
    %c0_49 = arith.constant 0 : index
    %c0_50 = arith.constant 0 : index
    %86 = vector.load %arg6[%c10, %c0_49, %c0_50] : memref<12x16x16xf32, #tpu.memory_space<vmem>>, vector<1x16x16xf32>
    %87 = vector.shape_cast %86 : vector<1x16x16xf32> to vector<16x16xf32>
    %cst_51 = arith.constant dense<0.000000e+00> : vector<96x16xf32>
    %88 = tpu.matmul %85, %87, %cst_51 {dimension_numbers = #tpu.dot_dimension_numbers<[1], [0], [0], [1], [0, 0, 1, 1], [], []>} : vector<96x16xf32>, vector<16x16xf32>, vector<96x16xf32> -> vector<96x16xf32>
    %89 = arith.addf %84, %88 : vector<96x16xf32>
    %90 = vector.extract_strided_slice %35 {offsets = [1056, 0], sizes = [96, 16], strides = [1, 1]} : vector<1152x16xf32> to vector<96x16xf32>
    %c11 = arith.constant 11 : index
    %c0_52 = arith.constant 0 : index
    %c0_53 = arith.constant 0 : index
    %91 = vector.load %arg6[%c11, %c0_52, %c0_53] : memref<12x16x16xf32, #tpu.memory_space<vmem>>, vector<1x16x16xf32>
    %92 = vector.shape_cast %91 : vector<1x16x16xf32> to vector<16x16xf32>
    %cst_54 = arith.constant dense<0.000000e+00> : vector<96x16xf32>
    %93 = tpu.matmul %90, %92, %cst_54 {dimension_numbers = #tpu.dot_dimension_numbers<[1], [0], [0], [1], [0, 0, 1, 1], [], []>} : vector<96x16xf32>, vector<16x16xf32>, vector<96x16xf32> -> vector<96x16xf32>
    %94 = arith.addf %89, %93 : vector<96x16xf32>
    %c0_55 = arith.constant 0 : index
    %c0_56 = arith.constant 0 : index
    %95 = vector.load %arg7[%c0_55, %c0_56] : memref<1x16xf32, #tpu.memory_space<vmem>>, vector<1x16xf32>
    %96 = vector.broadcast %95 : vector<1x16xf32> to vector<96x16xf32>
    %97 = arith.addf %94, %96 : vector<96x16xf32>
    %c0_57 = arith.constant 0 : index
    %c0_58 = arith.constant 0 : index
    %98 = vector.load %arg8[%c0_57, %c0_58] : memref<1x16xf32, #tpu.memory_space<vmem>>, vector<1x16xf32>
    %c0_59 = arith.constant 0 : index
    %c0_60 = arith.constant 0 : index
    %99 = vector.load %arg9[%c0_59, %c0_60] : memref<1x16xf32, #tpu.memory_space<vmem>>, vector<1x16xf32>
    %100 = vector.shape_cast %97 : vector<96x16xf32> to vector<1x96x16xf32>
    %cst_61 = arith.constant dense<0.000000e+00> : vector<1xf32>
    %101 = vector.multi_reduction <add>, %100, %cst_61 [1, 2] : vector<1x96x16xf32> to vector<1xf32>
    %102 = vector.shape_cast %101 : vector<1xf32> to vector<1x1x1xf32>
    %103 = vector.extract %102[0, 0, 0] : f32 from vector<1x1x1xf32>
    %cst_62 = arith.constant 6.51041686E-4 : f32
    %104 = arith.mulf %103, %cst_62 : f32
    %105 = vector.broadcast %104 : f32 to vector<96x16xf32>
    %106 = arith.subf %97, %105 : vector<96x16xf32>
    %107 = arith.mulf %106, %106 : vector<96x16xf32>
    %108 = vector.shape_cast %107 : vector<96x16xf32> to vector<1x96x16xf32>
    %cst_63 = arith.constant dense<0.000000e+00> : vector<1xf32>
    %109 = vector.multi_reduction <add>, %108, %cst_63 [1, 2] : vector<1x96x16xf32> to vector<1xf32>
    %110 = vector.shape_cast %109 : vector<1xf32> to vector<1x1x1xf32>
    %111 = vector.extract %110[0, 0, 0] : f32 from vector<1x1x1xf32>
    %cst_64 = arith.constant 6.51465787E-4 : f32
    %112 = arith.mulf %111, %cst_64 : f32
    %113 = math.sqrt %112 : f32
    %cst_65 = arith.constant 9.99999974E-6 : f32
    %114 = arith.addf %113, %cst_65 : f32
    %cst_66 = arith.constant 1.000000e+00 : f32
    %115 = arith.divf %cst_66, %114 : f32
    %116 = vector.broadcast %115 : f32 to vector<96x16xf32>
    %117 = arith.mulf %106, %116 : vector<96x16xf32>
    %118 = vector.broadcast %98 : vector<1x16xf32> to vector<96x16xf32>
    %119 = arith.mulf %118, %117 : vector<96x16xf32>
    %120 = vector.broadcast %99 : vector<1x16xf32> to vector<96x16xf32>
    %121 = arith.addf %119, %120 : vector<96x16xf32>
    %cst_67 = arith.constant 0.000000e+00 : f32
    %122 = vector.broadcast %cst_67 : f32 to vector<96x16xf32>
    %123 = arith.cmpf oge, %121, %122 : vector<96x16xf32>
    %cst_68 = arith.constant 0.00999999977 : f32
    %124 = vector.broadcast %cst_68 : f32 to vector<96x16xf32>
    %125 = arith.mulf %124, %121 : vector<96x16xf32>
    %126 = arith.select %123, %121, %125 : vector<96x16xi1>, vector<96x16xf32>
    %127 = vector.extract_strided_slice %126 {offsets = [0, 0], sizes = [64, 16], strides = [1, 1]} : vector<96x16xf32> to vector<64x16xf32>
    %c0_69 = arith.constant 0 : index
    %c0_70 = arith.constant 0 : index
    %c0_71 = arith.constant 0 : index
    %128 = vector.load %arg10[%c0_69, %c0_70, %c0_71] : memref<3x16x64xf32, #tpu.memory_space<vmem>>, vector<1x16x64xf32>
    %129 = vector.shape_cast %128 : vector<1x16x64xf32> to vector<16x64xf32>
    %cst_72 = arith.constant dense<0.000000e+00> : vector<64x64xf32>
    %130 = tpu.matmul %127, %129, %cst_72 {dimension_numbers = #tpu.dot_dimension_numbers<[1], [0], [0], [1], [0, 0, 1, 1], [], []>} : vector<64x16xf32>, vector<16x64xf32>, vector<64x64xf32> -> vector<64x64xf32>
    %131 = vector.extract_strided_slice %126 {offsets = [16, 0], sizes = [64, 16], strides = [1, 1]} : vector<96x16xf32> to vector<64x16xf32>
    %c1_73 = arith.constant 1 : index
    %c0_74 = arith.constant 0 : index
    %c0_75 = arith.constant 0 : index
    %132 = vector.load %arg10[%c1_73, %c0_74, %c0_75] : memref<3x16x64xf32, #tpu.memory_space<vmem>>, vector<1x16x64xf32>
    %133 = vector.shape_cast %132 : vector<1x16x64xf32> to vector<16x64xf32>
    %cst_76 = arith.constant dense<0.000000e+00> : vector<64x64xf32>
    %134 = tpu.matmul %131, %133, %cst_76 {dimension_numbers = #tpu.dot_dimension_numbers<[1], [0], [0], [1], [0, 0, 1, 1], [], []>} : vector<64x16xf32>, vector<16x64xf32>, vector<64x64xf32> -> vector<64x64xf32>
    %135 = arith.addf %130, %134 : vector<64x64xf32>
    %136 = vector.extract_strided_slice %126 {offsets = [32, 0], sizes = [64, 16], strides = [1, 1]} : vector<96x16xf32> to vector<64x16xf32>
    %c2_77 = arith.constant 2 : index
    %c0_78 = arith.constant 0 : index
    %c0_79 = arith.constant 0 : index
    %137 = vector.load %arg10[%c2_77, %c0_78, %c0_79] : memref<3x16x64xf32, #tpu.memory_space<vmem>>, vector<1x16x64xf32>
    %138 = vector.shape_cast %137 : vector<1x16x64xf32> to vector<16x64xf32>
    %cst_80 = arith.constant dense<0.000000e+00> : vector<64x64xf32>
    %139 = tpu.matmul %136, %138, %cst_80 {dimension_numbers = #tpu.dot_dimension_numbers<[1], [0], [0], [1], [0, 0, 1, 1], [], []>} : vector<64x16xf32>, vector<16x64xf32>, vector<64x64xf32> -> vector<64x64xf32>
    %140 = arith.addf %135, %139 : vector<64x64xf32>
    %c0_81 = arith.constant 0 : index
    %c0_82 = arith.constant 0 : index
    %141 = vector.load %arg11[%c0_81, %c0_82] : memref<1x64xf32, #tpu.memory_space<vmem>>, vector<1x64xf32>
    %142 = vector.broadcast %141 : vector<1x64xf32> to vector<64x64xf32>
    %143 = arith.addf %140, %142 : vector<64x64xf32>
    %c0_83 = arith.constant 0 : index
    %c0_84 = arith.constant 0 : index
    %144 = vector.load %arg12[%c0_83, %c0_84] : memref<1x64xf32, #tpu.memory_space<vmem>>, vector<1x64xf32>
    %c0_85 = arith.constant 0 : index
    %c0_86 = arith.constant 0 : index
    %145 = vector.load %arg13[%c0_85, %c0_86] : memref<1x64xf32, #tpu.memory_space<vmem>>, vector<1x64xf32>
    %146 = vector.shape_cast %143 : vector<64x64xf32> to vector<1x64x64xf32>
    %cst_87 = arith.constant dense<0.000000e+00> : vector<1xf32>
    %147 = vector.multi_reduction <add>, %146, %cst_87 [1, 2] : vector<1x64x64xf32> to vector<1xf32>
    %148 = vector.shape_cast %147 : vector<1xf32> to vector<1x1x1xf32>
    %149 = vector.extract %148[0, 0, 0] : f32 from vector<1x1x1xf32>
    %cst_88 = arith.constant 2.44140625E-4 : f32
    %150 = arith.mulf %149, %cst_88 : f32
    %151 = vector.broadcast %150 : f32 to vector<64x64xf32>
    %152 = arith.subf %143, %151 : vector<64x64xf32>
    %153 = arith.mulf %152, %152 : vector<64x64xf32>
    %154 = vector.shape_cast %153 : vector<64x64xf32> to vector<1x64x64xf32>
    %cst_89 = arith.constant dense<0.000000e+00> : vector<1xf32>
    %155 = vector.multi_reduction <add>, %154, %cst_89 [1, 2] : vector<1x64x64xf32> to vector<1xf32>
    %156 = vector.shape_cast %155 : vector<1xf32> to vector<1x1x1xf32>
    %157 = vector.extract %156[0, 0, 0] : f32 from vector<1x1x1xf32>
    %cst_90 = arith.constant 2.44200259E-4 : f32
    %158 = arith.mulf %157, %cst_90 : f32
    %159 = math.sqrt %158 : f32
    %cst_91 = arith.constant 9.99999974E-6 : f32
    %160 = arith.addf %159, %cst_91 : f32
    %cst_92 = arith.constant 1.000000e+00 : f32
    %161 = arith.divf %cst_92, %160 : f32
    %162 = vector.broadcast %161 : f32 to vector<64x64xf32>
    %163 = arith.mulf %152, %162 : vector<64x64xf32>
    %164 = vector.broadcast %144 : vector<1x64xf32> to vector<64x64xf32>
    %165 = arith.mulf %164, %163 : vector<64x64xf32>
    %166 = vector.broadcast %145 : vector<1x64xf32> to vector<64x64xf32>
    %167 = arith.addf %165, %166 : vector<64x64xf32>
    %cst_93 = arith.constant 0.000000e+00 : f32
    %168 = vector.broadcast %cst_93 : f32 to vector<64x64xf32>
    %169 = arith.cmpf oge, %167, %168 : vector<64x64xf32>
    %cst_94 = arith.constant 0.00999999977 : f32
    %170 = vector.broadcast %cst_94 : f32 to vector<64x64xf32>
    %171 = arith.mulf %170, %167 : vector<64x64xf32>
    %172 = arith.select %169, %167, %171 : vector<64x64xi1>, vector<64x64xf32>
    %173 = vector.extract_strided_slice %172 {offsets = [0, 0], sizes = [16, 64], strides = [1, 1]} : vector<64x64xf32> to vector<16x64xf32>
    %c0_95 = arith.constant 0 : index
    %c0_96 = arith.constant 0 : index
    %c0_97 = arith.constant 0 : index
    %174 = vector.load %arg14[%c0_95, %c0_96, %c0_97] : memref<4x64x64xf32, #tpu.memory_space<vmem>>, vector<1x64x64xf32>
    %175 = vector.shape_cast %174 : vector<1x64x64xf32> to vector<64x64xf32>
    %cst_98 = arith.constant dense<0.000000e+00> : vector<16x64xf32>
    %176 = tpu.matmul %173, %175, %cst_98 {dimension_numbers = #tpu.dot_dimension_numbers<[1], [0], [0], [1], [0, 0, 1, 1], [], []>} : vector<16x64xf32>, vector<64x64xf32>, vector<16x64xf32> -> vector<16x64xf32>
    %177 = vector.extract_strided_slice %172 {offsets = [16, 0], sizes = [16, 64], strides = [1, 1]} : vector<64x64xf32> to vector<16x64xf32>
    %c1_99 = arith.constant 1 : index
    %c0_100 = arith.constant 0 : index
    %c0_101 = arith.constant 0 : index
    %178 = vector.load %arg14[%c1_99, %c0_100, %c0_101] : memref<4x64x64xf32, #tpu.memory_space<vmem>>, vector<1x64x64xf32>
    %179 = vector.shape_cast %178 : vector<1x64x64xf32> to vector<64x64xf32>
    %cst_102 = arith.constant dense<0.000000e+00> : vector<16x64xf32>
    %180 = tpu.matmul %177, %179, %cst_102 {dimension_numbers = #tpu.dot_dimension_numbers<[1], [0], [0], [1], [0, 0, 1, 1], [], []>} : vector<16x64xf32>, vector<64x64xf32>, vector<16x64xf32> -> vector<16x64xf32>
    %181 = arith.addf %176, %180 : vector<16x64xf32>
    %182 = vector.extract_strided_slice %172 {offsets = [32, 0], sizes = [16, 64], strides = [1, 1]} : vector<64x64xf32> to vector<16x64xf32>
    %c2_103 = arith.constant 2 : index
    %c0_104 = arith.constant 0 : index
    %c0_105 = arith.constant 0 : index
    %183 = vector.load %arg14[%c2_103, %c0_104, %c0_105] : memref<4x64x64xf32, #tpu.memory_space<vmem>>, vector<1x64x64xf32>
    %184 = vector.shape_cast %183 : vector<1x64x64xf32> to vector<64x64xf32>
    %cst_106 = arith.constant dense<0.000000e+00> : vector<16x64xf32>
    %185 = tpu.matmul %182, %184, %cst_106 {dimension_numbers = #tpu.dot_dimension_numbers<[1], [0], [0], [1], [0, 0, 1, 1], [], []>} : vector<16x64xf32>, vector<64x64xf32>, vector<16x64xf32> -> vector<16x64xf32>
    %186 = arith.addf %181, %185 : vector<16x64xf32>
    %187 = vector.extract_strided_slice %172 {offsets = [48, 0], sizes = [16, 64], strides = [1, 1]} : vector<64x64xf32> to vector<16x64xf32>
    %c3_107 = arith.constant 3 : index
    %c0_108 = arith.constant 0 : index
    %c0_109 = arith.constant 0 : index
    %188 = vector.load %arg14[%c3_107, %c0_108, %c0_109] : memref<4x64x64xf32, #tpu.memory_space<vmem>>, vector<1x64x64xf32>
    %189 = vector.shape_cast %188 : vector<1x64x64xf32> to vector<64x64xf32>
    %cst_110 = arith.constant dense<0.000000e+00> : vector<16x64xf32>
    %190 = tpu.matmul %187, %189, %cst_110 {dimension_numbers = #tpu.dot_dimension_numbers<[1], [0], [0], [1], [0, 0, 1, 1], [], []>} : vector<16x64xf32>, vector<64x64xf32>, vector<16x64xf32> -> vector<16x64xf32>
    %191 = arith.addf %186, %190 : vector<16x64xf32>
    %c0_111 = arith.constant 0 : index
    %c0_112 = arith.constant 0 : index
    %192 = vector.load %arg15[%c0_111, %c0_112] : memref<1x64xf32, #tpu.memory_space<vmem>>, vector<1x64xf32>
    %193 = vector.broadcast %192 : vector<1x64xf32> to vector<16x64xf32>
    %194 = arith.addf %191, %193 : vector<16x64xf32>
    %c0_113 = arith.constant 0 : index
    %c0_114 = arith.constant 0 : index
    %195 = vector.load %arg16[%c0_113, %c0_114] : memref<1x64xf32, #tpu.memory_space<vmem>>, vector<1x64xf32>
    %c0_115 = arith.constant 0 : index
    %c0_116 = arith.constant 0 : index
    %196 = vector.load %arg17[%c0_115, %c0_116] : memref<1x64xf32, #tpu.memory_space<vmem>>, vector<1x64xf32>
    %197 = vector.shape_cast %194 : vector<16x64xf32> to vector<1x16x64xf32>
    %cst_117 = arith.constant dense<0.000000e+00> : vector<1xf32>
    %198 = vector.multi_reduction <add>, %197, %cst_117 [1, 2] : vector<1x16x64xf32> to vector<1xf32>
    %199 = vector.shape_cast %198 : vector<1xf32> to vector<1x1x1xf32>
    %200 = vector.extract %199[0, 0, 0] : f32 from vector<1x1x1xf32>
    %cst_118 = arith.constant 9.765625E-4 : f32
    %201 = arith.mulf %200, %cst_118 : f32
    %202 = vector.broadcast %201 : f32 to vector<16x64xf32>
    %203 = arith.subf %194, %202 : vector<16x64xf32>
    %204 = arith.mulf %203, %203 : vector<16x64xf32>
    %205 = vector.shape_cast %204 : vector<16x64xf32> to vector<1x16x64xf32>
    %cst_119 = arith.constant dense<0.000000e+00> : vector<1xf32>
    %206 = vector.multi_reduction <add>, %205, %cst_119 [1, 2] : vector<1x16x64xf32> to vector<1xf32>
    %207 = vector.shape_cast %206 : vector<1xf32> to vector<1x1x1xf32>
    %208 = vector.extract %207[0, 0, 0] : f32 from vector<1x1x1xf32>
    %cst_120 = arith.constant 9.77517105E-4 : f32
    %209 = arith.mulf %208, %cst_120 : f32
    %210 = math.sqrt %209 : f32
    %cst_121 = arith.constant 9.99999974E-6 : f32
    %211 = arith.addf %210, %cst_121 : f32
    %cst_122 = arith.constant 1.000000e+00 : f32
    %212 = arith.divf %cst_122, %211 : f32
    %213 = vector.broadcast %212 : f32 to vector<16x64xf32>
    %214 = arith.mulf %203, %213 : vector<16x64xf32>
    %215 = vector.broadcast %195 : vector<1x64xf32> to vector<16x64xf32>
    %216 = arith.mulf %215, %214 : vector<16x64xf32>
    %217 = vector.broadcast %196 : vector<1x64xf32> to vector<16x64xf32>
    %218 = arith.addf %216, %217 : vector<16x64xf32>
    %cst_123 = arith.constant 0.000000e+00 : f32
    %219 = vector.broadcast %cst_123 : f32 to vector<16x64xf32>
    %220 = arith.cmpf oge, %218, %219 : vector<16x64xf32>
    %cst_124 = arith.constant 0.00999999977 : f32
    %221 = vector.broadcast %cst_124 : f32 to vector<16x64xf32>
    %222 = arith.mulf %221, %218 : vector<16x64xf32>
    %223 = arith.select %220, %218, %222 : vector<16x64xi1>, vector<16x64xf32>
    %224 = vector.extract_strided_slice %223 {offsets = [0, 0], sizes = [4, 64], strides = [1, 1]} : vector<16x64xf32> to vector<4x64xf32>
    %c0_125 = arith.constant 0 : index
    %c0_126 = arith.constant 0 : index
    %c0_127 = arith.constant 0 : index
    %225 = vector.load %arg18[%c0_125, %c0_126, %c0_127] : memref<4x64x128xf32, #tpu.memory_space<vmem>>, vector<1x64x128xf32>
    %226 = vector.shape_cast %225 : vector<1x64x128xf32> to vector<64x128xf32>
    %cst_128 = arith.constant dense<0.000000e+00> : vector<4x128xf32>
    %227 = tpu.matmul %224, %226, %cst_128 {dimension_numbers = #tpu.dot_dimension_numbers<[1], [0], [0], [1], [0, 0, 1, 1], [], []>} : vector<4x64xf32>, vector<64x128xf32>, vector<4x128xf32> -> vector<4x128xf32>
    %228 = vector.extract_strided_slice %223 {offsets = [4, 0], sizes = [4, 64], strides = [1, 1]} : vector<16x64xf32> to vector<4x64xf32>
    %c1_129 = arith.constant 1 : index
    %c0_130 = arith.constant 0 : index
    %c0_131 = arith.constant 0 : index
    %229 = vector.load %arg18[%c1_129, %c0_130, %c0_131] : memref<4x64x128xf32, #tpu.memory_space<vmem>>, vector<1x64x128xf32>
    %230 = vector.shape_cast %229 : vector<1x64x128xf32> to vector<64x128xf32>
    %cst_132 = arith.constant dense<0.000000e+00> : vector<4x128xf32>
    %231 = tpu.matmul %228, %230, %cst_132 {dimension_numbers = #tpu.dot_dimension_numbers<[1], [0], [0], [1], [0, 0, 1, 1], [], []>} : vector<4x64xf32>, vector<64x128xf32>, vector<4x128xf32> -> vector<4x128xf32>
    %232 = arith.addf %227, %231 : vector<4x128xf32>
    %233 = vector.extract_strided_slice %223 {offsets = [8, 0], sizes = [4, 64], strides = [1, 1]} : vector<16x64xf32> to vector<4x64xf32>
    %c2_133 = arith.constant 2 : index
    %c0_134 = arith.constant 0 : index
    %c0_135 = arith.constant 0 : index
    %234 = vector.load %arg18[%c2_133, %c0_134, %c0_135] : memref<4x64x128xf32, #tpu.memory_space<vmem>>, vector<1x64x128xf32>
    %235 = vector.shape_cast %234 : vector<1x64x128xf32> to vector<64x128xf32>
    %cst_136 = arith.constant dense<0.000000e+00> : vector<4x128xf32>
    %236 = tpu.matmul %233, %235, %cst_136 {dimension_numbers = #tpu.dot_dimension_numbers<[1], [0], [0], [1], [0, 0, 1, 1], [], []>} : vector<4x64xf32>, vector<64x128xf32>, vector<4x128xf32> -> vector<4x128xf32>
    %237 = arith.addf %232, %236 : vector<4x128xf32>
    %238 = vector.extract_strided_slice %223 {offsets = [12, 0], sizes = [4, 64], strides = [1, 1]} : vector<16x64xf32> to vector<4x64xf32>
    %c3_137 = arith.constant 3 : index
    %c0_138 = arith.constant 0 : index
    %c0_139 = arith.constant 0 : index
    %239 = vector.load %arg18[%c3_137, %c0_138, %c0_139] : memref<4x64x128xf32, #tpu.memory_space<vmem>>, vector<1x64x128xf32>
    %240 = vector.shape_cast %239 : vector<1x64x128xf32> to vector<64x128xf32>
    %cst_140 = arith.constant dense<0.000000e+00> : vector<4x128xf32>
    %241 = tpu.matmul %238, %240, %cst_140 {dimension_numbers = #tpu.dot_dimension_numbers<[1], [0], [0], [1], [0, 0, 1, 1], [], []>} : vector<4x64xf32>, vector<64x128xf32>, vector<4x128xf32> -> vector<4x128xf32>
    %242 = arith.addf %237, %241 : vector<4x128xf32>
    %c0_141 = arith.constant 0 : index
    %c0_142 = arith.constant 0 : index
    %243 = vector.load %arg19[%c0_141, %c0_142] : memref<1x128xf32, #tpu.memory_space<vmem>>, vector<1x128xf32>
    %244 = vector.broadcast %243 : vector<1x128xf32> to vector<4x128xf32>
    %245 = arith.addf %242, %244 : vector<4x128xf32>
    %c0_143 = arith.constant 0 : index
    %c0_144 = arith.constant 0 : index
    %246 = vector.load %arg20[%c0_143, %c0_144] : memref<1x128xf32, #tpu.memory_space<vmem>>, vector<1x128xf32>
    %c0_145 = arith.constant 0 : index
    %c0_146 = arith.constant 0 : index
    %247 = vector.load %arg21[%c0_145, %c0_146] : memref<1x128xf32, #tpu.memory_space<vmem>>, vector<1x128xf32>
    %248 = vector.shape_cast %245 : vector<4x128xf32> to vector<1x4x128xf32>
    %cst_147 = arith.constant dense<0.000000e+00> : vector<1xf32>
    %249 = vector.multi_reduction <add>, %248, %cst_147 [1, 2] : vector<1x4x128xf32> to vector<1xf32>
    %250 = vector.shape_cast %249 : vector<1xf32> to vector<1x1x1xf32>
    %251 = vector.extract %250[0, 0, 0] : f32 from vector<1x1x1xf32>
    %cst_148 = arith.constant 0.001953125 : f32
    %252 = arith.mulf %251, %cst_148 : f32
    %253 = vector.broadcast %252 : f32 to vector<4x128xf32>
    %254 = arith.subf %245, %253 : vector<4x128xf32>
    %255 = arith.mulf %254, %254 : vector<4x128xf32>
    %256 = vector.shape_cast %255 : vector<4x128xf32> to vector<1x4x128xf32>
    %cst_149 = arith.constant dense<0.000000e+00> : vector<1xf32>
    %257 = vector.multi_reduction <add>, %256, %cst_149 [1, 2] : vector<1x4x128xf32> to vector<1xf32>
    %258 = vector.shape_cast %257 : vector<1xf32> to vector<1x1x1xf32>
    %259 = vector.extract %258[0, 0, 0] : f32 from vector<1x1x1xf32>
    %cst_150 = arith.constant 0.00195694715 : f32
    %260 = arith.mulf %259, %cst_150 : f32
    %261 = math.sqrt %260 : f32
    %cst_151 = arith.constant 9.99999974E-6 : f32
    %262 = arith.addf %261, %cst_151 : f32
    %cst_152 = arith.constant 1.000000e+00 : f32
    %263 = arith.divf %cst_152, %262 : f32
    %264 = vector.broadcast %263 : f32 to vector<4x128xf32>
    %265 = arith.mulf %254, %264 : vector<4x128xf32>
    %266 = vector.broadcast %246 : vector<1x128xf32> to vector<4x128xf32>
    %267 = arith.mulf %266, %265 : vector<4x128xf32>
    %268 = vector.broadcast %247 : vector<1x128xf32> to vector<4x128xf32>
    %269 = arith.addf %267, %268 : vector<4x128xf32>
    %cst_153 = arith.constant 0.000000e+00 : f32
    %270 = vector.broadcast %cst_153 : f32 to vector<4x128xf32>
    %271 = arith.cmpf oge, %269, %270 : vector<4x128xf32>
    %cst_154 = arith.constant 0.00999999977 : f32
    %272 = vector.broadcast %cst_154 : f32 to vector<4x128xf32>
    %273 = arith.mulf %272, %269 : vector<4x128xf32>
    %274 = arith.select %271, %269, %273 : vector<4x128xi1>, vector<4x128xf32>
    %275 = vector.extract_strided_slice %274 {offsets = [0, 0], sizes = [3, 128], strides = [1, 1]} : vector<4x128xf32> to vector<3x128xf32>
    %c0_155 = arith.constant 0 : index
    %c0_156 = arith.constant 0 : index
    %c0_157 = arith.constant 0 : index
    %276 = vector.load %arg22[%c0_155, %c0_156, %c0_157] : memref<2x128x128xf32, #tpu.memory_space<vmem>>, vector<1x128x128xf32>
    %277 = vector.shape_cast %276 : vector<1x128x128xf32> to vector<128x128xf32>
    %cst_158 = arith.constant dense<0.000000e+00> : vector<3x128xf32>
    %278 = tpu.matmul %275, %277, %cst_158 {dimension_numbers = #tpu.dot_dimension_numbers<[1], [0], [0], [1], [0, 0, 1, 1], [], []>} : vector<3x128xf32>, vector<128x128xf32>, vector<3x128xf32> -> vector<3x128xf32>
    %279 = vector.extract_strided_slice %274 {offsets = [1, 0], sizes = [3, 128], strides = [1, 1]} : vector<4x128xf32> to vector<3x128xf32>
    %c1_159 = arith.constant 1 : index
    %c0_160 = arith.constant 0 : index
    %c0_161 = arith.constant 0 : index
    %280 = vector.load %arg22[%c1_159, %c0_160, %c0_161] : memref<2x128x128xf32, #tpu.memory_space<vmem>>, vector<1x128x128xf32>
    %281 = vector.shape_cast %280 : vector<1x128x128xf32> to vector<128x128xf32>
    %cst_162 = arith.constant dense<0.000000e+00> : vector<3x128xf32>
    %282 = tpu.matmul %279, %281, %cst_162 {dimension_numbers = #tpu.dot_dimension_numbers<[1], [0], [0], [1], [0, 0, 1, 1], [], []>} : vector<3x128xf32>, vector<128x128xf32>, vector<3x128xf32> -> vector<3x128xf32>
    %283 = arith.addf %278, %282 : vector<3x128xf32>
    %c0_163 = arith.constant 0 : index
    %c0_164 = arith.constant 0 : index
    %284 = vector.load %arg23[%c0_163, %c0_164] : memref<1x128xf32, #tpu.memory_space<vmem>>, vector<1x128xf32>
    %285 = vector.broadcast %284 : vector<1x128xf32> to vector<3x128xf32>
    %286 = arith.addf %283, %285 : vector<3x128xf32>
    %c0_165 = arith.constant 0 : index
    %c0_166 = arith.constant 0 : index
    %287 = vector.load %arg24[%c0_165, %c0_166] : memref<1x128xf32, #tpu.memory_space<vmem>>, vector<1x128xf32>
    %c0_167 = arith.constant 0 : index
    %c0_168 = arith.constant 0 : index
    %288 = vector.load %arg25[%c0_167, %c0_168] : memref<1x128xf32, #tpu.memory_space<vmem>>, vector<1x128xf32>
    %289 = vector.shape_cast %286 : vector<3x128xf32> to vector<1x3x128xf32>
    %cst_169 = arith.constant dense<0.000000e+00> : vector<1xf32>
    %290 = vector.multi_reduction <add>, %289, %cst_169 [1, 2] : vector<1x3x128xf32> to vector<1xf32>
    %291 = vector.shape_cast %290 : vector<1xf32> to vector<1x1x1xf32>
    %292 = vector.extract %291[0, 0, 0] : f32 from vector<1x1x1xf32>
    %cst_170 = arith.constant 0.00260416674 : f32
    %293 = arith.mulf %292, %cst_170 : f32
    %294 = vector.broadcast %293 : f32 to vector<3x128xf32>
    %295 = arith.subf %286, %294 : vector<3x128xf32>
    %296 = arith.mulf %295, %295 : vector<3x128xf32>
    %297 = vector.shape_cast %296 : vector<3x128xf32> to vector<1x3x128xf32>
    %cst_171 = arith.constant dense<0.000000e+00> : vector<1xf32>
    %298 = vector.multi_reduction <add>, %297, %cst_171 [1, 2] : vector<1x3x128xf32> to vector<1xf32>
    %299 = vector.shape_cast %298 : vector<1xf32> to vector<1x1x1xf32>
    %300 = vector.extract %299[0, 0, 0] : f32 from vector<1x1x1xf32>
    %cst_172 = arith.constant 0.0026109661 : f32
    %301 = arith.mulf %300, %cst_172 : f32
    %302 = math.sqrt %301 : f32
    %cst_173 = arith.constant 9.99999974E-6 : f32
    %303 = arith.addf %302, %cst_173 : f32
    %cst_174 = arith.constant 1.000000e+00 : f32
    %304 = arith.divf %cst_174, %303 : f32
    %305 = vector.broadcast %304 : f32 to vector<3x128xf32>
    %306 = arith.mulf %295, %305 : vector<3x128xf32>
    %307 = vector.broadcast %287 : vector<1x128xf32> to vector<3x128xf32>
    %308 = arith.mulf %307, %306 : vector<3x128xf32>
    %309 = vector.broadcast %288 : vector<1x128xf32> to vector<3x128xf32>
    %310 = arith.addf %308, %309 : vector<3x128xf32>
    %cst_175 = arith.constant 0.000000e+00 : f32
    %311 = vector.broadcast %cst_175 : f32 to vector<3x128xf32>
    %312 = arith.cmpf oge, %310, %311 : vector<3x128xf32>
    %cst_176 = arith.constant 0.00999999977 : f32
    %313 = vector.broadcast %cst_176 : f32 to vector<3x128xf32>
    %314 = arith.mulf %313, %310 : vector<3x128xf32>
    %315 = arith.select %312, %310, %314 : vector<3x128xi1>, vector<3x128xf32>
    %316 = vector.extract_strided_slice %315 {offsets = [0, 0], sizes = [1, 128], strides = [1, 1]} : vector<3x128xf32> to vector<1x128xf32>
    %c0_177 = arith.constant 0 : index
    %c0_178 = arith.constant 0 : index
    %c0_179 = arith.constant 0 : index
    %317 = vector.load %arg26[%c0_177, %c0_178, %c0_179] : memref<3x128x256xf32, #tpu.memory_space<vmem>>, vector<1x128x256xf32>
    %318 = vector.shape_cast %317 : vector<1x128x256xf32> to vector<128x256xf32>
    %cst_180 = arith.constant dense<0.000000e+00> : vector<1x256xf32>
    %319 = tpu.matmul %316, %318, %cst_180 {dimension_numbers = #tpu.dot_dimension_numbers<[1], [0], [0], [1], [0, 0, 1, 1], [], []>} : vector<1x128xf32>, vector<128x256xf32>, vector<1x256xf32> -> vector<1x256xf32>
    %320 = vector.extract_strided_slice %315 {offsets = [1, 0], sizes = [1, 128], strides = [1, 1]} : vector<3x128xf32> to vector<1x128xf32>
    %c1_181 = arith.constant 1 : index
    %c0_182 = arith.constant 0 : index
    %c0_183 = arith.constant 0 : index
    %321 = vector.load %arg26[%c1_181, %c0_182, %c0_183] : memref<3x128x256xf32, #tpu.memory_space<vmem>>, vector<1x128x256xf32>
    %322 = vector.shape_cast %321 : vector<1x128x256xf32> to vector<128x256xf32>
    %cst_184 = arith.constant dense<0.000000e+00> : vector<1x256xf32>
    %323 = tpu.matmul %320, %322, %cst_184 {dimension_numbers = #tpu.dot_dimension_numbers<[1], [0], [0], [1], [0, 0, 1, 1], [], []>} : vector<1x128xf32>, vector<128x256xf32>, vector<1x256xf32> -> vector<1x256xf32>
    %324 = arith.addf %319, %323 : vector<1x256xf32>
    %325 = vector.extract_strided_slice %315 {offsets = [2, 0], sizes = [1, 128], strides = [1, 1]} : vector<3x128xf32> to vector<1x128xf32>
    %c2_185 = arith.constant 2 : index
    %c0_186 = arith.constant 0 : index
    %c0_187 = arith.constant 0 : index
    %326 = vector.load %arg26[%c2_185, %c0_186, %c0_187] : memref<3x128x256xf32, #tpu.memory_space<vmem>>, vector<1x128x256xf32>
    %327 = vector.shape_cast %326 : vector<1x128x256xf32> to vector<128x256xf32>
    %cst_188 = arith.constant dense<0.000000e+00> : vector<1x256xf32>
    %328 = tpu.matmul %325, %327, %cst_188 {dimension_numbers = #tpu.dot_dimension_numbers<[1], [0], [0], [1], [0, 0, 1, 1], [], []>} : vector<1x128xf32>, vector<128x256xf32>, vector<1x256xf32> -> vector<1x256xf32>
    %329 = arith.addf %324, %328 : vector<1x256xf32>
    %c0_189 = arith.constant 0 : index
    %c0_190 = arith.constant 0 : index
    %330 = vector.load %arg27[%c0_189, %c0_190] : memref<1x256xf32, #tpu.memory_space<vmem>>, vector<1x256xf32>
    %331 = arith.addf %329, %330 : vector<1x256xf32>
    %c0_191 = arith.constant 0 : index
    %c0_192 = arith.constant 0 : index
    %332 = vector.load %arg28[%c0_191, %c0_192] : memref<1x256xf32, #tpu.memory_space<vmem>>, vector<1x256xf32>
    %c0_193 = arith.constant 0 : index
    %c0_194 = arith.constant 0 : index
    %333 = vector.load %arg29[%c0_193, %c0_194] : memref<1x256xf32, #tpu.memory_space<vmem>>, vector<1x256xf32>
    %334 = vector.shape_cast %331 : vector<1x256xf32> to vector<1x1x256xf32>
    %cst_195 = arith.constant dense<0.000000e+00> : vector<1xf32>
    %335 = vector.multi_reduction <add>, %334, %cst_195 [1, 2] : vector<1x1x256xf32> to vector<1xf32>
    %336 = vector.shape_cast %335 : vector<1xf32> to vector<1x1x1xf32>
    %337 = vector.extract %336[0, 0, 0] : f32 from vector<1x1x1xf32>
    %cst_196 = arith.constant 3.906250e-03 : f32
    %338 = arith.mulf %337, %cst_196 : f32
    %339 = vector.broadcast %338 : f32 to vector<1x256xf32>
    %340 = arith.subf %331, %339 : vector<1x256xf32>
    %341 = arith.mulf %340, %340 : vector<1x256xf32>
    %342 = vector.shape_cast %341 : vector<1x256xf32> to vector<1x1x256xf32>
    %cst_197 = arith.constant dense<0.000000e+00> : vector<1xf32>
    %343 = vector.multi_reduction <add>, %342, %cst_197 [1, 2] : vector<1x1x256xf32> to vector<1xf32>
    %344 = vector.shape_cast %343 : vector<1xf32> to vector<1x1x1xf32>
    %345 = vector.extract %344[0, 0, 0] : f32 from vector<1x1x1xf32>
    %cst_198 = arith.constant 0.00392156886 : f32
    %346 = arith.mulf %345, %cst_198 : f32
    %347 = math.sqrt %346 : f32
    %cst_199 = arith.constant 9.99999974E-6 : f32
    %348 = arith.addf %347, %cst_199 : f32
    %cst_200 = arith.constant 1.000000e+00 : f32
    %349 = arith.divf %cst_200, %348 : f32
    %350 = vector.broadcast %349 : f32 to vector<1x256xf32>
    %351 = arith.mulf %340, %350 : vector<1x256xf32>
    %352 = arith.mulf %332, %351 : vector<1x256xf32>
    %353 = arith.addf %352, %333 : vector<1x256xf32>
    %cst_201 = arith.constant 0.000000e+00 : f32
    %354 = vector.broadcast %cst_201 : f32 to vector<1x256xf32>
    %355 = arith.cmpf oge, %353, %354 : vector<1x256xf32>
    %cst_202 = arith.constant 0.00999999977 : f32
    %356 = vector.broadcast %cst_202 : f32 to vector<1x256xf32>
    %357 = arith.mulf %356, %353 : vector<1x256xf32>
    %358 = arith.select %355, %353, %357 : vector<1x256xi1>, vector<1x256xf32>
    %c0_203 = arith.constant 0 : index
    %c0_204 = arith.constant 0 : index
    %359 = vector.load %arg30[%c0_203, %c0_204] : memref<256x1xf32, #tpu.memory_space<vmem>>, vector<256x1xf32>
    %cst_205 = arith.constant dense<0.000000e+00> : vector<1x1xf32>
    %360 = tpu.matmul %358, %359, %cst_205 {dimension_numbers = #tpu.dot_dimension_numbers<[1], [0], [0], [1], [0, 0, 1, 1], [], []>} : vector<1x256xf32>, vector<256x1xf32>, vector<1x1xf32> -> vector<1x1xf32>
    %c0_206 = arith.constant 0 : index
    %c0_207 = arith.constant 0 : index
    %361 = vector.load %arg31[%c0_206, %c0_207] : memref<1x1xf32, #tpu.memory_space<vmem>>, vector<1x1xf32>
    %362 = arith.addf %360, %361 : vector<1x1xf32>
    %c0_208 = arith.constant 0 : index
    %c0_209 = arith.constant 0 : index
    %c0_210 = arith.constant 0 : index
    %363 = vector.load %arg32[%c0_208, %c0_209, %c0_210] : memref<1x1x1xf32, #tpu.memory_space<vmem>>, vector<1x1x1xf32>
    %364 = vector.shape_cast %363 : vector<1x1x1xf32> to vector<1x1xf32>
    %365 = vector.shape_cast %362 : vector<1x1xf32> to vector<1x1x1xf32>
    tpu.vector_store %arg32[%c0_208, %c0_209, %c0_210], %365 {strides = array<i32>} : memref<1x1x1xf32, #tpu.memory_space<vmem>>, vector<1x1x1xf32>,
    return
  }
  func.func @transform_0(%arg0: i32) -> (i32, i32, i32) {
    %c0_i32 = arith.constant 0 : i32
    %c0_i32_0 = arith.constant 0 : i32
    %c0_i32_1 = arith.constant 0 : i32
    return %arg0, %c0_i32, %c0_i32_0 : i32, i32, i32
  }
  func.func @transform_1(%arg0: i32) -> (i32, i32) {
    %c0_i32 = arith.constant 0 : i32
    %c0_i32_0 = arith.constant 0 : i32
    %c0_i32_1 = arith.constant 0 : i32
    return %c0_i32, %c0_i32_0 : i32, i32
  }
  func.func @transform_2(%arg0: i32) -> (i32, i32) {
    %c0_i32 = arith.constant 0 : i32
    %c0_i32_0 = arith.constant 0 : i32
    %c0_i32_1 = arith.constant 0 : i32
    return %c0_i32, %c0_i32_0 : i32, i32
  }
  func.func @transform_3(%arg0: i32) -> (i32, i32) {
    %c0_i32 = arith.constant 0 : i32
    %c0_i32_0 = arith.constant 0 : i32
    %c0_i32_1 = arith.constant 0 : i32
    return %c0_i32, %c0_i32_0 : i32, i32
  }
  func.func @transform_4(%arg0: i32) -> (i32, i32) {
    %c0_i32 = arith.constant 0 : i32
    %c0_i32_0 = arith.constant 0 : i32
    %c0_i32_1 = arith.constant 0 : i32
    return %c0_i32, %c0_i32_0 : i32, i32
  }
  func.func @transform_5(%arg0: i32) -> (i32, i32, i32) {
    %c0_i32 = arith.constant 0 : i32
    %c0_i32_0 = arith.constant 0 : i32
    %c0_i32_1 = arith.constant 0 : i32
    %c0_i32_2 = arith.constant 0 : i32
    return %c0_i32, %c0_i32_0, %c0_i32_1 : i32, i32, i32
  }
  func.func @transform_6(%arg0: i32) -> (i32, i32) {
    %c0_i32 = arith.constant 0 : i32
    %c0_i32_0 = arith.constant 0 : i32
    %c0_i32_1 = arith.constant 0 : i32
    return %c0_i32, %c0_i32_0 : i32, i32
  }
  func.func @transform_7(%arg0: i32) -> (i32, i32) {
    %c0_i32 = arith.constant 0 : i32
    %c0_i32_0 = arith.constant 0 : i32
    %c0_i32_1 = arith.constant 0 : i32
    return %c0_i32, %c0_i32_0 : i32, i32
  }
  func.func @transform_8(%arg0: i32) -> (i32, i32) {
    %c0_i32 = arith.constant 0 : i32
    %c0_i32_0 = arith.constant 0 : i32
    %c0_i32_1 = arith.constant 0 : i32
    return %c0_i32, %c0_i32_0 : i32, i32
  }
  func.func @transform_9(%arg0: i32) -> (i32, i32, i32) {
    %c0_i32 = arith.constant 0 : i32
    %c0_i32_0 = arith.constant 0 : i32
    %c0_i32_1 = arith.constant 0 : i32
    %c0_i32_2 = arith.constant 0 : i32
    return %c0_i32, %c0_i32_0, %c0_i32_1 : i32, i32, i32
  }
  func.func @transform_10(%arg0: i32) -> (i32, i32) {
    %c0_i32 = arith.constant 0 : i32
    %c0_i32_0 = arith.constant 0 : i32
    %c0_i32_1 = arith.constant 0 : i32
    return %c0_i32, %c0_i32_0 : i32, i32
  }
  func.func @transform_11(%arg0: i32) -> (i32, i32) {
    %c0_i32 = arith.constant 0 : i32
    %c0_i32_0 = arith.constant 0 : i32
    %c0_i32_1 = arith.constant 0 : i32
    return %c0_i32, %c0_i32_0 : i32, i32
  }
  func.func @transform_12(%arg0: i32) -> (i32, i32) {
    %c0_i32 = arith.constant 0 : i32
    %c0_i32_0 = arith.constant 0 : i32
    %c0_i32_1 = arith.constant 0 : i32
    return %c0_i32, %c0_i32_0 : i32, i32
  }
  func.func @transform_13(%arg0: i32) -> (i32, i32, i32) {
    %c0_i32 = arith.constant 0 : i32
    %c0_i32_0 = arith.constant 0 : i32
    %c0_i32_1 = arith.constant 0 : i32
    %c0_i32_2 = arith.constant 0 : i32
    return %c0_i32, %c0_i32_0, %c0_i32_1 : i32, i32, i32
  }
  func.func @transform_14(%arg0: i32) -> (i32, i32) {
    %c0_i32 = arith.constant 0 : i32
    %c0_i32_0 = arith.constant 0 : i32
    %c0_i32_1 = arith.constant 0 : i32
    return %c0_i32, %c0_i32_0 : i32, i32
  }
  func.func @transform_15(%arg0: i32) -> (i32, i32) {
    %c0_i32 = arith.constant 0 : i32
    %c0_i32_0 = arith.constant 0 : i32
    %c0_i32_1 = arith.constant 0 : i32
    return %c0_i32, %c0_i32_0 : i32, i32
  }
  func.func @transform_16(%arg0: i32) -> (i32, i32) {
    %c0_i32 = arith.constant 0 : i32
    %c0_i32_0 = arith.constant 0 : i32
    %c0_i32_1 = arith.constant 0 : i32
    return %c0_i32, %c0_i32_0 : i32, i32
  }
  func.func @transform_17(%arg0: i32) -> (i32, i32, i32) {
    %c0_i32 = arith.constant 0 : i32
    %c0_i32_0 = arith.constant 0 : i32
    %c0_i32_1 = arith.constant 0 : i32
    %c0_i32_2 = arith.constant 0 : i32
    return %c0_i32, %c0_i32_0, %c0_i32_1 : i32, i32, i32
  }
  func.func @transform_18(%arg0: i32) -> (i32, i32) {
    %c0_i32 = arith.constant 0 : i32
    %c0_i32_0 = arith.constant 0 : i32
    %c0_i32_1 = arith.constant 0 : i32
    return %c0_i32, %c0_i32_0 : i32, i32
  }
  func.func @transform_19(%arg0: i32) -> (i32, i32) {
    %c0_i32 = arith.constant 0 : i32
    %c0_i32_0 = arith.constant 0 : i32
    %c0_i32_1 = arith.constant 0 : i32
    return %c0_i32, %c0_i32_0 : i32, i32
  }
  func.func @transform_20(%arg0: i32) -> (i32, i32) {
    %c0_i32 = arith.constant 0 : i32
    %c0_i32_0 = arith.constant 0 : i32
    %c0_i32_1 = arith.constant 0 : i32
    return %c0_i32, %c0_i32_0 : i32, i32
  }
  func.func @transform_21(%arg0: i32) -> (i32, i32, i32) {
    %c0_i32 = arith.constant 0 : i32
    %c0_i32_0 = arith.constant 0 : i32
    %c0_i32_1 = arith.constant 0 : i32
    %c0_i32_2 = arith.constant 0 : i32
    return %c0_i32, %c0_i32_0, %c0_i32_1 : i32, i32, i32
  }
  func.func @transform_22(%arg0: i32) -> (i32, i32) {
    %c0_i32 = arith.constant 0 : i32
    %c0_i32_0 = arith.constant 0 : i32
    %c0_i32_1 = arith.constant 0 : i32
    return %c0_i32, %c0_i32_0 : i32, i32
  }
  func.func @transform_23(%arg0: i32) -> (i32, i32) {
    %c0_i32 = arith.constant 0 : i32
    %c0_i32_0 = arith.constant 0 : i32
    %c0_i32_1 = arith.constant 0 : i32
    return %c0_i32, %c0_i32_0 : i32, i32
  }
  func.func @transform_24(%arg0: i32) -> (i32, i32) {
    %c0_i32 = arith.constant 0 : i32
    %c0_i32_0 = arith.constant 0 : i32
    %c0_i32_1 = arith.constant 0 : i32
    return %c0_i32, %c0_i32_0 : i32, i32
  }
  func.func @transform_25(%arg0: i32) -> (i32, i32, i32) {
    %c0_i32 = arith.constant 0 : i32
    %c0_i32_0 = arith.constant 0 : i32
    %c0_i32_1 = arith.constant 0 : i32
    %c0_i32_2 = arith.constant 0 : i32
    return %c0_i32, %c0_i32_0, %c0_i32_1 : i32, i32, i32
  }
  func.func @transform_26(%arg0: i32) -> (i32, i32) {
    %c0_i32 = arith.constant 0 : i32
    %c0_i32_0 = arith.constant 0 : i32
    %c0_i32_1 = arith.constant 0 : i32
    return %c0_i32, %c0_i32_0 : i32, i32
  }
  func.func @transform_27(%arg0: i32) -> (i32, i32) {
    %c0_i32 = arith.constant 0 : i32
    %c0_i32_0 = arith.constant 0 : i32
    %c0_i32_1 = arith.constant 0 : i32
    return %c0_i32, %c0_i32_0 : i32, i32
  }
  func.func @transform_28(%arg0: i32) -> (i32, i32) {
    %c0_i32 = arith.constant 0 : i32
    %c0_i32_0 = arith.constant 0 : i32
    %c0_i32_1 = arith.constant 0 : i32
    return %c0_i32, %c0_i32_0 : i32, i32
  }
  func.func @transform_29(%arg0: i32) -> (i32, i32) {
    %c0_i32 = arith.constant 0 : i32
    %c0_i32_0 = arith.constant 0 : i32
    %c0_i32_1 = arith.constant 0 : i32
    return %c0_i32, %c0_i32_0 : i32, i32
  }
  func.func @transform_30(%arg0: i32) -> (i32, i32) {
    %c0_i32 = arith.constant 0 : i32
    %c0_i32_0 = arith.constant 0 : i32
    %c0_i32_1 = arith.constant 0 : i32
    return %c0_i32, %c0_i32_0 : i32, i32
  }
  func.func @transform_31(%arg0: i32) -> (i32, i32, i32) {
    %c0_i32 = arith.constant 0 : i32
    %c0_i32_0 = arith.constant 0 : i32
    %c0_i32_1 = arith.constant 0 : i32
    return %arg0, %c0_i32, %c0_i32_0 : i32, i32, i32
  }
}

</mosaic_0001>

<bundles_post_ra>
// kernel: discriminator_forward.1
= control target key start
LH: loop header
LB: loop body
LE: loop exit
PB: predicated region body
PF: predicated region fallthrough
CT: control target
= control target key end

     0   :  { %s10502_s6 = smov 1   ;;  %s10503_s10 = smov 2   ;;  %s15013_s0 = inlined_call_operand.smem [shape: u32[32], index: -1, kind: input, shape index: {}] }
   0x1   :  { %s10544_s5 = sld [smem:[%s15013_s0]]   ;;  %s10504_s14 = smov 3  }
   0x2   :  { %s10549_s9 = sld [smem:[%s15013_s0 + %s10502_s6]]   ;;  %s10505_s18 = smov 4  }
   0x3   :  { %s10554_s13 = sld [smem:[%s15013_s0 + %s10503_s10]]   ;;  %s10506_s22 = smov 5  }
   0x4   :  { %s10559_s17 = sld [smem:[%s15013_s0 + %s10504_s14]]   ;;  %s10507_s26 = smov 6  }
   0x5   :  { %s10564_s21 = sld [smem:[%s15013_s0 + %s10505_s18]]   ;;  %s10508_s30 = smov 7  }
   0x6   :  { %s10569_s25 = sld [smem:[%s15013_s0 + %s10506_s22]]   ;;  %s10509_s4 = smov 8  }
   0x7   :  { %s10574_s29 = sld [smem:[%s15013_s0 + %s10507_s26]]   ;;  %s10510_s10 = smov 9  }
   0x8   :  { %s10579_s3 = sld [smem:[%s15013_s0 + %s10508_s30]]   ;;  %s10511_s15 = smov 10  }
   0x9   :  { %s10584_s8 = sld [smem:[%s15013_s0 + %s10509_s4]]   ;;  %s10512_s20 = smov 11  }
   0xa   :  { %s10589_s14 = sld [smem:[%s15013_s0 + %s10510_s10]]   ;;  %s10513_s26 = smov 12  }
   0xb   :  { %s10594_s19 = sld [smem:[%s15013_s0 + %s10511_s15]]   ;;  %s10514_s1 = smov 13  }
   0xc   :  { %s10599_s24 = sld [smem:[%s15013_s0 + %s10512_s20]]   ;;  %s10515_s7 = smov 14  }
   0xd   :  { %s10604_s30 = sld [smem:[%s15013_s0 + %s10513_s26]]   ;;  %s10516_s15 = smov 15  }
   0xe   :  { %s10609_s6 = sld [smem:[%s15013_s0 + %s10514_s1]]   ;;  %s10517_s22 = smov 16  }
   0xf   :  { %s10614_s12 = sld [smem:[%s15013_s0 + %s10515_s7]]   ;;  %s10518_s28 = smov 17  }
  0x10   :  { %s10619_s20 = sld [smem:[%s15013_s0 + %s10516_s15]]   ;;  %s10519_s7 = smov 18  }
  0x11   :  { %s10624_s27 = sld [smem:[%s15013_s0 + %s10517_s22]]   ;;  %s10520_s15 = smov 19  }
  0x12   :  { %s10629_s4 = sld [smem:[%s15013_s0 + %s10518_s28]]   ;;  %s10521_s22 = smov 20  }
  0x13   :  { %s10522_s28 = smov 21   ;;  %s10532_s16 = smov 31  }
  0x15   :  { %15212 = sst [smem:[#allocation3_spill]] %s10614_s12 }
  0x16   :  { %15213 = sst [smem:[#allocation4_spill]] %s10619_s20 }
  0x17   :  { %15214 = sst [smem:[#allocation5_spill]] %s10624_s27 }
  0x18   :  { %15215 = sst [smem:[#allocation6_spill]] %s10629_s4 }
  0x19   :  { %s10634_s12 = sld [smem:[%s15013_s0 + %s10519_s7]]   ;;  %s10523_s7 = smov 22  }
  0x1a   :  { %s10639_s20 = sld [smem:[%s15013_s0 + %s10520_s15]]   ;;  %s10524_s15 = smov 23  }
  0x1b   :  { %s10644_s27 = sld [smem:[%s15013_s0 + %s10521_s22]]   ;;  %s10525_s22 = smov 24  }
  0x1c   :  { %s10649_s4 = sld [smem:[%s15013_s0 + %s10522_s28]]   ;;  %s10526_s28 = smov 25  }
  0x1f   :  { %15216 = sst [smem:[#allocation7_spill]] %s10634_s12 }
  0x20   :  { %15217 = sst [smem:[#allocation8_spill]] %s10639_s20 }
  0x21   :  { %15218 = sst [smem:[#allocation9_spill]] %s10644_s27 }
  0x22   :  { %15219 = sst [smem:[#allocation10_spill]] %s10649_s4 }
  0x23   :  { %s10654_s12 = sld [smem:[%s15013_s0 + %s10523_s7]]   ;;  %s10527_s7 = smov 26  }
  0x24   :  { %s10659_s20 = sld [smem:[%s15013_s0 + %s10524_s15]]   ;;  %s10528_s15 = smov 27  }
  0x25   :  { %s10664_s27 = sld [smem:[%s15013_s0 + %s10525_s22]]   ;;  %s10529_s22 = smov 28  }
  0x26   :  { %s10669_s4 = sld [smem:[%s15013_s0 + %s10526_s28]]   ;;  %s10530_s28 = smov 29  }
  0x29   :  { %15220 = sst [smem:[#allocation11_spill]] %s10654_s12 }
  0x2a   :  { %15221 = sst [smem:[#allocation12_spill]] %s10659_s20 }
  0x2b   :  { %15222 = sst [smem:[#allocation13_spill]] %s10664_s27 }
  0x2c   :  { %15223 = sst [smem:[#allocation14_spill]] %s10669_s4 }
  0x2d   :  { %s10674_s12 = sld [smem:[%s15013_s0 + %s10527_s7]]   ;;  %s10531_s7 = smov 30  }
  0x2e   :  { %s10679_s20 = sld [smem:[%s15013_s0 + %s10528_s15]]  }
  0x2f   :  { %s10684_s27 = sld [smem:[%s15013_s0 + %s10529_s22]]   ;;  %s10699_s22 = smov 0  }
  0x30   :  { %s10689_s4 = sld [smem:[%s15013_s0 + %s10530_s28]]  }
  0x33   :  { %15224 = sst [smem:[#allocation15_spill]] %s10674_s12 }
  0x34   :  { %15225 = sst [smem:[#allocation16_spill]] %s10679_s20 }
  0x35   :  { %s8611_s12 = sld [smem:[%s15013_s0 + %s10531_s7]]  }
  0x36   :  { %s10697_s20 = sld [smem:[%s15013_s0 + %s10532_s16]]  }
  0x3b   :  { %v68_v0 = vstv %s8611_s12 }
  0x3c   :  { %69 = vst [vmem:[#allocation2] sm:$0x1] %v68_v0 }
  0x3d LB: > { %s8613_s23 = sadd.s32 4294967295, %s10500_s22   ;;  %p8617_p0 = scmp.ge.s32.totalorder %s10500_s22, 1  ;;  %s10500_s22 = sphi %s10699_s22, %s75_s22  }
  0x3e   : > { %p871_p1 = scmp.lt.s32.totalorder %s10500_s22, 3 }
  0x40   : > { %p872_p2 = pnand %p8617_p0, %p871_p1 }
  0x42   : > { %875 = sbr.rel (%p872_p2) target bundleno = 6679 (0x1a17), region = 144 }
  0x47   : > { %v1102_v1 = vld [vmem:[%s10549_s9 + $0x8] sm:$0xf]  ;;  %vm1543_vm0 = vcmask 1043456   ;;  %v1101_v2 = vld [vmem:[%s10549_s9] sm:$0xff]  ;;  %p949_p3 = scmp.lt.s32.totalorder %s8613_s23, 1  ;;  %vm1110_vm1 = vcmask 97280  }
  0x48   : > { %9607 = vmatprep.subr.msk.mxu0 %vm1543_vm0, %v1102_v1  ;;  %10361 = vmatprep.subr.msk.mxu1 %vm1543_vm0, %v1102_v1  ;;  %vm2334_vm2 = vcmask 130048  }
  0x49   : > { %9608 = vmatpush3.msk.msra.mxu0 %vm1543_vm0, %v1102_v1  ;;  %s15887_s23 = smov (!%p949_p3, %s8613_s23), 1  ;;  %10363 = vmatpush3.msk.msra.mxu1 %vm1543_vm0, %v1102_v1 }
  0x4a   : > { %9609 = vmatprep.subr.mxu0 %v1101_v2  ;;  %10362 = vmatprep.subr.mxu1 %v1101_v2  ;;  %s10365_s0 = smul.u32 1152, %s15887_s23 }
  0x4b   : > { %9610 = vmatpush3.msra.mxu0 %v1101_v2  ;;  %10364 = vmatpush3.msra.mxu1 %v1101_v2 }
  0x4c   : > { %s10717_s12 = scalar_lea.vmem %s10544_s5, %s10365_s0 }
  0x4d   : > { %v957_v3 = vld [vmem:[%s10717_s12] sm:$0xff]  ;;  %v958_v4 = vld [vmem:[%s10717_s12 + $0x8] sm:$0xff]  ;;  %v959_v5 = vld [vmem:[%s10717_s12 + $0x10] sm:$0xff] }
  0x4e   : > { %9611 = vmatprep.mubr.msk.f32.mxu0 %vm1110_vm1, %v957_v3  ;;  %v960_v6 = vld [vmem:[%s10717_s12 + $0x18] sm:$0xff]  ;;  %v961_v7 = vld [vmem:[%s10717_s12 + $0x20] sm:$0xff]  ;;  %v962_v8 = vld [vmem:[%s10717_s12 + $0x28] sm:$0xff] }
  0x4f   : > { %9612 = vmatmul.mubr.msk.f32.vlgmr.msra.gmra.mxu0 %vm1110_vm1, %v958_v4  ;;  %v963_v9 = vld [vmem:[%s10717_s12 + $0x30] sm:$0xff]  ;;  %v964_v10 = vld [vmem:[%s10717_s12 + $0x38] sm:$0xff]  ;;  %v965_v11 = vld [vmem:[%s10717_s12 + $0x40] sm:$0xff] }
  0x50   : > { %9614 = vmatprep.mubr.msk.f32.mxu0 %vm1110_vm1, %v959_v5  ;;  %v966_v12 = vld [vmem:[%s10717_s12 + $0x48] sm:$0xff]  ;;  %v967_v13 = vld [vmem:[%s10717_s12 + $0x50] sm:$0xff]  ;;  %v968_v14 = vld [vmem:[%s10717_s12 + $0x58] sm:$0xff] }
  0x51   : > { %v969_v15 = vld [vmem:[%s10717_s12 + $0x60] sm:$0xff]  ;;  %v970_v16 = vld [vmem:[%s10717_s12 + $0x68] sm:$0xff]  ;;  %v971_v17 = vld [vmem:[%s10717_s12 + $0x70] sm:$0xff] }
  0x52   : > { %v972_v18 = vld [vmem:[%s10717_s12 + $0x78] sm:$0xff]  ;;  %v973_v19 = vld [vmem:[%s10717_s12 + $0x80] sm:$0xff]  ;;  %v974_v20 = vld [vmem:[%s10717_s12 + $0x88] sm:$0xff] }
  0x53   : > { %9615 = vmatmul.mubr.msk.f32.gmra.mxu0 %vm1110_vm1, %v960_v6  ;;  %v975_v21 = vld [vmem:[%s10717_s12 + $0x90] sm:$0xff]  ;;  %v976_v22 = vld [vmem:[%s10717_s12 + $0x98] sm:$0xff]  ;;  %v977_v23 = vld [vmem:[%s10717_s12 + $0xa0] sm:$0xff] }
  0x54   : > { %9617 = vmatprep.mubr.msk.f32.mxu0 %vm1110_vm1, %v961_v7  ;;  %v978_v24 = vld [vmem:[%s10717_s12 + $0xa8] sm:$0xff]  ;;  %v979_v25 = vld [vmem:[%s10717_s12 + $0xb0] sm:$0xff]  ;;  %v980_v26 = vld [vmem:[%s10717_s12 + $0xb8] sm:$0xff] }
  0x55   : > { %v981_v27 = vld [vmem:[%s10717_s12 + $0xc0] sm:$0xff]  ;;  %v982_v28 = vld [vmem:[%s10717_s12 + $0xc8] sm:$0xff]  ;;  %v983_v29 = vld [vmem:[%s10717_s12 + $0xd0] sm:$0xff] }
  0x56   : > { %v984_v30 = vld [vmem:[%s10717_s12 + $0xd8] sm:$0xff]  ;;  %v985_v31 = vld [vmem:[%s10717_s12 + $0xe0] sm:$0xff]  ;;  %v986_v32 = vld [vmem:[%s10717_s12 + $0xe8] sm:$0xff] }
  0x57   : > { %9618 = vmatmul.mubr.msk.f32.gmra.mxu0 %vm1110_vm1, %v962_v8  ;;  %v987_v33 = vld [vmem:[%s10717_s12 + $0xf0] sm:$0xff]  ;;  %v988_v34 = vld [vmem:[%s10717_s12 + $0xf8] sm:$0xff]  ;;  %v989_v35 = vld [vmem:[%s10717_s12 + $0x100] sm:$0xff] }
  0x58   : > { %9620 = vmatprep.mubr.msk.f32.mxu0 %vm1110_vm1, %v963_v9  ;;  %v990_v36 = vld [vmem:[%s10717_s12 + $0x108] sm:$0xff]  ;;  %v991_v37 = vld [vmem:[%s10717_s12 + $0x110] sm:$0xff]  ;;  %v992_v38 = vld [vmem:[%s10717_s12 + $0x118] sm:$0xff] }
  0x59   : > { %v993_v39 = vld [vmem:[%s10717_s12 + $0x120] sm:$0xff]  ;;  %v994_v40 = vld [vmem:[%s10717_s12 + $0x128] sm:$0xff]  ;;  %v995_v41 = vld [vmem:[%s10717_s12 + $0x130] sm:$0xff] }
  0x5a   : > { %v996_v42 = vld [vmem:[%s10717_s12 + $0x138] sm:$0xff]  ;;  %v997_v43 = vld [vmem:[%s10717_s12 + $0x140] sm:$0xff]  ;;  %v998_v44 = vld [vmem:[%s10717_s12 + $0x148] sm:$0xff] }
  0x5b   : > { %9621 = vmatmul.mubr.msk.f32.gmra.mxu0 %vm1110_vm1, %v964_v10  ;;  %v999_v45 = vld [vmem:[%s10717_s12 + $0x150] sm:$0xff]  ;;  %v1000_v46 = vld [vmem:[%s10717_s12 + $0x158] sm:$0xff]  ;;  %v1001_v47 = vld [vmem:[%s10717_s12 + $0x160] sm:$0xff] }
  0x5c   : > { %9623 = vmatprep.mubr.msk.f32.mxu0 %vm1110_vm1, %v965_v11  ;;  %v1002_v48 = vld [vmem:[%s10717_s12 + $0x168] sm:$0xff]  ;;  %v1003_v49 = vld [vmem:[%s10717_s12 + $0x170] sm:$0xff]  ;;  %v1004_v50 = vld [vmem:[%s10717_s12 + $0x178] sm:$0xff] }
  0x5d   : > { %v1005_v51 = vld [vmem:[%s10717_s12 + $0x180] sm:$0xff]  ;;  %v1006_v52 = vld [vmem:[%s10717_s12 + $0x188] sm:$0xff]  ;;  %v1007_v53 = vld [vmem:[%s10717_s12 + $0x190] sm:$0xff] }
  0x5e   : > { %v1008_v54 = vld [vmem:[%s10717_s12 + $0x198] sm:$0xff]  ;;  %v1009_v55 = vld [vmem:[%s10717_s12 + $0x1a0] sm:$0xff]  ;;  %v1010_v56 = vld [vmem:[%s10717_s12 + $0x1a8] sm:$0xff] }
  0x5f   : > { %9624 = vmatmul.mubr.msk.f32.gmra.mxu0 %vm1110_vm1, %v966_v12  ;;  %v1011_v57 = vld [vmem:[%s10717_s12 + $0x1b0] sm:$0xff]  ;;  %v1012_v58 = vld [vmem:[%s10717_s12 + $0x1b8] sm:$0xff]  ;;  %v1013_v59 = vld [vmem:[%s10717_s12 + $0x1c0] sm:$0xff] }
  0x60   : > { %9626 = vmatprep.mubr.msk.f32.mxu0 %vm1110_vm1, %v967_v13  ;;  %v1014_v60 = vld [vmem:[%s10717_s12 + $0x1c8] sm:$0xff]  ;;  %v1015_v61 = vld [vmem:[%s10717_s12 + $0x1d0] sm:$0xff]  ;;  %v1016_v62 = vld [vmem:[%s10717_s12 + $0x1d8] sm:$0xff] }
  0x61   : > { %v1017_v63 = vld [vmem:[%s10717_s12 + $0x1e0] sm:$0xff]  ;;  %v1018_v0 = vld [vmem:[%s10717_s12 + $0x1e8] sm:$0xff]  ;;  %v1019_v1 = vld [vmem:[%s10717_s12 + $0x1f0] sm:$0xff] }
  0x62   : > { %v1020_v2 = vld [vmem:[%s10717_s12 + $0x1f8] sm:$0xff]  ;;  %v1021_v3 = vld [vmem:[%s10717_s12 + $0x200] sm:$0xff]  ;;  %v1022_v4 = vld [vmem:[%s10717_s12 + $0x208] sm:$0xff] }
  0x63   : > { %9627 = vmatmul.mubr.msk.f32.gmra.mxu0 %vm1110_vm1, %v968_v14  ;;  %v1023_v5 = vld [vmem:[%s10717_s12 + $0x210] sm:$0xff]  ;;  %v1024_v6 = vld [vmem:[%s10717_s12 + $0x218] sm:$0xff]  ;;  %v1025_v7 = vld [vmem:[%s10717_s12 + $0x220] sm:$0xff] }
  0x64   : > { %9629 = vmatprep.mubr.msk.f32.mxu0 %vm1110_vm1, %v969_v15  ;;  %v1026_v8 = vld [vmem:[%s10717_s12 + $0x228] sm:$0xff]  ;;  %v1027_v9 = vld [vmem:[%s10717_s12 + $0x230] sm:$0xff]  ;;  %v1028_v10 = vld [vmem:[%s10717_s12 + $0x238] sm:$0xff] }
  0x65   : > { %v1029_v11 = vld [vmem:[%s10717_s12 + $0x240] sm:$0xff]  ;;  %v1030_v12 = vld [vmem:[%s10717_s12 + $0x248] sm:$0xff]  ;;  %v1031_v13 = vld [vmem:[%s10717_s12 + $0x250] sm:$0xff] }
  0x66   : > { %v1032_v14 = vld [vmem:[%s10717_s12 + $0x258] sm:$0xff]  ;;  %v1033_v15 = vld [vmem:[%s10717_s12 + $0x260] sm:$0xff] }
  0x67   : > { %9630 = vmatmul.mubr.msk.f32.gmra.mxu0 %vm1110_vm1, %v970_v16  ;;  %v1097_v16 = vld [vmem:[%s10717_s12 + $0x460] sm:$0xff] }
  0x68   : > { %9632 = vmatprep.mubr.msk.f32.mxu0 %vm1110_vm1, %v971_v17  ;;  %v1034_v17 = vld [vmem:[%s10717_s12 + $0x268] sm:$0xff]  ;;  %9821 = vmatprep.mubr.msk.f32.mxu1 %vm1110_vm1, %v1097_v16  ;;  %v1064_v16 = vld [vmem:[%s10717_s12 + $0x358] sm:$0xff] }
  0x6b   : > { %9633 = vmatmul.mubr.msk.f32.gmra.mxu0 %vm1110_vm1, %v972_v18  ;;  %v1098_v18 = vld [vmem:[%s10717_s12 + $0x468] sm:$0xff] }
  0x6c   : > { %9635 = vmatprep.mubr.msk.f32.mxu0 %vm1110_vm1, %v973_v19  ;;  %v1035_v19 = vld [vmem:[%s10717_s12 + $0x270] sm:$0xff]  ;;  %9822 = vmatmul.mubr.msk.f32.vlgmr.msra.gmra.mxu1 %vm1110_vm1, %v1098_v18 }
  0x6f   : > { %9636 = vmatmul.mubr.msk.f32.gmra.mxu0 %vm1110_vm1, %v974_v20  ;;  %v1099_v20 = vld [vmem:[%s10717_s12 + $0x470] sm:$0xff] }
  0x70   : > { %9638 = vmatprep.mubr.msk.f32.mxu0 %vm1110_vm1, %v975_v21  ;;  %v1036_v21 = vld [vmem:[%s10717_s12 + $0x278] sm:$0xff]  ;;  %9824 = vmatprep.mubr.msk.f32.mxu1 %vm1110_vm1, %v1099_v20 }
  0x73   : > { %9639 = vmatmul.mubr.msk.f32.gmra.mxu0 %vm1110_vm1, %v976_v22  ;;  %v1100_v22 = vld [vmem:[%s10717_s12 + $0x478] sm:$0xff] }
  0x74   : > { %9641 = vmatprep.mubr.msk.f32.mxu0 %vm1110_vm1, %v977_v23  ;;  %v1037_v23 = vld [vmem:[%s10717_s12 + $0x280] sm:$0xff]  ;;  %9825 = vmatmul.mubr.msk.f32.gmra.mxu1 %vm1110_vm1, %v1100_v22 }
  0x77   : > { %9642 = vmatmul.mubr.msk.f32.gmra.mxu0 %vm1110_vm1, %v978_v24  ;;  %v1038_v24 = vld [vmem:[%s10717_s12 + $0x288] sm:$0xff] }
  0x78   : > { %9644 = vmatprep.mubr.msk.f32.mxu0 %vm1110_vm1, %v979_v25  ;;  %v1039_v25 = vld [vmem:[%s10717_s12 + $0x290] sm:$0xff] }
  0x7b   : > { %9645 = vmatmul.mubr.msk.f32.gmra.mxu0 %vm1110_vm1, %v980_v26  ;;  %v1040_v26 = vld [vmem:[%s10717_s12 + $0x298] sm:$0xff] }
  0x7c   : > { %9647 = vmatprep.mubr.msk.f32.mxu0 %vm1110_vm1, %v981_v27  ;;  %v1041_v27 = vld [vmem:[%s10717_s12 + $0x2a0] sm:$0xff] }
  0x7f   : > { %9648 = vmatmul.mubr.msk.f32.gmra.mxu0 %vm1110_vm1, %v982_v28  ;;  %v1042_v28 = vld [vmem:[%s10717_s12 + $0x2a8] sm:$0xff] }
  0x80   : > { %9650 = vmatprep.mubr.msk.f32.mxu0 %vm1110_vm1, %v983_v29  ;;  %v1043_v29 = vld [vmem:[%s10717_s12 + $0x2b0] sm:$0xff] }
  0x83   : > { %9651 = vmatmul.mubr.msk.f32.gmra.mxu0 %vm1110_vm1, %v984_v30  ;;  %v1044_v30 = vld [vmem:[%s10717_s12 + $0x2b8] sm:$0xff] }
  0x84   : > { %9653 = vmatprep.mubr.msk.f32.mxu0 %vm1110_vm1, %v985_v31  ;;  %v1045_v31 = vld [vmem:[%s10717_s12 + $0x2c0] sm:$0xff] }
  0x87   : > { %9654 = vmatmul.mubr.msk.f32.gmra.mxu0 %vm1110_vm1, %v986_v32  ;;  %v1046_v32 = vld [vmem:[%s10717_s12 + $0x2c8] sm:$0xff] }
  0x88   : > { %9656 = vmatprep.mubr.msk.f32.mxu0 %vm1110_vm1, %v987_v33  ;;  %v1047_v33 = vld [vmem:[%s10717_s12 + $0x2d0] sm:$0xff] }
  0x8b   : > { %9657 = vmatmul.mubr.msk.f32.gmra.mxu0 %vm1110_vm1, %v988_v34  ;;  %v1048_v34 = vld [vmem:[%s10717_s12 + $0x2d8] sm:$0xff] }
  0x8c   : > { %9659 = vmatprep.mubr.msk.f32.mxu0 %vm1110_vm1, %v989_v35  ;;  %v1049_v35 = vld [vmem:[%s10717_s12 + $0x2e0] sm:$0xff] }
  0x8f   : > { %9660 = vmatmul.mubr.msk.f32.gmra.mxu0 %vm1110_vm1, %v990_v36  ;;  %v1050_v36 = vld [vmem:[%s10717_s12 + $0x2e8] sm:$0xff] }
  0x90   : > { %9662 = vmatprep.mubr.msk.f32.mxu0 %vm1110_vm1, %v991_v37  ;;  %v1051_v37 = vld [vmem:[%s10717_s12 + $0x2f0] sm:$0xff] }
  0x93   : > { %9663 = vmatmul.mubr.msk.f32.gmra.mxu0 %vm1110_vm1, %v992_v38  ;;  %v1052_v38 = vld [vmem:[%s10717_s12 + $0x2f8] sm:$0xff] }
  0x94   : > { %9665 = vmatprep.mubr.msk.f32.mxu0 %vm1110_vm1, %v993_v39  ;;  %v1053_v39 = vld [vmem:[%s10717_s12 + $0x300] sm:$0xff] }
  0x97   : > { %9666 = vmatmul.mubr.msk.f32.gmra.mxu0 %vm1110_vm1, %v994_v40  ;;  %v1054_v40 = vld [vmem:[%s10717_s12 + $0x308] sm:$0xff] }
  0x98   : > { %9668 = vmatprep.mubr.msk.f32.mxu0 %vm1110_vm1, %v995_v41  ;;  %v1055_v41 = vld [vmem:[%s10717_s12 + $0x310] sm:$0xff] }
  0x9b   : > { %9669 = vmatmul.mubr.msk.f32.gmra.mxu0 %vm1110_vm1, %v996_v42 }
  0x9c   : > { %9671 = vmatprep.mubr.msk.f32.mxu0 %vm1110_vm1, %v997_v43  ;;  %v10924_v43 = vld [vmem:[%s10554_s13] ss:$0 sm:$0xff] }
  0x9f   : > { %9672 = vmatmul.mubr.msk.f32.gmra.mxu0 %vm1110_vm1, %v998_v44  ;;  %v1056_v44 = vld [vmem:[%s10717_s12 + $0x318] sm:$0xff] }
  0xa0   : > { %9674 = vmatprep.mubr.msk.f32.mxu0 %vm1110_vm1, %v999_v45 }
  0xa3   : > { %9675 = vmatmul.mubr.msk.f32.gmra.mxu0 %vm1110_vm1, %v1000_v46  ;;  %v1057_v46 = vld [vmem:[%s10717_s12 + $0x320] sm:$0xff] }
  0xa4   : > { %9677 = vmatprep.mubr.msk.f32.mxu0 %vm1110_vm1, %v1001_v47 }
  0xa7   : > { %9678 = vmatmul.mubr.msk.f32.gmra.mxu0 %vm1110_vm1, %v1002_v48 }
  0xa8   : > { %9680 = vmatprep.mubr.msk.f32.mxu0 %vm1110_vm1, %v1003_v49 }
  0xab   : > { %9681 = vmatmul.mubr.msk.f32.gmra.mxu0 %vm1110_vm1, %v1004_v50 }
  0xac   : > { %9683 = vmatprep.mubr.msk.f32.mxu0 %vm1110_vm1, %v1005_v51  ;;  %v1058_v51 = vld [vmem:[%s10717_s12 + $0x328] sm:$0xff] }
  0xaf   : > { %9684 = vmatmul.mubr.msk.f32.gmra.mxu0 %vm1110_vm1, %v1006_v52 }
  0xb0   : > { %9686 = vmatprep.mubr.msk.f32.mxu0 %vm1110_vm1, %v1007_v53  ;;  %v1059_v53 = vld [vmem:[%s10717_s12 + $0x330] sm:$0xff] }
  0xb3   : > { %9687 = vmatmul.mubr.msk.f32.gmra.mxu0 %vm1110_vm1, %v1008_v54 }
  0xb4   : > { %9689 = vmatprep.mubr.msk.f32.mxu0 %vm1110_vm1, %v1009_v55 }
  0xb7   : > { %9690 = vmatmul.mubr.msk.f32.gmra.mxu0 %vm1110_vm1, %v1010_v56 }
  0xb8   : > { %9692 = vmatprep.mubr.msk.f32.mxu0 %vm1110_vm1, %v1011_v57 }
  0xbb   : > { %9693 = vmatmul.mubr.msk.f32.gmra.mxu0 %vm1110_vm1, %v1012_v58 }
  0xbc   : > { %9695 = vmatprep.mubr.msk.f32.mxu0 %vm1110_vm1, %v1013_v59 }
  0xbf   : > { %9696 = vmatmul.mubr.msk.f32.gmra.mxu0 %vm1110_vm1, %v1014_v60  ;;  %v1060_v60 = vld [vmem:[%s10717_s12 + $0x338] sm:$0xff] }
  0xc0   : > { %9698 = vmatprep.mubr.msk.f32.mxu0 %vm1110_vm1, %v1015_v61 }
  0xc3   : > { %9699 = vmatmul.mubr.msk.f32.gmra.mxu0 %vm1110_vm1, %v1016_v62 }
  0xc4   : > { %9701 = vmatprep.mubr.msk.f32.mxu0 %vm1110_vm1, %v1017_v63  ;;  %v1061_v63 = vld [vmem:[%s10717_s12 + $0x340] sm:$0xff] }
  0xc7   : > { %9702 = vmatmul.mubr.msk.f32.gmra.mxu0 %vm1110_vm1, %v1018_v0 }
  0xc8   : > { %9704 = vmatprep.mubr.msk.f32.mxu0 %vm1110_vm1, %v1019_v1 }
  0xcb   : > { %9705 = vmatmul.mubr.msk.f32.gmra.mxu0 %vm1110_vm1, %v1020_v2 }
  0xcc   : > { %9707 = vmatprep.mubr.msk.f32.mxu0 %vm1110_vm1, %v1021_v3 }
  0xcf   : > { %9708 = vmatmul.mubr.msk.f32.gmra.mxu0 %vm1110_vm1, %v1022_v4 }
  0xd0   : > { %9710 = vmatprep.mubr.msk.f32.mxu0 %vm1110_vm1, %v1023_v5 }
  0xd3   : > { %9711 = vmatmul.mubr.msk.f32.gmra.mxu0 %vm1110_vm1, %v1024_v6  ;;  %v1062_v6 = vld [vmem:[%s10717_s12 + $0x348] sm:$0xff] }
  0xd4   : > { %9713 = vmatprep.mubr.msk.f32.mxu0 %vm1110_vm1, %v1025_v7 }
  0xd7   : > { %9714 = vmatmul.mubr.msk.f32.gmra.mxu0 %vm1110_vm1, %v1026_v8 }
  0xd8   : > { %9716 = vmatprep.mubr.msk.f32.mxu0 %vm1110_vm1, %v1027_v9  ;;  %v1063_v9 = vld [vmem:[%s10717_s12 + $0x350] sm:$0xff] }
  0xdb   : > { %9717 = vmatmul.mubr.msk.f32.gmra.mxu0 %vm1110_vm1, %v1028_v10 }
  0xdc   : > { %9719 = vmatprep.mubr.msk.f32.mxu0 %vm1110_vm1, %v1029_v11 }
  0xdf   : > { %9720 = vmatmul.mubr.msk.f32.gmra.mxu0 %vm1110_vm1, %v1030_v12 }
  0xe0   : > { %9722 = vmatprep.mubr.msk.f32.mxu0 %vm1110_vm1, %v1031_v13 }
  0xe3   : > { %9723 = vmatmul.mubr.msk.f32.gmra.mxu0 %vm1110_vm1, %v1032_v14 }
  0xe4   : > { %9725 = vmatprep.mubr.msk.f32.mxu0 %vm1110_vm1, %v1033_v15 }
  0xe7   : > { %9726 = vmatmul.mubr.msk.f32.gmra.mxu0 %vm1110_vm1, %v1034_v17 }
  0xe8   : > { %9728 = vmatprep.mubr.msk.f32.mxu0 %vm1110_vm1, %v1035_v19  ;;  %v1065_v19 = vld [vmem:[%s10717_s12 + $0x360] sm:$0xff] }
  0xeb   : > { %9729 = vmatmul.mubr.msk.f32.gmra.mxu0 %vm1110_vm1, %v1036_v21 }
  0xec   : > { %9731 = vmatprep.mubr.msk.f32.mxu0 %vm1110_vm1, %v1037_v23 }
  0xef   : > { %9732 = vmatmul.mubr.msk.f32.gmra.mxu0 %vm1110_vm1, %v1038_v24 }
  0xf0   : > { %9734 = vmatprep.mubr.msk.f32.mxu0 %vm1110_vm1, %v1039_v25 }
  0xf3   : > { %9735 = vmatmul.mubr.msk.f32.gmra.mxu0 %vm1110_vm1, %v1040_v26  ;;  %v1066_v26 = vld [vmem:[%s10717_s12 + $0x368] sm:$0xff] }
  0xf4   : > { %9737 = vmatprep.mubr.msk.f32.mxu0 %vm1110_vm1, %v1041_v27 }
  0xf7   : > { %9738 = vmatmul.mubr.msk.f32.gmra.mxu0 %vm1110_vm1, %v1042_v28 }
  0xf8   : > { %9740 = vmatprep.mubr.msk.f32.mxu0 %vm1110_vm1, %v1043_v29  ;;  %v1067_v29 = vld [vmem:[%s10717_s12 + $0x370] sm:$0xff] }
  0xfb   : > { %9741 = vmatmul.mubr.msk.f32.gmra.mxu0 %vm1110_vm1, %v1044_v30 }
  0xfc   : > { %9743 = vmatprep.mubr.msk.f32.mxu0 %vm1110_vm1, %v1045_v31 }
  0xff   : > { %9744 = vmatmul.mubr.msk.f32.gmra.mxu0 %vm1110_vm1, %v1046_v32 }
 0x100   : > { %9746 = vmatprep.mubr.msk.f32.mxu0 %vm1110_vm1, %v1047_v33 }
 0x103   : > { %9747 = vmatmul.mubr.msk.f32.gmra.mxu0 %vm1110_vm1, %v1048_v34 }
 0x104   : > { %9749 = vmatprep.mubr.msk.f32.mxu0 %vm1110_vm1, %v1049_v35 }
 0x107   : > { %9750 = vmatmul.mubr.msk.f32.gmra.mxu0 %vm1110_vm1, %v1050_v36  ;;  %v1068_v36 = vld [vmem:[%s10717_s12 + $0x378] sm:$0xff] }
 0x108   : > { %9752 = vmatprep.mubr.msk.f32.mxu0 %vm1110_vm1, %v1051_v37 }
 0x10b   : > { %9753 = vmatmul.mubr.msk.f32.gmra.mxu0 %vm1110_vm1, %v1052_v38 }
 0x10c   : > { %9755 = vmatprep.mubr.msk.f32.mxu0 %vm1110_vm1, %v1053_v39  ;;  %v1069_v39 = vld [vmem:[%s10717_s12 + $0x380] sm:$0xff] }
 0x10f   : > { %v9613_v42 = vpop.f32.mrf.mxu0  ;;  %9756 = vmatmul.mubr.msk.f32.gmra.mxu0 %vm1110_vm1, %v1054_v40 }
 0x110   : > { %9758 = vmatprep.mubr.msk.f32.mxu0 %vm1110_vm1, %v1055_v41  ;;  %v10931_v47 = vadd.f32 %v9613_v42, %v10924_v43 }
 0x111   : > { %v1613_v45 = vpop.f32.mrf.mxu0 }
 0x112   : > { %v10934_v48 = vadd.f32 %v10924_v43, %v1613_v45  ;;  %v2336_v54 = vsel %vm2334_vm2, %v10931_v47, 0.0 }
 0x113   : > { %v9616_v49 = vpop.f32.mrf.mxu0  ;;  %9759 = vmatmul.mubr.msk.f32.gmra.mxu0 %vm1110_vm1, %v1056_v44 }
 0x114   : > { %v2335_v50 = vsel %vm2334_vm2, %v10934_v48, 0.0  ;;  %9761 = vmatprep.mubr.msk.f32.mxu0 %vm1110_vm1, %v1057_v46  ;;  %v10945_v55 = vadd.f32 %v9616_v49, %v10924_v43  ;;  %v1070_v49 = vld [vmem:[%s10717_s12 + $0x388] sm:$0xff] }
 0x115   : > { %v1623_v52 = vpop.f32.mrf.mxu0  ;;  %v2337_v57 = vadd.f32 %v2336_v54, %v2335_v50 }
 0x116   : > { %v10948_v56 = vadd.f32 %v10924_v43, %v1623_v52  ;;  %v2340_v0 = vsel %vm2334_vm2, %v10945_v55, 0.0  ;;  %v1071_v52 = vld [vmem:[%s10717_s12 + $0x390] sm:$0xff] }
 0x117   : > { %v9619_v58 = vpop.f32.mrf.mxu0  ;;  %9762 = vmatmul.mubr.msk.f32.gmra.mxu0 %vm1110_vm1, %v1058_v51 }
 0x118   : > { %v2338_v59 = vsel %vm2334_vm2, %v10948_v56, 0.0  ;;  %9764 = vmatprep.mubr.msk.f32.mxu0 %vm1110_vm1, %v1059_v53  ;;  %v10959_v1 = vadd.f32 %v9619_v58, %v10924_v43 }
 0x119   : > { %v2339_v61 = vadd.f32 %v2338_v59, %v2337_v57  ;;  %v1633_v62 = vpop.f32.mrf.mxu0 }
 0x11a   : > { %v10962_v2 = vadd.f32 %v10924_v43, %v1633_v62  ;;  %v2344_v10 = vsel %vm2334_vm2, %v10959_v1, 0.0 }
 0x11b   : > { %v2341_v3 = vadd.f32 %v2340_v0, %v2339_v61  ;;  %v9622_v4 = vpop.f32.mrf.mxu0  ;;  %9765 = vmatmul.mubr.msk.f32.gmra.mxu0 %vm1110_vm1, %v1060_v60  ;;  %v1072_v61 = vld [vmem:[%s10717_s12 + $0x398] sm:$0xff]  ;;  %v1073_v0 = vld [vmem:[%s10717_s12 + $0x3a0] sm:$0xff] }
 0x11c   : > { %v2342_v5 = vsel %vm2334_vm2, %v10962_v2, 0.0  ;;  %9767 = vmatprep.mubr.msk.f32.mxu0 %vm1110_vm1, %v1061_v63  ;;  %v10973_v11 = vadd.f32 %v9622_v4, %v10924_v43 }
 0x11d   : > { %v2343_v7 = vadd.f32 %v2342_v5, %v2341_v3  ;;  %v1643_v8 = vpop.f32.mrf.mxu0 }
 0x11e   : > { %v10976_v12 = vadd.f32 %v10924_v43, %v1643_v8  ;;  %v2348_v20 = vsel %vm2334_vm2, %v10973_v11, 0.0 }
 0x11f   : > { %v2345_v13 = vadd.f32 %v2344_v10, %v2343_v7  ;;  %v9625_v14 = vpop.f32.mrf.mxu0  ;;  %9768 = vmatmul.mubr.msk.f32.gmra.mxu0 %vm1110_vm1, %v1062_v6 }
 0x120   : > { %v2346_v15 = vsel %vm2334_vm2, %v10976_v12, 0.0  ;;  %9770 = vmatprep.mubr.msk.f32.mxu0 %vm1110_vm1, %v1063_v9  ;;  %v10987_v21 = vadd.f32 %v9625_v14, %v10924_v43  ;;  %v1074_v9 = vld [vmem:[%s10717_s12 + $0x3a8] sm:$0xff]  ;;  %v1075_v14 = vld [vmem:[%s10717_s12 + $0x3b0] sm:$0xff] }
 0x121   : > { %v2347_v17 = vadd.f32 %v2346_v15, %v2345_v13  ;;  %v1653_v18 = vpop.f32.mrf.mxu0 }
 0x122   : > { %v10990_v22 = vadd.f32 %v10924_v43, %v1653_v18  ;;  %v2352_v30 = vsel %vm2334_vm2, %v10987_v21, 0.0 }
 0x123   : > { %v2349_v23 = vadd.f32 %v2348_v20, %v2347_v17  ;;  %v9628_v24 = vpop.f32.mrf.mxu0  ;;  %9771 = vmatmul.mubr.msk.f32.gmra.mxu0 %vm1110_vm1, %v1064_v16 }
 0x124   : > { %v2350_v25 = vsel %vm2334_vm2, %v10990_v22, 0.0  ;;  %9773 = vmatprep.mubr.msk.f32.mxu0 %vm1110_vm1, %v1065_v19  ;;  %v11001_v31 = vadd.f32 %v9628_v24, %v10924_v43 }
 0x125   : > { %v2351_v27 = vadd.f32 %v2350_v25, %v2349_v23  ;;  %v1663_v28 = vpop.f32.mrf.mxu0  ;;  %v1076_v23 = vld [vmem:[%s10717_s12 + $0x3b8] sm:$0xff] }
 0x126   : > { %v11004_v32 = vadd.f32 %v10924_v43, %v1663_v28  ;;  %v2356_v40 = vsel %vm2334_vm2, %v11001_v31, 0.0 }
 0x127   : > { %v2353_v33 = vadd.f32 %v2352_v30, %v2351_v27  ;;  %v9631_v34 = vpop.f32.mrf.mxu0  ;;  %9774 = vmatmul.mubr.msk.f32.gmra.mxu0 %vm1110_vm1, %v1066_v26  ;;  %v1077_v26 = vld [vmem:[%s10717_s12 + $0x3c0] sm:$0xff] }
 0x128   : > { %v2354_v35 = vsel %vm2334_vm2, %v11004_v32, 0.0  ;;  %9776 = vmatprep.mubr.msk.f32.mxu0 %vm1110_vm1, %v1067_v29  ;;  %v11015_v41 = vadd.f32 %v9631_v34, %v10924_v43 }
 0x129   : > { %v2355_v37 = vadd.f32 %v2354_v35, %v2353_v33  ;;  %v1673_v38 = vpop.f32.mrf.mxu0  ;;  %v1078_v35 = vld [vmem:[%s10717_s12 + $0x3c8] sm:$0xff] }
 0x12a   : > { %v11018_v42 = vadd.f32 %v10924_v43, %v1673_v38  ;;  %v2360_v53 = vsel %vm2334_vm2, %v11015_v41, 0.0  ;;  %v1079_v38 = vld [vmem:[%s10717_s12 + $0x3d0] sm:$0xff] }
 0x12b   : > { %v2357_v44 = vadd.f32 %v2356_v40, %v2355_v37  ;;  %v9634_v45 = vpop.f32.mrf.mxu0  ;;  %9777 = vmatmul.mubr.msk.f32.gmra.mxu0 %vm1110_vm1, %v1068_v36 }
 0x12c   : > { %v2358_v46 = vsel %vm2334_vm2, %v11018_v42, 0.0  ;;  %9779 = vmatprep.mubr.msk.f32.mxu0 %vm1110_vm1, %v1069_v39  ;;  %v11029_v54 = vadd.f32 %v9634_v45, %v10924_v43 }
 0x12d   : > { %v2359_v50 = vadd.f32 %v2358_v46, %v2357_v44  ;;  %v1683_v51 = vpop.f32.mrf.mxu0 }
 0x12e   : > { %v11032_v57 = vadd.f32 %v10924_v43, %v1683_v51  ;;  %v2364_v3 = vsel %vm2334_vm2, %v11029_v54, 0.0 }
 0x12f   : > { %v2361_v58 = vadd.f32 %v2360_v53, %v2359_v50  ;;  %v9637_v59 = vpop.f32.mrf.mxu0  ;;  %9780 = vmatmul.mubr.msk.f32.gmra.mxu0 %vm1110_vm1, %v1070_v49  ;;  %v1080_v50 = vld [vmem:[%s10717_s12 + $0x3d8] sm:$0xff]  ;;  %v1081_v53 = vld [vmem:[%s10717_s12 + $0x3e0] sm:$0xff] }
 0x130   : > { %v2362_v60 = vsel %vm2334_vm2, %v11032_v57, 0.0  ;;  %9782 = vmatprep.mubr.msk.f32.mxu0 %vm1110_vm1, %v1071_v52  ;;  %v11043_v4 = vadd.f32 %v9637_v59, %v10924_v43 }
 0x131   : > { %v2363_v62 = vadd.f32 %v2362_v60, %v2361_v58  ;;  %v1693_v63 = vpop.f32.mrf.mxu0 }
 0x132   : > { %v11046_v5 = vadd.f32 %v10924_v43, %v1693_v63  ;;  %v2368_v15 = vsel %vm2334_vm2, %v11043_v4, 0.0 }
 0x133   : > { %v2365_v6 = vadd.f32 %v2364_v3, %v2363_v62  ;;  %v9640_v7 = vpop.f32.mrf.mxu0  ;;  %9783 = vmatmul.mubr.msk.f32.gmra.mxu0 %vm1110_vm1, %v1072_v61 }
 0x134   : > { %v2366_v8 = vsel %vm2334_vm2, %v11046_v5, 0.0  ;;  %9785 = vmatprep.mubr.msk.f32.mxu0 %vm1110_vm1, %v1073_v0  ;;  %v11057_v16 = vadd.f32 %v9640_v7, %v10924_v43  ;;  %v1082_v0 = vld [vmem:[%s10717_s12 + $0x3e8] sm:$0xff]  ;;  %v1083_v7 = vld [vmem:[%s10717_s12 + $0x3f0] sm:$0xff] }
 0x135   : > { %v2367_v10 = vadd.f32 %v2366_v8, %v2365_v6  ;;  %v1703_v13 = vpop.f32.mrf.mxu0 }
 0x136   : > { %v11060_v17 = vadd.f32 %v10924_v43, %v1703_v13  ;;  %v2372_v27 = vsel %vm2334_vm2, %v11057_v16, 0.0 }
 0x137   : > { %v2369_v18 = vadd.f32 %v2368_v15, %v2367_v10  ;;  %v9643_v19 = vpop.f32.mrf.mxu0  ;;  %9786 = vmatmul.mubr.msk.f32.gmra.mxu0 %vm1110_vm1, %v1074_v9 }
 0x138   : > { %v2370_v20 = vsel %vm2334_vm2, %v11060_v17, 0.0  ;;  %9788 = vmatprep.mubr.msk.f32.mxu0 %vm1110_vm1, %v1075_v14  ;;  %v11071_v28 = vadd.f32 %v9643_v19, %v10924_v43 }
 0x139   : > { %v2371_v24 = vadd.f32 %v2370_v20, %v2369_v18  ;;  %v1713_v25 = vpop.f32.mrf.mxu0  ;;  %v1084_v18 = vld [vmem:[%s10717_s12 + $0x3f8] sm:$0xff] }
 0x13a   : > { %v11074_v29 = vadd.f32 %v10924_v43, %v1713_v25  ;;  %v2376_v39 = vsel %vm2334_vm2, %v11071_v28, 0.0 }
 0x13b   : > { %v2373_v30 = vadd.f32 %v2372_v27, %v2371_v24  ;;  %v9646_v33 = vpop.f32.mrf.mxu0  ;;  %9789 = vmatmul.mubr.msk.f32.gmra.mxu0 %vm1110_vm1, %v1076_v23  ;;  %v1085_v23 = vld [vmem:[%s10717_s12 + $0x400] sm:$0xff] }
 0x13c   : > { %v2374_v34 = vsel %vm2334_vm2, %v11074_v29, 0.0  ;;  %9791 = vmatprep.mubr.msk.f32.mxu0 %vm1110_vm1, %v1077_v26  ;;  %v11085_v40 = vadd.f32 %v9646_v33, %v10924_v43 }
 0x13d   : > { %v2375_v36 = vadd.f32 %v2374_v34, %v2373_v30  ;;  %v1723_v37 = vpop.f32.mrf.mxu0  ;;  %v1086_v34 = vld [vmem:[%s10717_s12 + $0x408] sm:$0xff] }
 0x13e   : > { %v11088_v44 = vadd.f32 %v10924_v43, %v1723_v37  ;;  %v2380_v58 = vsel %vm2334_vm2, %v11085_v40, 0.0  ;;  %v1087_v37 = vld [vmem:[%s10717_s12 + $0x410] sm:$0xff] }
 0x13f   : > { %v2377_v45 = vadd.f32 %v2376_v39, %v2375_v36  ;;  %v9649_v46 = vpop.f32.mrf.mxu0  ;;  %9792 = vmatmul.mubr.msk.f32.gmra.mxu0 %vm1110_vm1, %v1078_v35 }
 0x140   : > { %v2378_v49 = vsel %vm2334_vm2, %v11088_v44, 0.0  ;;  %9794 = vmatprep.mubr.msk.f32.mxu0 %vm1110_vm1, %v1079_v38  ;;  %v11099_v59 = vadd.f32 %v9649_v46, %v10924_v43 }
 0x141   : > { %v2379_v51 = vadd.f32 %v2378_v49, %v2377_v45  ;;  %v1733_v52 = vpop.f32.mrf.mxu0 }
 0x142   : > { %v11102_v60 = vadd.f32 %v10924_v43, %v1733_v52  ;;  %v2384_v8 = vsel %vm2334_vm2, %v11099_v59, 0.0 }
 0x143   : > { %v2381_v61 = vadd.f32 %v2380_v58, %v2379_v51  ;;  %v9652_v62 = vpop.f32.mrf.mxu0  ;;  %9795 = vmatmul.mubr.msk.f32.gmra.mxu0 %vm1110_vm1, %v1080_v50  ;;  %v1088_v51 = vld [vmem:[%s10717_s12 + $0x418] sm:$0xff]  ;;  %v1089_v58 = vld [vmem:[%s10717_s12 + $0x420] sm:$0xff] }
 0x144   : > { %v2382_v63 = vsel %vm2334_vm2, %v11102_v60, 0.0  ;;  %9797 = vmatprep.mubr.msk.f32.mxu0 %vm1110_vm1, %v1081_v53  ;;  %v11113_v9 = vadd.f32 %v9652_v62, %v10924_v43 }
 0x145   : > { %v2383_v3 = vadd.f32 %v2382_v63, %v2381_v61  ;;  %v1743_v6 = vpop.f32.mrf.mxu0 }
 0x146   : > { %v11116_v10 = vadd.f32 %v10924_v43, %v1743_v6  ;;  %v2388_v24 = vsel %vm2334_vm2, %v11113_v9, 0.0 }
 0x147   : > { %v2385_v13 = vadd.f32 %v2384_v8, %v2383_v3  ;;  %v9655_v14 = vpop.f32.mrf.mxu0  ;;  %9798 = vmatmul.mubr.msk.f32.gmra.mxu0 %vm1110_vm1, %v1082_v0 }
 0x148   : > { %v2386_v15 = vsel %vm2334_vm2, %v11116_v10, 0.0  ;;  %9800 = vmatprep.mubr.msk.f32.mxu0 %vm1110_vm1, %v1083_v7  ;;  %v11127_v25 = vadd.f32 %v9655_v14, %v10924_v43  ;;  %v1090_v7 = vld [vmem:[%s10717_s12 + $0x428] sm:$0xff]  ;;  %v1091_v14 = vld [vmem:[%s10717_s12 + $0x430] sm:$0xff] }
 0x149   : > { %v2387_v19 = vadd.f32 %v2386_v15, %v2385_v13  ;;  %v1753_v20 = vpop.f32.mrf.mxu0 }
 0x14a   : > { %v11130_v26 = vadd.f32 %v10924_v43, %v1753_v20  ;;  %v2392_v38 = vsel %vm2334_vm2, %v11127_v25, 0.0 }
 0x14b   : > { %v2389_v27 = vadd.f32 %v2388_v24, %v2387_v19  ;;  %v9658_v30 = vpop.f32.mrf.mxu0  ;;  %9801 = vmatmul.mubr.msk.f32.gmra.mxu0 %vm1110_vm1, %v1084_v18 }
 0x14c   : > { %v2390_v33 = vsel %vm2334_vm2, %v11130_v26, 0.0  ;;  %9803 = vmatprep.mubr.msk.f32.mxu0 %vm1110_vm1, %v1085_v23  ;;  %v11141_v39 = vadd.f32 %v9658_v30, %v10924_v43 }
 0x14d   : > { %v2391_v35 = vadd.f32 %v2390_v33, %v2389_v27  ;;  %v1763_v36 = vpop.f32.mrf.mxu0  ;;  %v1092_v27 = vld [vmem:[%s10717_s12 + $0x438] sm:$0xff] }
 0x14e   : > { %v11144_v45 = vadd.f32 %v10924_v43, %v1763_v36  ;;  %v2396_v61 = vsel %vm2334_vm2, %v11141_v39, 0.0 }
 0x14f   : > { %v2393_v46 = vadd.f32 %v2392_v38, %v2391_v35  ;;  %v9661_v49 = vpop.f32.mrf.mxu0  ;;  %9804 = vmatmul.mubr.msk.f32.gmra.mxu0 %vm1110_vm1, %v1086_v34  ;;  %v1093_v34 = vld [vmem:[%s10717_s12 + $0x440] sm:$0xff] }
 0x150   : > { %v2394_v50 = vsel %vm2334_vm2, %v11144_v45, 0.0  ;;  %9806 = vmatprep.mubr.msk.f32.mxu0 %vm1110_vm1, %v1087_v37  ;;  %v11155_v62 = vadd.f32 %v9661_v49, %v10924_v43 }
 0x151   : > { %v2395_v52 = vadd.f32 %v2394_v50, %v2393_v46  ;;  %v1773_v53 = vpop.f32.mrf.mxu0  ;;  %v1094_v50 = vld [vmem:[%s10717_s12 + $0x448] sm:$0xff] }
 0x152   : > { %v11158_v63 = vadd.f32 %v10924_v43, %v1773_v53  ;;  %v2400_v15 = vsel %vm2334_vm2, %v11155_v62, 0.0  ;;  %v1095_v53 = vld [vmem:[%s10717_s12 + $0x450] sm:$0xff] }
 0x153   : > { %v2397_v0 = vadd.f32 %v2396_v61, %v2395_v52  ;;  %v9664_v3 = vpop.f32.mrf.mxu0  ;;  %9807 = vmatmul.mubr.msk.f32.gmra.mxu0 %vm1110_vm1, %v1088_v51 }
 0x154   : > { %v2398_v6 = vsel %vm2334_vm2, %v11158_v63, 0.0  ;;  %9809 = vmatprep.mubr.msk.f32.mxu0 %vm1110_vm1, %v1089_v58  ;;  %v11169_v18 = vadd.f32 %v9664_v3, %v10924_v43 }
 0x155   : > { %v2399_v8 = vadd.f32 %v2398_v6, %v2397_v0  ;;  %v1783_v13 = vpop.f32.mrf.mxu0 }
 0x156   : > { %v11172_v19 = vadd.f32 %v10924_v43, %v1783_v13  ;;  %v2404_v35 = vsel %vm2334_vm2, %v11169_v18, 0.0 }
 0x157   : > { %v2401_v20 = vadd.f32 %v2400_v15, %v2399_v8  ;;  %v9667_v23 = vpop.f32.mrf.mxu0  ;;  %9810 = vmatmul.mubr.msk.f32.gmra.mxu0 %vm1110_vm1, %v1090_v7  ;;  %v1096_v8 = vld [vmem:[%s10717_s12 + $0x458] sm:$0xff] }
 0x158   : > { %v2402_v24 = vsel %vm2334_vm2, %v11172_v19, 0.0  ;;  %9812 = vmatprep.mubr.msk.f32.mxu0 %vm1110_vm1, %v1091_v14  ;;  %v11183_v36 = vadd.f32 %v9667_v23, %v10924_v43 }
 0x159   : > { %v2403_v30 = vadd.f32 %v2402_v24, %v2401_v20  ;;  %v1793_v33 = vpop.f32.mrf.mxu0 }
 0x15a   : > { %v11186_v37 = vadd.f32 %v10924_v43, %v1793_v33  ;;  %v2408_v58 = vsel %vm2334_vm2, %v11183_v36, 0.0 }
 0x15b   : > { %v2405_v38 = vadd.f32 %v2404_v35, %v2403_v30  ;;  %v9670_v46 = vpop.f32.mrf.mxu0  ;;  %9813 = vmatmul.mubr.msk.f32.gmra.mxu0 %vm1110_vm1, %v1092_v27 }
 0x15c   : > { %v2406_v49 = vsel %vm2334_vm2, %v11186_v37, 0.0  ;;  %9815 = vmatprep.mubr.msk.f32.mxu0 %vm1110_vm1, %v1093_v34  ;;  %v11197_v61 = vadd.f32 %v9670_v46, %v10924_v43 }
 0x15d   : > { %v2407_v51 = vadd.f32 %v2406_v49, %v2405_v38  ;;  %v1803_v52 = vpop.f32.mrf.mxu0 }
 0x15e   : > { %v11200_v0 = vadd.f32 %v10924_v43, %v1803_v52  ;;  %v2412_v15 = vsel %vm2334_vm2, %v11197_v61, 0.0 }
 0x15f   : > { %v2409_v3 = vadd.f32 %v2408_v58, %v2407_v51  ;;  %v9673_v6 = vpop.f32.mrf.mxu0  ;;  %9816 = vmatmul.mubr.msk.f32.gmra.mxu0 %vm1110_vm1, %v1094_v50 }
 0x160   : > { %v2410_v7 = vsel %vm2334_vm2, %v11200_v0, 0.0  ;;  %9818 = vmatprep.mubr.msk.f32.mxu0 %vm1110_vm1, %v1095_v53  ;;  %v11210_v20 = vadd.f32 %v9673_v6, %v10924_v43 }
 0x161   : > { %v2411_v13 = vadd.f32 %v2410_v7, %v2409_v3  ;;  %v1813_v14 = vpop.f32.mrf.mxu0 }
 0x162   : > { %v11213_v23 = vadd.f32 %v10924_v43, %v1813_v14  ;;  %v2416_v35 = vsel %vm2334_vm2, %v11210_v20, 0.0 }
 0x163   : > { %v2413_v24 = vadd.f32 %v2412_v15, %v2411_v13  ;;  %v9676_v27 = vpop.f32.mrf.mxu0  ;;  %9819 = vmatmul.mubr.msk.f32.gmra.mxu0 %vm1110_vm1, %v1096_v8 }
 0x164   : > { %v2414_v30 = vsel %vm2334_vm2, %v11213_v23, 0.0  ;;  %v11221_v38 = vadd.f32 %v9676_v27, %v10924_v43 }
 0x165   : > { %v2415_v33 = vadd.f32 %v2414_v30, %v2413_v24  ;;  %v1823_v34 = vpop.f32.mrf.mxu0 }
 0x166   : > { %v11224_v46 = vadd.f32 %v10924_v43, %v1823_v34  ;;  %v2420_v58 = vsel %vm2334_vm2, %v11221_v38, 0.0 }
 0x167   : > { %v2417_v49 = vadd.f32 %v2416_v35, %v2415_v33  ;;  %v9679_v50 = vpop.f32.mrf.mxu0 }
 0x168   : > { %v2418_v51 = vsel %vm2334_vm2, %v11224_v46, 0.0  ;;  %v11231_v3 = vadd.f32 %v9679_v50, %v10924_v43 }
 0x169   : > { %v2419_v52 = vadd.f32 %v2418_v51, %v2417_v49  ;;  %v1833_v53 = vpop.f32.mrf.mxu0 }
 0x16a   : > { %v11234_v6 = vadd.f32 %v10924_v43, %v1833_v53  ;;  %v2424_v24 = vsel %vm2334_vm2, %v11231_v3, 0.0 }
 0x16b   : > { %v2421_v7 = vadd.f32 %v2420_v58, %v2419_v52  ;;  %v9682_v8 = vpop.f32.mrf.mxu0 }
 0x16c   : > { %v2422_v13 = vsel %vm2334_vm2, %v11234_v6, 0.0  ;;  %v11241_v27 = vadd.f32 %v9682_v8, %v10924_v43 }
 0x16d   : > { %v2423_v14 = vadd.f32 %v2422_v13, %v2421_v7  ;;  %v1843_v15 = vpop.f32.mrf.mxu0 }
 0x16e   : > { %15226 = vst [vmem:[#allocation17_spill] sm:$0xff] %v11241_v27  ;;  %v11244_v30 = vadd.f32 %v10924_v43, %v1843_v15  ;;  %v2428_v51 = vsel %vm2334_vm2, %v11241_v27, 0.0  ;;  %v9823_v27 = vpop.f32.mrf.mxu1 }
 0x16f   : > { %v2425_v33 = vadd.f32 %v2424_v24, %v2423_v14  ;;  %v9685_v34 = vpop.f32.mrf.mxu0 }
 0x170   : > { %15227 = vst [vmem:[#allocation18_spill] sm:$0xff] %v11244_v30  ;;  %v2426_v35 = vsel %vm2334_vm2, %v11244_v30, 0.0  ;;  %v11251_v52 = vadd.f32 %v9685_v34, %v10924_v43 }
 0x171   : > { %v2427_v49 = vadd.f32 %v2426_v35, %v2425_v33  ;;  %v1853_v50 = vpop.f32.mrf.mxu0 }
 0x172   : > { %15228 = vst [vmem:[#allocation19_spill] sm:$0xff] %v11251_v52  ;;  %v11254_v53 = vadd.f32 %v10924_v43, %v1853_v50  ;;  %v2432_v15 = vsel %vm2334_vm2, %v11251_v52, 0.0 }
 0x173   : > { %v2429_v58 = vadd.f32 %v2428_v51, %v2427_v49  ;;  %v9688_v7 = vpop.f32.mrf.mxu0 }
 0x174   : > { %15229 = vst [vmem:[#allocation20_spill] sm:$0xff] %v11254_v53  ;;  %v2430_v8 = vsel %vm2334_vm2, %v11254_v53, 0.0  ;;  %v11261_v24 = vadd.f32 %v9688_v7, %v10924_v43 }
 0x175   : > { %v2431_v13 = vadd.f32 %v2430_v8, %v2429_v58  ;;  %v1863_v14 = vpop.f32.mrf.mxu0 }
 0x176   : > { %15230 = vst [vmem:[#allocation21_spill] sm:$0xff] %v11261_v24  ;;  %v11264_v33 = vadd.f32 %v10924_v43, %v1863_v14  ;;  %v2436_v58 = vsel %vm2334_vm2, %v11261_v24, 0.0 }
 0x177   : > { %v2433_v34 = vadd.f32 %v2432_v15, %v2431_v13  ;;  %v9691_v35 = vpop.f32.mrf.mxu0 }
 0x178   : > { %15231 = vst [vmem:[#allocation22_spill] sm:$0xff] %v11264_v33  ;;  %v2434_v49 = vsel %vm2334_vm2, %v11264_v33, 0.0  ;;  %v11271_v8 = vadd.f32 %v9691_v35, %v10924_v43 }
 0x179   : > { %v2435_v50 = vadd.f32 %v2434_v49, %v2433_v34  ;;  %v1873_v51 = vpop.f32.mrf.mxu0 }
 0x17a   : > { %15232 = vst [vmem:[#allocation23_spill] sm:$0xff] %v11271_v8  ;;  %v11274_v52 = vadd.f32 %v10924_v43, %v1873_v51  ;;  %v2440_v34 = vsel %vm2334_vm2, %v11271_v8, 0.0 }
 0x17b   : > { %v2437_v7 = vadd.f32 %v2436_v58, %v2435_v50  ;;  %v9694_v53 = vpop.f32.mrf.mxu0 }
 0x17c   : > { %15233 = vst [vmem:[#allocation24_spill] sm:$0xff] %v11274_v52  ;;  %v2438_v13 = vsel %vm2334_vm2, %v11274_v52, 0.0  ;;  %v11281_v49 = vadd.f32 %v9694_v53, %v10924_v43 }
 0x17d   : > { %v2439_v14 = vadd.f32 %v2438_v13, %v2437_v7  ;;  %v1883_v15 = vpop.f32.mrf.mxu0 }
 0x17e   : > { %15234 = vst [vmem:[#allocation25_spill] sm:$0xff] %v11281_v49  ;;  %v11284_v24 = vadd.f32 %v10924_v43, %v1883_v15  ;;  %v2444_v7 = vsel %vm2334_vm2, %v11281_v49, 0.0 }
 0x17f   : > { %v2441_v35 = vadd.f32 %v2440_v34, %v2439_v14  ;;  %v9697_v33 = vpop.f32.mrf.mxu0 }
 0x180   : > { %15235 = vst [vmem:[#allocation26_spill] sm:$0xff] %v11284_v24  ;;  %v2442_v50 = vsel %vm2334_vm2, %v11284_v24, 0.0  ;;  %v11291_v13 = vadd.f32 %v9697_v33, %v10924_v43 }
 0x181   : > { %v2443_v51 = vadd.f32 %v2442_v50, %v2441_v35  ;;  %v1893_v58 = vpop.f32.mrf.mxu0 }
 0x182   : > { %15236 = vst [vmem:[#allocation27_spill] sm:$0xff] %v11291_v13  ;;  %v11294_v8 = vadd.f32 %v10924_v43, %v1893_v58  ;;  %v2448_v35 = vsel %vm2334_vm2, %v11291_v13, 0.0 }
 0x183   : > { %v2445_v53 = vadd.f32 %v2444_v7, %v2443_v51  ;;  %v9700_v52 = vpop.f32.mrf.mxu0 }
 0x184   : > { %15237 = vst [vmem:[#allocation28_spill] sm:$0xff] %v11294_v8  ;;  %v2446_v14 = vsel %vm2334_vm2, %v11294_v8, 0.0  ;;  %v11301_v50 = vadd.f32 %v9700_v52, %v10924_v43 }
 0x185   : > { %v2447_v15 = vadd.f32 %v2446_v14, %v2445_v53  ;;  %v1903_v34 = vpop.f32.mrf.mxu0 }
 0x186   : > { %15238 = vst [vmem:[#allocation29_spill] sm:$0xff] %v11301_v50  ;;  %v11304_v49 = vadd.f32 %v10924_v43, %v1903_v34  ;;  %v2452_v53 = vsel %vm2334_vm2, %v11301_v50, 0.0 }
 0x187   : > { %v2449_v33 = vadd.f32 %v2448_v35, %v2447_v15  ;;  %v9703_v24 = vpop.f32.mrf.mxu0 }
 0x188   : > { %15239 = vst [vmem:[#allocation30_spill] sm:$0xff] %v11304_v49  ;;  %v2450_v51 = vsel %vm2334_vm2, %v11304_v49, 0.0  ;;  %v11311_v14 = vadd.f32 %v9703_v24, %v10924_v43 }
 0x189   : > { %v2451_v58 = vadd.f32 %v2450_v51, %v2449_v33  ;;  %v1913_v7 = vpop.f32.mrf.mxu0 }
 0x18a   : > { %15240 = vst [vmem:[#allocation31_spill] sm:$0xff] %v11311_v14  ;;  %v11314_v13 = vadd.f32 %v10924_v43, %v1913_v7  ;;  %v2456_v33 = vsel %vm2334_vm2, %v11311_v14, 0.0 }
 0x18b   : > { %v2453_v52 = vadd.f32 %v2452_v53, %v2451_v58  ;;  %v9706_v8 = vpop.f32.mrf.mxu0 }
 0x18c   : > { %15241 = vst [vmem:[#allocation32_spill] sm:$0xff] %v11314_v13  ;;  %v2454_v15 = vsel %vm2334_vm2, %v11314_v13, 0.0  ;;  %v11321_v51 = vadd.f32 %v9706_v8, %v10924_v43 }
 0x18d   : > { %v2455_v34 = vadd.f32 %v2454_v15, %v2453_v52  ;;  %v1923_v35 = vpop.f32.mrf.mxu0 }
 0x18e   : > { %15242 = vst [vmem:[#allocation33_spill] sm:$0xff] %v11321_v51  ;;  %v11324_v50 = vadd.f32 %v10924_v43, %v1923_v35  ;;  %v2460_v52 = vsel %vm2334_vm2, %v11321_v51, 0.0 }
 0x18f   : > { %v2457_v24 = vadd.f32 %v2456_v33, %v2455_v34  ;;  %v9709_v49 = vpop.f32.mrf.mxu0 }
 0x190   : > { %15243 = vst [vmem:[#allocation34_spill] sm:$0xff] %v11324_v50  ;;  %v2458_v58 = vsel %vm2334_vm2, %v11324_v50, 0.0  ;;  %v11331_v15 = vadd.f32 %v9709_v49, %v10924_v43 }
 0x191   : > { %v2459_v7 = vadd.f32 %v2458_v58, %v2457_v24  ;;  %v1933_v53 = vpop.f32.mrf.mxu0 }
 0x192   : > { %15244 = vst [vmem:[#allocation35_spill] sm:$0xff] %v11331_v15  ;;  %v11334_v14 = vadd.f32 %v10924_v43, %v1933_v53  ;;  %v2464_v24 = vsel %vm2334_vm2, %v11331_v15, 0.0 }
 0x193   : > { %v2461_v8 = vadd.f32 %v2460_v52, %v2459_v7  ;;  %v9712_v13 = vpop.f32.mrf.mxu0 }
 0x194   : > { %15245 = vst [vmem:[#allocation36_spill] sm:$0xff] %v11334_v14  ;;  %v2462_v34 = vsel %vm2334_vm2, %v11334_v14, 0.0  ;;  %v11341_v58 = vadd.f32 %v9712_v13, %v10924_v43 }
 0x195   : > { %v2463_v35 = vadd.f32 %v2462_v34, %v2461_v8  ;;  %v1943_v33 = vpop.f32.mrf.mxu0 }
 0x196   : > { %15246 = vst [vmem:[#allocation37_spill] sm:$0xff] %v11341_v58  ;;  %v11344_v51 = vadd.f32 %v10924_v43, %v1943_v33  ;;  %v2468_v8 = vsel %vm2334_vm2, %v11341_v58, 0.0 }
 0x197   : > { %v2465_v49 = vadd.f32 %v2464_v24, %v2463_v35  ;;  %v9715_v50 = vpop.f32.mrf.mxu0 }
 0x198   : > { %15247 = vst [vmem:[#allocation38_spill] sm:$0xff] %v11344_v51  ;;  %v2466_v7 = vsel %vm2334_vm2, %v11344_v51, 0.0  ;;  %v11351_v34 = vadd.f32 %v9715_v50, %v10924_v43 }
 0x199   : > { %v2467_v53 = vadd.f32 %v2466_v7, %v2465_v49  ;;  %v1953_v52 = vpop.f32.mrf.mxu0 }
 0x19a   : > { %15248 = vst [vmem:[#allocation39_spill] sm:$0xff] %v11351_v34  ;;  %v11354_v15 = vadd.f32 %v10924_v43, %v1953_v52  ;;  %v2472_v49 = vsel %vm2334_vm2, %v11351_v34, 0.0 }
 0x19b   : > { %v2469_v13 = vadd.f32 %v2468_v8, %v2467_v53  ;;  %v9718_v14 = vpop.f32.mrf.mxu0 }
 0x19c   : > { %15249 = vst [vmem:[#allocation40_spill] sm:$0xff] %v11354_v15  ;;  %v2470_v35 = vsel %vm2334_vm2, %v11354_v15, 0.0  ;;  %v11361_v7 = vadd.f32 %v9718_v14, %v10924_v43 }
 0x19d   : > { %v2471_v33 = vadd.f32 %v2470_v35, %v2469_v13  ;;  %v1963_v24 = vpop.f32.mrf.mxu0 }
 0x19e   : > { %15250 = vst [vmem:[#allocation41_spill] sm:$0xff] %v11361_v7  ;;  %v11364_v58 = vadd.f32 %v10924_v43, %v1963_v24  ;;  %v2476_v13 = vsel %vm2334_vm2, %v11361_v7, 0.0 }
 0x19f   : > { %v2473_v50 = vadd.f32 %v2472_v49, %v2471_v33  ;;  %v9721_v51 = vpop.f32.mrf.mxu0 }
 0x1a0   : > { %15251 = vst [vmem:[#allocation42_spill] sm:$0xff] %v11364_v58  ;;  %v2474_v53 = vsel %vm2334_vm2, %v11364_v58, 0.0  ;;  %v11371_v35 = vadd.f32 %v9721_v51, %v10924_v43 }
 0x1a1   : > { %v2475_v52 = vadd.f32 %v2474_v53, %v2473_v50  ;;  %v1973_v8 = vpop.f32.mrf.mxu0 }
 0x1a2   : > { %15252 = vst [vmem:[#allocation43_spill] sm:$0xff] %v11371_v35  ;;  %v11374_v34 = vadd.f32 %v10924_v43, %v1973_v8  ;;  %v2480_v50 = vsel %vm2334_vm2, %v11371_v35, 0.0 }
 0x1a3   : > { %v2477_v14 = vadd.f32 %v2476_v13, %v2475_v52  ;;  %v9724_v15 = vpop.f32.mrf.mxu0 }
 0x1a4   : > { %15253 = vst [vmem:[#allocation44_spill] sm:$0xff] %v11374_v34  ;;  %v2478_v33 = vsel %vm2334_vm2, %v11374_v34, 0.0  ;;  %v11381_v53 = vadd.f32 %v9724_v15, %v10924_v43 }
 0x1a5   : > { %v2479_v24 = vadd.f32 %v2478_v33, %v2477_v14  ;;  %v1983_v49 = vpop.f32.mrf.mxu0 }
 0x1a6   : > { %15254 = vst [vmem:[#allocation45_spill] sm:$0xff] %v11381_v53  ;;  %v11384_v7 = vadd.f32 %v10924_v43, %v1983_v49  ;;  %v2484_v14 = vsel %vm2334_vm2, %v11381_v53, 0.0 }
 0x1a7   : > { %v2481_v51 = vadd.f32 %v2480_v50, %v2479_v24  ;;  %v9727_v58 = vpop.f32.mrf.mxu0 }
 0x1a8   : > { %15255 = vst [vmem:[#allocation46_spill] sm:$0xff] %v11384_v7  ;;  %v2482_v52 = vsel %vm2334_vm2, %v11384_v7, 0.0  ;;  %v11391_v33 = vadd.f32 %v9727_v58, %v10924_v43 }
 0x1a9   : > { %v2483_v8 = vadd.f32 %v2482_v52, %v2481_v51  ;;  %v1993_v13 = vpop.f32.mrf.mxu0 }
 0x1aa   : > { %15256 = vst [vmem:[#allocation47_spill] sm:$0xff] %v11391_v33  ;;  %v11394_v35 = vadd.f32 %v10924_v43, %v1993_v13  ;;  %v2488_v51 = vsel %vm2334_vm2, %v11391_v33, 0.0 }
 0x1ab   : > { %v2485_v15 = vadd.f32 %v2484_v14, %v2483_v8  ;;  %v9730_v34 = vpop.f32.mrf.mxu0 }
 0x1ac   : > { %15257 = vst [vmem:[#allocation48_spill] sm:$0xff] %v11394_v35  ;;  %v2486_v24 = vsel %vm2334_vm2, %v11394_v35, 0.0  ;;  %v11401_v52 = vadd.f32 %v9730_v34, %v10924_v43 }
 0x1ad   : > { %v2487_v49 = vadd.f32 %v2486_v24, %v2485_v15  ;;  %v2003_v50 = vpop.f32.mrf.mxu0 }
 0x1ae   : > { %15258 = vst [vmem:[#allocation49_spill] sm:$0xff] %v11401_v52  ;;  %v11404_v53 = vadd.f32 %v10924_v43, %v2003_v50  ;;  %v2492_v15 = vsel %vm2334_vm2, %v11401_v52, 0.0 }
 0x1af   : > { %v2489_v58 = vadd.f32 %v2488_v51, %v2487_v49  ;;  %v9733_v7 = vpop.f32.mrf.mxu0 }
 0x1b0   : > { %15259 = vst [vmem:[#allocation50_spill] sm:$0xff] %v11404_v53  ;;  %v2490_v8 = vsel %vm2334_vm2, %v11404_v53, 0.0  ;;  %v11411_v24 = vadd.f32 %v9733_v7, %v10924_v43 }
 0x1b1   : > { %v2491_v13 = vadd.f32 %v2490_v8, %v2489_v58  ;;  %v2013_v14 = vpop.f32.mrf.mxu0 }
 0x1b2   : > { %15260 = vst [vmem:[#allocation51_spill] sm:$0xff] %v11411_v24  ;;  %v11414_v33 = vadd.f32 %v10924_v43, %v2013_v14  ;;  %v2496_v58 = vsel %vm2334_vm2, %v11411_v24, 0.0 }
 0x1b3   : > { %v2493_v34 = vadd.f32 %v2492_v15, %v2491_v13  ;;  %v9736_v35 = vpop.f32.mrf.mxu0 }
 0x1b4   : > { %15261 = vst [vmem:[#allocation52_spill] sm:$0xff] %v11414_v33  ;;  %v2494_v49 = vsel %vm2334_vm2, %v11414_v33, 0.0  ;;  %v11421_v8 = vadd.f32 %v9736_v35, %v10924_v43 }
 0x1b5   : > { %v2495_v50 = vadd.f32 %v2494_v49, %v2493_v34  ;;  %v2023_v51 = vpop.f32.mrf.mxu0 }
 0x1b6   : > { %15262 = vst [vmem:[#allocation53_spill] sm:$0xff] %v11421_v8  ;;  %v11424_v52 = vadd.f32 %v10924_v43, %v2023_v51  ;;  %v2500_v34 = vsel %vm2334_vm2, %v11421_v8, 0.0 }
 0x1b7   : > { %v2497_v7 = vadd.f32 %v2496_v58, %v2495_v50  ;;  %v9739_v53 = vpop.f32.mrf.mxu0 }
 0x1b8   : > { %15263 = vst [vmem:[#allocation54_spill] sm:$0xff] %v11424_v52  ;;  %v2498_v13 = vsel %vm2334_vm2, %v11424_v52, 0.0  ;;  %v11431_v49 = vadd.f32 %v9739_v53, %v10924_v43 }
 0x1b9   : > { %v2499_v14 = vadd.f32 %v2498_v13, %v2497_v7  ;;  %v2033_v15 = vpop.f32.mrf.mxu0 }
 0x1ba   : > { %15264 = vst [vmem:[#allocation55_spill] sm:$0xff] %v11431_v49  ;;  %v11434_v24 = vadd.f32 %v10924_v43, %v2033_v15  ;;  %v2504_v7 = vsel %vm2334_vm2, %v11431_v49, 0.0 }
 0x1bb   : > { %v2501_v35 = vadd.f32 %v2500_v34, %v2499_v14  ;;  %v9742_v33 = vpop.f32.mrf.mxu0 }
 0x1bc   : > { %15265 = vst [vmem:[#allocation56_spill] sm:$0xff] %v11434_v24  ;;  %v2502_v50 = vsel %vm2334_vm2, %v11434_v24, 0.0  ;;  %v11441_v13 = vadd.f32 %v9742_v33, %v10924_v43 }
 0x1bd   : > { %v2503_v51 = vadd.f32 %v2502_v50, %v2501_v35  ;;  %v2043_v58 = vpop.f32.mrf.mxu0 }
 0x1be   : > { %15266 = vst [vmem:[#allocation57_spill] sm:$0xff] %v11441_v13  ;;  %v11444_v8 = vadd.f32 %v10924_v43, %v2043_v58  ;;  %v2508_v35 = vsel %vm2334_vm2, %v11441_v13, 0.0 }
 0x1bf   : > { %v2505_v53 = vadd.f32 %v2504_v7, %v2503_v51  ;;  %v9745_v52 = vpop.f32.mrf.mxu0 }
 0x1c0   : > { %15267 = vst [vmem:[#allocation58_spill] sm:$0xff] %v11444_v8  ;;  %v2506_v14 = vsel %vm2334_vm2, %v11444_v8, 0.0  ;;  %v11451_v50 = vadd.f32 %v9745_v52, %v10924_v43 }
 0x1c1   : > { %v2507_v15 = vadd.f32 %v2506_v14, %v2505_v53  ;;  %v2053_v34 = vpop.f32.mrf.mxu0 }
 0x1c2   : > { %15268 = vst [vmem:[#allocation59_spill] sm:$0xff] %v11451_v50  ;;  %v11454_v49 = vadd.f32 %v10924_v43, %v2053_v34  ;;  %v2512_v53 = vsel %vm2334_vm2, %v11451_v50, 0.0 }
 0x1c3   : > { %v2509_v33 = vadd.f32 %v2508_v35, %v2507_v15  ;;  %v9748_v24 = vpop.f32.mrf.mxu0 }
 0x1c4   : > { %15269 = vst [vmem:[#allocation60_spill] sm:$0xff] %v11454_v49  ;;  %v2510_v51 = vsel %vm2334_vm2, %v11454_v49, 0.0  ;;  %v11461_v14 = vadd.f32 %v9748_v24, %v10924_v43 }
 0x1c5   : > { %v2511_v58 = vadd.f32 %v2510_v51, %v2509_v33  ;;  %v2063_v7 = vpop.f32.mrf.mxu0 }
 0x1c6   : > { %15270 = vst [vmem:[#allocation61_spill] sm:$0xff] %v11461_v14  ;;  %v11464_v13 = vadd.f32 %v10924_v43, %v2063_v7  ;;  %v2516_v33 = vsel %vm2334_vm2, %v11461_v14, 0.0 }
 0x1c7   : > { %v2513_v52 = vadd.f32 %v2512_v53, %v2511_v58  ;;  %v9751_v8 = vpop.f32.mrf.mxu0 }
 0x1c8   : > { %15271 = vst [vmem:[#allocation62_spill] sm:$0xff] %v11464_v13  ;;  %v2514_v15 = vsel %vm2334_vm2, %v11464_v13, 0.0  ;;  %v11471_v51 = vadd.f32 %v9751_v8, %v10924_v43 }
 0x1c9   : > { %v2515_v34 = vadd.f32 %v2514_v15, %v2513_v52  ;;  %v2073_v35 = vpop.f32.mrf.mxu0 }
 0x1ca   : > { %15272 = vst [vmem:[#allocation63_spill] sm:$0xff] %v11471_v51  ;;  %v11474_v50 = vadd.f32 %v10924_v43, %v2073_v35  ;;  %v2520_v52 = vsel %vm2334_vm2, %v11471_v51, 0.0 }
 0x1cb   : > { %v2517_v24 = vadd.f32 %v2516_v33, %v2515_v34  ;;  %v9754_v49 = vpop.f32.mrf.mxu0 }
 0x1cc   : > { %15273 = vst [vmem:[#allocation64_spill] sm:$0xff] %v11474_v50  ;;  %v2518_v58 = vsel %vm2334_vm2, %v11474_v50, 0.0  ;;  %v11481_v15 = vadd.f32 %v9754_v49, %v10924_v43 }
 0x1cd   : > { %v2519_v7 = vadd.f32 %v2518_v58, %v2517_v24  ;;  %v2083_v53 = vpop.f32.mrf.mxu0 }
 0x1ce   : > { %15274 = vst [vmem:[#allocation65_spill] sm:$0xff] %v11481_v15  ;;  %v11484_v14 = vadd.f32 %v10924_v43, %v2083_v53  ;;  %v2524_v24 = vsel %vm2334_vm2, %v11481_v15, 0.0 }
 0x1cf   : > { %v2521_v8 = vadd.f32 %v2520_v52, %v2519_v7  ;;  %v9757_v13 = vpop.f32.mrf.mxu0 }
 0x1d0   : > { %15275 = vst [vmem:[#allocation66_spill] sm:$0xff] %v11484_v14  ;;  %v2522_v34 = vsel %vm2334_vm2, %v11484_v14, 0.0  ;;  %v11491_v58 = vadd.f32 %v9757_v13, %v10924_v43 }
 0x1d1   : > { %v2523_v35 = vadd.f32 %v2522_v34, %v2521_v8  ;;  %v2093_v33 = vpop.f32.mrf.mxu0 }
 0x1d2   : > { %15276 = vst [vmem:[#allocation67_spill] sm:$0xff] %v11491_v58  ;;  %v11494_v51 = vadd.f32 %v10924_v43, %v2093_v33  ;;  %v2528_v8 = vsel %vm2334_vm2, %v11491_v58, 0.0 }
 0x1d3   : > { %v2525_v49 = vadd.f32 %v2524_v24, %v2523_v35  ;;  %v9760_v50 = vpop.f32.mrf.mxu0 }
 0x1d4   : > { %15277 = vst [vmem:[#allocation68_spill] sm:$0xff] %v11494_v51  ;;  %v2526_v7 = vsel %vm2334_vm2, %v11494_v51, 0.0  ;;  %v11501_v34 = vadd.f32 %v9760_v50, %v10924_v43 }
 0x1d5   : > { %v2527_v53 = vadd.f32 %v2526_v7, %v2525_v49  ;;  %v2103_v52 = vpop.f32.mrf.mxu0 }
 0x1d6   : > { %15278 = vst [vmem:[#allocation69_spill] sm:$0xff] %v11501_v34  ;;  %v11504_v15 = vadd.f32 %v10924_v43, %v2103_v52  ;;  %v2532_v49 = vsel %vm2334_vm2, %v11501_v34, 0.0 }
 0x1d7   : > { %v2529_v13 = vadd.f32 %v2528_v8, %v2527_v53  ;;  %v9763_v14 = vpop.f32.mrf.mxu0 }
 0x1d8   : > { %15279 = vst [vmem:[#allocation70_spill] sm:$0xff] %v11504_v15  ;;  %v2530_v35 = vsel %vm2334_vm2, %v11504_v15, 0.0  ;;  %v11511_v7 = vadd.f32 %v9763_v14, %v10924_v43 }
 0x1d9   : > { %v2531_v33 = vadd.f32 %v2530_v35, %v2529_v13  ;;  %v2113_v24 = vpop.f32.mrf.mxu0 }
 0x1da   : > { %15280 = vst [vmem:[#allocation71_spill] sm:$0xff] %v11511_v7  ;;  %v11514_v58 = vadd.f32 %v10924_v43, %v2113_v24  ;;  %v2536_v13 = vsel %vm2334_vm2, %v11511_v7, 0.0 }
 0x1db   : > { %v2533_v50 = vadd.f32 %v2532_v49, %v2531_v33  ;;  %v9766_v51 = vpop.f32.mrf.mxu0 }
 0x1dc   : > { %15281 = vst [vmem:[#allocation72_spill] sm:$0xff] %v11514_v58  ;;  %v2534_v53 = vsel %vm2334_vm2, %v11514_v58, 0.0  ;;  %v11521_v35 = vadd.f32 %v9766_v51, %v10924_v43 }
 0x1dd   : > { %v2535_v52 = vadd.f32 %v2534_v53, %v2533_v50  ;;  %v2123_v8 = vpop.f32.mrf.mxu0 }
 0x1de   : > { %15282 = vst [vmem:[#allocation73_spill] sm:$0xff] %v11521_v35  ;;  %v11524_v34 = vadd.f32 %v10924_v43, %v2123_v8  ;;  %v2540_v50 = vsel %vm2334_vm2, %v11521_v35, 0.0 }
 0x1df   : > { %v2537_v14 = vadd.f32 %v2536_v13, %v2535_v52  ;;  %v9769_v15 = vpop.f32.mrf.mxu0 }
 0x1e0   : > { %15283 = vst [vmem:[#allocation74_spill] sm:$0xff] %v11524_v34  ;;  %v2538_v33 = vsel %vm2334_vm2, %v11524_v34, 0.0  ;;  %v11531_v53 = vadd.f32 %v9769_v15, %v10924_v43 }
 0x1e1   : > { %v2539_v24 = vadd.f32 %v2538_v33, %v2537_v14  ;;  %v2133_v49 = vpop.f32.mrf.mxu0 }
 0x1e2   : > { %15284 = vst [vmem:[#allocation75_spill] sm:$0xff] %v11531_v53  ;;  %v11534_v51 = vadd.f32 %v10924_v43, %v2133_v49  ;;  %v2544_v14 = vsel %vm2334_vm2, %v11531_v53, 0.0 }
 0x1e3   : > { %v2541_v7 = vadd.f32 %v2540_v50, %v2539_v24  ;;  %v9772_v8 = vpop.f32.mrf.mxu0 }
 0x1e4   : > { %15285 = vst [vmem:[#allocation76_spill] sm:$0xff] %v11534_v51  ;;  %v2542_v52 = vsel %vm2334_vm2, %v11534_v51, 0.0  ;;  %v11541_v33 = vadd.f32 %v9772_v8, %v10924_v43 }
 0x1e5   : > { %v2543_v13 = vadd.f32 %v2542_v52, %v2541_v7  ;;  %v2143_v58 = vpop.f32.mrf.mxu0  ;;  %v11551_v52 = vld [vmem:[%s10554_s13] ss:$0 sm:$0xff] }
 0x1e6   : > { %15286 = vst [vmem:[#allocation77_spill] sm:$0xff] %v11541_v33  ;;  %v11544_v15 = vadd.f32 %v10924_v43, %v2143_v58  ;;  %v2548_v7 = vsel %vm2334_vm2, %v11541_v33, 0.0 }
 0x1e7   : > { %v2545_v35 = vadd.f32 %v2544_v14, %v2543_v13  ;;  %v9775_v34 = vpop.f32.mrf.mxu0 }
 0x1e8   : > { %15287 = vst [vmem:[#allocation78_spill] sm:$0xff] %v11544_v15  ;;  %v2546_v24 = vsel %vm2334_vm2, %v11544_v15, 0.0  ;;  %v11554_v53 = vadd.f32 %v11551_v52, %v9775_v34 }
 0x1e9   : > { %v2547_v49 = vadd.f32 %v2546_v24, %v2545_v35  ;;  %v2153_v50 = vpop.f32.mrf.mxu0 }
 0x1ea   : > { %15288 = vst [vmem:[#allocation79_spill] sm:$0xff] %v11554_v53  ;;  %v11557_v8 = vadd.f32 %v11551_v52, %v2153_v50  ;;  %v2552_v35 = vsel %vm2334_vm2, %v11554_v53, 0.0 }
 0x1eb   : > { %v2549_v43 = vadd.f32 %v2548_v7, %v2547_v49  ;;  %v9778_v58 = vpop.f32.mrf.mxu0 }
 0x1ec   : > { %15289 = vst [vmem:[#allocation80_spill] sm:$0xff] %v11557_v8  ;;  %v2550_v13 = vsel %vm2334_vm2, %v11557_v8, 0.0  ;;  %v11564_v24 = vadd.f32 %v11551_v52, %v9778_v58 }
 0x1ed   : > { %v2551_v14 = vadd.f32 %v2550_v13, %v2549_v43  ;;  %v2163_v15 = vpop.f32.mrf.mxu0 }
 0x1ee   : > { %15290 = vst [vmem:[#allocation81_spill] sm:$0xff] %v11564_v24  ;;  %v11567_v33 = vadd.f32 %v11551_v52, %v2163_v15  ;;  %v2556_v43 = vsel %vm2334_vm2, %v11564_v24, 0.0 }
 0x1ef   : > { %v2553_v34 = vadd.f32 %v2552_v35, %v2551_v14  ;;  %v9781_v51 = vpop.f32.mrf.mxu0 }
 0x1f0   : > { %15291 = vst [vmem:[#allocation82_spill] sm:$0xff] %v11567_v33  ;;  %v2554_v49 = vsel %vm2334_vm2, %v11567_v33, 0.0  ;;  %v11574_v13 = vadd.f32 %v11551_v52, %v9781_v51 }
 0x1f1   : > { %v2555_v50 = vadd.f32 %v2554_v49, %v2553_v34  ;;  %v2173_v7 = vpop.f32.mrf.mxu0 }
 0x1f2   : > { %15292 = vst [vmem:[#allocation83_spill] sm:$0xff] %v11574_v13  ;;  %v11577_v53 = vadd.f32 %v11551_v52, %v2173_v7  ;;  %v2560_v34 = vsel %vm2334_vm2, %v11574_v13, 0.0 }
 0x1f3   : > { %v2557_v58 = vadd.f32 %v2556_v43, %v2555_v50  ;;  %v9784_v8 = vpop.f32.mrf.mxu0 }
 0x1f4   : > { %15293 = vst [vmem:[#allocation84_spill] sm:$0xff] %v11577_v53  ;;  %v2558_v15 = vsel %vm2334_vm2, %v11577_v53, 0.0  ;;  %v11584_v49 = vadd.f32 %v11551_v52, %v9784_v8 }
 0x1f5   : > { %v2559_v14 = vadd.f32 %v2558_v15, %v2557_v58  ;;  %v2183_v35 = vpop.f32.mrf.mxu0 }
 0x1f6   : > { %15294 = vst [vmem:[#allocation85_spill] sm:$0xff] %v11584_v49  ;;  %v11587_v24 = vadd.f32 %v11551_v52, %v2183_v35  ;;  %v2564_v58 = vsel %vm2334_vm2, %v11584_v49, 0.0 }
 0x1f7   : > { %v2561_v51 = vadd.f32 %v2560_v34, %v2559_v14  ;;  %v9787_v33 = vpop.f32.mrf.mxu0 }
 0x1f8   : > { %15295 = vst [vmem:[#allocation86_spill] sm:$0xff] %v11587_v24  ;;  %v2562_v50 = vsel %vm2334_vm2, %v11587_v24, 0.0  ;;  %v11594_v15 = vadd.f32 %v11551_v52, %v9787_v33 }
 0x1f9   : > { %v2563_v7 = vadd.f32 %v2562_v50, %v2561_v51  ;;  %v2193_v43 = vpop.f32.mrf.mxu0 }
 0x1fa   : > { %15296 = vst [vmem:[#allocation87_spill] sm:$0xff] %v11594_v15  ;;  %v11597_v13 = vadd.f32 %v11551_v52, %v2193_v43  ;;  %v2568_v51 = vsel %vm2334_vm2, %v11594_v15, 0.0 }
 0x1fb   : > { %v2565_v8 = vadd.f32 %v2564_v58, %v2563_v7  ;;  %v9790_v53 = vpop.f32.mrf.mxu0 }
 0x1fc   : > { %15297 = vst [vmem:[#allocation88_spill] sm:$0xff] %v11597_v13  ;;  %v2566_v14 = vsel %vm2334_vm2, %v11597_v13, 0.0  ;;  %v11604_v50 = vadd.f32 %v11551_v52, %v9790_v53 }
 0x1fd   : > { %v2567_v35 = vadd.f32 %v2566_v14, %v2565_v8  ;;  %v2203_v34 = vpop.f32.mrf.mxu0 }
 0x1fe   : > { %15298 = vst [vmem:[#allocation89_spill] sm:$0xff] %v11604_v50  ;;  %v11607_v49 = vadd.f32 %v11551_v52, %v2203_v34  ;;  %v2572_v8 = vsel %vm2334_vm2, %v11604_v50, 0.0 }
 0x1ff   : > { %v2569_v33 = vadd.f32 %v2568_v51, %v2567_v35  ;;  %v9793_v24 = vpop.f32.mrf.mxu0 }
 0x200   : > { %15299 = vst [vmem:[#allocation90_spill] sm:$0xff] %v11607_v49  ;;  %v2570_v7 = vsel %vm2334_vm2, %v11607_v49, 0.0  ;;  %v11614_v14 = vadd.f32 %v11551_v52, %v9793_v24 }
 0x201   : > { %v2571_v43 = vadd.f32 %v2570_v7, %v2569_v33  ;;  %v2213_v58 = vpop.f32.mrf.mxu0 }
 0x202   : > { %15300 = vst [vmem:[#allocation91_spill] sm:$0xff] %v11614_v14  ;;  %v11617_v15 = vadd.f32 %v11551_v52, %v2213_v58  ;;  %v2576_v33 = vsel %vm2334_vm2, %v11614_v14, 0.0 }
 0x203   : > { %v2573_v53 = vadd.f32 %v2572_v8, %v2571_v43  ;;  %v9796_v13 = vpop.f32.mrf.mxu0 }
 0x204   : > { %15301 = vst [vmem:[#allocation92_spill] sm:$0xff] %v11617_v15  ;;  %v2574_v35 = vsel %vm2334_vm2, %v11617_v15, 0.0  ;;  %v11624_v7 = vadd.f32 %v11551_v52, %v9796_v13 }
 0x205   : > { %v2575_v34 = vadd.f32 %v2574_v35, %v2573_v53  ;;  %v2223_v51 = vpop.f32.mrf.mxu0 }
 0x206   : > { %15302 = vst [vmem:[#allocation93_spill] sm:$0xff] %v11624_v7  ;;  %v11627_v50 = vadd.f32 %v11551_v52, %v2223_v51  ;;  %v2580_v53 = vsel %vm2334_vm2, %v11624_v7, 0.0 }
 0x207   : > { %v2577_v24 = vadd.f32 %v2576_v33, %v2575_v34  ;;  %v9799_v49 = vpop.f32.mrf.mxu0 }
 0x208   : > { %15303 = vst [vmem:[#allocation94_spill] sm:$0xff] %v11627_v50  ;;  %v2578_v43 = vsel %vm2334_vm2, %v11627_v50, 0.0  ;;  %v11634_v35 = vadd.f32 %v11551_v52, %v9799_v49 }
 0x209   : > { %v2579_v58 = vadd.f32 %v2578_v43, %v2577_v24  ;;  %v2233_v8 = vpop.f32.mrf.mxu0 }
 0x20a   : > { %15304 = vst [vmem:[#allocation95_spill] sm:$0xff] %v11634_v35  ;;  %v11637_v14 = vadd.f32 %v11551_v52, %v2233_v8  ;;  %v2584_v24 = vsel %vm2334_vm2, %v11634_v35, 0.0 }
 0x20b   : > { %v2581_v13 = vadd.f32 %v2580_v53, %v2579_v58  ;;  %v9802_v15 = vpop.f32.mrf.mxu0 }
 0x20c   : > { %15305 = vst [vmem:[#allocation96_spill] sm:$0xff] %v11637_v14  ;;  %v2582_v34 = vsel %vm2334_vm2, %v11637_v14, 0.0  ;;  %v11644_v43 = vadd.f32 %v11551_v52, %v9802_v15 }
 0x20d   : > { %v2583_v51 = vadd.f32 %v2582_v34, %v2581_v13  ;;  %v2243_v33 = vpop.f32.mrf.mxu0 }
 0x20e   : > { %15306 = vst [vmem:[#allocation97_spill] sm:$0xff] %v11644_v43  ;;  %v11647_v7 = vadd.f32 %v11551_v52, %v2243_v33  ;;  %v2588_v13 = vsel %vm2334_vm2, %v11644_v43, 0.0 }
 0x20f   : > { %v2585_v49 = vadd.f32 %v2584_v24, %v2583_v51  ;;  %v9805_v50 = vpop.f32.mrf.mxu0 }
 0x210   : > { %15307 = vst [vmem:[#allocation98_spill] sm:$0xff] %v11647_v7  ;;  %v2586_v58 = vsel %vm2334_vm2, %v11647_v7, 0.0  ;;  %v11654_v34 = vadd.f32 %v11551_v52, %v9805_v50 }
 0x211   : > { %v2587_v8 = vadd.f32 %v2586_v58, %v2585_v49  ;;  %v2253_v53 = vpop.f32.mrf.mxu0 }
 0x212   : > { %15308 = vst [vmem:[#allocation99_spill] sm:$0xff] %v11654_v34  ;;  %v11657_v35 = vadd.f32 %v11551_v52, %v2253_v53  ;;  %v2592_v49 = vsel %vm2334_vm2, %v11654_v34, 0.0 }
 0x213   : > { %v2589_v15 = vadd.f32 %v2588_v13, %v2587_v8  ;;  %v9808_v14 = vpop.f32.mrf.mxu0 }
 0x214   : > { %15309 = vst [vmem:[#allocation100_spill] sm:$0xff] %v11657_v35  ;;  %v2590_v51 = vsel %vm2334_vm2, %v11657_v35, 0.0  ;;  %v11664_v58 = vadd.f32 %v11551_v52, %v9808_v14 }
 0x215   : > { %v2591_v33 = vadd.f32 %v2590_v51, %v2589_v15  ;;  %v2263_v24 = vpop.f32.mrf.mxu0 }
 0x216   : > { %15310 = vst [vmem:[#allocation101_spill] sm:$0xff] %v11664_v58  ;;  %v11667_v43 = vadd.f32 %v11551_v52, %v2263_v24  ;;  %v2596_v15 = vsel %vm2334_vm2, %v11664_v58, 0.0 }
 0x217   : > { %v2593_v50 = vadd.f32 %v2592_v49, %v2591_v33  ;;  %v9811_v7 = vpop.f32.mrf.mxu0 }
 0x218   : > { %15311 = vst [vmem:[#allocation102_spill] sm:$0xff] %v11667_v43  ;;  %v2594_v8 = vsel %vm2334_vm2, %v11667_v43, 0.0  ;;  %v11674_v51 = vadd.f32 %v11551_v52, %v9811_v7 }
 0x219   : > { %v2595_v53 = vadd.f32 %v2594_v8, %v2593_v50  ;;  %v2273_v13 = vpop.f32.mrf.mxu0 }
 0x21a   : > { %15312 = vst [vmem:[#allocation103_spill] sm:$0xff] %v11674_v51  ;;  %v11677_v34 = vadd.f32 %v11551_v52, %v2273_v13  ;;  %v2600_v50 = vsel %vm2334_vm2, %v11674_v51, 0.0 }
 0x21b   : > { %v2597_v14 = vadd.f32 %v2596_v15, %v2595_v53  ;;  %v9814_v35 = vpop.f32.mrf.mxu0 }
 0x21c   : > { %15313 = vst [vmem:[#allocation104_spill] sm:$0xff] %v11677_v34  ;;  %v2598_v33 = vsel %vm2334_vm2, %v11677_v34, 0.0  ;;  %v11684_v8 = vadd.f32 %v11551_v52, %v9814_v35  ;;  %v2313_v34 = vpop.f32.mrf.mxu1 }
 0x21d   : > { %v2599_v24 = vadd.f32 %v2598_v33, %v2597_v14  ;;  %v2283_v49 = vpop.f32.mrf.mxu0 }
 0x21e   : > { %15314 = vst [vmem:[#allocation105_spill] sm:$0xff] %v11684_v8  ;;  %v11687_v7 = vadd.f32 %v11551_v52, %v2283_v49  ;;  %v2604_v14 = vsel %vm2334_vm2, %v11684_v8, 0.0 }
 0x21f   : > { %v2601_v58 = vadd.f32 %v2600_v50, %v2599_v24  ;;  %v9817_v13 = vpop.f32.mrf.mxu0 }
 0x220   : > { %15315 = vst [vmem:[#allocation106_spill] sm:$0xff] %v11687_v7  ;;  %v2602_v53 = vsel %vm2334_vm2, %v11687_v7, 0.0  ;;  %v11694_v33 = vadd.f32 %v11551_v52, %v9817_v13  ;;  %v9826_v7 = vpop.f32.mrf.mxu1 }
 0x221   : > { %v2603_v15 = vadd.f32 %v2602_v53, %v2601_v58  ;;  %v2293_v43 = vpop.f32.mrf.mxu0 }
 0x222   : > { %15316 = vst [vmem:[#allocation107_spill] sm:$0xff] %v11694_v33  ;;  %v11697_v35 = vadd.f32 %v11551_v52, %v2293_v43  ;;  %v2608_v58 = vsel %vm2334_vm2, %v11694_v33, 0.0  ;;  %v11717_v33 = vadd.f32 %v11551_v52, %v9823_v27 }
 0x223   : > { %v2605_v51 = vadd.f32 %v2604_v14, %v2603_v15  ;;  %v9820_v49 = vpop.f32.mrf.mxu0  ;;  %v11712_v15 = vadd.f32 %v11551_v52, %v2313_v34 }
 0x224   : > { %15317 = vst [vmem:[#allocation108_spill] sm:$0xff] %v11697_v35  ;;  %v2606_v24 = vsel %vm2334_vm2, %v11697_v35, 0.0  ;;  %v11704_v53 = vadd.f32 %v11551_v52, %v9820_v49  ;;  %15321 = vst [vmem:[#allocation112_spill] sm:$0xff] %v11717_v33  ;;  %v2616_v34 = vsel %vm2334_vm2, %v11717_v33, 0.0 }
 0x225   : > { %v2607_v50 = vadd.f32 %v2606_v24, %v2605_v51  ;;  %v2303_v30 = vpop.f32.mrf.mxu0  ;;  %15320 = vst [vmem:[#allocation111_spill] sm:$0xff] %v11712_v15  ;;  %v2323_v51 = vpop.f32.mrf.mxu1 }
 0x226   : > { %15318 = vst [vmem:[#allocation109_spill] sm:$0xff] %v11704_v53  ;;  %v11707_v13 = vadd.f32 %v11551_v52, %v2303_v30  ;;  %v2612_v24 = vsel %vm2334_vm2, %v11704_v53, 0.0  ;;  %v2614_v30 = vsel %vm2334_vm2, %v11712_v15, 0.0 }
 0x227   : > { %v2609_v8 = vadd.f32 %v2608_v58, %v2607_v50  ;;  %v11722_v50 = vadd.f32 %v11551_v52, %v2323_v51 }
 0x228   : > { %15319 = vst [vmem:[#allocation110_spill] sm:$0xff] %v11707_v13  ;;  %v2610_v43 = vsel %vm2334_vm2, %v11707_v13, 0.0 }
 0x229   : > { %v2611_v14 = vadd.f32 %v2610_v43, %v2609_v8  ;;  %v11727_v8 = vadd.f32 %v11551_v52, %v9826_v7  ;;  %v2618_v53 = vsel %vm2334_vm2, %v11722_v50, 0.0 }
 0x22b   : > { %v2613_v49 = vadd.f32 %v2612_v24, %v2611_v14  ;;  %v2620_v14 = vsel %vm2334_vm2, %v11727_v8, 0.0 }
 0x22d   : > { %v2615_v58 = vadd.f32 %v2614_v30, %v2613_v49 }
 0x22f   : > { %v2617_v43 = vadd.f32 %v2616_v34, %v2615_v58 }
 0x231   : > { %v2619_v27 = vadd.f32 %v2618_v53, %v2617_v43 }
 0x233   : > { %v2621_v24 = vadd.f32 %v2620_v14, %v2619_v27 }
 0x235   : > { %2622 = vadd.xlane.f32.xlu0 %v2621_v24 }
 0x2be   : > { %v2623_v15 = vpop.xlane.xlu0 %2622 }
 0x2bf   : > { %v2624_v51 = vrot.slane %v2623_v15, 4 }
 0x2c1   : > { %v2625_v13 = vadd.f32 %v2624_v51, %v2623_v15 }
 0x2c3   : > { %v2626_v49 = vrot.slane %v2625_v13, 2 }
 0x2c5   : > { %v2627_v30 = vadd.f32 %v2626_v49, %v2625_v13 }
 0x2c7   : > { %v2628_v35 = vrot.slane %v2627_v30, 1 }
 0x2c9   : > { %v2629_v33 = vadd.f32 %v2628_v35, %v2627_v30 }
 0x2cb   : > { %10366 = vpush %v2629_v33 }
 0x2fc   : > { %s10367_s26 = spop %10366 }
 0x2fd   : > { %s2631_s28 = smul.f32 5.4253473e-05, %s10367_s26 }
 0x2ff   : > { %v11733_v52 = vstv %s2631_s28 }
 0x300   : > { %v11737_v7 = vsub.f32 %v10934_v48, %v11733_v52  ;;  %v11741_v53 = vsub.f32 %v10931_v47, %v11733_v52  ;;  %v11745_v15 = vsub.f32 %v10948_v56, %v11733_v52  ;;  %v11749_v35 = vsub.f32 %v10945_v55, %v11733_v52 }
 0x301   : > { %v11757_v48 = vsub.f32 %v10962_v2, %v11733_v52  ;;  %v11763_v56 = vsub.f32 %v10959_v1, %v11733_v52  ;;  %v11771_v27 = vsub.f32 %v10976_v12, %v11733_v52  ;;  %v11778_v1 = vsub.f32 %v10973_v11, %v11733_v52 }
 0x302   : > { %15322 = vst [vmem:[#allocation113_spill] sm:$0xff] %v11737_v7  ;;  %15323 = vst [vmem:[#allocation114_spill] sm:$0xff] %v11741_v53  ;;  %v2777_v33 = vmul.f32 %v11737_v7, %v11737_v7  ;;  %v2778_v13 = vmul.f32 %v11741_v53, %v11741_v53  ;;  %v2779_v47 = vmul.f32 %v11745_v15, %v11745_v15 }
 0x303   : > { %15324 = vst [vmem:[#allocation115_spill] sm:$0xff] %v11745_v15  ;;  %15325 = vst [vmem:[#allocation116_spill] sm:$0xff] %v11749_v35  ;;  %v2780_v55 = vmul.f32 %v11749_v35, %v11749_v35  ;;  %v2781_v2 = vmul.f32 %v11757_v48, %v11757_v48  ;;  %v2782_v51 = vmul.f32 %v11763_v56, %v11763_v56 }
 0x304   : > { %15326 = vst [vmem:[#allocation117_spill] sm:$0xff] %v11757_v48  ;;  %15327 = vst [vmem:[#allocation118_spill] sm:$0xff] %v11763_v56  ;;  %v2921_v58 = vsel %vm2334_vm2, %v2777_v33, 0.0  ;;  %v2922_v34 = vsel %vm2334_vm2, %v2778_v13, 0.0  ;;  %v2924_v14 = vsel %vm2334_vm2, %v2779_v47, 0.0  ;;  %v11785_v12 = vsub.f32 %v10990_v22, %v11733_v52 }
 0x305   : > { %v2923_v43 = vadd.f32 %v2922_v34, %v2921_v58  ;;  %15328 = vst [vmem:[#allocation119_spill] sm:$0xff] %v11771_v27  ;;  %15329 = vst [vmem:[#allocation120_spill] sm:$0xff] %v11778_v1  ;;  %v2926_v49 = vsel %vm2334_vm2, %v2780_v55, 0.0  ;;  %v2783_v33 = vmul.f32 %v11771_v27, %v11771_v27  ;;  %v2928_v13 = vsel %vm2334_vm2, %v2781_v2, 0.0 }
 0x306   : > { %15330 = vst [vmem:[#allocation121_spill] sm:$0xff] %v11785_v12  ;;  %v11792_v11 = vsub.f32 %v10987_v21, %v11733_v52  ;;  %v2784_v58 = vmul.f32 %v11778_v1, %v11778_v1  ;;  %v2930_v55 = vsel %vm2334_vm2, %v2782_v51, 0.0  ;;  %v11799_v22 = vsub.f32 %v11004_v32, %v11733_v52 }
 0x307   : > { %v2925_v24 = vadd.f32 %v2924_v14, %v2923_v43  ;;  %v2785_v43 = vmul.f32 %v11785_v12, %v11785_v12  ;;  %v2932_v2 = vsel %vm2334_vm2, %v2783_v33, 0.0  ;;  %v11806_v21 = vsub.f32 %v11001_v31, %v11733_v52 }
 0x308   : > { %15331 = vst [vmem:[#allocation122_spill] sm:$0xff] %v11792_v11  ;;  %15332 = vst [vmem:[#allocation123_spill] sm:$0xff] %v11799_v22  ;;  %v2934_v51 = vsel %vm2334_vm2, %v2784_v58, 0.0  ;;  %v11813_v32 = vsub.f32 %v11018_v42, %v11733_v52  ;;  %v11820_v31 = vsub.f32 %v11015_v41, %v11733_v52  ;;  %v11827_v42 = vsub.f32 %v11032_v57, %v11733_v52 }
 0x309   : > { %v2927_v30 = vadd.f32 %v2926_v49, %v2925_v24  ;;  %15333 = vst [vmem:[#allocation124_spill] sm:$0xff] %v11806_v21  ;;  %v2786_v24 = vmul.f32 %v11792_v11, %v11792_v11  ;;  %v2936_v33 = vsel %vm2334_vm2, %v2785_v43, 0.0  ;;  %v11834_v41 = vsub.f32 %v11029_v54, %v11733_v52 }
 0x30a   : > { %15334 = vst [vmem:[#allocation125_spill] sm:$0xff] %v11813_v32  ;;  %15335 = vst [vmem:[#allocation126_spill] sm:$0xff] %v11827_v42  ;;  %v11841_v57 = vsub.f32 %v11046_v5, %v11733_v52  ;;  %v11848_v54 = vsub.f32 %v11043_v4, %v11733_v52  ;;  %v11855_v5 = vsub.f32 %v11060_v17, %v11733_v52 }
 0x30b   : > { %v2929_v47 = vadd.f32 %v2928_v13, %v2927_v30  ;;  %v2787_v30 = vmul.f32 %v11799_v22, %v11799_v22  ;;  %v2938_v58 = vsel %vm2334_vm2, %v2786_v24, 0.0  ;;  %15336 = vst [vmem:[#allocation127_spill] sm:$0xff] %v11834_v41  ;;  %v11862_v4 = vsub.f32 %v11057_v16, %v11733_v52 }
 0x30c   : > { %15337 = vst [vmem:[#allocation128_spill] sm:$0xff] %v11841_v57  ;;  %15338 = vst [vmem:[#allocation129_spill] sm:$0xff] %v11848_v54  ;;  %v11869_v17 = vsub.f32 %v11074_v29, %v11733_v52  ;;  %v11876_v16 = vsub.f32 %v11071_v28, %v11733_v52  ;;  %v11883_v29 = vsub.f32 %v11088_v44, %v11733_v52 }
 0x30d   : > { %v2931_v34 = vadd.f32 %v2930_v55, %v2929_v47  ;;  %v2788_v47 = vmul.f32 %v11806_v21, %v11806_v21  ;;  %v2940_v43 = vsel %vm2334_vm2, %v2787_v30, 0.0  ;;  %15339 = vst [vmem:[#allocation130_spill] sm:$0xff] %v11855_v5  ;;  %15340 = vst [vmem:[#allocation131_spill] sm:$0xff] %v11862_v4  ;;  %v11890_v28 = vsub.f32 %v11085_v40, %v11733_v52 }
 0x30e   : > { %15341 = vst [vmem:[#allocation132_spill] sm:$0xff] %v11869_v17  ;;  %15342 = vst [vmem:[#allocation133_spill] sm:$0xff] %v11876_v16  ;;  %v11897_v44 = vsub.f32 %v11102_v60, %v11733_v52  ;;  %v11904_v40 = vsub.f32 %v11099_v59, %v11733_v52  ;;  %v11911_v60 = vsub.f32 %v11116_v10, %v11733_v52 }
 0x30f   : > { %v2933_v14 = vadd.f32 %v2932_v2, %v2931_v34  ;;  %v2789_v34 = vmul.f32 %v11813_v32, %v11813_v32  ;;  %v2942_v24 = vsel %vm2334_vm2, %v2788_v47, 0.0  ;;  %15343 = vst [vmem:[#allocation134_spill] sm:$0xff] %v11883_v29  ;;  %15344 = vst [vmem:[#allocation135_spill] sm:$0xff] %v11890_v28  ;;  %v11918_v59 = vsub.f32 %v11113_v9, %v11733_v52 }
 0x310   : > { %15345 = vst [vmem:[#allocation136_spill] sm:$0xff] %v11897_v44  ;;  %15346 = vst [vmem:[#allocation137_spill] sm:$0xff] %v11904_v40  ;;  %v11925_v10 = vsub.f32 %v11130_v26, %v11733_v52  ;;  %v11932_v9 = vsub.f32 %v11127_v25, %v11733_v52  ;;  %v11939_v26 = vsub.f32 %v11144_v45, %v11733_v52 }
 0x311   : > { %v2935_v49 = vadd.f32 %v2934_v51, %v2933_v14  ;;  %v2790_v14 = vmul.f32 %v11820_v31, %v11820_v31  ;;  %v2944_v30 = vsel %vm2334_vm2, %v2789_v34, 0.0  ;;  %15347 = vst [vmem:[#allocation138_spill] sm:$0xff] %v11911_v60  ;;  %15348 = vst [vmem:[#allocation139_spill] sm:$0xff] %v11918_v59  ;;  %v11946_v25 = vsub.f32 %v11141_v39, %v11733_v52 }
 0x312   : > { %15349 = vst [vmem:[#allocation140_spill] sm:$0xff] %v11925_v10  ;;  %15350 = vst [vmem:[#allocation141_spill] sm:$0xff] %v11932_v9  ;;  %v11953_v45 = vsub.f32 %v11158_v63, %v11733_v52  ;;  %v11960_v39 = vsub.f32 %v11155_v62, %v11733_v52  ;;  %v11967_v63 = vsub.f32 %v11172_v19, %v11733_v52 }
 0x313   : > { %v2937_v13 = vadd.f32 %v2936_v33, %v2935_v49  ;;  %v2791_v49 = vmul.f32 %v11827_v42, %v11827_v42  ;;  %v2946_v47 = vsel %vm2334_vm2, %v2790_v14, 0.0  ;;  %15351 = vst [vmem:[#allocation142_spill] sm:$0xff] %v11939_v26  ;;  %15352 = vst [vmem:[#allocation143_spill] sm:$0xff] %v11946_v25  ;;  %v11974_v62 = vsub.f32 %v11169_v18, %v11733_v52 }
 0x314   : > { %15353 = vst [vmem:[#allocation144_spill] sm:$0xff] %v11953_v45  ;;  %v11981_v19 = vsub.f32 %v11186_v37, %v11733_v52  ;;  %v11988_v18 = vsub.f32 %v11183_v36, %v11733_v52  ;;  %v11995_v37 = vsub.f32 %v11200_v0, %v11733_v52  ;;  %v12002_v36 = vsub.f32 %v11197_v61, %v11733_v52 }
 0x315   : > { %v2939_v55 = vadd.f32 %v2938_v58, %v2937_v13  ;;  %v2792_v13 = vmul.f32 %v11834_v41, %v11834_v41  ;;  %v2948_v34 = vsel %vm2334_vm2, %v2791_v49, 0.0  ;;  %v12009_v0 = vsub.f32 %v11213_v23, %v11733_v52 }
 0x316   : > { %v12016_v61 = vsub.f32 %v11210_v20, %v11733_v52  ;;  %v12023_v23 = vsub.f32 %v11224_v46, %v11733_v52  ;;  %v12030_v20 = vsub.f32 %v11221_v38, %v11733_v52  ;;  %v12037_v46 = vsub.f32 %v11234_v6, %v11733_v52 }
 0x317   : > { %v2941_v2 = vadd.f32 %v2940_v43, %v2939_v55  ;;  %v2793_v55 = vmul.f32 %v11841_v57, %v11841_v57  ;;  %v2950_v14 = vsel %vm2334_vm2, %v2792_v13, 0.0  ;;  %v12044_v38 = vsub.f32 %v11231_v3, %v11733_v52 }
 0x319   : > { %v2943_v51 = vadd.f32 %v2942_v24, %v2941_v2  ;;  %v2794_v2 = vmul.f32 %v11848_v54, %v11848_v54  ;;  %v2952_v49 = vsel %vm2334_vm2, %v2793_v55, 0.0 }
 0x31b   : > { %v2945_v33 = vadd.f32 %v2944_v30, %v2943_v51  ;;  %v2795_v51 = vmul.f32 %v11855_v5, %v11855_v5  ;;  %v2954_v13 = vsel %vm2334_vm2, %v2794_v2, 0.0 }
 0x31d   : > { %v2947_v58 = vadd.f32 %v2946_v47, %v2945_v33  ;;  %v2796_v33 = vmul.f32 %v11862_v4, %v11862_v4  ;;  %v2956_v55 = vsel %vm2334_vm2, %v2795_v51, 0.0 }
 0x31f   : > { %v2949_v43 = vadd.f32 %v2948_v34, %v2947_v58  ;;  %v2797_v58 = vmul.f32 %v11869_v17, %v11869_v17  ;;  %v2958_v2 = vsel %vm2334_vm2, %v2796_v33, 0.0 }
 0x321   : > { %v2951_v24 = vadd.f32 %v2950_v14, %v2949_v43  ;;  %v2798_v43 = vmul.f32 %v11876_v16, %v11876_v16  ;;  %v2960_v51 = vsel %vm2334_vm2, %v2797_v58, 0.0 }
 0x323   : > { %v2953_v30 = vadd.f32 %v2952_v49, %v2951_v24  ;;  %v2799_v24 = vmul.f32 %v11883_v29, %v11883_v29  ;;  %v2962_v33 = vsel %vm2334_vm2, %v2798_v43, 0.0 }
 0x325   : > { %v2955_v47 = vadd.f32 %v2954_v13, %v2953_v30  ;;  %v2800_v30 = vmul.f32 %v11890_v28, %v11890_v28  ;;  %v2964_v58 = vsel %vm2334_vm2, %v2799_v24, 0.0 }
 0x327   : > { %v2957_v34 = vadd.f32 %v2956_v55, %v2955_v47  ;;  %v2801_v47 = vmul.f32 %v11897_v44, %v11897_v44  ;;  %v2966_v43 = vsel %vm2334_vm2, %v2800_v30, 0.0 }
 0x329   : > { %v2959_v14 = vadd.f32 %v2958_v2, %v2957_v34  ;;  %v2802_v34 = vmul.f32 %v11904_v40, %v11904_v40  ;;  %v2968_v24 = vsel %vm2334_vm2, %v2801_v47, 0.0 }
 0x32b   : > { %v2961_v49 = vadd.f32 %v2960_v51, %v2959_v14  ;;  %v2803_v14 = vmul.f32 %v11911_v60, %v11911_v60  ;;  %v2970_v30 = vsel %vm2334_vm2, %v2802_v34, 0.0 }
 0x32d   : > { %v2963_v13 = vadd.f32 %v2962_v33, %v2961_v49  ;;  %v2804_v49 = vmul.f32 %v11918_v59, %v11918_v59  ;;  %v2972_v47 = vsel %vm2334_vm2, %v2803_v14, 0.0 }
 0x32f   : > { %v2965_v55 = vadd.f32 %v2964_v58, %v2963_v13  ;;  %v2805_v13 = vmul.f32 %v11925_v10, %v11925_v10  ;;  %v2974_v34 = vsel %vm2334_vm2, %v2804_v49, 0.0 }
 0x331   : > { %v2967_v2 = vadd.f32 %v2966_v43, %v2965_v55  ;;  %v2806_v55 = vmul.f32 %v11932_v9, %v11932_v9  ;;  %v2976_v14 = vsel %vm2334_vm2, %v2805_v13, 0.0 }
 0x333   : > { %v2969_v51 = vadd.f32 %v2968_v24, %v2967_v2  ;;  %v2807_v2 = vmul.f32 %v11939_v26, %v11939_v26  ;;  %v2978_v49 = vsel %vm2334_vm2, %v2806_v55, 0.0 }
 0x335   : > { %v2971_v33 = vadd.f32 %v2970_v30, %v2969_v51  ;;  %v2808_v51 = vmul.f32 %v11946_v25, %v11946_v25  ;;  %v2980_v13 = vsel %vm2334_vm2, %v2807_v2, 0.0 }
 0x337   : > { %v2973_v58 = vadd.f32 %v2972_v47, %v2971_v33  ;;  %v2809_v33 = vmul.f32 %v11953_v45, %v11953_v45  ;;  %v2982_v55 = vsel %vm2334_vm2, %v2808_v51, 0.0 }
 0x339   : > { %v2975_v43 = vadd.f32 %v2974_v34, %v2973_v58  ;;  %v2810_v58 = vmul.f32 %v11960_v39, %v11960_v39  ;;  %v2984_v2 = vsel %vm2334_vm2, %v2809_v33, 0.0 }
 0x33b   : > { %v2977_v24 = vadd.f32 %v2976_v14, %v2975_v43  ;;  %v2811_v43 = vmul.f32 %v11967_v63, %v11967_v63  ;;  %v2986_v51 = vsel %vm2334_vm2, %v2810_v58, 0.0 }
 0x33d   : > { %v2979_v30 = vadd.f32 %v2978_v49, %v2977_v24  ;;  %v2812_v24 = vmul.f32 %v11974_v62, %v11974_v62  ;;  %v2988_v33 = vsel %vm2334_vm2, %v2811_v43, 0.0 }
 0x33f   : > { %v2981_v47 = vadd.f32 %v2980_v13, %v2979_v30  ;;  %v2813_v30 = vmul.f32 %v11981_v19, %v11981_v19  ;;  %v2990_v58 = vsel %vm2334_vm2, %v2812_v24, 0.0 }
 0x341   : > { %v2983_v34 = vadd.f32 %v2982_v55, %v2981_v47  ;;  %v2814_v47 = vmul.f32 %v11988_v18, %v11988_v18  ;;  %v2992_v43 = vsel %vm2334_vm2, %v2813_v30, 0.0 }
 0x343   : > { %v2985_v14 = vadd.f32 %v2984_v2, %v2983_v34  ;;  %v2815_v34 = vmul.f32 %v11995_v37, %v11995_v37  ;;  %v2994_v24 = vsel %vm2334_vm2, %v2814_v47, 0.0 }
 0x345   : > { %v2987_v49 = vadd.f32 %v2986_v51, %v2985_v14  ;;  %v2816_v14 = vmul.f32 %v12002_v36, %v12002_v36  ;;  %v2996_v30 = vsel %vm2334_vm2, %v2815_v34, 0.0 }
 0x347   : > { %v2989_v13 = vadd.f32 %v2988_v33, %v2987_v49  ;;  %v2817_v49 = vmul.f32 %v12009_v0, %v12009_v0  ;;  %v2998_v47 = vsel %vm2334_vm2, %v2816_v14, 0.0 }
 0x349   : > { %v2991_v55 = vadd.f32 %v2990_v58, %v2989_v13  ;;  %v2818_v13 = vmul.f32 %v12016_v61, %v12016_v61  ;;  %v3000_v34 = vsel %vm2334_vm2, %v2817_v49, 0.0 }
 0x34b   : > { %v2993_v2 = vadd.f32 %v2992_v43, %v2991_v55  ;;  %v2819_v55 = vmul.f32 %v12023_v23, %v12023_v23  ;;  %v3002_v14 = vsel %vm2334_vm2, %v2818_v13, 0.0 }
 0x34d   : > { %v2995_v51 = vadd.f32 %v2994_v24, %v2993_v2  ;;  %v2820_v2 = vmul.f32 %v12030_v20, %v12030_v20  ;;  %v3004_v49 = vsel %vm2334_vm2, %v2819_v55, 0.0 }
 0x34f   : > { %v2997_v33 = vadd.f32 %v2996_v30, %v2995_v51  ;;  %v15354_v51 = vld [vmem:[#allocation18_spill] sm:$0xff]  ;;  %v2821_v30 = vmul.f32 %v12037_v46, %v12037_v46  ;;  %v3006_v13 = vsel %vm2334_vm2, %v2820_v2, 0.0 }
 0x350   : > { %v12051_v6 = vsub.f32 %v15354_v51, %v11733_v52 }
 0x351   : > { %v2999_v58 = vadd.f32 %v2998_v47, %v2997_v33  ;;  %v15355_v47 = vld [vmem:[#allocation17_spill] sm:$0xff]  ;;  %v3008_v55 = vsel %vm2334_vm2, %v2821_v30, 0.0 }
 0x352   : > { %v12058_v3 = vsub.f32 %v15355_v47, %v11733_v52  ;;  %v2823_v51 = vmul.f32 %v12051_v6, %v12051_v6 }
 0x353   : > { %v3001_v43 = vadd.f32 %v3000_v34, %v2999_v58  ;;  %v2822_v58 = vmul.f32 %v12044_v38, %v12044_v38 }
 0x354   : > { %v2824_v45 = vmul.f32 %v12058_v3, %v12058_v3  ;;  %v3012_v30 = vsel %vm2334_vm2, %v2823_v51, 0.0 }
 0x355   : > { %v3003_v24 = vadd.f32 %v3002_v14, %v3001_v43  ;;  %v15356_v43 = vld [vmem:[#allocation20_spill] sm:$0xff]  ;;  %v3010_v2 = vsel %vm2334_vm2, %v2822_v58, 0.0 }
 0x356   : > { %v12065_v14 = vsub.f32 %v15356_v43, %v11733_v52  ;;  %v3014_v58 = vsel %vm2334_vm2, %v2824_v45, 0.0 }
 0x357   : > { %v3005_v33 = vadd.f32 %v3004_v49, %v3003_v24  ;;  %v15357_v49 = vld [vmem:[#allocation19_spill] sm:$0xff] }
 0x358   : > { %v12072_v47 = vsub.f32 %v15357_v49, %v11733_v52  ;;  %v2825_v25 = vmul.f32 %v12065_v14, %v12065_v14 }
 0x359   : > { %v3007_v34 = vadd.f32 %v3006_v13, %v3005_v33  ;;  %v15358_v13 = vld [vmem:[#allocation22_spill] sm:$0xff] }
 0x35a   : > { %v12079_v43 = vsub.f32 %v15358_v13, %v11733_v52  ;;  %v2826_v26 = vmul.f32 %v12072_v47, %v12072_v47  ;;  %v3016_v51 = vsel %vm2334_vm2, %v2825_v25, 0.0 }
 0x35b   : > { %v3009_v24 = vadd.f32 %v3008_v55, %v3007_v34  ;;  %v15359_v55 = vld [vmem:[#allocation21_spill] sm:$0xff] }
 0x35c   : > { %v12086_v49 = vsub.f32 %v15359_v55, %v11733_v52  ;;  %v2827_v9 = vmul.f32 %v12079_v43, %v12079_v43  ;;  %v3018_v45 = vsel %vm2334_vm2, %v2826_v26, 0.0 }
 0x35d   : > { %v3011_v33 = vadd.f32 %v3010_v2, %v3009_v24  ;;  %v15360_v2 = vld [vmem:[#allocation24_spill] sm:$0xff] }
 0x35e   : > { %v12093_v13 = vsub.f32 %v15360_v2, %v11733_v52  ;;  %v2828_v10 = vmul.f32 %v12086_v49, %v12086_v49  ;;  %v3020_v25 = vsel %vm2334_vm2, %v2827_v9, 0.0 }
 0x35f   : > { %v3013_v34 = vadd.f32 %v3012_v30, %v3011_v33  ;;  %v15361_v30 = vld [vmem:[#allocation23_spill] sm:$0xff] }
 0x360   : > { %v12100_v55 = vsub.f32 %v15361_v30, %v11733_v52  ;;  %v2829_v59 = vmul.f32 %v12093_v13, %v12093_v13  ;;  %v3022_v26 = vsel %vm2334_vm2, %v2828_v10, 0.0 }
 0x361   : > { %v3015_v24 = vadd.f32 %v3014_v58, %v3013_v34  ;;  %v15362_v58 = vld [vmem:[#allocation26_spill] sm:$0xff] }
 0x362   : > { %v12107_v2 = vsub.f32 %v15362_v58, %v11733_v52  ;;  %v2830_v60 = vmul.f32 %v12100_v55, %v12100_v55  ;;  %v3024_v9 = vsel %vm2334_vm2, %v2829_v59, 0.0 }
 0x363   : > { %v3017_v33 = vadd.f32 %v3016_v51, %v3015_v24  ;;  %v15363_v51 = vld [vmem:[#allocation25_spill] sm:$0xff] }
 0x364   : > { %v12114_v30 = vsub.f32 %v15363_v51, %v11733_v52  ;;  %v2831_v40 = vmul.f32 %v12107_v2, %v12107_v2  ;;  %v3026_v10 = vsel %vm2334_vm2, %v2830_v60, 0.0 }
 0x365   : > { %v3019_v34 = vadd.f32 %v3018_v45, %v3017_v33  ;;  %v15364_v45 = vld [vmem:[#allocation28_spill] sm:$0xff] }
 0x366   : > { %v12121_v58 = vsub.f32 %v15364_v45, %v11733_v52  ;;  %v2832_v44 = vmul.f32 %v12114_v30, %v12114_v30  ;;  %v3028_v59 = vsel %vm2334_vm2, %v2831_v40, 0.0 }
 0x367   : > { %v3021_v24 = vadd.f32 %v3020_v25, %v3019_v34  ;;  %v15365_v25 = vld [vmem:[#allocation27_spill] sm:$0xff] }
 0x368   : > { %v12128_v51 = vsub.f32 %v15365_v25, %v11733_v52  ;;  %v2833_v21 = vmul.f32 %v12121_v58, %v12121_v58  ;;  %v3030_v60 = vsel %vm2334_vm2, %v2832_v44, 0.0 }
 0x369   : > { %v3023_v33 = vadd.f32 %v3022_v26, %v3021_v24  ;;  %v15366_v26 = vld [vmem:[#allocation30_spill] sm:$0xff] }
 0x36a   : > { %v12135_v45 = vsub.f32 %v15366_v26, %v11733_v52  ;;  %v2834_v22 = vmul.f32 %v12128_v51, %v12128_v51  ;;  %v3032_v40 = vsel %vm2334_vm2, %v2833_v21, 0.0 }
 0x36b   : > { %v3025_v34 = vadd.f32 %v3024_v9, %v3023_v33  ;;  %v15367_v9 = vld [vmem:[#allocation29_spill] sm:$0xff] }
 0x36c   : > { %v12142_v25 = vsub.f32 %v15367_v9, %v11733_v52  ;;  %v2835_v11 = vmul.f32 %v12135_v45, %v12135_v45  ;;  %v3034_v44 = vsel %vm2334_vm2, %v2834_v22, 0.0 }
 0x36d   : > { %v3027_v24 = vadd.f32 %v3026_v10, %v3025_v34  ;;  %v15368_v10 = vld [vmem:[#allocation32_spill] sm:$0xff] }
 0x36e   : > { %v12149_v26 = vsub.f32 %v15368_v10, %v11733_v52  ;;  %v2836_v12 = vmul.f32 %v12142_v25, %v12142_v25  ;;  %v3036_v21 = vsel %vm2334_vm2, %v2835_v11, 0.0 }
 0x36f   : > { %v3029_v33 = vadd.f32 %v3028_v59, %v3027_v24  ;;  %v15369_v59 = vld [vmem:[#allocation31_spill] sm:$0xff] }
 0x370   : > { %v12156_v9 = vsub.f32 %v15369_v59, %v11733_v52  ;;  %v2837_v1 = vmul.f32 %v12149_v26, %v12149_v26  ;;  %v3038_v22 = vsel %vm2334_vm2, %v2836_v12, 0.0 }
 0x371   : > { %v3031_v34 = vadd.f32 %v3030_v60, %v3029_v33  ;;  %v15370_v60 = vld [vmem:[#allocation34_spill] sm:$0xff] }
 0x372   : > { %v12163_v10 = vsub.f32 %v15370_v60, %v11733_v52  ;;  %v2838_v27 = vmul.f32 %v12156_v9, %v12156_v9  ;;  %v3040_v11 = vsel %vm2334_vm2, %v2837_v1, 0.0 }
 0x373   : > { %v3033_v24 = vadd.f32 %v3032_v40, %v3031_v34  ;;  %v15371_v40 = vld [vmem:[#allocation33_spill] sm:$0xff] }
 0x374   : > { %v12170_v59 = vsub.f32 %v15371_v40, %v11733_v52  ;;  %v2839_v56 = vmul.f32 %v12163_v10, %v12163_v10  ;;  %v3042_v12 = vsel %vm2334_vm2, %v2838_v27, 0.0 }
 0x375   : > { %v3035_v33 = vadd.f32 %v3034_v44, %v3033_v24  ;;  %v15372_v44 = vld [vmem:[#allocation36_spill] sm:$0xff] }
 0x376   : > { %v12177_v60 = vsub.f32 %v15372_v44, %v11733_v52  ;;  %v2840_v48 = vmul.f32 %v12170_v59, %v12170_v59  ;;  %v3044_v1 = vsel %vm2334_vm2, %v2839_v56, 0.0 }
 0x377   : > { %v3037_v34 = vadd.f32 %v3036_v21, %v3035_v33  ;;  %v15373_v21 = vld [vmem:[#allocation35_spill] sm:$0xff] }
 0x378   : > { %v12184_v40 = vsub.f32 %v15373_v21, %v11733_v52  ;;  %v2841_v35 = vmul.f32 %v12177_v60, %v12177_v60  ;;  %v3046_v27 = vsel %vm2334_vm2, %v2840_v48, 0.0 }
 0x379   : > { %v3039_v24 = vadd.f32 %v3038_v22, %v3037_v34  ;;  %v15374_v22 = vld [vmem:[#allocation38_spill] sm:$0xff] }
 0x37a   : > { %v12191_v44 = vsub.f32 %v15374_v22, %v11733_v52  ;;  %v2842_v15 = vmul.f32 %v12184_v40, %v12184_v40  ;;  %v3048_v56 = vsel %vm2334_vm2, %v2841_v35, 0.0 }
 0x37b   : > { %v3041_v33 = vadd.f32 %v3040_v11, %v3039_v24  ;;  %v15375_v11 = vld [vmem:[#allocation37_spill] sm:$0xff] }
 0x37c   : > { %v12198_v21 = vsub.f32 %v15375_v11, %v11733_v52  ;;  %v2843_v53 = vmul.f32 %v12191_v44, %v12191_v44  ;;  %v3050_v48 = vsel %vm2334_vm2, %v2842_v15, 0.0 }
 0x37d   : > { %v3043_v34 = vadd.f32 %v3042_v12, %v3041_v33  ;;  %v15376_v12 = vld [vmem:[#allocation40_spill] sm:$0xff] }
 0x37e   : > { %v12205_v22 = vsub.f32 %v15376_v12, %v11733_v52  ;;  %v2844_v28 = vmul.f32 %v12198_v21, %v12198_v21  ;;  %v3052_v35 = vsel %vm2334_vm2, %v2843_v53, 0.0 }
 0x37f   : > { %v3045_v24 = vadd.f32 %v3044_v1, %v3043_v34  ;;  %v15377_v1 = vld [vmem:[#allocation39_spill] sm:$0xff] }
 0x380   : > { %v12212_v11 = vsub.f32 %v15377_v1, %v11733_v52  ;;  %v2845_v7 = vmul.f32 %v12205_v22, %v12205_v22  ;;  %v3054_v15 = vsel %vm2334_vm2, %v2844_v28, 0.0 }
 0x381   : > { %v3047_v33 = vadd.f32 %v3046_v27, %v3045_v24  ;;  %v15378_v27 = vld [vmem:[#allocation42_spill] sm:$0xff] }
 0x382   : > { %v12219_v12 = vsub.f32 %v15378_v27, %v11733_v52  ;;  %v2846_v29 = vmul.f32 %v12212_v11, %v12212_v11  ;;  %v3056_v53 = vsel %vm2334_vm2, %v2845_v7, 0.0 }
 0x383   : > { %v3049_v34 = vadd.f32 %v3048_v56, %v3047_v33  ;;  %v15379_v56 = vld [vmem:[#allocation41_spill] sm:$0xff] }
 0x384   : > { %v12226_v1 = vsub.f32 %v15379_v56, %v11733_v52  ;;  %v2847_v16 = vmul.f32 %v12219_v12, %v12219_v12  ;;  %v3058_v28 = vsel %vm2334_vm2, %v2846_v29, 0.0 }
 0x385   : > { %v3051_v24 = vadd.f32 %v3050_v48, %v3049_v34  ;;  %v15380_v48 = vld [vmem:[#allocation44_spill] sm:$0xff] }
 0x386   : > { %v12233_v27 = vsub.f32 %v15380_v48, %v11733_v52  ;;  %v2848_v17 = vmul.f32 %v12226_v1, %v12226_v1  ;;  %v3060_v7 = vsel %vm2334_vm2, %v2847_v16, 0.0 }
 0x387   : > { %v3053_v33 = vadd.f32 %v3052_v35, %v3051_v24  ;;  %v15381_v35 = vld [vmem:[#allocation43_spill] sm:$0xff] }
 0x388   : > { %v12240_v56 = vsub.f32 %v15381_v35, %v11733_v52  ;;  %v2849_v4 = vmul.f32 %v12233_v27, %v12233_v27  ;;  %v3062_v29 = vsel %vm2334_vm2, %v2848_v17, 0.0 }
 0x389   : > { %v3055_v34 = vadd.f32 %v3054_v15, %v3053_v33  ;;  %v15382_v15 = vld [vmem:[#allocation46_spill] sm:$0xff] }
 0x38a   : > { %v12247_v48 = vsub.f32 %v15382_v15, %v11733_v52  ;;  %v2850_v5 = vmul.f32 %v12240_v56, %v12240_v56  ;;  %v3064_v16 = vsel %vm2334_vm2, %v2849_v4, 0.0 }
 0x38b   : > { %v3057_v24 = vadd.f32 %v3056_v53, %v3055_v34  ;;  %v15383_v53 = vld [vmem:[#allocation45_spill] sm:$0xff] }
 0x38c   : > { %v12254_v35 = vsub.f32 %v15383_v53, %v11733_v52  ;;  %v2851_v54 = vmul.f32 %v12247_v48, %v12247_v48  ;;  %v3066_v17 = vsel %vm2334_vm2, %v2850_v5, 0.0 }
 0x38d   : > { %v3059_v33 = vadd.f32 %v3058_v28, %v3057_v24  ;;  %v15384_v28 = vld [vmem:[#allocation48_spill] sm:$0xff] }
 0x38e   : > { %v12261_v15 = vsub.f32 %v15384_v28, %v11733_v52  ;;  %v2852_v57 = vmul.f32 %v12254_v35, %v12254_v35  ;;  %v3068_v4 = vsel %vm2334_vm2, %v2851_v54, 0.0 }
 0x38f   : > { %v3061_v34 = vadd.f32 %v3060_v7, %v3059_v33  ;;  %v15385_v7 = vld [vmem:[#allocation47_spill] sm:$0xff] }
 0x390   : > { %v12268_v53 = vsub.f32 %v15385_v7, %v11733_v52  ;;  %v2853_v41 = vmul.f32 %v12261_v15, %v12261_v15  ;;  %v3070_v5 = vsel %vm2334_vm2, %v2852_v57, 0.0 }
 0x391   : > { %v3063_v24 = vadd.f32 %v3062_v29, %v3061_v34  ;;  %v15387_v29 = vld [vmem:[#allocation50_spill] sm:$0xff] }
 0x392   : > { %15386 = vst [vmem:[#allocation18_spill] sm:$0xff] %v12268_v53  ;;  %v12275_v28 = vsub.f32 %v15387_v29, %v11733_v52  ;;  %v2854_v42 = vmul.f32 %v12268_v53, %v12268_v53  ;;  %v3072_v54 = vsel %vm2334_vm2, %v2853_v41, 0.0 }
 0x393   : > { %v3065_v33 = vadd.f32 %v3064_v16, %v3063_v24  ;;  %v15389_v16 = vld [vmem:[#allocation49_spill] sm:$0xff] }
 0x394   : > { %15388 = vst [vmem:[#allocation17_spill] sm:$0xff] %v12275_v28  ;;  %v12282_v7 = vsub.f32 %v15389_v16, %v11733_v52  ;;  %v2855_v32 = vmul.f32 %v12275_v28, %v12275_v28  ;;  %v3074_v57 = vsel %vm2334_vm2, %v2854_v42, 0.0 }
 0x395   : > { %v3067_v34 = vadd.f32 %v3066_v17, %v3065_v33  ;;  %v15391_v17 = vld [vmem:[#allocation52_spill] sm:$0xff] }
 0x396   : > { %15390 = vst [vmem:[#allocation20_spill] sm:$0xff] %v12282_v7  ;;  %v12289_v29 = vsub.f32 %v15391_v17, %v11733_v52  ;;  %v2856_v53 = vmul.f32 %v12282_v7, %v12282_v7  ;;  %v3076_v41 = vsel %vm2334_vm2, %v2855_v32, 0.0 }
 0x397   : > { %v3069_v24 = vadd.f32 %v3068_v4, %v3067_v34  ;;  %v15393_v4 = vld [vmem:[#allocation51_spill] sm:$0xff] }
 0x398   : > { %15392 = vst [vmem:[#allocation19_spill] sm:$0xff] %v12289_v29  ;;  %v12296_v16 = vsub.f32 %v15393_v4, %v11733_v52  ;;  %v2857_v28 = vmul.f32 %v12289_v29, %v12289_v29  ;;  %v3078_v42 = vsel %vm2334_vm2, %v2856_v53, 0.0 }
 0x399   : > { %v3071_v33 = vadd.f32 %v3070_v5, %v3069_v24  ;;  %v15395_v5 = vld [vmem:[#allocation54_spill] sm:$0xff] }
 0x39a   : > { %15394 = vst [vmem:[#allocation22_spill] sm:$0xff] %v12296_v16  ;;  %v12303_v17 = vsub.f32 %v15395_v5, %v11733_v52  ;;  %v2858_v7 = vmul.f32 %v12296_v16, %v12296_v16  ;;  %v3080_v32 = vsel %vm2334_vm2, %v2857_v28, 0.0 }
 0x39b   : > { %v3073_v34 = vadd.f32 %v3072_v54, %v3071_v33  ;;  %v15397_v54 = vld [vmem:[#allocation53_spill] sm:$0xff] }
 0x39c   : > { %15396 = vst [vmem:[#allocation21_spill] sm:$0xff] %v12303_v17  ;;  %v12310_v4 = vsub.f32 %v15397_v54, %v11733_v52  ;;  %v2859_v29 = vmul.f32 %v12303_v17, %v12303_v17  ;;  %v3082_v53 = vsel %vm2334_vm2, %v2858_v7, 0.0 }
 0x39d   : > { %v3075_v24 = vadd.f32 %v3074_v57, %v3073_v34  ;;  %v15399_v57 = vld [vmem:[#allocation56_spill] sm:$0xff] }
 0x39e   : > { %15398 = vst [vmem:[#allocation24_spill] sm:$0xff] %v12310_v4  ;;  %v12317_v5 = vsub.f32 %v15399_v57, %v11733_v52  ;;  %v2860_v16 = vmul.f32 %v12310_v4, %v12310_v4  ;;  %v3084_v28 = vsel %vm2334_vm2, %v2859_v29, 0.0 }
 0x39f   : > { %v3077_v33 = vadd.f32 %v3076_v41, %v3075_v24  ;;  %v15401_v41 = vld [vmem:[#allocation55_spill] sm:$0xff] }
 0x3a0   : > { %15400 = vst [vmem:[#allocation23_spill] sm:$0xff] %v12317_v5  ;;  %v12324_v54 = vsub.f32 %v15401_v41, %v11733_v52  ;;  %v2861_v17 = vmul.f32 %v12317_v5, %v12317_v5  ;;  %v3086_v7 = vsel %vm2334_vm2, %v2860_v16, 0.0 }
 0x3a1   : > { %v3079_v34 = vadd.f32 %v3078_v42, %v3077_v33  ;;  %v15403_v42 = vld [vmem:[#allocation58_spill] sm:$0xff] }
 0x3a2   : > { %15402 = vst [vmem:[#allocation26_spill] sm:$0xff] %v12324_v54  ;;  %v12331_v57 = vsub.f32 %v15403_v42, %v11733_v52  ;;  %v2862_v4 = vmul.f32 %v12324_v54, %v12324_v54  ;;  %v3088_v29 = vsel %vm2334_vm2, %v2861_v17, 0.0 }
 0x3a3   : > { %v3081_v24 = vadd.f32 %v3080_v32, %v3079_v34  ;;  %v15405_v32 = vld [vmem:[#allocation57_spill] sm:$0xff] }
 0x3a4   : > { %15404 = vst [vmem:[#allocation25_spill] sm:$0xff] %v12331_v57  ;;  %v12338_v41 = vsub.f32 %v15405_v32, %v11733_v52  ;;  %v2863_v5 = vmul.f32 %v12331_v57, %v12331_v57  ;;  %v3090_v16 = vsel %vm2334_vm2, %v2862_v4, 0.0 }
 0x3a5   : > { %v3083_v33 = vadd.f32 %v3082_v53, %v3081_v24  ;;  %v15407_v53 = vld [vmem:[#allocation60_spill] sm:$0xff] }
 0x3a6   : > { %15406 = vst [vmem:[#allocation28_spill] sm:$0xff] %v12338_v41  ;;  %v12345_v42 = vsub.f32 %v15407_v53, %v11733_v52  ;;  %v2864_v54 = vmul.f32 %v12338_v41, %v12338_v41  ;;  %v3092_v17 = vsel %vm2334_vm2, %v2863_v5, 0.0 }
 0x3a7   : > { %v3085_v34 = vadd.f32 %v3084_v28, %v3083_v33  ;;  %v15409_v28 = vld [vmem:[#allocation59_spill] sm:$0xff] }
 0x3a8   : > { %15408 = vst [vmem:[#allocation27_spill] sm:$0xff] %v12345_v42  ;;  %v12352_v32 = vsub.f32 %v15409_v28, %v11733_v52  ;;  %v2865_v57 = vmul.f32 %v12345_v42, %v12345_v42  ;;  %v3094_v4 = vsel %vm2334_vm2, %v2864_v54, 0.0 }
 0x3a9   : > { %v3087_v24 = vadd.f32 %v3086_v7, %v3085_v34  ;;  %v15411_v7 = vld [vmem:[#allocation62_spill] sm:$0xff] }
 0x3aa   : > { %15410 = vst [vmem:[#allocation30_spill] sm:$0xff] %v12352_v32  ;;  %v12359_v53 = vsub.f32 %v15411_v7, %v11733_v52  ;;  %v2866_v41 = vmul.f32 %v12352_v32, %v12352_v32  ;;  %v3096_v5 = vsel %vm2334_vm2, %v2865_v57, 0.0 }
 0x3ab   : > { %v3089_v33 = vadd.f32 %v3088_v29, %v3087_v24  ;;  %v15413_v29 = vld [vmem:[#allocation61_spill] sm:$0xff] }
 0x3ac   : > { %15412 = vst [vmem:[#allocation29_spill] sm:$0xff] %v12359_v53  ;;  %v12366_v28 = vsub.f32 %v15413_v29, %v11733_v52  ;;  %v2867_v42 = vmul.f32 %v12359_v53, %v12359_v53  ;;  %v3098_v54 = vsel %vm2334_vm2, %v2866_v41, 0.0 }
 0x3ad   : > { %v3091_v34 = vadd.f32 %v3090_v16, %v3089_v33  ;;  %v15415_v16 = vld [vmem:[#allocation64_spill] sm:$0xff] }
 0x3ae   : > { %15414 = vst [vmem:[#allocation32_spill] sm:$0xff] %v12366_v28  ;;  %v12373_v7 = vsub.f32 %v15415_v16, %v11733_v52  ;;  %v2868_v32 = vmul.f32 %v12366_v28, %v12366_v28  ;;  %v3100_v57 = vsel %vm2334_vm2, %v2867_v42, 0.0 }
 0x3af   : > { %v3093_v24 = vadd.f32 %v3092_v17, %v3091_v34  ;;  %v15417_v17 = vld [vmem:[#allocation63_spill] sm:$0xff] }
 0x3b0   : > { %15416 = vst [vmem:[#allocation31_spill] sm:$0xff] %v12373_v7  ;;  %v12380_v29 = vsub.f32 %v15417_v17, %v11733_v52  ;;  %v2869_v53 = vmul.f32 %v12373_v7, %v12373_v7  ;;  %v3102_v41 = vsel %vm2334_vm2, %v2868_v32, 0.0 }
 0x3b1   : > { %v3095_v33 = vadd.f32 %v3094_v4, %v3093_v24  ;;  %v15419_v4 = vld [vmem:[#allocation66_spill] sm:$0xff] }
 0x3b2   : > { %15418 = vst [vmem:[#allocation34_spill] sm:$0xff] %v12380_v29  ;;  %v12387_v16 = vsub.f32 %v15419_v4, %v11733_v52  ;;  %v2870_v28 = vmul.f32 %v12380_v29, %v12380_v29  ;;  %v3104_v42 = vsel %vm2334_vm2, %v2869_v53, 0.0 }
 0x3b3   : > { %v3097_v34 = vadd.f32 %v3096_v5, %v3095_v33  ;;  %v15421_v5 = vld [vmem:[#allocation65_spill] sm:$0xff] }
 0x3b4   : > { %15420 = vst [vmem:[#allocation33_spill] sm:$0xff] %v12387_v16  ;;  %v12394_v17 = vsub.f32 %v15421_v5, %v11733_v52  ;;  %v2871_v7 = vmul.f32 %v12387_v16, %v12387_v16  ;;  %v3106_v32 = vsel %vm2334_vm2, %v2870_v28, 0.0 }
 0x3b5   : > { %v3099_v24 = vadd.f32 %v3098_v54, %v3097_v34  ;;  %v15423_v54 = vld [vmem:[#allocation68_spill] sm:$0xff] }
 0x3b6   : > { %15422 = vst [vmem:[#allocation36_spill] sm:$0xff] %v12394_v17  ;;  %v12401_v4 = vsub.f32 %v15423_v54, %v11733_v52  ;;  %v2872_v29 = vmul.f32 %v12394_v17, %v12394_v17  ;;  %v3108_v53 = vsel %vm2334_vm2, %v2871_v7, 0.0 }
 0x3b7   : > { %v3101_v33 = vadd.f32 %v3100_v57, %v3099_v24  ;;  %v15425_v57 = vld [vmem:[#allocation67_spill] sm:$0xff] }
 0x3b8   : > { %15424 = vst [vmem:[#allocation35_spill] sm:$0xff] %v12401_v4  ;;  %v12408_v5 = vsub.f32 %v15425_v57, %v11733_v52  ;;  %v2873_v16 = vmul.f32 %v12401_v4, %v12401_v4  ;;  %v3110_v28 = vsel %vm2334_vm2, %v2872_v29, 0.0 }
 0x3b9   : > { %v3103_v34 = vadd.f32 %v3102_v41, %v3101_v33  ;;  %v15427_v41 = vld [vmem:[#allocation70_spill] sm:$0xff] }
 0x3ba   : > { %15426 = vst [vmem:[#allocation38_spill] sm:$0xff] %v12408_v5  ;;  %v12415_v54 = vsub.f32 %v15427_v41, %v11733_v52  ;;  %v2874_v17 = vmul.f32 %v12408_v5, %v12408_v5  ;;  %v3112_v7 = vsel %vm2334_vm2, %v2873_v16, 0.0 }
 0x3bb   : > { %v3105_v24 = vadd.f32 %v3104_v42, %v3103_v34  ;;  %v15429_v42 = vld [vmem:[#allocation69_spill] sm:$0xff] }
 0x3bc   : > { %15428 = vst [vmem:[#allocation37_spill] sm:$0xff] %v12415_v54  ;;  %v12422_v57 = vsub.f32 %v15429_v42, %v11733_v52  ;;  %v2875_v4 = vmul.f32 %v12415_v54, %v12415_v54  ;;  %v3114_v29 = vsel %vm2334_vm2, %v2874_v17, 0.0 }
 0x3bd   : > { %v3107_v33 = vadd.f32 %v3106_v32, %v3105_v24  ;;  %v15431_v32 = vld [vmem:[#allocation72_spill] sm:$0xff] }
 0x3be   : > { %15430 = vst [vmem:[#allocation40_spill] sm:$0xff] %v12422_v57  ;;  %v12429_v41 = vsub.f32 %v15431_v32, %v11733_v52  ;;  %v2876_v5 = vmul.f32 %v12422_v57, %v12422_v57  ;;  %v3116_v16 = vsel %vm2334_vm2, %v2875_v4, 0.0 }
 0x3bf   : > { %v3109_v34 = vadd.f32 %v3108_v53, %v3107_v33  ;;  %v15433_v53 = vld [vmem:[#allocation71_spill] sm:$0xff] }
 0x3c0   : > { %15432 = vst [vmem:[#allocation39_spill] sm:$0xff] %v12429_v41  ;;  %v12436_v42 = vsub.f32 %v15433_v53, %v11733_v52  ;;  %v2877_v54 = vmul.f32 %v12429_v41, %v12429_v41  ;;  %v3118_v17 = vsel %vm2334_vm2, %v2876_v5, 0.0 }
 0x3c1   : > { %v3111_v24 = vadd.f32 %v3110_v28, %v3109_v34  ;;  %v15435_v28 = vld [vmem:[#allocation74_spill] sm:$0xff] }
 0x3c2   : > { %15434 = vst [vmem:[#allocation42_spill] sm:$0xff] %v12436_v42  ;;  %v12443_v32 = vsub.f32 %v15435_v28, %v11733_v52  ;;  %v2878_v57 = vmul.f32 %v12436_v42, %v12436_v42  ;;  %v3120_v4 = vsel %vm2334_vm2, %v2877_v54, 0.0 }
 0x3c3   : > { %v3113_v33 = vadd.f32 %v3112_v7, %v3111_v24  ;;  %v15437_v7 = vld [vmem:[#allocation73_spill] sm:$0xff] }
 0x3c4   : > { %15436 = vst [vmem:[#allocation41_spill] sm:$0xff] %v12443_v32  ;;  %v12450_v53 = vsub.f32 %v15437_v7, %v11733_v52  ;;  %v2879_v41 = vmul.f32 %v12443_v32, %v12443_v32  ;;  %v3122_v5 = vsel %vm2334_vm2, %v2878_v57, 0.0 }
 0x3c5   : > { %v3115_v34 = vadd.f32 %v3114_v29, %v3113_v33  ;;  %v15439_v29 = vld [vmem:[#allocation76_spill] sm:$0xff] }
 0x3c6   : > { %15438 = vst [vmem:[#allocation44_spill] sm:$0xff] %v12450_v53  ;;  %v12457_v28 = vsub.f32 %v15439_v29, %v11733_v52  ;;  %v2880_v42 = vmul.f32 %v12450_v53, %v12450_v53  ;;  %v3124_v54 = vsel %vm2334_vm2, %v2879_v41, 0.0 }
 0x3c7   : > { %v3117_v24 = vadd.f32 %v3116_v16, %v3115_v34  ;;  %v15441_v16 = vld [vmem:[#allocation75_spill] sm:$0xff] }
 0x3c8   : > { %15440 = vst [vmem:[#allocation43_spill] sm:$0xff] %v12457_v28  ;;  %v12464_v7 = vsub.f32 %v15441_v16, %v11733_v52  ;;  %v2881_v32 = vmul.f32 %v12457_v28, %v12457_v28  ;;  %v3126_v57 = vsel %vm2334_vm2, %v2880_v42, 0.0 }
 0x3c9   : > { %v3119_v33 = vadd.f32 %v3118_v17, %v3117_v24  ;;  %v15443_v17 = vld [vmem:[#allocation78_spill] sm:$0xff] }
 0x3ca   : > { %15442 = vst [vmem:[#allocation46_spill] sm:$0xff] %v12464_v7  ;;  %v12471_v29 = vsub.f32 %v15443_v17, %v11733_v52  ;;  %v2882_v53 = vmul.f32 %v12464_v7, %v12464_v7  ;;  %v3128_v41 = vsel %vm2334_vm2, %v2881_v32, 0.0 }
 0x3cb   : > { %v3121_v34 = vadd.f32 %v3120_v4, %v3119_v33  ;;  %v15445_v4 = vld [vmem:[#allocation77_spill] sm:$0xff] }
 0x3cc   : > { %15444 = vst [vmem:[#allocation45_spill] sm:$0xff] %v12471_v29  ;;  %v12478_v16 = vsub.f32 %v15445_v4, %v11733_v52  ;;  %v2883_v28 = vmul.f32 %v12471_v29, %v12471_v29  ;;  %v3130_v42 = vsel %vm2334_vm2, %v2882_v53, 0.0 }
 0x3cd   : > { %v3123_v24 = vadd.f32 %v3122_v5, %v3121_v34  ;;  %v15447_v5 = vld [vmem:[#allocation80_spill] sm:$0xff] }
 0x3ce   : > { %15446 = vst [vmem:[#allocation48_spill] sm:$0xff] %v12478_v16  ;;  %v12485_v17 = vsub.f32 %v15447_v5, %v11733_v52  ;;  %v2884_v7 = vmul.f32 %v12478_v16, %v12478_v16  ;;  %v3132_v32 = vsel %vm2334_vm2, %v2883_v28, 0.0 }
 0x3cf   : > { %v3125_v33 = vadd.f32 %v3124_v54, %v3123_v24  ;;  %v15449_v54 = vld [vmem:[#allocation79_spill] sm:$0xff] }
 0x3d0   : > { %15448 = vst [vmem:[#allocation47_spill] sm:$0xff] %v12485_v17  ;;  %v12492_v4 = vsub.f32 %v15449_v54, %v11733_v52  ;;  %v2885_v29 = vmul.f32 %v12485_v17, %v12485_v17  ;;  %v3134_v53 = vsel %vm2334_vm2, %v2884_v7, 0.0 }
 0x3d1   : > { %v3127_v34 = vadd.f32 %v3126_v57, %v3125_v33  ;;  %v15451_v57 = vld [vmem:[#allocation82_spill] sm:$0xff] }
 0x3d2   : > { %15450 = vst [vmem:[#allocation50_spill] sm:$0xff] %v12492_v4  ;;  %v12499_v5 = vsub.f32 %v15451_v57, %v11733_v52  ;;  %v2886_v16 = vmul.f32 %v12492_v4, %v12492_v4  ;;  %v3136_v28 = vsel %vm2334_vm2, %v2885_v29, 0.0 }
 0x3d3   : > { %v3129_v24 = vadd.f32 %v3128_v41, %v3127_v34  ;;  %v15453_v41 = vld [vmem:[#allocation81_spill] sm:$0xff] }
 0x3d4   : > { %15452 = vst [vmem:[#allocation49_spill] sm:$0xff] %v12499_v5  ;;  %v12506_v54 = vsub.f32 %v15453_v41, %v11733_v52  ;;  %v2887_v17 = vmul.f32 %v12499_v5, %v12499_v5  ;;  %v3138_v7 = vsel %vm2334_vm2, %v2886_v16, 0.0 }
 0x3d5   : > { %v3131_v33 = vadd.f32 %v3130_v42, %v3129_v24  ;;  %v15455_v42 = vld [vmem:[#allocation84_spill] sm:$0xff] }
 0x3d6   : > { %15454 = vst [vmem:[#allocation52_spill] sm:$0xff] %v12506_v54  ;;  %v12513_v57 = vsub.f32 %v15455_v42, %v11733_v52  ;;  %v2888_v4 = vmul.f32 %v12506_v54, %v12506_v54  ;;  %v3140_v29 = vsel %vm2334_vm2, %v2887_v17, 0.0 }
 0x3d7   : > { %v3133_v34 = vadd.f32 %v3132_v32, %v3131_v33  ;;  %v15457_v32 = vld [vmem:[#allocation83_spill] sm:$0xff] }
 0x3d8   : > { %15456 = vst [vmem:[#allocation51_spill] sm:$0xff] %v12513_v57  ;;  %v12520_v41 = vsub.f32 %v15457_v32, %v11733_v52  ;;  %v2889_v5 = vmul.f32 %v12513_v57, %v12513_v57  ;;  %v3142_v16 = vsel %vm2334_vm2, %v2888_v4, 0.0 }
 0x3d9   : > { %v3135_v24 = vadd.f32 %v3134_v53, %v3133_v34  ;;  %v15459_v53 = vld [vmem:[#allocation86_spill] sm:$0xff] }
 0x3da   : > { %15458 = vst [vmem:[#allocation54_spill] sm:$0xff] %v12520_v41  ;;  %v12527_v42 = vsub.f32 %v15459_v53, %v11733_v52  ;;  %v2890_v54 = vmul.f32 %v12520_v41, %v12520_v41  ;;  %v3144_v17 = vsel %vm2334_vm2, %v2889_v5, 0.0 }
 0x3db   : > { %v3137_v33 = vadd.f32 %v3136_v28, %v3135_v24  ;;  %v15461_v28 = vld [vmem:[#allocation85_spill] sm:$0xff] }
 0x3dc   : > { %15460 = vst [vmem:[#allocation53_spill] sm:$0xff] %v12527_v42  ;;  %v12534_v32 = vsub.f32 %v15461_v28, %v11733_v52  ;;  %v2891_v57 = vmul.f32 %v12527_v42, %v12527_v42  ;;  %v3146_v4 = vsel %vm2334_vm2, %v2890_v54, 0.0 }
 0x3dd   : > { %v3139_v34 = vadd.f32 %v3138_v7, %v3137_v33  ;;  %v15463_v7 = vld [vmem:[#allocation88_spill] sm:$0xff] }
 0x3de   : > { %15462 = vst [vmem:[#allocation56_spill] sm:$0xff] %v12534_v32  ;;  %v12541_v53 = vsub.f32 %v15463_v7, %v11733_v52  ;;  %v2892_v41 = vmul.f32 %v12534_v32, %v12534_v32  ;;  %v3148_v5 = vsel %vm2334_vm2, %v2891_v57, 0.0 }
 0x3df   : > { %v3141_v24 = vadd.f32 %v3140_v29, %v3139_v34  ;;  %v15465_v29 = vld [vmem:[#allocation87_spill] sm:$0xff] }
 0x3e0   : > { %15464 = vst [vmem:[#allocation55_spill] sm:$0xff] %v12541_v53  ;;  %v12548_v28 = vsub.f32 %v15465_v29, %v11733_v52  ;;  %v2893_v42 = vmul.f32 %v12541_v53, %v12541_v53  ;;  %v3150_v54 = vsel %vm2334_vm2, %v2892_v41, 0.0 }
 0x3e1   : > { %v3143_v33 = vadd.f32 %v3142_v16, %v3141_v24  ;;  %v15467_v16 = vld [vmem:[#allocation90_spill] sm:$0xff] }
 0x3e2   : > { %15466 = vst [vmem:[#allocation58_spill] sm:$0xff] %v12548_v28  ;;  %v12555_v7 = vsub.f32 %v15467_v16, %v11733_v52  ;;  %v2894_v32 = vmul.f32 %v12548_v28, %v12548_v28  ;;  %v3152_v57 = vsel %vm2334_vm2, %v2893_v42, 0.0 }
 0x3e3   : > { %v3145_v34 = vadd.f32 %v3144_v17, %v3143_v33  ;;  %v15469_v17 = vld [vmem:[#allocation89_spill] sm:$0xff] }
 0x3e4   : > { %15468 = vst [vmem:[#allocation57_spill] sm:$0xff] %v12555_v7  ;;  %v12562_v29 = vsub.f32 %v15469_v17, %v11733_v52  ;;  %v2895_v53 = vmul.f32 %v12555_v7, %v12555_v7  ;;  %v3154_v41 = vsel %vm2334_vm2, %v2894_v32, 0.0 }
 0x3e5   : > { %v3147_v24 = vadd.f32 %v3146_v4, %v3145_v34  ;;  %v15471_v4 = vld [vmem:[#allocation92_spill] sm:$0xff] }
 0x3e6   : > { %15470 = vst [vmem:[#allocation60_spill] sm:$0xff] %v12562_v29  ;;  %v12569_v16 = vsub.f32 %v15471_v4, %v11733_v52  ;;  %v2896_v28 = vmul.f32 %v12562_v29, %v12562_v29  ;;  %v3156_v42 = vsel %vm2334_vm2, %v2895_v53, 0.0 }
 0x3e7   : > { %v3149_v33 = vadd.f32 %v3148_v5, %v3147_v24  ;;  %v15473_v5 = vld [vmem:[#allocation91_spill] sm:$0xff] }
 0x3e8   : > { %15472 = vst [vmem:[#allocation59_spill] sm:$0xff] %v12569_v16  ;;  %v12576_v17 = vsub.f32 %v15473_v5, %v11733_v52  ;;  %v2897_v7 = vmul.f32 %v12569_v16, %v12569_v16  ;;  %v3158_v32 = vsel %vm2334_vm2, %v2896_v28, 0.0 }
 0x3e9   : > { %v3151_v34 = vadd.f32 %v3150_v54, %v3149_v33  ;;  %v15475_v54 = vld [vmem:[#allocation94_spill] sm:$0xff] }
 0x3ea   : > { %15474 = vst [vmem:[#allocation62_spill] sm:$0xff] %v12576_v17  ;;  %v12583_v4 = vsub.f32 %v15475_v54, %v11733_v52  ;;  %v2898_v29 = vmul.f32 %v12576_v17, %v12576_v17  ;;  %v3160_v53 = vsel %vm2334_vm2, %v2897_v7, 0.0 }
 0x3eb   : > { %v3153_v24 = vadd.f32 %v3152_v57, %v3151_v34  ;;  %v15477_v57 = vld [vmem:[#allocation93_spill] sm:$0xff] }
 0x3ec   : > { %15476 = vst [vmem:[#allocation61_spill] sm:$0xff] %v12583_v4  ;;  %v12590_v5 = vsub.f32 %v15477_v57, %v11733_v52  ;;  %v2899_v16 = vmul.f32 %v12583_v4, %v12583_v4  ;;  %v3162_v28 = vsel %vm2334_vm2, %v2898_v29, 0.0 }
 0x3ed   : > { %v3155_v33 = vadd.f32 %v3154_v41, %v3153_v24  ;;  %v15479_v41 = vld [vmem:[#allocation96_spill] sm:$0xff] }
 0x3ee   : > { %15478 = vst [vmem:[#allocation64_spill] sm:$0xff] %v12590_v5  ;;  %v12597_v54 = vsub.f32 %v15479_v41, %v11733_v52  ;;  %v2900_v17 = vmul.f32 %v12590_v5, %v12590_v5  ;;  %v3164_v7 = vsel %vm2334_vm2, %v2899_v16, 0.0 }
 0x3ef   : > { %v3157_v34 = vadd.f32 %v3156_v42, %v3155_v33  ;;  %v15481_v42 = vld [vmem:[#allocation95_spill] sm:$0xff] }
 0x3f0   : > { %15480 = vst [vmem:[#allocation63_spill] sm:$0xff] %v12597_v54  ;;  %v12604_v57 = vsub.f32 %v15481_v42, %v11733_v52  ;;  %v2901_v4 = vmul.f32 %v12597_v54, %v12597_v54  ;;  %v3166_v29 = vsel %vm2334_vm2, %v2900_v17, 0.0 }
 0x3f1   : > { %v3159_v24 = vadd.f32 %v3158_v32, %v3157_v34  ;;  %v15483_v32 = vld [vmem:[#allocation98_spill] sm:$0xff] }
 0x3f2   : > { %15482 = vst [vmem:[#allocation66_spill] sm:$0xff] %v12604_v57  ;;  %v12611_v41 = vsub.f32 %v15483_v32, %v11733_v52  ;;  %v2902_v5 = vmul.f32 %v12604_v57, %v12604_v57  ;;  %v3168_v16 = vsel %vm2334_vm2, %v2901_v4, 0.0 }
 0x3f3   : > { %v3161_v33 = vadd.f32 %v3160_v53, %v3159_v24  ;;  %v15485_v53 = vld [vmem:[#allocation97_spill] sm:$0xff] }
 0x3f4   : > { %15484 = vst [vmem:[#allocation65_spill] sm:$0xff] %v12611_v41  ;;  %v12618_v42 = vsub.f32 %v15485_v53, %v11733_v52  ;;  %v2903_v54 = vmul.f32 %v12611_v41, %v12611_v41  ;;  %v3170_v17 = vsel %vm2334_vm2, %v2902_v5, 0.0 }
 0x3f5   : > { %v3163_v34 = vadd.f32 %v3162_v28, %v3161_v33  ;;  %v15487_v28 = vld [vmem:[#allocation100_spill] sm:$0xff] }
 0x3f6   : > { %15486 = vst [vmem:[#allocation68_spill] sm:$0xff] %v12618_v42  ;;  %v12625_v32 = vsub.f32 %v15487_v28, %v11733_v52  ;;  %v2904_v57 = vmul.f32 %v12618_v42, %v12618_v42  ;;  %v3172_v4 = vsel %vm2334_vm2, %v2903_v54, 0.0 }
 0x3f7   : > { %v3165_v24 = vadd.f32 %v3164_v7, %v3163_v34  ;;  %v15489_v7 = vld [vmem:[#allocation99_spill] sm:$0xff] }
 0x3f8   : > { %15488 = vst [vmem:[#allocation67_spill] sm:$0xff] %v12625_v32  ;;  %v12632_v53 = vsub.f32 %v15489_v7, %v11733_v52  ;;  %v2905_v41 = vmul.f32 %v12625_v32, %v12625_v32  ;;  %v3174_v5 = vsel %vm2334_vm2, %v2904_v57, 0.0 }
 0x3f9   : > { %v3167_v33 = vadd.f32 %v3166_v29, %v3165_v24  ;;  %v15491_v29 = vld [vmem:[#allocation102_spill] sm:$0xff] }
 0x3fa   : > { %15490 = vst [vmem:[#allocation70_spill] sm:$0xff] %v12632_v53  ;;  %v12639_v28 = vsub.f32 %v15491_v29, %v11733_v52  ;;  %v2906_v42 = vmul.f32 %v12632_v53, %v12632_v53  ;;  %v3176_v54 = vsel %vm2334_vm2, %v2905_v41, 0.0 }
 0x3fb   : > { %v3169_v34 = vadd.f32 %v3168_v16, %v3167_v33  ;;  %v15493_v16 = vld [vmem:[#allocation101_spill] sm:$0xff] }
 0x3fc   : > { %15492 = vst [vmem:[#allocation69_spill] sm:$0xff] %v12639_v28  ;;  %v12646_v7 = vsub.f32 %v15493_v16, %v11733_v52  ;;  %v2907_v32 = vmul.f32 %v12639_v28, %v12639_v28  ;;  %v3178_v57 = vsel %vm2334_vm2, %v2906_v42, 0.0 }
 0x3fd   : > { %v3171_v24 = vadd.f32 %v3170_v17, %v3169_v34  ;;  %v15495_v17 = vld [vmem:[#allocation104_spill] sm:$0xff] }
 0x3fe   : > { %15494 = vst [vmem:[#allocation72_spill] sm:$0xff] %v12646_v7  ;;  %v12653_v29 = vsub.f32 %v15495_v17, %v11733_v52  ;;  %v2908_v53 = vmul.f32 %v12646_v7, %v12646_v7  ;;  %v3180_v41 = vsel %vm2334_vm2, %v2907_v32, 0.0 }
 0x3ff   : > { %v3173_v33 = vadd.f32 %v3172_v4, %v3171_v24  ;;  %v15497_v4 = vld [vmem:[#allocation103_spill] sm:$0xff] }
 0x400   : > { %15496 = vst [vmem:[#allocation71_spill] sm:$0xff] %v12653_v29  ;;  %v12660_v16 = vsub.f32 %v15497_v4, %v11733_v52  ;;  %v2909_v28 = vmul.f32 %v12653_v29, %v12653_v29  ;;  %v3182_v42 = vsel %vm2334_vm2, %v2908_v53, 0.0 }
 0x401   : > { %v3175_v34 = vadd.f32 %v3174_v5, %v3173_v33  ;;  %v15499_v5 = vld [vmem:[#allocation106_spill] sm:$0xff] }
 0x402   : > { %15498 = vst [vmem:[#allocation74_spill] sm:$0xff] %v12660_v16  ;;  %v12667_v17 = vsub.f32 %v15499_v5, %v11733_v52  ;;  %v2910_v7 = vmul.f32 %v12660_v16, %v12660_v16  ;;  %v3184_v32 = vsel %vm2334_vm2, %v2909_v28, 0.0 }
 0x403   : > { %v3177_v24 = vadd.f32 %v3176_v54, %v3175_v34  ;;  %v15501_v54 = vld [vmem:[#allocation105_spill] sm:$0xff] }
 0x404   : > { %15500 = vst [vmem:[#allocation73_spill] sm:$0xff] %v12667_v17  ;;  %v12674_v4 = vsub.f32 %v15501_v54, %v11733_v52  ;;  %v2911_v29 = vmul.f32 %v12667_v17, %v12667_v17  ;;  %v3186_v53 = vsel %vm2334_vm2, %v2910_v7, 0.0 }
 0x405   : > { %v3179_v33 = vadd.f32 %v3178_v57, %v3177_v24  ;;  %v15503_v57 = vld [vmem:[#allocation108_spill] sm:$0xff] }
 0x406   : > { %15502 = vst [vmem:[#allocation76_spill] sm:$0xff] %v12674_v4  ;;  %v12681_v5 = vsub.f32 %v15503_v57, %v11733_v52  ;;  %v2912_v16 = vmul.f32 %v12674_v4, %v12674_v4  ;;  %v3188_v28 = vsel %vm2334_vm2, %v2911_v29, 0.0 }
 0x407   : > { %v3181_v34 = vadd.f32 %v3180_v41, %v3179_v33  ;;  %v15505_v41 = vld [vmem:[#allocation107_spill] sm:$0xff] }
 0x408   : > { %15504 = vst [vmem:[#allocation75_spill] sm:$0xff] %v12681_v5  ;;  %v12688_v54 = vsub.f32 %v15505_v41, %v11733_v52  ;;  %v2913_v17 = vmul.f32 %v12681_v5, %v12681_v5  ;;  %v3190_v7 = vsel %vm2334_vm2, %v2912_v16, 0.0 }
 0x409   : > { %v3183_v24 = vadd.f32 %v3182_v42, %v3181_v34  ;;  %v15507_v42 = vld [vmem:[#allocation110_spill] sm:$0xff] }
 0x40a   : > { %15506 = vst [vmem:[#allocation78_spill] sm:$0xff] %v12688_v54  ;;  %v12695_v57 = vsub.f32 %v15507_v42, %v11733_v52  ;;  %v2914_v4 = vmul.f32 %v12688_v54, %v12688_v54  ;;  %v3192_v29 = vsel %vm2334_vm2, %v2913_v17, 0.0 }
 0x40b   : > { %v3185_v33 = vadd.f32 %v3184_v32, %v3183_v24  ;;  %v15509_v32 = vld [vmem:[#allocation109_spill] sm:$0xff] }
 0x40c   : > { %15508 = vst [vmem:[#allocation77_spill] sm:$0xff] %v12695_v57  ;;  %v12702_v41 = vsub.f32 %v15509_v32, %v11733_v52  ;;  %v2915_v5 = vmul.f32 %v12695_v57, %v12695_v57  ;;  %v3194_v16 = vsel %vm2334_vm2, %v2914_v4, 0.0 }
 0x40d   : > { %v3187_v34 = vadd.f32 %v3186_v53, %v3185_v33  ;;  %v15511_v53 = vld [vmem:[#allocation111_spill] sm:$0xff] }
 0x40e   : > { %15510 = vst [vmem:[#allocation80_spill] sm:$0xff] %v12702_v41  ;;  %v12709_v42 = vsub.f32 %v15511_v53, %v11733_v52  ;;  %v2916_v54 = vmul.f32 %v12702_v41, %v12702_v41  ;;  %v3196_v17 = vsel %vm2334_vm2, %v2915_v5, 0.0 }
 0x40f   : > { %v3189_v24 = vadd.f32 %v3188_v28, %v3187_v34  ;;  %v15513_v28 = vld [vmem:[#allocation112_spill] sm:$0xff] }
 0x410   : > { %15512 = vst [vmem:[#allocation79_spill] sm:$0xff] %v12709_v42  ;;  %v12716_v32 = vsub.f32 %v15513_v28, %v11733_v52  ;;  %v2917_v53 = vmul.f32 %v12709_v42, %v12709_v42  ;;  %v3198_v4 = vsel %vm2334_vm2, %v2916_v54, 0.0 }
 0x411   : > { %v3191_v33 = vadd.f32 %v3190_v7, %v3189_v24  ;;  %v12723_v7 = vsub.f32 %v11722_v50, %v11733_v52 }
 0x412   : > { %15514 = vst [vmem:[#allocation82_spill] sm:$0xff] %v12716_v32  ;;  %v2918_v28 = vmul.f32 %v12716_v32, %v12716_v32 }
 0x413   : > { %v3193_v34 = vadd.f32 %v3192_v29, %v3191_v33  ;;  %15515 = vst [vmem:[#allocation81_spill] sm:$0xff] %v12723_v7  ;;  %v12730_v29 = vsub.f32 %v11727_v8, %v11733_v52  ;;  %v2919_v50 = vmul.f32 %v12723_v7, %v12723_v7 }
 0x415   : > { %v3195_v24 = vadd.f32 %v3194_v16, %v3193_v34  ;;  %v3200_v16 = vsel %vm2334_vm2, %v2917_v53, 0.0  ;;  %v2920_v5 = vmul.f32 %v12730_v29, %v12730_v29  ;;  %v3204_v8 = vsel %vm2334_vm2, %v2919_v50, 0.0 }
 0x417   : > { %v3197_v33 = vadd.f32 %v3196_v17, %v3195_v24  ;;  %v3202_v24 = vsel %vm2334_vm2, %v2918_v28, 0.0  ;;  %v3206_v32 = vsel %vm2334_vm2, %v2920_v5, 0.0  ;;  %v8768_v5 = vld [vmem:[%s10569_s25 + $0x18] sm:$0xff] }
 0x418   : > { %9827 = vmatprep.subr.mxu1 %v8768_v5 }
 0x419   : > { %v3199_v34 = vadd.f32 %v3198_v4, %v3197_v33  ;;  %9828 = vmatpush3.msra.mxu1 %v8768_v5  ;;  %v15526_v5 = vld [vmem:[#allocation23_spill] sm:$0xff] }
 0x41b   : > { %v3201_v41 = vadd.f32 %v3200_v16, %v3199_v34 }
 0x41d   : > { %v3203_v17 = vadd.f32 %v3202_v24, %v3201_v41  ;;  %v8767_v24 = vld [vmem:[%s10569_s25 + $0x10] sm:$0xff] }
 0x41e   : > { %9829 = vmatprep.subr.mxu1 %v8767_v24 }
 0x41f   : > { %v3205_v52 = vadd.f32 %v3204_v8, %v3203_v17  ;;  %9830 = vmatpush3.msra.mxu1 %v8767_v24  ;;  %v12746_v17 = vld [vmem:[%s10569_s25 + $0x8] sm:$0xff] }
 0x420   : > { %15516 = vst [vmem:[#allocation84_spill] sm:$0xff] %v12746_v17  ;;  %9849 = vmatprep.subr.mxu1 %v12746_v17  ;;  %v15534_v17 = vld [vmem:[#allocation27_spill] sm:$0xff] }
 0x421   : > { %v3207_v42 = vadd.f32 %v3206_v32, %v3205_v52 }
 0x423   : > { %3208 = vadd.xlane.f32.xlu0 %v3207_v42 }
 0x4ac   : > { %v3209_v54 = vpop.xlane.xlu0 %3208 }
 0x4ad   : > { %v3210_v33 = vrot.slane %v3209_v54, 4 }
 0x4af   : > { %v3211_v4 = vadd.f32 %v3210_v33, %v3209_v54 }
 0x4b1   : > { %v3212_v7 = vrot.slane %v3211_v4, 2 }
 0x4b3   : > { %v3213_v57 = vadd.f32 %v3212_v7, %v3211_v4 }
 0x4b5   : > { %v3214_v53 = vrot.slane %v3213_v57, 1 }
 0x4b7   : > { %v3215_v34 = vadd.f32 %v3214_v53, %v3213_v57 }
 0x4b9   : > { %10368 = vpush %v3215_v34  ;;  %v15518_v34 = vld [vmem:[#allocation18_spill] sm:$0xff] }
 0x4ea   : > { %s10369_s1 = spop %10368 }
 0x4eb   : > { %s3217_s2 = smul.f32 5.4256416e-05, %s10369_s1 }
 0x4ed   : > { %v3218_v16 = vstv %s3217_s2 }
 0x4ee   : > { %10464 = vrsqrt.f32 %v3218_v16  ;;  %vm3221_vm3 = vcmp.eq.f32.partialorder %v3218_v16, inf  ;;  %v3224_v50 = vand.u32 2147483648, %v3218_v16  ;;  %vm3223_vm4 = vcmp.eq.f32.partialorder %v3218_v16, 0.0 }
 0x4fb   : > { %v10465_v41 = vpop.eup %10464 }
 0x4fc   : > { %v3220_v28 = vmul.f32 %v10465_v41, %v3218_v16  ;;  %v15520_v41 = vld [vmem:[#allocation20_spill] sm:$0xff] }
 0x4fe   : > { %v3222_v32 = vsel %vm3221_vm3, %v3218_v16, %v3220_v28  ;;  %v15519_v16 = vld [vmem:[#allocation17_spill] sm:$0xff]  ;;  %v15521_v28 = vld [vmem:[#allocation19_spill] sm:$0xff] }
 0x4ff   : > { %v3225_v42 = vsel %vm3223_vm4, %v3224_v50, %v3222_v32  ;;  %v15522_v50 = vld [vmem:[#allocation22_spill] sm:$0xff]  ;;  %v15523_v32 = vld [vmem:[#allocation21_spill] sm:$0xff] }
 0x500   : > { %10370 = vpush %v3225_v42 }
 0x531   : > { %s10371_s7 = spop %10370 }
 0x532   : > { %s3227_s10 = sadd.f32 1e-05, %s10371_s7 }
 0x534   : > { %v3228_v7 = vstv %s3227_s10 }
 0x535   : > { %10466 = vrcp.f32 %v3228_v7  ;;  %v15524_v7 = vld [vmem:[#allocation24_spill] sm:$0xff] }
 0x542   : > { %v10467_v57 = vpop.eup %10466 }
 0x543   : > { %10372 = vpush %v10467_v57 }
 0x574   : > { %s10373_s11 = spop %10372 }
 0x575   : > { %v12749_v8 = vstv %s10373_s11 }
 0x576   : > { %v12753_v52 = vmul.f32 %v12749_v8, %v11820_v31  ;;  %v12757_v54 = vmul.f32 %v12749_v8, %v11960_v39  ;;  %v12761_v33 = vmul.f32 %v12749_v8, %v11967_v63  ;;  %v12765_v4 = vmul.f32 %v12749_v8, %v11974_v62 }
 0x577   : > { %v12769_v53 = vmul.f32 %v12749_v8, %v11981_v19  ;;  %v12773_v31 = vmul.f32 %v12749_v8, %v11988_v18  ;;  %v12777_v39 = vmul.f32 %v12749_v8, %v11995_v37  ;;  %v12781_v63 = vmul.f32 %v12749_v8, %v12002_v36 }
 0x578   : > { %15517 = vst [vmem:[#allocation83_spill] sm:$0xff] %v12753_v52  ;;  %v12785_v62 = vmul.f32 %v12749_v8, %v12009_v0  ;;  %v12789_v19 = vmul.f32 %v12749_v8, %v12016_v61  ;;  %v12793_v18 = vmul.f32 %v12749_v8, %v12023_v23  ;;  %v12797_v37 = vmul.f32 %v12749_v8, %v12030_v20  ;;  %v15536_v52 = vld [vmem:[#allocation30_spill] sm:$0xff] }
 0x579   : > { %v12801_v36 = vmul.f32 %v12749_v8, %v12037_v46  ;;  %v12805_v0 = vmul.f32 %v12749_v8, %v12044_v38  ;;  %v12809_v61 = vmul.f32 %v12749_v8, %v12051_v6  ;;  %v12813_v23 = vmul.f32 %v12749_v8, %v12058_v3 }
 0x57a   : > { %v12817_v20 = vmul.f32 %v12749_v8, %v12065_v14  ;;  %v12821_v46 = vmul.f32 %v12749_v8, %v12072_v47  ;;  %v12825_v38 = vmul.f32 %v12749_v8, %v12079_v43  ;;  %v12829_v6 = vmul.f32 %v12749_v8, %v12086_v49 }
 0x57b   : > { %v12833_v3 = vmul.f32 %v12749_v8, %v12093_v13  ;;  %v12837_v14 = vmul.f32 %v12749_v8, %v12100_v55  ;;  %v12841_v47 = vmul.f32 %v12749_v8, %v12107_v2  ;;  %v12845_v43 = vmul.f32 %v12749_v8, %v12114_v30 }
 0x57c   : > { %v12849_v49 = vmul.f32 %v12749_v8, %v12121_v58  ;;  %v12853_v13 = vmul.f32 %v12749_v8, %v12128_v51  ;;  %v12857_v55 = vmul.f32 %v12749_v8, %v12135_v45  ;;  %v12861_v2 = vmul.f32 %v12749_v8, %v12142_v25 }
 0x57d   : > { %v12865_v30 = vmul.f32 %v12749_v8, %v12149_v26  ;;  %v12869_v58 = vmul.f32 %v12749_v8, %v12156_v9  ;;  %v12873_v51 = vmul.f32 %v12749_v8, %v12163_v10  ;;  %v12877_v45 = vmul.f32 %v12749_v8, %v12170_v59 }
 0x57e   : > { %v12881_v25 = vmul.f32 %v12749_v8, %v12177_v60  ;;  %v12885_v26 = vmul.f32 %v12749_v8, %v12184_v40  ;;  %v12889_v9 = vmul.f32 %v12749_v8, %v12191_v44  ;;  %v12893_v10 = vmul.f32 %v12749_v8, %v12198_v21 }
 0x57f   : > { %v12897_v59 = vmul.f32 %v12749_v8, %v12205_v22  ;;  %v12901_v60 = vmul.f32 %v12749_v8, %v12212_v11  ;;  %v12905_v40 = vmul.f32 %v12749_v8, %v12219_v12  ;;  %v12909_v44 = vmul.f32 %v12749_v8, %v12226_v1 }
 0x580   : > { %v12913_v21 = vmul.f32 %v12749_v8, %v12233_v27  ;;  %v12917_v22 = vmul.f32 %v12749_v8, %v12240_v56  ;;  %v12921_v11 = vmul.f32 %v12749_v8, %v12247_v48  ;;  %v12925_v12 = vmul.f32 %v12749_v8, %v12254_v35 }
 0x581   : > { %v12929_v1 = vmul.f32 %v12749_v8, %v12261_v15  ;;  %v12933_v27 = vmul.f32 %v12749_v8, %v15518_v34  ;;  %v12937_v56 = vmul.f32 %v12749_v8, %v15519_v16  ;;  %v12941_v48 = vmul.f32 %v12749_v8, %v15520_v41  ;;  %v15528_v34 = vld [vmem:[#allocation26_spill] sm:$0xff]  ;;  %v15530_v41 = vld [vmem:[#allocation25_spill] sm:$0xff] }
 0x582   : > { %v12945_v35 = vmul.f32 %v12749_v8, %v15521_v28  ;;  %v12949_v15 = vmul.f32 %v12749_v8, %v15522_v50  ;;  %v12953_v42 = vmul.f32 %v12749_v8, %v15523_v32  ;;  %v12957_v57 = vmul.f32 %v12749_v8, %v15524_v7  ;;  %v15532_v50 = vld [vmem:[#allocation28_spill] sm:$0xff] }
 0x583   : > { %v12961_v24 = vmul.f32 %v12749_v8, %v15526_v5  ;;  %v12965_v16 = vmul.f32 %v12749_v8, %v15528_v34  ;;  %v12969_v28 = vmul.f32 %v12749_v8, %v15530_v41  ;;  %v12973_v32 = vmul.f32 %v12749_v8, %v15532_v50 }
 0x584   : > { %15525 = vst [vmem:[#allocation86_spill] sm:$0xff] %v12957_v57  ;;  %v12977_v7 = vmul.f32 %v12749_v8, %v15534_v17  ;;  %v12981_v5 = vmul.f32 %v12749_v8, %v15536_v52  ;;  %v15630_v57 = vld [vmem:[#allocation75_spill] sm:$0xff] }
 0x585   : > { %15527 = vst [vmem:[#allocation85_spill] sm:$0xff] %v12961_v24  ;;  %15529 = vst [vmem:[#allocation88_spill] sm:$0xff] %v12965_v16  ;;  %v15538_v24 = vld [vmem:[#allocation29_spill] sm:$0xff]  ;;  %v15540_v16 = vld [vmem:[#allocation32_spill] sm:$0xff] }
 0x586   : > { %15531 = vst [vmem:[#allocation87_spill] sm:$0xff] %v12969_v28  ;;  %15533 = vst [vmem:[#allocation90_spill] sm:$0xff] %v12973_v32  ;;  %v12985_v34 = vmul.f32 %v12749_v8, %v15538_v24  ;;  %v12989_v41 = vmul.f32 %v12749_v8, %v15540_v16  ;;  %v15542_v28 = vld [vmem:[#allocation31_spill] sm:$0xff]  ;;  %v15544_v32 = vld [vmem:[#allocation34_spill] sm:$0xff] }
 0x587   : > { %15535 = vst [vmem:[#allocation89_spill] sm:$0xff] %v12977_v7  ;;  %15537 = vst [vmem:[#allocation92_spill] sm:$0xff] %v12981_v5  ;;  %v12993_v50 = vmul.f32 %v12749_v8, %v15542_v28  ;;  %v12997_v17 = vmul.f32 %v12749_v8, %v15544_v32  ;;  %v15546_v7 = vld [vmem:[#allocation33_spill] sm:$0xff]  ;;  %v15548_v5 = vld [vmem:[#allocation36_spill] sm:$0xff] }
 0x588   : > { %15539 = vst [vmem:[#allocation91_spill] sm:$0xff] %v12985_v34  ;;  %15541 = vst [vmem:[#allocation94_spill] sm:$0xff] %v12989_v41  ;;  %v13001_v52 = vmul.f32 %v12749_v8, %v15546_v7  ;;  %v13005_v24 = vmul.f32 %v12749_v8, %v15548_v5  ;;  %v15550_v34 = vld [vmem:[#allocation35_spill] sm:$0xff]  ;;  %v15552_v41 = vld [vmem:[#allocation38_spill] sm:$0xff] }
 0x589   : > { %15543 = vst [vmem:[#allocation93_spill] sm:$0xff] %v12993_v50  ;;  %15545 = vst [vmem:[#allocation96_spill] sm:$0xff] %v12997_v17  ;;  %v13009_v16 = vmul.f32 %v12749_v8, %v15550_v34  ;;  %v13013_v28 = vmul.f32 %v12749_v8, %v15552_v41  ;;  %v15554_v50 = vld [vmem:[#allocation37_spill] sm:$0xff]  ;;  %v15556_v17 = vld [vmem:[#allocation40_spill] sm:$0xff] }
 0x58a   : > { %15547 = vst [vmem:[#allocation95_spill] sm:$0xff] %v13001_v52  ;;  %15549 = vst [vmem:[#allocation98_spill] sm:$0xff] %v13005_v24  ;;  %v13017_v32 = vmul.f32 %v12749_v8, %v15554_v50  ;;  %v13021_v7 = vmul.f32 %v12749_v8, %v15556_v17  ;;  %v15558_v52 = vld [vmem:[#allocation39_spill] sm:$0xff]  ;;  %v15560_v24 = vld [vmem:[#allocation42_spill] sm:$0xff] }
 0x58b   : > { %15551 = vst [vmem:[#allocation97_spill] sm:$0xff] %v13009_v16  ;;  %15553 = vst [vmem:[#allocation100_spill] sm:$0xff] %v13013_v28  ;;  %v13025_v5 = vmul.f32 %v12749_v8, %v15558_v52  ;;  %v13029_v34 = vmul.f32 %v12749_v8, %v15560_v24  ;;  %v15562_v16 = vld [vmem:[#allocation41_spill] sm:$0xff]  ;;  %v15564_v28 = vld [vmem:[#allocation44_spill] sm:$0xff] }
 0x58c   : > { %15555 = vst [vmem:[#allocation99_spill] sm:$0xff] %v13017_v32  ;;  %15557 = vst [vmem:[#allocation102_spill] sm:$0xff] %v13021_v7  ;;  %v13033_v41 = vmul.f32 %v12749_v8, %v15562_v16  ;;  %v13037_v50 = vmul.f32 %v12749_v8, %v15564_v28  ;;  %v15566_v32 = vld [vmem:[#allocation43_spill] sm:$0xff]  ;;  %v15568_v7 = vld [vmem:[#allocation46_spill] sm:$0xff] }
 0x58d   : > { %15559 = vst [vmem:[#allocation101_spill] sm:$0xff] %v13025_v5  ;;  %15561 = vst [vmem:[#allocation104_spill] sm:$0xff] %v13029_v34  ;;  %v13041_v17 = vmul.f32 %v12749_v8, %v15566_v32  ;;  %v13045_v52 = vmul.f32 %v12749_v8, %v15568_v7  ;;  %v15570_v5 = vld [vmem:[#allocation45_spill] sm:$0xff]  ;;  %v15572_v34 = vld [vmem:[#allocation48_spill] sm:$0xff] }
 0x58e   : > { %15563 = vst [vmem:[#allocation103_spill] sm:$0xff] %v13033_v41  ;;  %15565 = vst [vmem:[#allocation106_spill] sm:$0xff] %v13037_v50  ;;  %v13049_v24 = vmul.f32 %v12749_v8, %v15570_v5  ;;  %v13053_v16 = vmul.f32 %v12749_v8, %v15572_v34  ;;  %v15574_v41 = vld [vmem:[#allocation47_spill] sm:$0xff]  ;;  %v15576_v50 = vld [vmem:[#allocation50_spill] sm:$0xff] }
 0x58f   : > { %15567 = vst [vmem:[#allocation105_spill] sm:$0xff] %v13041_v17  ;;  %15569 = vst [vmem:[#allocation108_spill] sm:$0xff] %v13045_v52  ;;  %v13057_v28 = vmul.f32 %v12749_v8, %v15574_v41  ;;  %v13061_v32 = vmul.f32 %v12749_v8, %v15576_v50  ;;  %v15578_v17 = vld [vmem:[#allocation49_spill] sm:$0xff]  ;;  %v15580_v52 = vld [vmem:[#allocation52_spill] sm:$0xff] }
 0x590   : > { %15571 = vst [vmem:[#allocation107_spill] sm:$0xff] %v13049_v24  ;;  %15573 = vst [vmem:[#allocation110_spill] sm:$0xff] %v13053_v16  ;;  %v13065_v7 = vmul.f32 %v12749_v8, %v15578_v17  ;;  %v13069_v5 = vmul.f32 %v12749_v8, %v15580_v52  ;;  %v15582_v24 = vld [vmem:[#allocation51_spill] sm:$0xff]  ;;  %v15584_v16 = vld [vmem:[#allocation54_spill] sm:$0xff] }
 0x591   : > { %15575 = vst [vmem:[#allocation109_spill] sm:$0xff] %v13057_v28  ;;  %15577 = vst [vmem:[#allocation111_spill] sm:$0xff] %v13061_v32  ;;  %v13073_v34 = vmul.f32 %v12749_v8, %v15582_v24  ;;  %v13077_v41 = vmul.f32 %v12749_v8, %v15584_v16  ;;  %v15586_v28 = vld [vmem:[#allocation53_spill] sm:$0xff]  ;;  %v15588_v32 = vld [vmem:[#allocation56_spill] sm:$0xff] }
 0x592   : > { %15579 = vst [vmem:[#allocation112_spill] sm:$0xff] %v13065_v7  ;;  %15581 = vst [vmem:[#allocation18_spill] sm:$0xff] %v13069_v5  ;;  %v13081_v50 = vmul.f32 %v12749_v8, %v15586_v28  ;;  %v13085_v17 = vmul.f32 %v12749_v8, %v15588_v32  ;;  %v15590_v7 = vld [vmem:[#allocation55_spill] sm:$0xff]  ;;  %v15592_v5 = vld [vmem:[#allocation58_spill] sm:$0xff] }
 0x593   : > { %15583 = vst [vmem:[#allocation17_spill] sm:$0xff] %v13073_v34  ;;  %15585 = vst [vmem:[#allocation20_spill] sm:$0xff] %v13077_v41  ;;  %v13089_v52 = vmul.f32 %v12749_v8, %v15590_v7  ;;  %v13093_v24 = vmul.f32 %v12749_v8, %v15592_v5  ;;  %v15594_v34 = vld [vmem:[#allocation57_spill] sm:$0xff]  ;;  %v15596_v41 = vld [vmem:[#allocation60_spill] sm:$0xff] }
 0x594   : > { %15587 = vst [vmem:[#allocation19_spill] sm:$0xff] %v13081_v50  ;;  %15589 = vst [vmem:[#allocation22_spill] sm:$0xff] %v13085_v17  ;;  %v13097_v16 = vmul.f32 %v12749_v8, %v15594_v34  ;;  %v13101_v28 = vmul.f32 %v12749_v8, %v15596_v41  ;;  %v15598_v50 = vld [vmem:[#allocation59_spill] sm:$0xff]  ;;  %v15600_v17 = vld [vmem:[#allocation62_spill] sm:$0xff] }
 0x595   : > { %15591 = vst [vmem:[#allocation21_spill] sm:$0xff] %v13089_v52  ;;  %15593 = vst [vmem:[#allocation24_spill] sm:$0xff] %v13093_v24  ;;  %v13105_v32 = vmul.f32 %v12749_v8, %v15598_v50  ;;  %v13109_v7 = vmul.f32 %v12749_v8, %v15600_v17  ;;  %v15602_v52 = vld [vmem:[#allocation61_spill] sm:$0xff]  ;;  %v15604_v24 = vld [vmem:[#allocation64_spill] sm:$0xff] }
 0x596   : > { %15595 = vst [vmem:[#allocation23_spill] sm:$0xff] %v13097_v16  ;;  %15597 = vst [vmem:[#allocation26_spill] sm:$0xff] %v13101_v28  ;;  %v13113_v5 = vmul.f32 %v12749_v8, %v15602_v52  ;;  %v13117_v34 = vmul.f32 %v12749_v8, %v15604_v24  ;;  %v15606_v16 = vld [vmem:[#allocation63_spill] sm:$0xff]  ;;  %v15608_v28 = vld [vmem:[#allocation66_spill] sm:$0xff] }
 0x597   : > { %15599 = vst [vmem:[#allocation25_spill] sm:$0xff] %v13105_v32  ;;  %15601 = vst [vmem:[#allocation28_spill] sm:$0xff] %v13109_v7  ;;  %v13121_v41 = vmul.f32 %v12749_v8, %v15606_v16  ;;  %v13125_v50 = vmul.f32 %v12749_v8, %v15608_v28  ;;  %v15610_v32 = vld [vmem:[#allocation65_spill] sm:$0xff]  ;;  %v15612_v7 = vld [vmem:[#allocation68_spill] sm:$0xff] }
 0x598   : > { %15603 = vst [vmem:[#allocation27_spill] sm:$0xff] %v13113_v5  ;;  %15605 = vst [vmem:[#allocation30_spill] sm:$0xff] %v13117_v34  ;;  %v13129_v17 = vmul.f32 %v12749_v8, %v15610_v32  ;;  %v13133_v52 = vmul.f32 %v12749_v8, %v15612_v7  ;;  %v15614_v5 = vld [vmem:[#allocation67_spill] sm:$0xff]  ;;  %v15616_v34 = vld [vmem:[#allocation70_spill] sm:$0xff] }
 0x599   : > { %15607 = vst [vmem:[#allocation29_spill] sm:$0xff] %v13121_v41  ;;  %15609 = vst [vmem:[#allocation32_spill] sm:$0xff] %v13125_v50  ;;  %v13137_v24 = vmul.f32 %v12749_v8, %v15614_v5  ;;  %v13141_v16 = vmul.f32 %v12749_v8, %v15616_v34  ;;  %v15618_v41 = vld [vmem:[#allocation69_spill] sm:$0xff]  ;;  %v13148_v50 = vld [vmem:[%s10559_s17] ss:$0 sm:$0xff] }
 0x59a   : > { %15611 = vst [vmem:[#allocation31_spill] sm:$0xff] %v13129_v17  ;;  %15613 = vst [vmem:[#allocation34_spill] sm:$0xff] %v13133_v52  ;;  %v13145_v28 = vmul.f32 %v12749_v8, %v15618_v41  ;;  %v15620_v32 = vld [vmem:[#allocation72_spill] sm:$0xff]  ;;  %v15622_v7 = vld [vmem:[#allocation71_spill] sm:$0xff] }
 0x59b   : > { %15615 = vst [vmem:[#allocation33_spill] sm:$0xff] %v13137_v24  ;;  %15617 = vst [vmem:[#allocation36_spill] sm:$0xff] %v13141_v16  ;;  %v13152_v17 = vmul.f32 %v12749_v8, %v15620_v32  ;;  %v13156_v52 = vmul.f32 %v12749_v8, %v15622_v7  ;;  %v15624_v5 = vld [vmem:[#allocation74_spill] sm:$0xff]  ;;  %v15626_v34 = vld [vmem:[#allocation73_spill] sm:$0xff]  ;;  %v13172_v32 = vmul.f32 %v12749_v8, %v15630_v57 }
 0x59c   : > { %15619 = vst [vmem:[#allocation35_spill] sm:$0xff] %v13145_v28  ;;  %v13160_v24 = vmul.f32 %v12749_v8, %v15624_v5  ;;  %v13164_v16 = vmul.f32 %v12749_v8, %v15626_v34  ;;  %v15628_v41 = vld [vmem:[#allocation76_spill] sm:$0xff] }
 0x59d   : > { %15621 = vst [vmem:[#allocation38_spill] sm:$0xff] %v13152_v17  ;;  %15623 = vst [vmem:[#allocation37_spill] sm:$0xff] %v13156_v52  ;;  %v13168_v28 = vmul.f32 %v12749_v8, %v15628_v41  ;;  %v15632_v17 = vld [vmem:[#allocation78_spill] sm:$0xff]  ;;  %v15633_v52 = vld [vmem:[#allocation77_spill] sm:$0xff] }
 0x59e   : > { %15625 = vst [vmem:[#allocation40_spill] sm:$0xff] %v13160_v24  ;;  %15627 = vst [vmem:[#allocation39_spill] sm:$0xff] %v13164_v16  ;;  %v13176_v7 = vmul.f32 %v12749_v8, %v15632_v17  ;;  %v13180_v5 = vmul.f32 %v12749_v8, %v15633_v52  ;;  %v15634_v24 = vld [vmem:[#allocation80_spill] sm:$0xff]  ;;  %v15635_v16 = vld [vmem:[#allocation79_spill] sm:$0xff]  ;;  %v13200_v52 = vmul.f32 %v12749_v8, %v12730_v29 }
 0x59f   : > { %15629 = vst [vmem:[#allocation42_spill] sm:$0xff] %v13168_v28  ;;  %15631 = vst [vmem:[#allocation41_spill] sm:$0xff] %v13172_v32  ;;  %v13184_v34 = vmul.f32 %v12749_v8, %v15634_v24  ;;  %v13188_v41 = vmul.f32 %v12749_v8, %v15635_v16  ;;  %v15636_v28 = vld [vmem:[#allocation82_spill] sm:$0xff]  ;;  %v15637_v32 = vld [vmem:[#allocation81_spill] sm:$0xff]  ;;  %v13204_v24 = vmul.f32 %v13148_v50, %v12757_v54 }
 0x5a0   : > { %v13192_v57 = vmul.f32 %v12749_v8, %v15636_v28  ;;  %v13196_v17 = vmul.f32 %v12749_v8, %v15637_v32  ;;  %v13208_v16 = vmul.f32 %v13148_v50, %v12761_v33  ;;  %v13212_v28 = vmul.f32 %v13148_v50, %v12765_v4 }
 0x5a1   : > { %v13216_v32 = vmul.f32 %v13148_v50, %v12769_v53  ;;  %v13220_v29 = vmul.f32 %v13148_v50, %v12773_v31  ;;  %v13224_v54 = vmul.f32 %v13148_v50, %v12777_v39  ;;  %v13228_v33 = vmul.f32 %v13148_v50, %v12781_v63 }
 0x5a2   : > { %v13232_v4 = vmul.f32 %v13148_v50, %v12785_v62  ;;  %v13236_v53 = vmul.f32 %v13148_v50, %v12789_v19  ;;  %v13240_v31 = vmul.f32 %v13148_v50, %v12793_v18  ;;  %v13244_v39 = vmul.f32 %v13148_v50, %v12797_v37 }
 0x5a3   : > { %v13248_v63 = vmul.f32 %v13148_v50, %v12801_v36  ;;  %v13252_v62 = vmul.f32 %v13148_v50, %v12805_v0  ;;  %v13256_v19 = vmul.f32 %v13148_v50, %v12809_v61  ;;  %v13260_v18 = vmul.f32 %v13148_v50, %v12813_v23 }
 0x5a4   : > { %v13264_v37 = vmul.f32 %v13148_v50, %v12817_v20  ;;  %v13268_v36 = vmul.f32 %v13148_v50, %v12821_v46  ;;  %v13272_v0 = vmul.f32 %v13148_v50, %v12825_v38  ;;  %v13276_v61 = vmul.f32 %v13148_v50, %v12829_v6 }
 0x5a5   : > { %v13280_v23 = vmul.f32 %v13148_v50, %v12833_v3  ;;  %v13284_v20 = vmul.f32 %v13148_v50, %v12837_v14  ;;  %v13288_v46 = vmul.f32 %v13148_v50, %v12841_v47  ;;  %v13292_v38 = vmul.f32 %v13148_v50, %v12845_v43 }
 0x5a6   : > { %v13296_v6 = vmul.f32 %v13148_v50, %v12849_v49  ;;  %v13300_v3 = vmul.f32 %v13148_v50, %v12853_v13  ;;  %v13304_v14 = vmul.f32 %v13148_v50, %v12857_v55  ;;  %v13308_v47 = vmul.f32 %v13148_v50, %v12861_v2 }
 0x5a7   : > { %v13312_v43 = vmul.f32 %v13148_v50, %v12865_v30  ;;  %v13316_v49 = vmul.f32 %v13148_v50, %v12869_v58  ;;  %v13320_v13 = vmul.f32 %v13148_v50, %v12873_v51  ;;  %v13324_v55 = vmul.f32 %v13148_v50, %v12877_v45 }
 0x5a8   : > { %v13328_v2 = vmul.f32 %v13148_v50, %v12881_v25  ;;  %v13332_v30 = vmul.f32 %v13148_v50, %v12885_v26  ;;  %v13336_v58 = vmul.f32 %v13148_v50, %v12889_v9  ;;  %v13340_v51 = vmul.f32 %v13148_v50, %v12893_v10 }
 0x5a9   : > { %v13344_v45 = vmul.f32 %v13148_v50, %v12897_v59  ;;  %v13348_v25 = vmul.f32 %v13148_v50, %v12901_v60  ;;  %v13352_v26 = vmul.f32 %v13148_v50, %v12905_v40  ;;  %v13356_v9 = vmul.f32 %v13148_v50, %v12909_v44 }
 0x5aa   : > { %v13360_v10 = vmul.f32 %v13148_v50, %v12913_v21  ;;  %v13364_v59 = vmul.f32 %v13148_v50, %v12917_v22  ;;  %v13368_v60 = vmul.f32 %v13148_v50, %v12921_v11  ;;  %v13372_v40 = vmul.f32 %v13148_v50, %v12925_v12 }
 0x5ab   : > { %15638 = vst [vmem:[#allocation44_spill] sm:$0xff] %v13356_v9  ;;  %v13376_v44 = vmul.f32 %v13148_v50, %v12929_v1  ;;  %v13380_v21 = vmul.f32 %v13148_v50, %v12933_v27  ;;  %v13384_v22 = vmul.f32 %v13148_v50, %v12937_v56  ;;  %v13388_v11 = vmul.f32 %v13148_v50, %v12941_v48 }
 0x5ac   : > { %15639 = vst [vmem:[#allocation43_spill] sm:$0xff] %v13360_v10  ;;  %15640 = vst [vmem:[#allocation46_spill] sm:$0xff] %v13364_v59  ;;  %v13392_v12 = vmul.f32 %v13148_v50, %v12945_v35  ;;  %v13396_v1 = vmul.f32 %v13148_v50, %v12949_v15  ;;  %v13400_v27 = vmul.f32 %v13148_v50, %v12953_v42 }
 0x5ad   : > { %15641 = vst [vmem:[#allocation45_spill] sm:$0xff] %v13368_v60  ;;  %15642 = vst [vmem:[#allocation48_spill] sm:$0xff] %v13372_v40  ;;  %v15774_v60 = vld [vmem:[#allocation133_spill] sm:$0xff] }
 0x5ae   : > { %15643 = vst [vmem:[#allocation47_spill] sm:$0xff] %v13376_v44  ;;  %15644 = vst [vmem:[#allocation50_spill] sm:$0xff] %v13380_v21  ;;  %v15650_v21 = vld [vmem:[#allocation86_spill] sm:$0xff]  ;;  %v3253_v59 = vmul.f32 %v12749_v8, %v15774_v60 }
 0x5af   : > { %15645 = vst [vmem:[#allocation49_spill] sm:$0xff] %v13384_v22  ;;  %15646 = vst [vmem:[#allocation52_spill] sm:$0xff] %v13388_v11  ;;  %v13404_v56 = vmul.f32 %v13148_v50, %v15650_v21  ;;  %v15652_v22 = vld [vmem:[#allocation85_spill] sm:$0xff]  ;;  %v15654_v11 = vld [vmem:[#allocation88_spill] sm:$0xff] }
 0x5b0   : > { %15647 = vst [vmem:[#allocation51_spill] sm:$0xff] %v13392_v12  ;;  %15648 = vst [vmem:[#allocation54_spill] sm:$0xff] %v13396_v1  ;;  %v13408_v48 = vmul.f32 %v13148_v50, %v15652_v22  ;;  %v13412_v35 = vmul.f32 %v13148_v50, %v15654_v11  ;;  %v15656_v12 = vld [vmem:[#allocation87_spill] sm:$0xff]  ;;  %v15658_v1 = vld [vmem:[#allocation90_spill] sm:$0xff] }
 0x5b1   : > { %15649 = vst [vmem:[#allocation53_spill] sm:$0xff] %v13400_v27  ;;  %15651 = vst [vmem:[#allocation56_spill] sm:$0xff] %v13404_v56  ;;  %v13416_v15 = vmul.f32 %v13148_v50, %v15656_v12  ;;  %v13420_v42 = vmul.f32 %v13148_v50, %v15658_v1  ;;  %v15660_v27 = vld [vmem:[#allocation89_spill] sm:$0xff]  ;;  %v15662_v56 = vld [vmem:[#allocation92_spill] sm:$0xff] }
 0x5b2   : > { %15653 = vst [vmem:[#allocation55_spill] sm:$0xff] %v13408_v48  ;;  %15655 = vst [vmem:[#allocation58_spill] sm:$0xff] %v13412_v35  ;;  %v13424_v21 = vmul.f32 %v13148_v50, %v15660_v27  ;;  %v13428_v22 = vmul.f32 %v13148_v50, %v15662_v56  ;;  %v15664_v48 = vld [vmem:[#allocation91_spill] sm:$0xff]  ;;  %v15666_v35 = vld [vmem:[#allocation94_spill] sm:$0xff] }
 0x5b3   : > { %15657 = vst [vmem:[#allocation57_spill] sm:$0xff] %v13416_v15  ;;  %15659 = vst [vmem:[#allocation60_spill] sm:$0xff] %v13420_v42  ;;  %v13432_v11 = vmul.f32 %v13148_v50, %v15664_v48  ;;  %v13436_v12 = vmul.f32 %v13148_v50, %v15666_v35  ;;  %v15668_v15 = vld [vmem:[#allocation93_spill] sm:$0xff]  ;;  %v15670_v42 = vld [vmem:[#allocation96_spill] sm:$0xff] }
 0x5b4   : > { %15661 = vst [vmem:[#allocation59_spill] sm:$0xff] %v13424_v21  ;;  %15663 = vst [vmem:[#allocation62_spill] sm:$0xff] %v13428_v22  ;;  %v13440_v1 = vmul.f32 %v13148_v50, %v15668_v15  ;;  %v13444_v27 = vmul.f32 %v13148_v50, %v15670_v42  ;;  %v15672_v21 = vld [vmem:[#allocation95_spill] sm:$0xff]  ;;  %v15674_v22 = vld [vmem:[#allocation98_spill] sm:$0xff] }
 0x5b5   : > { %15665 = vst [vmem:[#allocation61_spill] sm:$0xff] %v13432_v11  ;;  %15667 = vst [vmem:[#allocation64_spill] sm:$0xff] %v13436_v12  ;;  %v13448_v56 = vmul.f32 %v13148_v50, %v15672_v21  ;;  %v13452_v48 = vmul.f32 %v13148_v50, %v15674_v22  ;;  %v15676_v11 = vld [vmem:[#allocation97_spill] sm:$0xff]  ;;  %v15678_v12 = vld [vmem:[#allocation100_spill] sm:$0xff] }
 0x5b6   : > { %15669 = vst [vmem:[#allocation63_spill] sm:$0xff] %v13440_v1  ;;  %15671 = vst [vmem:[#allocation66_spill] sm:$0xff] %v13444_v27  ;;  %v13456_v35 = vmul.f32 %v13148_v50, %v15676_v11  ;;  %v13460_v15 = vmul.f32 %v13148_v50, %v15678_v12  ;;  %v15680_v1 = vld [vmem:[#allocation99_spill] sm:$0xff]  ;;  %v15682_v27 = vld [vmem:[#allocation102_spill] sm:$0xff] }
 0x5b7   : > { %15673 = vst [vmem:[#allocation65_spill] sm:$0xff] %v13448_v56  ;;  %15675 = vst [vmem:[#allocation68_spill] sm:$0xff] %v13452_v48  ;;  %v13464_v42 = vmul.f32 %v13148_v50, %v15680_v1  ;;  %v13468_v21 = vmul.f32 %v13148_v50, %v15682_v27  ;;  %v15684_v56 = vld [vmem:[#allocation101_spill] sm:$0xff]  ;;  %v15686_v48 = vld [vmem:[#allocation104_spill] sm:$0xff] }
 0x5b8   : > { %15677 = vst [vmem:[#allocation67_spill] sm:$0xff] %v13456_v35  ;;  %15679 = vst [vmem:[#allocation70_spill] sm:$0xff] %v13460_v15  ;;  %v13472_v22 = vmul.f32 %v13148_v50, %v15684_v56  ;;  %v13476_v11 = vmul.f32 %v13148_v50, %v15686_v48  ;;  %v15688_v35 = vld [vmem:[#allocation103_spill] sm:$0xff]  ;;  %v15690_v15 = vld [vmem:[#allocation106_spill] sm:$0xff] }
 0x5b9   : > { %15681 = vst [vmem:[#allocation69_spill] sm:$0xff] %v13464_v42  ;;  %15683 = vst [vmem:[#allocation72_spill] sm:$0xff] %v13468_v21  ;;  %v13480_v12 = vmul.f32 %v13148_v50, %v15688_v35  ;;  %v13484_v1 = vmul.f32 %v13148_v50, %v15690_v15  ;;  %v15692_v42 = vld [vmem:[#allocation105_spill] sm:$0xff]  ;;  %v15694_v21 = vld [vmem:[#allocation108_spill] sm:$0xff] }
 0x5ba   : > { %15685 = vst [vmem:[#allocation71_spill] sm:$0xff] %v13472_v22  ;;  %15687 = vst [vmem:[#allocation74_spill] sm:$0xff] %v13476_v11  ;;  %v13488_v27 = vmul.f32 %v13148_v50, %v15692_v42  ;;  %v13492_v56 = vmul.f32 %v13148_v50, %v15694_v21  ;;  %v15696_v22 = vld [vmem:[#allocation107_spill] sm:$0xff]  ;;  %v15698_v11 = vld [vmem:[#allocation110_spill] sm:$0xff] }
 0x5bb   : > { %15689 = vst [vmem:[#allocation73_spill] sm:$0xff] %v13480_v12  ;;  %15691 = vst [vmem:[#allocation76_spill] sm:$0xff] %v13484_v1  ;;  %v13496_v48 = vmul.f32 %v13148_v50, %v15696_v22  ;;  %v13500_v35 = vmul.f32 %v13148_v50, %v15698_v11  ;;  %v15700_v12 = vld [vmem:[#allocation109_spill] sm:$0xff]  ;;  %v15702_v1 = vld [vmem:[#allocation111_spill] sm:$0xff] }
 0x5bc   : > { %15693 = vst [vmem:[#allocation75_spill] sm:$0xff] %v13488_v27  ;;  %15695 = vst [vmem:[#allocation78_spill] sm:$0xff] %v13492_v56  ;;  %v13504_v15 = vmul.f32 %v13148_v50, %v15700_v12  ;;  %v13508_v42 = vmul.f32 %v13148_v50, %v15702_v1  ;;  %v15704_v27 = vld [vmem:[#allocation112_spill] sm:$0xff]  ;;  %v15706_v56 = vld [vmem:[#allocation18_spill] sm:$0xff] }
 0x5bd   : > { %15697 = vst [vmem:[#allocation77_spill] sm:$0xff] %v13496_v48  ;;  %15699 = vst [vmem:[#allocation80_spill] sm:$0xff] %v13500_v35  ;;  %v13512_v21 = vmul.f32 %v13148_v50, %v15704_v27  ;;  %v13516_v22 = vmul.f32 %v13148_v50, %v15706_v56  ;;  %v15708_v48 = vld [vmem:[#allocation17_spill] sm:$0xff]  ;;  %v15710_v35 = vld [vmem:[#allocation20_spill] sm:$0xff] }
 0x5be   : > { %15701 = vst [vmem:[#allocation79_spill] sm:$0xff] %v13504_v15  ;;  %15703 = vst [vmem:[#allocation82_spill] sm:$0xff] %v13508_v42  ;;  %v13520_v11 = vmul.f32 %v13148_v50, %v15708_v48  ;;  %v13524_v12 = vmul.f32 %v13148_v50, %v15710_v35  ;;  %v15712_v15 = vld [vmem:[#allocation19_spill] sm:$0xff]  ;;  %v15714_v42 = vld [vmem:[#allocation22_spill] sm:$0xff] }
 0x5bf   : > { %15705 = vst [vmem:[#allocation81_spill] sm:$0xff] %v13512_v21  ;;  %15707 = vst [vmem:[#allocation86_spill] sm:$0xff] %v13516_v22  ;;  %v13528_v1 = vmul.f32 %v13148_v50, %v15712_v15  ;;  %v13532_v27 = vmul.f32 %v13148_v50, %v15714_v42  ;;  %v15716_v21 = vld [vmem:[#allocation21_spill] sm:$0xff]  ;;  %v15718_v22 = vld [vmem:[#allocation24_spill] sm:$0xff] }
 0x5c0   : > { %15709 = vst [vmem:[#allocation85_spill] sm:$0xff] %v13520_v11  ;;  %15711 = vst [vmem:[#allocation88_spill] sm:$0xff] %v13524_v12  ;;  %v13536_v56 = vmul.f32 %v13148_v50, %v15716_v21  ;;  %v13540_v48 = vmul.f32 %v13148_v50, %v15718_v22  ;;  %v15720_v11 = vld [vmem:[#allocation23_spill] sm:$0xff]  ;;  %v15722_v12 = vld [vmem:[#allocation26_spill] sm:$0xff] }
 0x5c1   : > { %15713 = vst [vmem:[#allocation87_spill] sm:$0xff] %v13528_v1  ;;  %15715 = vst [vmem:[#allocation90_spill] sm:$0xff] %v13532_v27  ;;  %v13544_v35 = vmul.f32 %v13148_v50, %v15720_v11  ;;  %v13548_v15 = vmul.f32 %v13148_v50, %v15722_v12  ;;  %v15724_v1 = vld [vmem:[#allocation25_spill] sm:$0xff]  ;;  %v15726_v27 = vld [vmem:[#allocation28_spill] sm:$0xff] }
 0x5c2   : > { %15717 = vst [vmem:[#allocation89_spill] sm:$0xff] %v13536_v56  ;;  %15719 = vst [vmem:[#allocation92_spill] sm:$0xff] %v13540_v48  ;;  %v13552_v42 = vmul.f32 %v13148_v50, %v15724_v1  ;;  %v13556_v21 = vmul.f32 %v13148_v50, %v15726_v27  ;;  %v15728_v56 = vld [vmem:[#allocation27_spill] sm:$0xff]  ;;  %v15730_v48 = vld [vmem:[#allocation30_spill] sm:$0xff] }
 0x5c3   : > { %15721 = vst [vmem:[#allocation91_spill] sm:$0xff] %v13544_v35  ;;  %15723 = vst [vmem:[#allocation94_spill] sm:$0xff] %v13548_v15  ;;  %v13560_v22 = vmul.f32 %v13148_v50, %v15728_v56  ;;  %v13564_v11 = vmul.f32 %v13148_v50, %v15730_v48  ;;  %v15732_v35 = vld [vmem:[#allocation29_spill] sm:$0xff]  ;;  %v15734_v15 = vld [vmem:[#allocation32_spill] sm:$0xff] }
 0x5c4   : > { %15725 = vst [vmem:[#allocation93_spill] sm:$0xff] %v13552_v42  ;;  %15727 = vst [vmem:[#allocation96_spill] sm:$0xff] %v13556_v21  ;;  %v13568_v12 = vmul.f32 %v13148_v50, %v15732_v35  ;;  %v13572_v1 = vmul.f32 %v13148_v50, %v15734_v15  ;;  %v15736_v42 = vld [vmem:[#allocation31_spill] sm:$0xff]  ;;  %v15738_v21 = vld [vmem:[#allocation34_spill] sm:$0xff] }
 0x5c5   : > { %15729 = vst [vmem:[#allocation95_spill] sm:$0xff] %v13560_v22  ;;  %15731 = vst [vmem:[#allocation98_spill] sm:$0xff] %v13564_v11  ;;  %v13576_v27 = vmul.f32 %v13148_v50, %v15736_v42  ;;  %v13580_v56 = vmul.f32 %v13148_v50, %v15738_v21  ;;  %v15740_v22 = vld [vmem:[#allocation33_spill] sm:$0xff]  ;;  %v15742_v11 = vld [vmem:[#allocation36_spill] sm:$0xff] }
 0x5c6   : > { %15733 = vst [vmem:[#allocation97_spill] sm:$0xff] %v13568_v12  ;;  %15735 = vst [vmem:[#allocation100_spill] sm:$0xff] %v13572_v1  ;;  %v13584_v48 = vmul.f32 %v13148_v50, %v15740_v22  ;;  %v13588_v35 = vmul.f32 %v13148_v50, %v15742_v11  ;;  %v15744_v12 = vld [vmem:[#allocation35_spill] sm:$0xff]  ;;  %v15746_v1 = vld [vmem:[#allocation38_spill] sm:$0xff] }
 0x5c7   : > { %15737 = vst [vmem:[#allocation99_spill] sm:$0xff] %v13576_v27  ;;  %15739 = vst [vmem:[#allocation102_spill] sm:$0xff] %v13580_v56  ;;  %v13592_v15 = vmul.f32 %v13148_v50, %v15744_v12  ;;  %v13596_v42 = vmul.f32 %v13148_v50, %v15746_v1  ;;  %v15748_v27 = vld [vmem:[#allocation37_spill] sm:$0xff]  ;;  %v15750_v56 = vld [vmem:[#allocation40_spill] sm:$0xff] }
 0x5c8   : > { %15741 = vst [vmem:[#allocation101_spill] sm:$0xff] %v13584_v48  ;;  %15743 = vst [vmem:[#allocation104_spill] sm:$0xff] %v13588_v35  ;;  %v13600_v21 = vmul.f32 %v13148_v50, %v15748_v27  ;;  %v13604_v22 = vmul.f32 %v13148_v50, %v15750_v56  ;;  %v15752_v48 = vld [vmem:[#allocation39_spill] sm:$0xff]  ;;  %v15754_v35 = vld [vmem:[#allocation42_spill] sm:$0xff]  ;;  %v13620_v27 = vmul.f32 %v13148_v50, %v13176_v7 }
 0x5c9   : > { %15745 = vst [vmem:[#allocation103_spill] sm:$0xff] %v13592_v15  ;;  %15747 = vst [vmem:[#allocation106_spill] sm:$0xff] %v13596_v42  ;;  %v13608_v11 = vmul.f32 %v13148_v50, %v15752_v48  ;;  %v13612_v12 = vmul.f32 %v13148_v50, %v15754_v35  ;;  %v15756_v15 = vld [vmem:[#allocation41_spill] sm:$0xff]  ;;  %v13624_v56 = vmul.f32 %v13148_v50, %v13180_v5 }
 0x5ca   : > { %15749 = vst [vmem:[#allocation105_spill] sm:$0xff] %v13600_v21  ;;  %15751 = vst [vmem:[#allocation108_spill] sm:$0xff] %v13604_v22  ;;  %v13616_v1 = vmul.f32 %v13148_v50, %v15756_v15  ;;  %v13628_v48 = vmul.f32 %v13148_v50, %v13184_v34  ;;  %v13632_v35 = vmul.f32 %v13148_v50, %v13188_v41  ;;  %v13651_v41 = vld [vmem:[%s10564_s21] ss:$0 sm:$0xff]  ;;  %v15771_v22 = vld [vmem:[#allocation130_spill] sm:$0xff] }
 0x5cb   : > { %15753 = vst [vmem:[#allocation107_spill] sm:$0xff] %v13608_v11  ;;  %15755 = vst [vmem:[#allocation110_spill] sm:$0xff] %v13612_v12  ;;  %v13636_v15 = vmul.f32 %v13148_v50, %v13192_v57  ;;  %v13640_v7 = vmul.f32 %v13148_v50, %v13196_v17  ;;  %v13644_v5 = vmul.f32 %v13148_v50, %v13200_v52  ;;  %v15769_v17 = vld [vmem:[#allocation128_spill] sm:$0xff]  ;;  %v15770_v12 = vld [vmem:[#allocation129_spill] sm:$0xff] }
 0x5cc   : > { %15757 = vst [vmem:[#allocation109_spill] sm:$0xff] %v13616_v1  ;;  %15758 = vst [vmem:[#allocation111_spill] sm:$0xff] %v13620_v27 }
 0x5cd   : > { %15759 = vst [vmem:[#allocation112_spill] sm:$0xff] %v13624_v56  ;;  %15760 = vst [vmem:[#allocation18_spill] sm:$0xff] %v13628_v48  ;;  %v15765_v56 = vld [vmem:[#allocation125_spill] sm:$0xff]  ;;  %v15766_v48 = vld [vmem:[#allocation83_spill] sm:$0xff] }
 0x5ce   : > { %15761 = vst [vmem:[#allocation17_spill] sm:$0xff] %v13632_v35  ;;  %15762 = vst [vmem:[#allocation20_spill] sm:$0xff] %v13636_v15  ;;  %v3244_v34 = vmul.f32 %v12749_v8, %v15765_v56  ;;  %v3395_v27 = vmul.f32 %v13148_v50, %v15766_v48  ;;  %v15767_v35 = vld [vmem:[#allocation126_spill] sm:$0xff]  ;;  %v15768_v15 = vld [vmem:[#allocation127_spill] sm:$0xff]  ;;  %v3249_v56 = vmul.f32 %v12749_v8, %v15770_v12 }
 0x5cf   : > { %15763 = vst [vmem:[#allocation19_spill] sm:$0xff] %v13640_v7  ;;  %15764 = vst [vmem:[#allocation22_spill] sm:$0xff] %v13644_v5  ;;  %v3246_v57 = vmul.f32 %v12749_v8, %v15767_v35  ;;  %v3247_v1 = vmul.f32 %v12749_v8, %v15768_v15  ;;  %v3248_v7 = vmul.f32 %v12749_v8, %v15769_v17  ;;  %v15772_v15 = vld [vmem:[#allocation131_spill] sm:$0xff] }
 0x5d0   : > { %v3394_v52 = vmul.f32 %v13148_v50, %v3244_v34  ;;  %v3545_v5 = vadd.f32 %v13651_v41, %v3395_v27  ;;  %v3250_v35 = vmul.f32 %v12749_v8, %v15771_v22  ;;  %v3251_v42 = vmul.f32 %v12749_v8, %v15772_v15  ;;  %v15773_v27 = vld [vmem:[#allocation132_spill] sm:$0xff] }
 0x5d1   : > { %v3396_v48 = vmul.f32 %v13148_v50, %v3246_v57  ;;  %v3397_v11 = vmul.f32 %v13148_v50, %v3247_v1  ;;  %v3398_v21 = vmul.f32 %v13148_v50, %v3248_v7  ;;  %v3252_v44 = vmul.f32 %v12749_v8, %v15773_v27  ;;  %v15775_v27 = vld [vmem:[#allocation134_spill] sm:$0xff] }
 0x5d2   : > { %v3544_v17 = vadd.f32 %v13651_v41, %v3394_v52  ;;  %vm3689_vm5 = vcmp.ge.f32.partialorder %v3545_v5, 0.0  ;;  %v3833_v34 = vmul.f32 0.01, %v3545_v5  ;;  %v3399_v12 = vmul.f32 %v13148_v50, %v3249_v56 }
 0x5d3   : > { %v3546_v57 = vadd.f32 %v13651_v41, %v3396_v48  ;;  %v3547_v1 = vadd.f32 %v13651_v41, %v3397_v11  ;;  %v3400_v22 = vmul.f32 %v13148_v50, %v3250_v35  ;;  %v3548_v15 = vadd.f32 %v13651_v41, %v3398_v21 }
 0x5d4   : > { %vm3688_vm6 = vcmp.ge.f32.partialorder %v3544_v17, 0.0  ;;  %v3832_v7 = vmul.f32 0.01, %v3544_v17  ;;  %v3977_v40 = vsel %vm3689_vm5, %v3545_v5, %v3833_v34  ;;  %v3254_v56 = vmul.f32 %v12749_v8, %v15775_v27  ;;  %v4108_v5 = vld [vmem:[%s10569_s25] sm:$0xff] }
 0x5d5   : > { %vm3690_vm7 = vcmp.ge.f32.partialorder %v3546_v57, 0.0  ;;  %v3834_v52 = vmul.f32 0.01, %v3546_v57  ;;  %v3401_v11 = vmul.f32 %v13148_v50, %v3251_v42  ;;  %v3402_v10 = vmul.f32 %v13148_v50, %v3252_v44  ;;  %v15776_v27 = vld [vmem:[#allocation84_spill] sm:$0xff]  ;;  %v13692_v42 = vld [vmem:[%s10569_s25 + $0x28] sm:$0xff] }
 0x5d6   : > { %v3976_v48 = vsel %vm3688_vm6, %v3544_v17, %v3832_v7  ;;  %v3835_v35 = vmul.f32 0.01, %v3547_v1  ;;  %v3549_v21 = vadd.f32 %v13651_v41, %v3399_v12  ;;  %vm3691_vm8 = vcmp.ge.f32.partialorder %v3547_v1, 0.0  ;;  %v15777_v44 = vld [vmem:[#allocation113_spill] sm:$0xff]  ;;  %v15778_v7 = vld [vmem:[#allocation135_spill] sm:$0xff] }
 0x5d7   : > { %9831 = vmatprep.mubr.msk.f32.mxu1 %vm2334_vm2, %v3976_v48  ;;  %v3978_v34 = vsel %vm3690_vm7, %v3546_v57, %v3834_v52  ;;  %v3836_v60 = vmul.f32 0.01, %v3548_v15  ;;  %v3550_v9 = vadd.f32 %v13651_v41, %v3400_v22  ;;  %vm3692_vm9 = vcmp.ge.f32.partialorder %v3548_v15, 0.0 }
 0x5d8   : > { %9832 = vmatmul.mubr.msk.f32.vlgmr.msra.gmra.mxu1 %vm2334_vm2, %v3977_v40  ;;  %v3232_v17 = vmul.f32 %v12749_v8, %v15777_v44  ;;  %v3255_v12 = vmul.f32 %v12749_v8, %v15778_v7  ;;  %v3403_v40 = vmul.f32 %v13148_v50, %v3253_v59  ;;  %v3404_v57 = vmul.f32 %v13148_v50, %v3254_v56  ;;  %v15779_v59 = vld [vmem:[#allocation114_spill] sm:$0xff] }
 0x5d9   : > { %9850 = vmatpush3.msra.mxu1 %v15776_v27  ;;  %9834 = vmatprep.mubr.msk.f32.mxu1 %vm2334_vm2, %v3978_v34  ;;  %v3979_v52 = vsel %vm3691_vm8, %v3547_v1, %v3835_v35  ;;  %v3837_v22 = vmul.f32 0.01, %v3549_v21  ;;  %v3551_v48 = vadd.f32 %v13651_v41, %v3401_v11  ;;  %v3980_v34 = vsel %vm3692_vm9, %v3548_v15, %v3836_v60  ;;  %v15780_v1 = vld [vmem:[#allocation115_spill] sm:$0xff] }
 0x5da   : > { %9851 = vmatprep.subr.mxu1 %v4108_v5  ;;  %vm3693_vm10 = vcmp.ge.f32.partialorder %v3549_v21, 0.0  ;;  %v3838_v27 = vmul.f32 0.01, %v3550_v9  ;;  %v3552_v44 = vadd.f32 %v13651_v41, %v3402_v10  ;;  %vm3694_vm11 = vcmp.ge.f32.partialorder %v3550_v9, 0.0 }
 0x5db   : > { %9852 = vmatpush3.msra.mxu1 %v4108_v5  ;;  %v3233_v56 = vmul.f32 %v12749_v8, %v15779_v59  ;;  %v3234_v35 = vmul.f32 %v12749_v8, %v15780_v1  ;;  %v3382_v11 = vmul.f32 %v13148_v50, %v3232_v17  ;;  %v3405_v5 = vmul.f32 %v13148_v50, %v3255_v12  ;;  %v15781_v59 = vld [vmem:[#allocation116_spill] sm:$0xff]  ;;  %v15782_v17 = vld [vmem:[#allocation117_spill] sm:$0xff] }
 0x5dc   : > { %9835 = vmatmul.mubr.msk.f32.gmra.mxu1 %vm2334_vm2, %v3979_v52  ;;  %9871 = vmatprep.subr.mxu1 %v13692_v42  ;;  %v3981_v15 = vsel %vm3693_vm10, %v3549_v21, %v3837_v22  ;;  %v3839_v60 = vmul.f32 0.01, %v3551_v48  ;;  %v3553_v7 = vadd.f32 %v13651_v41, %v3403_v40  ;;  %v3982_v10 = vsel %vm3694_vm11, %v3550_v9, %v3838_v27 }
 0x5dd   : > { %9837 = vmatprep.mubr.msk.f32.mxu1 %vm2334_vm2, %v3980_v34  ;;  %vm3695_vm12 = vcmp.ge.f32.partialorder %v3551_v48, 0.0  ;;  %v3840_v52 = vmul.f32 0.01, %v3552_v44  ;;  %v3554_v34 = vadd.f32 %v13651_v41, %v3404_v57  ;;  %vm3696_vm13 = vcmp.ge.f32.partialorder %v3552_v44, 0.0 }
 0x5de   : > { %v3235_v1 = vmul.f32 %v12749_v8, %v15781_v59  ;;  %v3236_v12 = vmul.f32 %v12749_v8, %v15782_v17  ;;  %v3383_v21 = vmul.f32 %v13148_v50, %v3233_v56  ;;  %v3384_v40 = vmul.f32 %v13148_v50, %v3234_v35  ;;  %v15783_v59 = vld [vmem:[#allocation118_spill] sm:$0xff]  ;;  %v15784_v56 = vld [vmem:[#allocation119_spill] sm:$0xff] }
 0x5df   : > { %v3983_v22 = vsel %vm3695_vm12, %v3551_v48, %v3839_v60  ;;  %v3555_v9 = vadd.f32 %v13651_v41, %v3405_v5  ;;  %v3984_v57 = vsel %vm3696_vm13, %v3552_v44, %v3840_v52  ;;  %vm3697_vm14 = vcmp.ge.f32.partialorder %v3553_v7, 0.0 }
 0x5e0   : > { %9838 = vmatmul.mubr.msk.f32.gmra.mxu1 %vm2334_vm2, %v3981_v15  ;;  %v3841_v15 = vmul.f32 0.01, %v3553_v7  ;;  %v3842_v27 = vmul.f32 0.01, %v3554_v34  ;;  %vm3698_vm15 = vcmp.ge.f32.partialorder %v3554_v34, 0.0  ;;  %v3237_v17 = vmul.f32 %v12749_v8, %v15783_v59  ;;  %v15785_v59 = vld [vmem:[#allocation120_spill] sm:$0xff] }
 0x5e1   : > { %9840 = vmatprep.mubr.msk.f32.mxu1 %vm2334_vm2, %v3982_v10  ;;  %v3532_v10 = vadd.f32 %v13651_v41, %v3382_v11  ;;  %v3238_v35 = vmul.f32 %v12749_v8, %v15784_v56  ;;  %v3385_v48 = vmul.f32 %v13148_v50, %v3235_v1  ;;  %v3386_v5 = vmul.f32 %v13148_v50, %v3236_v12  ;;  %v15786_v1 = vld [vmem:[#allocation121_spill] sm:$0xff] }
 0x5e2   : > { %v3533_v60 = vadd.f32 %v13651_v41, %v3383_v21  ;;  %v3985_v44 = vsel %vm3697_vm14, %v3553_v7, %v3841_v15  ;;  %v3843_v52 = vmul.f32 0.01, %v3555_v9  ;;  %v3986_v11 = vsel %vm3698_vm15, %v3554_v34, %v3842_v27 }
 0x5e3   : > { %vm3699_vm1 = vcmp.ge.f32.partialorder %v3555_v9, 0.0  ;;  %vm3676_vm3 = vcmp.ge.f32.partialorder %v3532_v10, 0.0  ;;  %v3239_v56 = vmul.f32 %v12749_v8, %v15785_v59  ;;  %v3240_v12 = vmul.f32 %v12749_v8, %v15786_v1  ;;  %v15787_v59 = vld [vmem:[#allocation122_spill] sm:$0xff]  ;;  %v15788_v1 = vld [vmem:[#allocation123_spill] sm:$0xff] }
 0x5e4   : > { %9841 = vmatmul.mubr.msk.f32.gmra.mxu1 %vm2334_vm2, %v3983_v22  ;;  %v3820_v22 = vmul.f32 0.01, %v3532_v10  ;;  %v3387_v21 = vmul.f32 %v13148_v50, %v3237_v17  ;;  %v3388_v7 = vmul.f32 %v13148_v50, %v3238_v35  ;;  %v3987_v15 = vsel %vm3699_vm1, %v3555_v9, %v3843_v52 }
 0x5e5   : > { %9843 = vmatprep.mubr.msk.f32.mxu1 %vm2334_vm2, %v3984_v57  ;;  %v3534_v57 = vadd.f32 %v13651_v41, %v3384_v40  ;;  %v3535_v34 = vadd.f32 %v13651_v41, %v3385_v48  ;;  %vm3677_vm4 = vcmp.ge.f32.partialorder %v3533_v60, 0.0  ;;  %v3241_v17 = vmul.f32 %v12749_v8, %v15787_v59 }
 0x5e6   : > { %v3964_v40 = vsel %vm3676_vm3, %v3532_v10, %v3820_v22  ;;  %v3242_v9 = vmul.f32 %v12749_v8, %v15788_v1  ;;  %v3389_v35 = vmul.f32 %v13148_v50, %v3239_v56  ;;  %v3390_v48 = vmul.f32 %v13148_v50, %v3240_v12  ;;  %v13758_v56 = vld [vmem:[%s10569_s25 + $0x38] sm:$0xff] }
 0x5e7   : > { %v3822_v27 = vmul.f32 0.01, %v3534_v57  ;;  %vm3678_vm5 = vcmp.ge.f32.partialorder %v3534_v57, 0.0  ;;  %v3823_v10 = vmul.f32 0.01, %v3535_v34  ;;  %v3537_v22 = vadd.f32 %v13651_v41, %v3387_v21  ;;  %v15789_v12 = vld [vmem:[#allocation124_spill] sm:$0xff] }
 0x5e8   : > { %9844 = vmatmul.mubr.msk.f32.gmra.mxu1 %vm2334_vm2, %v3985_v44  ;;  %v3821_v44 = vmul.f32 0.01, %v3533_v60  ;;  %vm3679_vm6 = vcmp.ge.f32.partialorder %v3535_v34, 0.0  ;;  %v3538_v59 = vadd.f32 %v13651_v41, %v3388_v7  ;;  %v3391_v1 = vmul.f32 %v13148_v50, %v3241_v17  ;;  %v15791_v17 = vld [vmem:[#allocation137_spill] sm:$0xff] }
 0x5e9   : > { %9846 = vmatprep.mubr.msk.f32.mxu1 %vm2334_vm2, %v3986_v11  ;;  %v3536_v11 = vadd.f32 %v13651_v41, %v3386_v5  ;;  %v3966_v5 = vsel %vm3678_vm5, %v3534_v57, %v3822_v27  ;;  %v3392_v57 = vmul.f32 %v13148_v50, %v3242_v9  ;;  %v3967_v27 = vsel %vm3679_vm6, %v3535_v34, %v3823_v10  ;;  %v15792_v34 = vld [vmem:[#allocation138_spill] sm:$0xff] }
 0x5ea   : > { %v3965_v52 = vsel %vm3677_vm4, %v3533_v60, %v3821_v44  ;;  %v3243_v60 = vmul.f32 %v12749_v8, %v15789_v12  ;;  %v15790_v44 = vld [vmem:[#allocation136_spill] sm:$0xff]  ;;  %v3825_v7 = vmul.f32 0.01, %v3537_v22  ;;  %vm3681_vm8 = vcmp.ge.f32.partialorder %v3537_v22, 0.0 }
 0x5eb   : > { %vm3680_vm7 = vcmp.ge.f32.partialorder %v3536_v11, 0.0  ;;  %v3256_v21 = vmul.f32 %v12749_v8, %v15790_v44  ;;  %v3540_v12 = vadd.f32 %v13651_v41, %v3390_v48  ;;  %vm3682_vm9 = vcmp.ge.f32.partialorder %v3538_v59, 0.0 }
 0x5ec   : > { %9847 = vmatmul.mubr.msk.f32.gmra.mxu1 %vm2334_vm2, %v3987_v15  ;;  %v8793_v15 = vld [vmem:[%s10569_s25 + $0x20] sm:$0xff]  ;;  %v3257_v9 = vmul.f32 %v12749_v8, %v15791_v17  ;;  %v3258_v10 = vmul.f32 %v12749_v8, %v15792_v34  ;;  %v3541_v44 = vadd.f32 %v13651_v41, %v3391_v1  ;;  %v15793_v17 = vld [vmem:[#allocation139_spill] sm:$0xff] }
 0x5ed   : > { %9853 = vmatprep.mubr.msk.f32.mxu1 %vm2334_vm2, %v3964_v40  ;;  %v3824_v40 = vmul.f32 0.01, %v3536_v11  ;;  %vm3684_vm11 = vcmp.ge.f32.partialorder %v3540_v12, 0.0  ;;  %v3259_v34 = vmul.f32 %v12749_v8, %v15793_v17  ;;  %v15795_v17 = vld [vmem:[#allocation141_spill] sm:$0xff] }
 0x5ee   : > { %v3408_v1 = vmul.f32 %v13148_v50, %v3258_v10  ;;  %vm3685_vm12 = vcmp.ge.f32.partialorder %v3541_v44, 0.0 }
 0x5f0   : > { %9854 = vmatmul.mubr.msk.f32.vlgmr.msra.gmra.mxu1 %vm2334_vm2, %v3965_v52  ;;  %v3968_v52 = vsel %vm3680_vm7, %v3536_v11, %v3824_v40  ;;  %v3969_v11 = vsel %vm3681_vm8, %v3537_v22, %v3825_v7  ;;  %v3407_v22 = vmul.f32 %v13148_v50, %v3257_v9  ;;  %v15796_v9 = vld [vmem:[#allocation142_spill] sm:$0xff] }
 0x5f1   : > { %9872 = vmatpush3.msra.mxu1 %v13692_v42  ;;  %9856 = vmatprep.mubr.msk.f32.mxu1 %vm2334_vm2, %v3966_v5  ;;  %v3539_v42 = vadd.f32 %v13651_v41, %v3389_v35  ;;  %v3826_v5 = vmul.f32 0.01, %v3538_v59  ;;  %v3393_v35 = vmul.f32 %v13148_v50, %v3243_v60  ;;  %v15794_v60 = vld [vmem:[#allocation140_spill] sm:$0xff]  ;;  %v3262_v10 = vmul.f32 %v12749_v8, %v15796_v9 }
 0x5f2   : > { %9873 = vmatprep.subr.mxu1 %v8793_v15 }
 0x5f3   : > { %9874 = vmatpush3.msra.mxu1 %v8793_v15  ;;  %v3406_v15 = vmul.f32 %v13148_v50, %v3256_v21  ;;  %v3827_v40 = vmul.f32 0.01, %v3539_v42  ;;  %v3970_v48 = vsel %vm3682_vm9, %v3538_v59, %v3826_v5  ;;  %vm3683_vm10 = vcmp.ge.f32.partialorder %v3539_v42, 0.0 }
 0x5f4   : > { %9857 = vmatmul.mubr.msk.f32.gmra.mxu1 %vm2334_vm2, %v3967_v27  ;;  %9893 = vmatprep.subr.mxu1 %v13758_v56  ;;  %v3828_v27 = vmul.f32 0.01, %v3540_v12  ;;  %v3260_v21 = vmul.f32 %v12749_v8, %v15794_v60  ;;  %v3543_v59 = vadd.f32 %v13651_v41, %v3393_v35  ;;  %v3261_v60 = vmul.f32 %v12749_v8, %v15795_v17  ;;  %v15797_v17 = vld [vmem:[#allocation143_spill] sm:$0xff] }
 0x5f5   : > { %9859 = vmatprep.mubr.msk.f32.mxu1 %vm2334_vm2, %v3968_v52  ;;  %v3542_v52 = vadd.f32 %v13651_v41, %v3392_v57  ;;  %v3971_v7 = vsel %vm3683_vm10, %v3539_v42, %v3827_v40  ;;  %v3409_v42 = vmul.f32 %v13148_v50, %v3259_v34  ;;  %v3557_v40 = vadd.f32 %v13651_v41, %v3407_v22  ;;  %v15798_v34 = vld [vmem:[#allocation144_spill] sm:$0xff] }
 0x5f6   : > { %v3972_v57 = vsel %vm3684_vm11, %v3540_v12, %v3828_v27  ;;  %v3410_v35 = vmul.f32 %v13148_v50, %v3260_v21  ;;  %v3831_v27 = vmul.f32 0.01, %v3543_v59  ;;  %vm3687_vm14 = vcmp.ge.f32.partialorder %v3543_v59, 0.0 }
 0x5f7   : > { %v3830_v5 = vmul.f32 0.01, %v3542_v52  ;;  %vm3686_vm13 = vcmp.ge.f32.partialorder %v3542_v52, 0.0  ;;  %v3263_v9 = vmul.f32 %v12749_v8, %v15797_v17  ;;  %v3264_v21 = vmul.f32 %v12749_v8, %v15798_v34  ;;  %v13820_v17 = vld [vmem:[%s10569_s25 + $0x48] sm:$0xff] }
 0x5f8   : > { %9860 = vmatmul.mubr.msk.f32.gmra.mxu1 %vm2334_vm2, %v3969_v11  ;;  %v3829_v11 = vmul.f32 0.01, %v3541_v44  ;;  %v3411_v22 = vmul.f32 %v13148_v50, %v3261_v60  ;;  %vm3701_vm1 = vcmp.ge.f32.partialorder %v3557_v40, 0.0 }
 0x5f9   : > { %9862 = vmatprep.mubr.msk.f32.mxu1 %vm2334_vm2, %v3970_v48  ;;  %v3556_v48 = vadd.f32 %v13651_v41, %v3406_v15  ;;  %v3974_v15 = vsel %vm3686_vm13, %v3542_v52, %v3830_v5  ;;  %v3845_v52 = vmul.f32 0.01, %v3557_v40  ;;  %v3559_v5 = vadd.f32 %v13651_v41, %v3409_v42  ;;  %v8807_v42 = vld [vmem:[%s10569_s25 + $0x30] sm:$0xff] }
 0x5fa   : > { %v3973_v12 = vsel %vm3685_vm12, %v3541_v44, %v3829_v11  ;;  %v3412_v44 = vmul.f32 %v13148_v50, %v3262_v10  ;;  %v3975_v11 = vsel %vm3687_vm14, %v3543_v59, %v3831_v27  ;;  %v3413_v8 = vmul.f32 %v13148_v50, %v3263_v9 }
 0x5fb   : > { %vm3700_vm15 = vcmp.ge.f32.partialorder %v3556_v48, 0.0  ;;  %v3414_v60 = vmul.f32 %v13148_v50, %v3264_v21  ;;  %v3989_v10 = vsel %vm3701_vm1, %v3557_v40, %v3845_v52  ;;  %v3847_v59 = vmul.f32 0.01, %v3559_v5 }
 0x5fc   : > { %9863 = vmatmul.mubr.msk.f32.gmra.mxu1 %vm2334_vm2, %v3971_v7  ;;  %v3844_v7 = vmul.f32 0.01, %v3556_v48  ;;  %v3561_v27 = vadd.f32 %v13651_v41, %v3411_v22  ;;  %vm3703_vm4 = vcmp.ge.f32.partialorder %v3559_v5, 0.0  ;;  %v3563_v9 = vadd.f32 %v13651_v41, %v3413_v8 }
 0x5fd   : > { %9865 = vmatprep.mubr.msk.f32.mxu1 %vm2334_vm2, %v3972_v57  ;;  %v3558_v57 = vadd.f32 %v13651_v41, %v3408_v1  ;;  %v3991_v50 = vsel %vm3703_vm4, %v3559_v5, %v3847_v59  ;;  %v3564_v21 = vadd.f32 %v13651_v41, %v3414_v60  ;;  %v3566_v5 = vadd.f32 %v13651_v41, %v13208_v16 }
 0x5fe   : > { %v3988_v1 = vsel %vm3700_vm15, %v3556_v48, %v3844_v7  ;;  %v3849_v40 = vmul.f32 0.01, %v3561_v27  ;;  %vm3705_vm6 = vcmp.ge.f32.partialorder %v3561_v27, 0.0  ;;  %v3851_v22 = vmul.f32 0.01, %v3563_v9 }
 0x5ff   : > { %vm3702_vm3 = vcmp.ge.f32.partialorder %v3558_v57, 0.0  ;;  %vm3707_vm8 = vcmp.ge.f32.partialorder %v3563_v9, 0.0  ;;  %v3852_v52 = vmul.f32 0.01, %v3564_v21  ;;  %vm3708_vm9 = vcmp.ge.f32.partialorder %v3564_v21, 0.0 }
 0x600   : > { %9866 = vmatmul.mubr.msk.f32.gmra.mxu1 %vm2334_vm2, %v3973_v12  ;;  %v3846_v12 = vmul.f32 0.01, %v3558_v57  ;;  %v3568_v60 = vadd.f32 %v13651_v41, %v13216_v32  ;;  %vm3710_vm11 = vcmp.ge.f32.partialorder %v3566_v5, 0.0  ;;  %v3569_v16 = vadd.f32 %v13651_v41, %v13220_v29 }
 0x601   : > { %9868 = vmatprep.mubr.msk.f32.mxu1 %vm2334_vm2, %v3974_v15  ;;  %v3560_v15 = vadd.f32 %v13651_v41, %v3410_v35  ;;  %v3562_v35 = vadd.f32 %v13651_v41, %v3412_v44  ;;  %v3565_v44 = vadd.f32 %v13651_v41, %v13204_v24  ;;  %v3996_v8 = vsel %vm3708_vm9, %v3564_v21, %v3852_v52 }
 0x602   : > { %v3990_v48 = vsel %vm3702_vm3, %v3558_v57, %v3846_v12  ;;  %v3854_v24 = vmul.f32 0.01, %v3566_v5  ;;  %vm3712_vm13 = vcmp.ge.f32.partialorder %v3568_v60, 0.0  ;;  %vm3713_vm14 = vcmp.ge.f32.partialorder %v3569_v16, 0.0 }
 0x603   : > { %v3848_v7 = vmul.f32 0.01, %v3560_v15  ;;  %vm3704_vm5 = vcmp.ge.f32.partialorder %v3560_v15, 0.0  ;;  %v3850_v34 = vmul.f32 0.01, %v3562_v35  ;;  %vm3706_vm7 = vcmp.ge.f32.partialorder %v3562_v35, 0.0 }
 0x604   : > { %9869 = vmatmul.mubr.msk.f32.gmra.mxu1 %vm2334_vm2, %v3975_v11  ;;  %v3853_v12 = vmul.f32 0.01, %v3565_v44  ;;  %vm3709_vm10 = vcmp.ge.f32.partialorder %v3565_v44, 0.0  ;;  %v3574_v21 = vadd.f32 %v13651_v41, %v13240_v31  ;;  %v3576_v31 = vadd.f32 %v13651_v41, %v13248_v63 }
 0x605   : > { %9875 = vmatprep.mubr.msk.f32.mxu1 %vm2334_vm2, %v3988_v1  ;;  %v3992_v57 = vsel %vm3704_vm5, %v3560_v15, %v3848_v7  ;;  %v3994_v11 = vsel %vm3706_vm7, %v3562_v35, %v3850_v34  ;;  %v3995_v1 = vsel %vm3707_vm8, %v3563_v9, %v3851_v22  ;;  %v3567_v15 = vadd.f32 %v13651_v41, %v13212_v28 }
 0x606   : > { %v3856_v28 = vmul.f32 0.01, %v3568_v60  ;;  %v3571_v7 = vadd.f32 %v13651_v41, %v13228_v33  ;;  %v3573_v9 = vadd.f32 %v13651_v41, %v13236_v53  ;;  %v3575_v53 = vadd.f32 %v13651_v41, %v13244_v39 }
 0x607   : > { %v3855_v59 = vmul.f32 0.01, %v3567_v15  ;;  %vm3711_vm12 = vcmp.ge.f32.partialorder %v3567_v15, 0.0  ;;  %vm3718_vm5 = vcmp.ge.f32.partialorder %v3574_v21, 0.0  ;;  %vm3720_vm7 = vcmp.ge.f32.partialorder %v3576_v31, 0.0 }
 0x608   : > { %9876 = vmatmul.mubr.msk.f32.vlgmr.msra.gmra.mxu1 %vm2334_vm2, %v3989_v10  ;;  %v3997_v10 = vsel %vm3709_vm10, %v3565_v44, %v3853_v12  ;;  %v4000_v29 = vsel %vm3712_vm13, %v3568_v60, %v3856_v28  ;;  %vm3715_vm1 = vcmp.ge.f32.partialorder %v3571_v7, 0.0  ;;  %v3861_v22 = vmul.f32 0.01, %v3573_v9 }
 0x609   : > { %9894 = vmatpush3.msra.mxu1 %v13758_v56  ;;  %9878 = vmatprep.mubr.msk.f32.mxu1 %vm2334_vm2, %v3990_v48  ;;  %v3993_v56 = vsel %vm3705_vm6, %v3561_v27, %v3849_v40  ;;  %v3998_v27 = vsel %vm3710_vm11, %v3566_v5, %v3854_v24  ;;  %v3999_v32 = vsel %vm3711_vm12, %v3567_v15, %v3855_v59  ;;  %v3857_v48 = vmul.f32 0.01, %v3569_v16 }
 0x60a   : > { %9895 = vmatprep.subr.mxu1 %v8807_v42  ;;  %v3859_v40 = vmul.f32 0.01, %v3571_v7  ;;  %vm3717_vm4 = vcmp.ge.f32.partialorder %v3573_v9, 0.0  ;;  %v3863_v52 = vmul.f32 0.01, %v3575_v53  ;;  %v3577_v5 = vadd.f32 %v13651_v41, %v13252_v62 }
 0x60b   : > { %9896 = vmatpush3.msra.mxu1 %v8807_v42  ;;  %v3570_v42 = vadd.f32 %v13651_v41, %v13224_v54  ;;  %v4001_v54 = vsel %vm3713_vm14, %v3569_v16, %v3857_v48  ;;  %vm3719_vm6 = vcmp.ge.f32.partialorder %v3575_v53, 0.0  ;;  %v3578_v12 = vadd.f32 %v13651_v41, %v13256_v19 }
 0x60c   : > { %9879 = vmatmul.mubr.msk.f32.gmra.mxu1 %vm2334_vm2, %v3991_v50  ;;  %9915 = vmatprep.subr.mxu1 %v13820_v17  ;;  %v3572_v50 = vadd.f32 %v13651_v41, %v13232_v4  ;;  %v13860_v4 = vld [vmem:[%s10569_s25 + $0x58] sm:$0xff]  ;;  %v4007_v63 = vsel %vm3719_vm6, %v3575_v53, %v3863_v52  ;;  %v3865_v15 = vmul.f32 0.01, %v3577_v5  ;;  %vm3721_vm8 = vcmp.ge.f32.partialorder %v3577_v5, 0.0 }
 0x60d   : > { %9881 = vmatprep.mubr.msk.f32.mxu1 %vm2334_vm2, %v3992_v57  ;;  %v3858_v35 = vmul.f32 0.01, %v3570_v42  ;;  %vm3714_vm15 = vcmp.ge.f32.partialorder %v3570_v42, 0.0  ;;  %v8821_v57 = vld [vmem:[%s10569_s25 + $0x40] sm:$0xff]  ;;  %v3866_v62 = vmul.f32 0.01, %v3578_v12  ;;  %v3580_v60 = vadd.f32 %v13651_v41, %v13264_v37 }
 0x60e   : > { %v3860_v34 = vmul.f32 0.01, %v3572_v50  ;;  %vm3716_vm3 = vcmp.ge.f32.partialorder %v3572_v50, 0.0  ;;  %vm3722_vm9 = vcmp.ge.f32.partialorder %v3578_v12, 0.0  ;;  %v3581_v19 = vadd.f32 %v13651_v41, %v13268_v36 }
 0x60f   : > { %v4002_v33 = vsel %vm3714_vm15, %v3570_v42, %v3858_v35  ;;  %v4009_v16 = vsel %vm3721_vm8, %v3577_v5, %v3865_v15  ;;  %v4010_v59 = vsel %vm3722_vm9, %v3578_v12, %v3866_v62  ;;  %vm3724_vm11 = vcmp.ge.f32.partialorder %v3580_v60, 0.0  ;;  %v8835_v35 = vld [vmem:[%s10569_s25 + $0x50] sm:$0xff]  ;;  %v8849_v62 = vld [vmem:[%s10569_s25 + $0x60] sm:$0xff] }
 0x610   : > { %9882 = vmatmul.mubr.msk.f32.gmra.mxu1 %vm2334_vm2, %v3993_v56  ;;  %v4003_v56 = vsel %vm3715_vm1, %v3571_v7, %v3859_v40  ;;  %v4004_v44 = vsel %vm3716_vm3, %v3572_v50, %v3860_v34  ;;  %v3869_v28 = vmul.f32 0.01, %v3581_v19  ;;  %v3583_v42 = vadd.f32 %v13651_v41, %v13276_v61 }
 0x611   : > { %9884 = vmatprep.mubr.msk.f32.mxu1 %vm2334_vm2, %v3994_v11  ;;  %v3862_v11 = vmul.f32 0.01, %v3574_v21  ;;  %vm3725_vm12 = vcmp.ge.f32.partialorder %v3581_v19, 0.0  ;;  %v3584_v48 = vadd.f32 %v13651_v41, %v13280_v23  ;;  %v13902_v23 = vld [vmem:[%s10569_s25 + $0x68] sm:$0xff]  ;;  %v3595_v12 = vadd.f32 %v13651_v41, %v13324_v55 }
 0x612   : > { %v3871_v7 = vmul.f32 0.01, %v3583_v42  ;;  %vm3727_vm14 = vcmp.ge.f32.partialorder %v3583_v42, 0.0  ;;  %v3596_v15 = vadd.f32 %v13651_v41, %v13328_v2  ;;  %v13944_v2 = vld [vmem:[%s10569_s25 + $0x78] sm:$0xff] }
 0x613   : > { %v4006_v39 = vsel %vm3718_vm5, %v3574_v21, %v3862_v11  ;;  %v3872_v50 = vmul.f32 0.01, %v3584_v48  ;;  %vm3728_vm15 = vcmp.ge.f32.partialorder %v3584_v48, 0.0 }
 0x614   : > { %9885 = vmatmul.mubr.msk.f32.gmra.mxu1 %vm2334_vm2, %v3995_v1  ;;  %v3864_v1 = vmul.f32 0.01, %v3576_v31  ;;  %v4015_v40 = vsel %vm3727_vm14, %v3583_v42, %v3871_v7 }
 0x615   : > { %9887 = vmatprep.mubr.msk.f32.mxu1 %vm2334_vm2, %v3996_v8  ;;  %v3579_v8 = vadd.f32 %v13651_v41, %v13260_v18  ;;  %v3868_v18 = vmul.f32 0.01, %v3580_v60 }
 0x616   : > { %v4008_v24 = vsel %vm3720_vm7, %v3576_v31, %v3864_v1  ;;  %v3592_v31 = vadd.f32 %v13651_v41, %v13312_v43 }
 0x617   : > { %vm3723_vm10 = vcmp.ge.f32.partialorder %v3579_v8, 0.0  ;;  %v4012_v36 = vsel %vm3724_vm11, %v3580_v60, %v3868_v18  ;;  %v3884_v60 = vmul.f32 0.01, %v3596_v15 }
 0x618   : > { %9888 = vmatmul.mubr.msk.f32.gmra.mxu1 %vm2334_vm2, %v3997_v10  ;;  %v3867_v10 = vmul.f32 0.01, %v3579_v8  ;;  %vm3736_vm9 = vcmp.ge.f32.partialorder %v3592_v31, 0.0 }
 0x619   : > { %9890 = vmatprep.mubr.msk.f32.mxu1 %vm2334_vm2, %v3998_v27  ;;  %v3582_v27 = vadd.f32 %v13651_v41, %v13272_v0  ;;  %v4013_v0 = vsel %vm3725_vm12, %v3581_v19, %v3869_v28  ;;  %vm3739_vm12 = vcmp.ge.f32.partialorder %v3595_v12, 0.0  ;;  %v3598_v19 = vadd.f32 %v13651_v41, %v13336_v58 }
 0x61a   : > { %v4011_v37 = vsel %vm3723_vm10, %v3579_v8, %v3867_v10  ;;  %v3883_v8 = vmul.f32 0.01, %v3595_v12  ;;  %v3600_v58 = vadd.f32 %v13651_v41, %v13344_v45  ;;  %v3601_v28 = vadd.f32 %v13651_v41, %v13348_v25 }
 0x61b   : > { %vm3726_vm13 = vcmp.ge.f32.partialorder %v3582_v27, 0.0  ;;  %v3886_v18 = vmul.f32 0.01, %v3598_v19 }
 0x61c   : > { %9891 = vmatmul.mubr.msk.f32.gmra.mxu1 %vm2334_vm2, %v3999_v32  ;;  %v3870_v32 = vmul.f32 0.01, %v3582_v27  ;;  %v3888_v42 = vmul.f32 0.01, %v3600_v58 }
 0x61d   : > { %9897 = vmatprep.mubr.msk.f32.mxu1 %vm2334_vm2, %v4000_v29  ;;  %v3585_v29 = vadd.f32 %v13651_v41, %v13284_v20  ;;  %v3587_v20 = vadd.f32 %v13651_v41, %v13292_v38 }
 0x61e   : > { %v4014_v61 = vsel %vm3726_vm13, %v3582_v27, %v3870_v32  ;;  %vm3740_vm13 = vcmp.ge.f32.partialorder %v3596_v15, 0.0  ;;  %v3889_v32 = vmul.f32 0.01, %v3601_v28 }
 0x61f   : > { %vm3729_vm1 = vcmp.ge.f32.partialorder %v3585_v29, 0.0  ;;  %v3875_v21 = vmul.f32 0.01, %v3587_v20 }
 0x620   : > { %9898 = vmatmul.mubr.msk.f32.vlgmr.msra.gmra.mxu1 %vm2334_vm2, %v4001_v54  ;;  %v3586_v54 = vadd.f32 %v13651_v41, %v13288_v46  ;;  %v3588_v46 = vadd.f32 %v13651_v41, %v13296_v6 }
 0x621   : > { %9916 = vmatpush3.msra.mxu1 %v13820_v17  ;;  %9900 = vmatprep.mubr.msk.f32.mxu1 %vm2334_vm2, %v4002_v33  ;;  %v4005_v17 = vsel %vm3717_vm4, %v3573_v9, %v3861_v22  ;;  %v3873_v9 = vmul.f32 0.01, %v3585_v29  ;;  %vm3731_vm4 = vcmp.ge.f32.partialorder %v3587_v20, 0.0  ;;  %v3590_v22 = vadd.f32 %v13651_v41, %v13304_v14 }
 0x622   : > { %9917 = vmatprep.subr.mxu1 %v8821_v57  ;;  %v3874_v33 = vmul.f32 0.01, %v3586_v54  ;;  %vm3730_vm3 = vcmp.ge.f32.partialorder %v3586_v54, 0.0  ;;  %vm3732_vm5 = vcmp.ge.f32.partialorder %v3588_v46, 0.0  ;;  %v4019_v6 = vsel %vm3731_vm4, %v3587_v20, %v3875_v21 }
 0x623   : > { %9918 = vmatpush3.msra.mxu1 %v8821_v57  ;;  %v4016_v57 = vsel %vm3728_vm15, %v3584_v48, %v3872_v50  ;;  %v4017_v34 = vsel %vm3729_vm1, %v3585_v29, %v3873_v9  ;;  %vm3734_vm7 = vcmp.ge.f32.partialorder %v3590_v22, 0.0  ;;  %v3593_v14 = vadd.f32 %v13651_v41, %v13316_v49  ;;  %v15799_v48 = vld [vmem:[#allocation44_spill] sm:$0xff]  ;;  %v15800_v29 = vld [vmem:[#allocation43_spill] sm:$0xff]  ;;  %v15802_v9 = vld [vmem:[#allocation45_spill] sm:$0xff] }
 0x624   : > { %9901 = vmatmul.mubr.msk.f32.gmra.mxu1 %vm2334_vm2, %v4003_v56  ;;  %9937 = vmatprep.subr.mxu1 %v13860_v4  ;;  %v4018_v38 = vsel %vm3730_vm3, %v3586_v54, %v3874_v33  ;;  %v3876_v56 = vmul.f32 0.01, %v3588_v46  ;;  %vm3742_vm15 = vcmp.ge.f32.partialorder %v3598_v19, 0.0  ;;  %vm3744_vm3 = vcmp.ge.f32.partialorder %v3600_v58, 0.0 }
 0x625   : > { %9903 = vmatprep.mubr.msk.f32.mxu1 %vm2334_vm2, %v4004_v44  ;;  %v3591_v44 = vadd.f32 %v13651_v41, %v13308_v47  ;;  %v3880_v47 = vmul.f32 0.01, %v3592_v31  ;;  %v3881_v1 = vmul.f32 0.01, %v3593_v14  ;;  %vm3737_vm10 = vcmp.ge.f32.partialorder %v3593_v14, 0.0 }
 0x626   : > { %v4020_v11 = vsel %vm3732_vm5, %v3588_v46, %v3876_v56  ;;  %v4032_v7 = vsel %vm3744_vm3, %v3600_v58, %v3888_v42  ;;  %vm3745_vm4 = vcmp.ge.f32.partialorder %v3601_v28, 0.0  ;;  %v3606_v20 = vadd.f32 %v13651_v41, %v15802_v9  ;;  %v15803_v46 = vld [vmem:[#allocation48_spill] sm:$0xff] }
 0x627   : > { %v3879_v52 = vmul.f32 0.01, %v3591_v44  ;;  %vm3735_vm8 = vcmp.ge.f32.partialorder %v3591_v44, 0.0  ;;  %v4024_v49 = vsel %vm3736_vm9, %v3592_v31, %v3880_v47  ;;  %v4033_v50 = vsel %vm3745_vm4, %v3601_v28, %v3889_v32  ;;  %v14005_v58 = vld [vmem:[%s10564_s21] ss:$0 sm:$0xff]  ;;  %v15813_v28 = vld [vmem:[#allocation58_spill] sm:$0xff] }
 0x628   : > { %9904 = vmatmul.mubr.msk.f32.gmra.mxu1 %vm2334_vm2, %v4005_v17  ;;  %vm3750_vm9 = vcmp.ge.f32.partialorder %v3606_v20, 0.0  ;;  %v15814_v32 = vld [vmem:[#allocation57_spill] sm:$0xff] }
 0x629   : > { %9906 = vmatprep.mubr.msk.f32.mxu1 %vm2334_vm2, %v4006_v39  ;;  %v3594_v39 = vadd.f32 %v13651_v41, %v13320_v13  ;;  %v4023_v43 = vsel %vm3735_vm8, %v3591_v44, %v3879_v52  ;;  %v4025_v13 = vsel %vm3737_vm10, %v3593_v14, %v3881_v1  ;;  %v15806_v14 = vld [vmem:[#allocation49_spill] sm:$0xff] }
 0x62a   : > { %v13986_v52 = vld [vmem:[%s10569_s25 + $0x88] sm:$0xff] }
 0x62b   : > { %vm3738_vm11 = vcmp.ge.f32.partialorder %v3594_v39, 0.0 }
 0x62c   : > { %9907 = vmatmul.mubr.msk.f32.gmra.mxu1 %vm2334_vm2, %v4007_v63  ;;  %v3882_v63 = vmul.f32 0.01, %v3594_v39 }
 0x62d   : > { %9909 = vmatprep.mubr.msk.f32.mxu1 %vm2334_vm2, %v4008_v24  ;;  %v3597_v24 = vadd.f32 %v13651_v41, %v13332_v30  ;;  %v3599_v30 = vadd.f32 %v13651_v41, %v13340_v51  ;;  %v4030_v51 = vsel %vm3742_vm15, %v3598_v19, %v3886_v18 }
 0x62e   : > { %v4026_v55 = vsel %vm3738_vm11, %v3594_v39, %v3882_v63  ;;  %v15807_v39 = vld [vmem:[#allocation52_spill] sm:$0xff] }
 0x62f   : > { %v3885_v10 = vmul.f32 0.01, %v3597_v24  ;;  %vm3741_vm14 = vcmp.ge.f32.partialorder %v3597_v24, 0.0  ;;  %vm3743_vm1 = vcmp.ge.f32.partialorder %v3599_v30, 0.0 }
 0x630   : > { %9910 = vmatmul.mubr.msk.f32.gmra.mxu1 %vm2334_vm2, %v4009_v16  ;;  %v4027_v16 = vsel %vm3739_vm12, %v3595_v12, %v3883_v8  ;;  %v15809_v8 = vld [vmem:[#allocation54_spill] sm:$0xff] }
 0x631   : > { %9912 = vmatprep.mubr.msk.f32.mxu1 %vm2334_vm2, %v4010_v59  ;;  %v4028_v59 = vsel %vm3740_vm13, %v3596_v15, %v3884_v60  ;;  %v4029_v27 = vsel %vm3741_vm14, %v3597_v24, %v3885_v10  ;;  %v3613_v24 = vadd.f32 %v13651_v41, %v15809_v8  ;;  %v15810_v60 = vld [vmem:[#allocation53_spill] sm:$0xff]  ;;  %v15811_v10 = vld [vmem:[#allocation56_spill] sm:$0xff] }
 0x632   : > { %v3614_v19 = vadd.f32 %v13651_v41, %v15810_v60 }
 0x634   : > { %9913 = vmatmul.mubr.msk.f32.gmra.mxu1 %vm2334_vm2, %v4011_v37  ;;  %v3887_v37 = vmul.f32 0.01, %v3599_v30  ;;  %v3902_v18 = vmul.f32 0.01, %v3614_v19  ;;  %vm3758_vm3 = vcmp.ge.f32.partialorder %v3614_v19, 0.0 }
 0x635   : > { %9919 = vmatprep.mubr.msk.f32.mxu1 %vm2334_vm2, %v4012_v36  ;;  %v3602_v36 = vadd.f32 %v13651_v41, %v13352_v26  ;;  %v15801_v26 = vld [vmem:[#allocation46_spill] sm:$0xff] }
 0x636   : > { %v4031_v45 = vsel %vm3743_vm1, %v3599_v30, %v3887_v37  ;;  %v3615_v30 = vadd.f32 %v13651_v41, %v15811_v10  ;;  %vm3757_vm1 = vcmp.ge.f32.partialorder %v3613_v24, 0.0 }
 0x637   : > { %v3890_v25 = vmul.f32 0.01, %v3602_v36  ;;  %vm3746_vm5 = vcmp.ge.f32.partialorder %v3602_v36, 0.0 }
 0x638   : > { %9920 = vmatmul.mubr.msk.f32.vlgmr.msra.gmra.mxu1 %vm2334_vm2, %v4013_v0  ;;  %v3603_v0 = vadd.f32 %v13651_v41, %v15799_v48  ;;  %vm3759_vm4 = vcmp.ge.f32.partialorder %v3615_v30, 0.0  ;;  %v3618_v48 = vadd.f32 %v14005_v58, %v15814_v32 }
 0x639   : > { %9938 = vmatpush3.msra.mxu1 %v13860_v4  ;;  %9922 = vmatprep.mubr.msk.f32.mxu1 %vm2334_vm2, %v4014_v61  ;;  %v3589_v4 = vadd.f32 %v13651_v41, %v13300_v3  ;;  %v3878_v3 = vmul.f32 0.01, %v3590_v22  ;;  %v3605_v61 = vadd.f32 %v13651_v41, %v15801_v26 }
 0x63a   : > { %9939 = vmatprep.subr.mxu1 %v8835_v35  ;;  %v3891_v54 = vmul.f32 0.01, %v3603_v0  ;;  %v3906_v26 = vmul.f32 0.01, %v3618_v48 }
 0x63b   : > { %9940 = vmatpush3.msra.mxu1 %v8835_v35  ;;  %v3877_v53 = vmul.f32 0.01, %v3589_v4  ;;  %vm3733_vm6 = vcmp.ge.f32.partialorder %v3589_v4, 0.0  ;;  %v4022_v5 = vsel %vm3734_vm7, %v3590_v22, %v3878_v3  ;;  %v3604_v35 = vadd.f32 %v13651_v41, %v15800_v29 }
 0x63c   : > { %9923 = vmatmul.mubr.msk.f32.gmra.mxu1 %vm2334_vm2, %v4015_v40  ;;  %9959 = vmatprep.subr.mxu1 %v13902_v23  ;;  %v3893_v33 = vmul.f32 0.01, %v3605_v61  ;;  %vm3749_vm8 = vcmp.ge.f32.partialorder %v3605_v61, 0.0 }
 0x63d   : > { %9925 = vmatprep.mubr.msk.f32.mxu1 %vm2334_vm2, %v4016_v57  ;;  %v4021_v17 = vsel %vm3733_vm6, %v3589_v4, %v3877_v53  ;;  %vm3747_vm6 = vcmp.ge.f32.partialorder %v3603_v0, 0.0  ;;  %v3892_v40 = vmul.f32 0.01, %v3604_v35  ;;  %vm3748_vm7 = vcmp.ge.f32.partialorder %v3604_v35, 0.0  ;;  %v15805_v53 = vld [vmem:[#allocation50_spill] sm:$0xff] }
 0x63e   : > { %v4035_v57 = vsel %vm3747_vm6, %v3603_v0, %v3891_v54  ;;  %v3894_v4 = vmul.f32 0.01, %v3606_v20  ;;  %v4037_v22 = vsel %vm3749_vm8, %v3605_v61, %v3893_v33  ;;  %v3609_v44 = vadd.f32 %v13651_v41, %v15805_v53  ;;  %v15816_v61 = vld [vmem:[#allocation59_spill] sm:$0xff] }
 0x63f   : > { %v4036_v21 = vsel %vm3748_vm7, %v3604_v35, %v3892_v40  ;;  %vm3762_vm7 = vcmp.ge.f32.partialorder %v3618_v48, 0.0  ;;  %v15817_v40 = vld [vmem:[#allocation62_spill] sm:$0xff] }
 0x640   : > { %9926 = vmatmul.mubr.msk.f32.gmra.mxu1 %vm2334_vm2, %v4017_v34  ;;  %v3607_v34 = vadd.f32 %v13651_v41, %v15803_v46  ;;  %v4038_v3 = vsel %vm3750_vm9, %v3606_v20, %v3894_v4  ;;  %v3897_v47 = vmul.f32 0.01, %v3609_v44  ;;  %vm3753_vm12 = vcmp.ge.f32.partialorder %v3609_v44, 0.0  ;;  %v8877_v20 = vld [vmem:[%s10569_s25 + $0x80] sm:$0xff] }
 0x641   : > { %9928 = vmatprep.mubr.msk.f32.mxu1 %vm2334_vm2, %v4018_v38  ;;  %v15804_v38 = vld [vmem:[#allocation47_spill] sm:$0xff]  ;;  %v3621_v9 = vadd.f32 %v14005_v58, %v15817_v40  ;;  %v15818_v46 = vld [vmem:[#allocation61_spill] sm:$0xff] }
 0x642   : > { %v3608_v56 = vadd.f32 %v13651_v41, %v15804_v38  ;;  %vm3751_vm10 = vcmp.ge.f32.partialorder %v3607_v34, 0.0  ;;  %v4041_v15 = vsel %vm3753_vm12, %v3609_v44, %v3897_v47  ;;  %v15820_v44 = vld [vmem:[#allocation63_spill] sm:$0xff]  ;;  %v15822_v47 = vld [vmem:[#allocation65_spill] sm:$0xff] }
 0x643   : > { %v3909_v38 = vmul.f32 0.01, %v3621_v9 }
 0x644   : > { %9929 = vmatmul.mubr.msk.f32.gmra.mxu1 %vm2334_vm2, %v4019_v6  ;;  %v3895_v6 = vmul.f32 0.01, %v3607_v34  ;;  %v3896_v31 = vmul.f32 0.01, %v3608_v56  ;;  %vm3752_vm11 = vcmp.ge.f32.partialorder %v3608_v56, 0.0 }
 0x645   : > { %9931 = vmatprep.mubr.msk.f32.mxu1 %vm2334_vm2, %v4020_v11  ;;  %v8863_v11 = vld [vmem:[%s10569_s25 + $0x70] sm:$0xff] }
 0x646   : > { %v4040_v1 = vsel %vm3752_vm11, %v3608_v56, %v3896_v31  ;;  %v15819_v56 = vld [vmem:[#allocation64_spill] sm:$0xff] }
 0x648   : > { %9932 = vmatmul.mubr.msk.f32.gmra.mxu1 %vm2334_vm2, %v4021_v17  ;;  %v3610_v17 = vadd.f32 %v13651_v41, %v15806_v14  ;;  %v15821_v14 = vld [vmem:[#allocation66_spill] sm:$0xff] }
 0x649   : > { %9934 = vmatprep.mubr.msk.f32.mxu1 %vm2334_vm2, %v4022_v5  ;;  %v4039_v5 = vsel %vm3751_vm10, %v3607_v34, %v3895_v6  ;;  %v3622_v34 = vadd.f32 %v14005_v58, %v15818_v46  ;;  %vm3765_vm10 = vcmp.ge.f32.partialorder %v3621_v9, 0.0 }
 0x64a   : > { %v3898_v12 = vmul.f32 0.01, %v3610_v17  ;;  %vm3754_vm13 = vcmp.ge.f32.partialorder %v3610_v17, 0.0 }
 0x64b   : > { %v3910_v53 = vmul.f32 0.01, %v3622_v34  ;;  %vm3766_vm11 = vcmp.ge.f32.partialorder %v3622_v34, 0.0 }
 0x64c   : > { %9935 = vmatmul.mubr.msk.f32.gmra.mxu1 %vm2334_vm2, %v4023_v43  ;;  %v3611_v43 = vadd.f32 %v13651_v41, %v15807_v39  ;;  %v3626_v39 = vadd.f32 %v14005_v58, %v15822_v47 }
 0x64d   : > { %9941 = vmatprep.mubr.msk.f32.mxu1 %vm2334_vm2, %v4024_v49  ;;  %v15808_v49 = vld [vmem:[#allocation51_spill] sm:$0xff] }
 0x64e   : > { %v3612_v63 = vadd.f32 %v13651_v41, %v15808_v49  ;;  %vm3755_vm14 = vcmp.ge.f32.partialorder %v3611_v43, 0.0  ;;  %v4046_v41 = vsel %vm3758_vm3, %v3614_v19, %v3902_v18  ;;  %v15827_v18 = vld [vmem:[#allocation72_spill] sm:$0xff] }
 0x650   : > { %9942 = vmatmul.mubr.msk.f32.vlgmr.msra.gmra.mxu1 %vm2334_vm2, %v4025_v13  ;;  %v3899_v13 = vmul.f32 0.01, %v3611_v43  ;;  %vm3756_vm15 = vcmp.ge.f32.partialorder %v3612_v63, 0.0 }
 0x651   : > { %9960 = vmatpush3.msra.mxu1 %v13902_v23  ;;  %9944 = vmatprep.mubr.msk.f32.mxu1 %vm2334_vm2, %v4026_v55  ;;  %v4034_v23 = vsel %vm3746_vm5, %v3602_v36, %v3890_v25  ;;  %v3900_v55 = vmul.f32 0.01, %v3612_v63  ;;  %v3903_v36 = vmul.f32 0.01, %v3615_v30  ;;  %v15815_v25 = vld [vmem:[#allocation60_spill] sm:$0xff] }
 0x652   : > { %9961 = vmatprep.subr.mxu1 %v8849_v62  ;;  %v3619_v29 = vadd.f32 %v14005_v58, %v15815_v25 }
 0x653   : > { %9962 = vmatpush3.msra.mxu1 %v8849_v62  ;;  %v4042_v62 = vsel %vm3754_vm13, %v3610_v17, %v3898_v12  ;;  %v4047_v0 = vsel %vm3759_vm4, %v3615_v30, %v3903_v36  ;;  %v3625_v17 = vadd.f32 %v14005_v58, %v15821_v14  ;;  %v15823_v12 = vld [vmem:[#allocation68_spill] sm:$0xff] }
 0x654   : > { %9945 = vmatmul.mubr.msk.f32.gmra.mxu1 %vm2334_vm2, %v4027_v16  ;;  %9981 = vmatprep.subr.mxu1 %v13944_v2  ;;  %v3901_v16 = vmul.f32 0.01, %v3613_v24  ;;  %vm3763_vm8 = vcmp.ge.f32.partialorder %v3619_v29, 0.0  ;;  %v3627_v49 = vadd.f32 %v14005_v58, %v15823_v12 }
 0x655   : > { %9947 = vmatprep.mubr.msk.f32.mxu1 %vm2334_vm2, %v4028_v59  ;;  %v4044_v59 = vsel %vm3756_vm15, %v3612_v63, %v3900_v55  ;;  %vm3770_vm15 = vcmp.ge.f32.partialorder %v3626_v39, 0.0 }
 0x656   : > { %v4045_v42 = vsel %vm3757_vm1, %v3613_v24, %v3901_v16  ;;  %v15825_v24 = vld [vmem:[#allocation70_spill] sm:$0xff]  ;;  %v3915_v60 = vmul.f32 0.01, %v3627_v49  ;;  %vm3771_vm1 = vcmp.ge.f32.partialorder %v3627_v49, 0.0  ;;  %v15826_v16 = vld [vmem:[#allocation69_spill] sm:$0xff] }
 0x657   : > { %v3630_v10 = vadd.f32 %v14005_v58, %v15826_v16 }
 0x658   : > { %9948 = vmatmul.mubr.msk.f32.gmra.mxu1 %vm2334_vm2, %v4029_v27  ;;  %v15812_v27 = vld [vmem:[#allocation55_spill] sm:$0xff]  ;;  %v4059_v30 = vsel %vm3771_vm1, %v3627_v49, %v3915_v60  ;;  %v15837_v49 = vld [vmem:[#allocation82_spill] sm:$0xff] }
 0x659   : > { %9950 = vmatprep.mubr.msk.f32.mxu1 %vm2334_vm2, %v4030_v51  ;;  %v3616_v37 = vadd.f32 %v14005_v58, %v15812_v27  ;;  %v3617_v51 = vadd.f32 %v14005_v58, %v15813_v28  ;;  %v3631_v27 = vadd.f32 %v14005_v58, %v15827_v18  ;;  %v3918_v28 = vmul.f32 0.01, %v3630_v10 }
 0x65b   : > { %vm3760_vm5 = vcmp.ge.f32.partialorder %v3616_v37, 0.0  ;;  %vm3761_vm6 = vcmp.ge.f32.partialorder %v3617_v51, 0.0 }
 0x65c   : > { %9951 = vmatmul.mubr.msk.f32.gmra.mxu1 %vm2334_vm2, %v4031_v45  ;;  %v3904_v45 = vmul.f32 0.01, %v3616_v37 }
 0x65d   : > { %9953 = vmatprep.mubr.msk.f32.mxu1 %vm2334_vm2, %v4032_v7  ;;  %v3905_v7 = vmul.f32 0.01, %v3617_v51 }
 0x65e   : > { %v4048_v35 = vsel %vm3760_vm5, %v3616_v37, %v3904_v45  ;;  %vm3774_vm5 = vcmp.ge.f32.partialorder %v3630_v10, 0.0  ;;  %v15829_v45 = vld [vmem:[#allocation74_spill] sm:$0xff] }
 0x65f   : > { %v4049_v54 = vsel %vm3761_vm6, %v3617_v51, %v3905_v7  ;;  %v15828_v51 = vld [vmem:[#allocation71_spill] sm:$0xff]  ;;  %v3633_v32 = vadd.f32 %v14005_v58, %v15829_v45  ;;  %v4062_v7 = vsel %vm3774_vm5, %v3630_v10, %v3918_v28  ;;  %vm3775_vm6 = vcmp.ge.f32.partialorder %v3631_v27, 0.0 }
 0x660   : > { %9954 = vmatmul.mubr.msk.f32.gmra.mxu1 %vm2334_vm2, %v4033_v50  ;;  %v3620_v50 = vadd.f32 %v14005_v58, %v15816_v61 }
 0x661   : > { %9956 = vmatprep.mubr.msk.f32.mxu1 %vm2334_vm2, %v4034_v23  ;;  %v3907_v23 = vmul.f32 0.01, %v3619_v29 }
 0x662   : > { %v3908_v33 = vmul.f32 0.01, %v3620_v50  ;;  %vm3764_vm9 = vcmp.ge.f32.partialorder %v3620_v50, 0.0 }
 0x663   : > { %v4051_v4 = vsel %vm3763_vm8, %v3619_v29, %v3907_v23  ;;  %v15830_v29 = vld [vmem:[#allocation73_spill] sm:$0xff]  ;;  %v15831_v23 = vld [vmem:[#allocation76_spill] sm:$0xff]  ;;  %vm3777_vm8 = vcmp.ge.f32.partialorder %v3633_v32, 0.0 }
 0x664   : > { %9957 = vmatmul.mubr.msk.f32.gmra.mxu1 %vm2334_vm2, %v4035_v57  ;;  %v4050_v57 = vsel %vm3762_vm7, %v3618_v48, %v3906_v26  ;;  %v4052_v6 = vsel %vm3764_vm9, %v3620_v50, %v3908_v33  ;;  %v8891_v48 = vld [vmem:[%s10569_s25 + $0x90] sm:$0xff]  ;;  %v14075_v26 = vld [vmem:[%s10569_s25 + $0xa8] sm:$0xff]  ;;  %v3635_v40 = vadd.f32 %v14005_v58, %v15831_v23 }
 0x665   : > { %9963 = vmatprep.mubr.msk.f32.mxu1 %vm2334_vm2, %v4036_v21  ;;  %v14031_v21 = vld [vmem:[%s10569_s25 + $0x98] sm:$0xff] }
 0x666   : > { %v15832_v33 = vld [vmem:[#allocation75_spill] sm:$0xff] }
 0x667   : > { %v3636_v46 = vadd.f32 %v14005_v58, %v15832_v33 }
 0x668   : > { %9964 = vmatmul.mubr.msk.f32.vlgmr.msra.gmra.mxu1 %vm2334_vm2, %v4037_v22  ;;  %v3623_v22 = vadd.f32 %v14005_v58, %v15819_v56 }
 0x669   : > { %9982 = vmatpush3.msra.mxu1 %v13944_v2  ;;  %9966 = vmatprep.mubr.msk.f32.mxu1 %vm2334_vm2, %v4038_v3  ;;  %v4043_v2 = vsel %vm3755_vm14, %v3611_v43, %v3899_v13  ;;  %v4053_v3 = vsel %vm3765_vm10, %v3621_v9, %v3909_v38  ;;  %vm3769_vm14 = vcmp.ge.f32.partialorder %v3625_v17, 0.0  ;;  %v15824_v13 = vld [vmem:[#allocation67_spill] sm:$0xff]  ;;  %v15833_v38 = vld [vmem:[#allocation78_spill] sm:$0xff]  ;;  %vm3779_vm10 = vcmp.ge.f32.partialorder %v3635_v40, 0.0 }
 0x66a   : > { %9983 = vmatprep.subr.mxu1 %v8863_v11  ;;  %v3911_v31 = vmul.f32 0.01, %v3623_v22  ;;  %vm3767_vm12 = vcmp.ge.f32.partialorder %v3623_v22, 0.0  ;;  %v3628_v8 = vadd.f32 %v14005_v58, %v15824_v13  ;;  %v3637_v56 = vadd.f32 %v14005_v58, %v15833_v38 }
 0x66b   : > { %9984 = vmatpush3.msra.mxu1 %v8863_v11  ;;  %v3624_v11 = vadd.f32 %v14005_v58, %v15820_v44  ;;  %v15834_v44 = vld [vmem:[#allocation77_spill] sm:$0xff] }
 0x66c   : > { %9967 = vmatmul.mubr.msk.f32.gmra.mxu1 %vm2334_vm2, %v4039_v5  ;;  %10003 = vmatprep.subr.mxu1 %v13986_v52  ;;  %v4055_v43 = vsel %vm3767_vm12, %v3623_v22, %v3911_v31  ;;  %vm3772_vm3 = vcmp.ge.f32.partialorder %v3628_v8, 0.0  ;;  %v3925_v14 = vmul.f32 0.01, %v3637_v56  ;;  %vm3781_vm12 = vcmp.ge.f32.partialorder %v3637_v56, 0.0 }
 0x66d   : > { %9969 = vmatprep.mubr.msk.f32.mxu1 %vm2334_vm2, %v4040_v1  ;;  %v3912_v5 = vmul.f32 0.01, %v3624_v11  ;;  %vm3768_vm13 = vcmp.ge.f32.partialorder %v3624_v11, 0.0  ;;  %v3913_v1 = vmul.f32 0.01, %v3625_v17 }
 0x66f   : > { %v4056_v63 = vsel %vm3768_vm13, %v3624_v11, %v3912_v5  ;;  %v4057_v55 = vsel %vm3769_vm14, %v3625_v17, %v3913_v1  ;;  %v3638_v11 = vadd.f32 %v14005_v58, %v15834_v44  ;;  %v15835_v17 = vld [vmem:[#allocation80_spill] sm:$0xff] }
 0x670   : > { %9970 = vmatmul.mubr.msk.f32.gmra.mxu1 %vm2334_vm2, %v4041_v15  ;;  %v3914_v15 = vmul.f32 0.01, %v3626_v39 }
 0x671   : > { %9972 = vmatprep.mubr.msk.f32.mxu1 %vm2334_vm2, %v4042_v62  ;;  %v3629_v62 = vadd.f32 %v14005_v58, %v15825_v24  ;;  %vm3782_vm13 = vcmp.ge.f32.partialorder %v3638_v11, 0.0 }
 0x672   : > { %v4058_v19 = vsel %vm3770_vm15, %v3626_v39, %v3914_v15  ;;  %v3926_v39 = vmul.f32 0.01, %v3638_v11  ;;  %v4069_v15 = vsel %vm3781_vm12, %v3637_v56, %v3925_v14 }
 0x673   : > { %vm3773_vm4 = vcmp.ge.f32.partialorder %v3629_v62, 0.0 }
 0x674   : > { %9973 = vmatmul.mubr.msk.f32.gmra.mxu1 %vm2334_vm2, %v4043_v2  ;;  %v3916_v2 = vmul.f32 0.01, %v3628_v8  ;;  %v4070_v24 = vsel %vm3782_vm13, %v3638_v11, %v3926_v39 }
 0x675   : > { %9975 = vmatprep.mubr.msk.f32.mxu1 %vm2334_vm2, %v4044_v59  ;;  %v3917_v59 = vmul.f32 0.01, %v3629_v62 }
 0x676   : > { %v4060_v37 = vsel %vm3772_vm3, %v3628_v8, %v3916_v2  ;;  %v15839_v2 = vld [vmem:[#allocation86_spill] sm:$0xff] }
 0x677   : > { %v4061_v36 = vsel %vm3773_vm4, %v3629_v62, %v3917_v59  ;;  %v3643_v16 = vadd.f32 %v14005_v58, %v15839_v2 }
 0x678   : > { %9976 = vmatmul.mubr.msk.f32.gmra.mxu1 %vm2334_vm2, %v4045_v42  ;;  %v3632_v42 = vadd.f32 %v14005_v58, %v15828_v51 }
 0x679   : > { %9978 = vmatprep.mubr.msk.f32.mxu1 %vm2334_vm2, %v4046_v41  ;;  %v3919_v41 = vmul.f32 0.01, %v3631_v27  ;;  %v3931_v45 = vmul.f32 0.01, %v3643_v16  ;;  %vm3787_vm4 = vcmp.ge.f32.partialorder %v3643_v16, 0.0 }
 0x67a   : > { %v3920_v25 = vmul.f32 0.01, %v3632_v42  ;;  %vm3776_vm7 = vcmp.ge.f32.partialorder %v3632_v42, 0.0 }
 0x67b   : > { %v4063_v50 = vsel %vm3775_vm6, %v3631_v27, %v3919_v41  ;;  %v4075_v33 = vsel %vm3787_vm4, %v3643_v16, %v3931_v45 }
 0x67c   : > { %9979 = vmatmul.mubr.msk.f32.gmra.mxu1 %vm2334_vm2, %v4047_v0 }
 0x67d   : > { %9985 = vmatprep.mubr.msk.f32.mxu1 %vm2334_vm2, %v4048_v35  ;;  %v3634_v35 = vadd.f32 %v14005_v58, %v15830_v29  ;;  %v15842_v29 = vld [vmem:[#allocation87_spill] sm:$0xff] }
 0x67f   : > { %vm3778_vm9 = vcmp.ge.f32.partialorder %v3634_v35, 0.0 }
 0x680   : > { %9986 = vmatmul.mubr.msk.f32.vlgmr.msra.gmra.mxu1 %vm2334_vm2, %v4049_v54  ;;  %v3921_v54 = vmul.f32 0.01, %v3633_v32 }
 0x681   : > { %10004 = vmatpush3.msra.mxu1 %v13986_v52  ;;  %9988 = vmatprep.mubr.msk.f32.mxu1 %vm2334_vm2, %v4050_v57  ;;  %v4054_v52 = vsel %vm3766_vm11, %v3622_v34, %v3910_v53  ;;  %v3922_v57 = vmul.f32 0.01, %v3634_v35  ;;  %v3924_v53 = vmul.f32 0.01, %v3636_v46  ;;  %vm3780_vm11 = vcmp.ge.f32.partialorder %v3636_v46, 0.0 }
 0x682   : > { %10005 = vmatprep.subr.mxu1 %v8877_v20 }
 0x683   : > { %10006 = vmatpush3.msra.mxu1 %v8877_v20  ;;  %v4064_v20 = vsel %vm3776_vm7, %v3632_v42, %v3920_v25  ;;  %v4068_v47 = vsel %vm3780_vm11, %v3636_v46, %v3924_v53  ;;  %v15841_v42 = vld [vmem:[#allocation88_spill] sm:$0xff] }
 0x684   : > { %9989 = vmatmul.mubr.msk.f32.gmra.mxu1 %vm2334_vm2, %v4051_v4  ;;  %10025 = vmatprep.subr.mxu1 %v14031_v21  ;;  %v3923_v4 = vmul.f32 0.01, %v3635_v40 }
 0x685   : > { %9991 = vmatprep.mubr.msk.f32.mxu1 %vm2334_vm2, %v4052_v6  ;;  %v4066_v6 = vsel %vm3778_vm9, %v3634_v35, %v3922_v57  ;;  %v3646_v35 = vadd.f32 %v14005_v58, %v15842_v29 }
 0x686   : > { %v4067_v31 = vsel %vm3779_vm10, %v3635_v40, %v3923_v4  ;;  %v15843_v40 = vld [vmem:[#allocation90_spill] sm:$0xff]  ;;  %v15844_v4 = vld [vmem:[#allocation89_spill] sm:$0xff] }
 0x687   : > { %v3648_v38 = vadd.f32 %v14005_v58, %v15844_v4  ;;  %vm3790_vm7 = vcmp.ge.f32.partialorder %v3646_v35, 0.0 }
 0x688   : > { %9992 = vmatmul.mubr.msk.f32.gmra.mxu1 %vm2334_vm2, %v4053_v3 }
 0x689   : > { %9994 = vmatprep.mubr.msk.f32.mxu1 %vm2334_vm2, %v4054_v52  ;;  %v3639_v52 = vadd.f32 %v14005_v58, %v15835_v17  ;;  %vm3792_vm9 = vcmp.ge.f32.partialorder %v3648_v38, 0.0 }
 0x68b   : > { %v3927_v13 = vmul.f32 0.01, %v3639_v52  ;;  %vm3783_vm14 = vcmp.ge.f32.partialorder %v3639_v52, 0.0 }
 0x68c   : > { %9995 = vmatmul.mubr.msk.f32.gmra.mxu1 %vm2334_vm2, %v4055_v43  ;;  %v15836_v43 = vld [vmem:[#allocation79_spill] sm:$0xff] }
 0x68d   : > { %9997 = vmatprep.mubr.msk.f32.mxu1 %vm2334_vm2, %v4056_v63  ;;  %v3640_v1 = vadd.f32 %v14005_v58, %v15836_v43  ;;  %v3641_v63 = vadd.f32 %v14005_v58, %v15837_v49 }
 0x68f   : > { %v3928_v62 = vmul.f32 0.01, %v3640_v1  ;;  %vm3784_vm15 = vcmp.ge.f32.partialorder %v3640_v1, 0.0  ;;  %v3929_v10 = vmul.f32 0.01, %v3641_v63  ;;  %vm3785_vm1 = vcmp.ge.f32.partialorder %v3641_v63, 0.0 }
 0x690   : > { %9998 = vmatmul.mubr.msk.f32.gmra.mxu1 %vm2334_vm2, %v4057_v55  ;;  %v15838_v55 = vld [vmem:[#allocation81_spill] sm:$0xff] }
 0x691   : > { %10000 = vmatprep.mubr.msk.f32.mxu1 %vm2334_vm2, %v4058_v19  ;;  %v3642_v60 = vadd.f32 %v14005_v58, %v15838_v55  ;;  %v4072_v18 = vsel %vm3784_vm15, %v3640_v1, %v3928_v62  ;;  %v4073_v41 = vsel %vm3785_vm1, %v3641_v63, %v3929_v10 }
 0x693   : > { %v3930_v27 = vmul.f32 0.01, %v3642_v60  ;;  %vm3786_vm3 = vcmp.ge.f32.partialorder %v3642_v60, 0.0 }
 0x694   : > { %10001 = vmatmul.mubr.msk.f32.gmra.mxu1 %vm2334_vm2, %v4059_v30  ;;  %v4071_v30 = vsel %vm3783_vm14, %v3639_v52, %v3927_v13  ;;  %v3936_v52 = vmul.f32 0.01, %v3648_v38 }
 0x695   : > { %10007 = vmatprep.mubr.msk.f32.mxu1 %vm2334_vm2, %v4060_v37  ;;  %v15840_v37 = vld [vmem:[#allocation85_spill] sm:$0xff] }
 0x696   : > { %v3644_v28 = vadd.f32 %v14005_v58, %v15840_v37 }
 0x698   : > { %v14067_v0 = vpop.f32.mrf.mxu1  ;;  %10008 = vmatmul.mubr.msk.f32.vlgmr.msra.gmra.mxu1 %vm2334_vm2, %v4061_v36  ;;  %v3645_v36 = vadd.f32 %v14005_v58, %v15841_v42  ;;  %v3932_v25 = vmul.f32 0.01, %v3644_v28  ;;  %vm3788_vm5 = vcmp.ge.f32.partialorder %v3644_v28, 0.0 }
 0x699   : > { %10026 = vmatpush3.msra.mxu1 %v14031_v21  ;;  %10010 = vmatprep.mubr.msk.f32.mxu1 %vm2334_vm2, %v4062_v7  ;;  %v4065_v21 = vsel %vm3777_vm8, %v3633_v32, %v3921_v54  ;;  %v8905_v32 = vld [vmem:[%s10569_s25 + $0xa0] sm:$0xff]  ;;  %v4074_v7 = vsel %vm3786_vm3, %v3642_v60, %v3930_v27  ;;  %v14142_v54 = vld [vmem:[%s10569_s25 + $0xb8] sm:$0xff] }
 0x69a   : > { %v14077_v61 = vpop.f32.mrf.mxu1  ;;  %10027 = vmatprep.subr.mxu1 %v8891_v48  ;;  %v3933_v46 = vmul.f32 0.01, %v3645_v36  ;;  %vm3789_vm6 = vcmp.ge.f32.partialorder %v3645_v36, 0.0 }
 0x69b   : > { %10028 = vmatpush3.msra.mxu1 %v8891_v48 }
 0x69c   : > { %v14081_v9 = vpop.f32.mrf.mxu1  ;;  %10011 = vmatmul.mubr.msk.f32.gmra.mxu1 %vm2334_vm2, %v4063_v50  ;;  %10047 = vmatprep.subr.mxu1 %v14075_v26  ;;  %v4077_v11 = vsel %vm3789_vm6, %v3645_v36, %v3933_v46 }
 0x69d   : > { %10013 = vmatprep.mubr.msk.f32.mxu1 %vm2334_vm2, %v4064_v20  ;;  %v3647_v20 = vadd.f32 %v14005_v58, %v15843_v40 }
 0x69e   : > { %v14088_v34 = vpop.f32.mrf.mxu1 }
 0x69f   : > { %vm3791_vm8 = vcmp.ge.f32.partialorder %v3647_v20, 0.0 }
 0x6a0   : > { %v14092_v22 = vpop.f32.mrf.mxu1  ;;  %10014 = vmatmul.mubr.msk.f32.gmra.mxu1 %vm2334_vm2, %v4065_v21  ;;  %v3934_v21 = vmul.f32 0.01, %v3646_v35 }
 0x6a1   : > { %10016 = vmatprep.mubr.msk.f32.mxu1 %vm2334_vm2, %v4066_v6  ;;  %v15845_v6 = vld [vmem:[#allocation92_spill] sm:$0xff] }
 0x6a2   : > { %v14098_v3 = vpop.f32.mrf.mxu1  ;;  %v3649_v53 = vadd.f32 %v14005_v58, %v15845_v6  ;;  %v4078_v17 = vsel %vm3790_vm7, %v3646_v35, %v3934_v21  ;;  %v15852_v35 = vld [vmem:[#allocation97_spill] sm:$0xff]  ;;  %v8919_v21 = vld [vmem:[%s10569_s25 + $0xb0] sm:$0xff] }
 0x6a4   : > { %v14102_v5 = vpop.f32.mrf.mxu1  ;;  %10017 = vmatmul.mubr.msk.f32.gmra.mxu1 %vm2334_vm2, %v4067_v31  ;;  %v3935_v31 = vmul.f32 0.01, %v3647_v20  ;;  %vm3793_vm10 = vcmp.ge.f32.partialorder %v3649_v53, 0.0 }
 0x6a5   : > { %10019 = vmatprep.mubr.msk.f32.mxu1 %vm2334_vm2, %v4068_v47 }
 0x6a6   : > { %v14108_v12 = vpop.f32.mrf.mxu1  ;;  %v4079_v63 = vsel %vm3791_vm8, %v3647_v20, %v3935_v31 }
 0x6a8   : > { %v14112_v8 = vpop.f32.mrf.mxu1  ;;  %10020 = vmatmul.mubr.msk.f32.gmra.mxu1 %vm2334_vm2, %v4069_v15  ;;  %v3937_v15 = vmul.f32 0.01, %v3649_v53 }
 0x6a9   : > { %10022 = vmatprep.mubr.msk.f32.mxu1 %vm2334_vm2, %v4070_v24  ;;  %v4080_v24 = vsel %vm3792_vm9, %v3648_v38, %v3936_v52 }
 0x6aa   : > { %v14118_v19 = vpop.f32.mrf.mxu1 }
 0x6ac   : > { %v14122_v59 = vpop.f32.mrf.mxu1  ;;  %10023 = vmatmul.mubr.msk.f32.gmra.mxu1 %vm2334_vm2, %v4071_v30  ;;  %v4081_v30 = vsel %vm3793_vm10, %v3649_v53, %v3937_v15 }
 0x6ad   : > { %10029 = vmatprep.mubr.msk.f32.mxu1 %vm2334_vm2, %v4072_v18 }
 0x6ae   : > { %v14128_v51 = vpop.f32.mrf.mxu1 }
 0x6b0   : > { %v9855_v48 = vpop.f32.mrf.mxu1  ;;  %10030 = vmatmul.mubr.msk.f32.vlgmr.msra.gmra.mxu1 %vm2334_vm2, %v4073_v41 }
 0x6b1   : > { %v14137_v50 = vadd.f32 %v9855_v48, %v14067_v0  ;;  %10048 = vmatpush3.msra.mxu1 %v14075_v26  ;;  %10032 = vmatprep.mubr.msk.f32.mxu1 %vm2334_vm2, %v4074_v7  ;;  %v4076_v26 = vsel %vm3788_vm5, %v3644_v28, %v3932_v25 }
 0x6b2   : > { %v4376_v23 = vpop.f32.mrf.mxu1  ;;  %10049 = vmatprep.subr.mxu1 %v8905_v32 }
 0x6b3   : > { %v14147_v57 = vadd.f32 %v4376_v23, %v14077_v61  ;;  %10050 = vmatpush3.msra.mxu1 %v8905_v32  ;;  %v3656_v23 = vadd.f32 %v14005_v58, %v15852_v35 }
 0x6b4   : > { %v9858_v0 = vpop.f32.mrf.mxu1  ;;  %10033 = vmatmul.mubr.msk.f32.gmra.mxu1 %vm2334_vm2, %v4075_v33  ;;  %10069 = vmatprep.subr.mxu1 %v14142_v54 }
 0x6b5   : > { %v14154_v56 = vadd.f32 %v9858_v0, %v14081_v9  ;;  %10035 = vmatprep.mubr.msk.f32.mxu1 %vm2334_vm2, %v4076_v26  ;;  %v15846_v9 = vld [vmem:[#allocation91_spill] sm:$0xff]  ;;  %vm3800_vm3 = vcmp.ge.f32.partialorder %v3656_v23, 0.0 }
 0x6b6   : > { %v4386_v61 = vpop.f32.mrf.mxu1  ;;  %v3650_v47 = vadd.f32 %v14005_v58, %v15846_v9 }
 0x6b7   : > { %v14160_v44 = vadd.f32 %v4386_v61, %v14088_v34  ;;  %v15847_v34 = vld [vmem:[#allocation94_spill] sm:$0xff]  ;;  %v15854_v61 = vld [vmem:[#allocation99_spill] sm:$0xff] }
 0x6b8   : > { %v9861_v14 = vpop.f32.mrf.mxu1  ;;  %10036 = vmatmul.mubr.msk.f32.gmra.mxu1 %vm2334_vm2, %v4077_v11  ;;  %v3651_v1 = vadd.f32 %v14005_v58, %v15847_v34  ;;  %v3938_v62 = vmul.f32 0.01, %v3650_v47  ;;  %vm3794_vm11 = vcmp.ge.f32.partialorder %v3650_v47, 0.0  ;;  %v3658_v6 = vadd.f32 %v14005_v58, %v15854_v61  ;;  %v15855_v11 = vld [vmem:[#allocation102_spill] sm:$0xff]  ;;  %v15864_v61 = vld [vmem:[#allocation109_spill] sm:$0xff] }
 0x6b9   : > { %v14166_v39 = vadd.f32 %v9861_v14, %v14092_v22  ;;  %10038 = vmatprep.mubr.msk.f32.mxu1 %vm2334_vm2, %v4078_v17  ;;  %v15848_v22 = vld [vmem:[#allocation93_spill] sm:$0xff]  ;;  %v3659_v31 = vadd.f32 %v14005_v58, %v15855_v11  ;;  %v15865_v11 = vld [vmem:[#allocation111_spill] sm:$0xff] }
 0x6ba   : > { %v4396_v43 = vpop.f32.mrf.mxu1  ;;  %v3652_v55 = vadd.f32 %v14005_v58, %v15848_v22  ;;  %v3939_v18 = vmul.f32 0.01, %v3651_v1  ;;  %v4082_v37 = vsel %vm3794_vm11, %v3650_v47, %v3938_v62  ;;  %vm3795_vm12 = vcmp.ge.f32.partialorder %v3651_v1, 0.0  ;;  %v15856_v47 = vld [vmem:[#allocation101_spill] sm:$0xff] }
 0x6bb   : > { %v14172_v49 = vadd.f32 %v4396_v43, %v14098_v3  ;;  %v15849_v3 = vld [vmem:[#allocation96_spill] sm:$0xff]  ;;  %v3660_v43 = vadd.f32 %v14005_v58, %v15856_v47  ;;  %vm3802_vm5 = vcmp.ge.f32.partialorder %v3658_v6, 0.0  ;;  %vm3803_vm6 = vcmp.ge.f32.partialorder %v3659_v31, 0.0 }
 0x6bc   : > { %v9864_v13 = vpop.f32.mrf.mxu1  ;;  %10039 = vmatmul.mubr.msk.f32.gmra.mxu1 %vm2334_vm2, %v4079_v63  ;;  %v3653_v16 = vadd.f32 %v14005_v58, %v15849_v3  ;;  %v3940_v28 = vmul.f32 0.01, %v3652_v55  ;;  %vm3796_vm13 = vcmp.ge.f32.partialorder %v3652_v55, 0.0  ;;  %v4083_v7 = vsel %vm3795_vm12, %v3651_v1, %v3939_v18  ;;  %v15857_v1 = vld [vmem:[#allocation104_spill] sm:$0xff] }
 0x6bd   : > { %v14178_v60 = vadd.f32 %v9864_v13, %v14102_v5  ;;  %10041 = vmatprep.mubr.msk.f32.mxu1 %vm2334_vm2, %v4080_v24  ;;  %v15850_v5 = vld [vmem:[#allocation95_spill] sm:$0xff]  ;;  %v3661_v63 = vadd.f32 %v14005_v58, %v15857_v1  ;;  %v3947_v24 = vmul.f32 0.01, %v3659_v31  ;;  %vm3804_vm7 = vcmp.ge.f32.partialorder %v3660_v43, 0.0  ;;  %v15866_v47 = vld [vmem:[#allocation112_spill] sm:$0xff]  ;;  %v15867_v1 = vld [vmem:[#allocation18_spill] sm:$0xff] }
 0x6be   : > { %v4406_v2 = vpop.f32.mrf.mxu1  ;;  %v3654_v42 = vadd.f32 %v14005_v58, %v15850_v5  ;;  %v3941_v32 = vmul.f32 0.01, %v3653_v16  ;;  %vm3797_vm14 = vcmp.ge.f32.partialorder %v3653_v16, 0.0  ;;  %v4084_v29 = vsel %vm3796_vm13, %v3652_v55, %v3940_v28 }
 0x6bf   : > { %v14184_v10 = vadd.f32 %v4406_v2, %v14108_v12  ;;  %v15851_v12 = vld [vmem:[#allocation98_spill] sm:$0xff]  ;;  %v3948_v55 = vmul.f32 0.01, %v3660_v43  ;;  %vm3805_vm8 = vcmp.ge.f32.partialorder %v3661_v63, 0.0 }
 0x6c0   : > { %v9867_v27 = vpop.f32.mrf.mxu1  ;;  %10042 = vmatmul.mubr.msk.f32.gmra.mxu1 %vm2334_vm2, %v4081_v30  ;;  %v3655_v45 = vadd.f32 %v14005_v58, %v15851_v12  ;;  %vm3798_vm15 = vcmp.ge.f32.partialorder %v3654_v42, 0.0  ;;  %v4085_v0 = vsel %vm3797_vm14, %v3653_v16, %v3941_v32 }
 0x6c1   : > { %v14190_v36 = vadd.f32 %v9867_v27, %v14112_v8  ;;  %10044 = vmatprep.mubr.msk.f32.mxu1 %vm2334_vm2, %v4082_v37  ;;  %v3942_v8 = vmul.f32 0.01, %v3654_v42  ;;  %v4091_v27 = vsel %vm3803_vm6, %v3659_v31, %v3947_v24  ;;  %v3949_v37 = vmul.f32 0.01, %v3661_v63 }
 0x6c2   : > { %v4416_v41 = vpop.f32.mrf.mxu1  ;;  %v3943_v26 = vmul.f32 0.01, %v3655_v45  ;;  %vm3799_vm1 = vcmp.ge.f32.partialorder %v3655_v45, 0.0  ;;  %v4092_v5 = vsel %vm3804_vm7, %v3660_v43, %v3948_v55  ;;  %v3669_v31 = vadd.f32 %v14005_v58, %v15865_v11 }
 0x6c3   : > { %v14196_v48 = vadd.f32 %v4416_v41, %v14118_v19  ;;  %v15853_v19 = vld [vmem:[#allocation100_spill] sm:$0xff]  ;;  %v4086_v38 = vsel %vm3798_vm15, %v3654_v42, %v3942_v8 }
 0x6c4   : > { %v9870_v25 = vpop.f32.mrf.mxu1  ;;  %10045 = vmatmul.mubr.msk.f32.gmra.mxu1 %vm2334_vm2, %v4083_v7  ;;  %v3657_v33 = vadd.f32 %v14005_v58, %v15853_v19  ;;  %v4087_v17 = vsel %vm3799_vm1, %v3655_v45, %v3943_v26  ;;  %v3957_v24 = vmul.f32 0.01, %v3669_v31  ;;  %vm3813_vm1 = vcmp.ge.f32.partialorder %v3669_v31, 0.0 }
 0x6c5   : > { %v14202_v40 = vadd.f32 %v9870_v25, %v14122_v59  ;;  %10051 = vmatprep.mubr.msk.f32.mxu1 %vm2334_vm2, %v4084_v29  ;;  %v3944_v59 = vmul.f32 0.01, %v3656_v23  ;;  %v4093_v25 = vsel %vm3805_vm8, %v3661_v63, %v3949_v37  ;;  %v3671_v63 = vadd.f32 %v14005_v58, %v15867_v1 }
 0x6c6   : > { %v4426_v20 = vpop.f32.mrf.mxu1  ;;  %v3945_v52 = vmul.f32 0.01, %v3657_v33  ;;  %vm3801_vm4 = vcmp.ge.f32.partialorder %v3657_v33, 0.0 }
 0x6c7   : > { %v14208_v46 = vadd.f32 %v4426_v20, %v14128_v51  ;;  %v3959_v37 = vmul.f32 0.01, %v3671_v63 }
 0x6c8   : > { %v9877_v4 = vpop.f32.mrf.mxu1  ;;  %10052 = vmatmul.mubr.msk.f32.vlgmr.msra.gmra.mxu1 %vm2334_vm2, %v4085_v0  ;;  %v4089_v13 = vsel %vm3801_vm4, %v3657_v33, %v3945_v52  ;;  %vm3815_vm4 = vcmp.ge.f32.partialorder %v3671_v63, 0.0 }
 0x6c9   : > { %v14215_v53 = vadd.f32 %v9877_v4, %v14137_v50  ;;  %10070 = vmatpush3.msra.mxu1 %v14142_v54  ;;  %10054 = vmatprep.mubr.msk.f32.mxu1 %vm2334_vm2, %v4086_v38  ;;  %v4088_v50 = vsel %vm3800_vm3, %v3656_v23, %v3944_v59  ;;  %v3946_v54 = vmul.f32 0.01, %v3658_v6 }
 0x6ca   : > { %v4540_v51 = vpop.f32.mrf.mxu1  ;;  %10071 = vmatprep.subr.mxu1 %v8919_v21 }
 0x6cb   : > { %v14222_v14 = vadd.f32 %v4540_v51, %v14147_v57  ;;  %10072 = vmatpush3.msra.mxu1 %v8919_v21  ;;  %v4090_v22 = vsel %vm3802_vm5, %v3658_v6, %v3946_v54 }
 0x6cc   : > { %v9880_v9 = vpop.f32.mrf.mxu1  ;;  %10055 = vmatmul.mubr.msk.f32.gmra.mxu1 %vm2334_vm2, %v4087_v17 }
 0x6cd   : > { %v14228_v34 = vadd.f32 %v9880_v9, %v14154_v56  ;;  %10057 = vmatprep.mubr.msk.f32.mxu1 %vm2334_vm2, %v4088_v50  ;;  %v15858_v56 = vld [vmem:[#allocation103_spill] sm:$0xff] }
 0x6ce   : > { %v4550_v57 = vpop.f32.mrf.mxu1  ;;  %v3662_v2 = vadd.f32 %v14005_v58, %v15858_v56  ;;  %v15868_v56 = vld [vmem:[#allocation17_spill] sm:$0xff] }
 0x6cf   : > { %v14234_v15 = vadd.f32 %v4550_v57, %v14160_v44  ;;  %v15859_v44 = vld [vmem:[#allocation106_spill] sm:$0xff] }
 0x6d0   : > { %v9883_v62 = vpop.f32.mrf.mxu1  ;;  %10058 = vmatmul.mubr.msk.f32.gmra.mxu1 %vm2334_vm2, %v4089_v13  ;;  %v3663_v30 = vadd.f32 %v14005_v58, %v15859_v44  ;;  %v3950_v42 = vmul.f32 0.01, %v3662_v2  ;;  %vm3806_vm9 = vcmp.ge.f32.partialorder %v3662_v2, 0.0  ;;  %v15869_v44 = vld [vmem:[#allocation20_spill] sm:$0xff] }
 0x6d1   : > { %v14240_v3 = vadd.f32 %v9883_v62, %v14166_v39  ;;  %10060 = vmatprep.mubr.msk.f32.mxu1 %vm2334_vm2, %v4090_v22  ;;  %v15860_v39 = vld [vmem:[#allocation105_spill] sm:$0xff] }
 0x6d2   : > { %v4560_v16 = vpop.f32.mrf.mxu1  ;;  %v3664_v41 = vadd.f32 %v14005_v58, %v15860_v39  ;;  %v3951_v29 = vmul.f32 0.01, %v3663_v30  ;;  %v4094_v35 = vsel %vm3806_vm9, %v3662_v2, %v3950_v42  ;;  %vm3807_vm10 = vcmp.ge.f32.partialorder %v3663_v30, 0.0  ;;  %v15870_v39 = vld [vmem:[#allocation19_spill] sm:$0xff] }
 0x6d3   : > { %v14246_v18 = vadd.f32 %v4560_v16, %v14172_v49  ;;  %v15861_v49 = vld [vmem:[#allocation108_spill] sm:$0xff]  ;;  %v3672_v2 = vadd.f32 %v14005_v58, %v15868_v56 }
 0x6d4   : > { %v9886_v28 = vpop.f32.mrf.mxu1  ;;  %10061 = vmatmul.mubr.msk.f32.gmra.mxu1 %vm2334_vm2, %v4091_v27  ;;  %v3665_v32 = vadd.f32 %v14005_v58, %v15861_v49  ;;  %v3952_v23 = vmul.f32 0.01, %v3664_v41  ;;  %vm3808_vm11 = vcmp.ge.f32.partialorder %v3664_v41, 0.0  ;;  %v4095_v21 = vsel %vm3807_vm10, %v3663_v30, %v3951_v29  ;;  %v15871_v49 = vld [vmem:[#allocation22_spill] sm:$0xff] }
 0x6d5   : > { %v14252_v12 = vadd.f32 %v9886_v28, %v14178_v60  ;;  %10063 = vmatprep.mubr.msk.f32.mxu1 %vm2334_vm2, %v4092_v5  ;;  %v15862_v60 = vld [vmem:[#allocation107_spill] sm:$0xff]  ;;  %v3673_v30 = vadd.f32 %v14005_v58, %v15869_v44  ;;  %v4101_v27 = vsel %vm3813_vm1, %v3669_v31, %v3957_v24  ;;  %v3960_v42 = vmul.f32 0.01, %v3672_v2 }
 0x6d6   : > { %v4570_v45 = vpop.f32.mrf.mxu1  ;;  %v3666_v20 = vadd.f32 %v14005_v58, %v15862_v60  ;;  %v3953_v26 = vmul.f32 0.01, %v3665_v32  ;;  %vm3809_vm12 = vcmp.ge.f32.partialorder %v3665_v32, 0.0  ;;  %v4096_v38 = vsel %vm3808_vm11, %v3664_v41, %v3952_v23 }
 0x6d7   : > { %v14258_v7 = vadd.f32 %v4570_v45, %v14184_v10  ;;  %v15863_v10 = vld [vmem:[#allocation110_spill] sm:$0xff]  ;;  %v3674_v41 = vadd.f32 %v14005_v58, %v15870_v39  ;;  %vm3816_vm5 = vcmp.ge.f32.partialorder %v3672_v2, 0.0  ;;  %v3961_v29 = vmul.f32 0.01, %v3673_v30 }
 0x6d8   : > { %v9889_v8 = vpop.f32.mrf.mxu1  ;;  %10064 = vmatmul.mubr.msk.f32.gmra.mxu1 %vm2334_vm2, %v4093_v25  ;;  %v3667_v0 = vadd.f32 %v14005_v58, %v15863_v10  ;;  %v3954_v59 = vmul.f32 0.01, %v3666_v20  ;;  %vm3810_vm13 = vcmp.ge.f32.partialorder %v3666_v20, 0.0  ;;  %v4097_v17 = vsel %vm3809_vm12, %v3665_v32, %v3953_v26 }
 0x6d9   : > { %v14264_v19 = vadd.f32 %v9889_v8, %v14190_v36  ;;  %10066 = vmatprep.mubr.msk.f32.mxu1 %vm2334_vm2, %v4094_v35  ;;  %v3668_v36 = vadd.f32 %v14005_v58, %v15864_v61  ;;  %v3675_v32 = vadd.f32 %v14005_v58, %v15871_v49  ;;  %v4103_v25 = vsel %vm3815_vm4, %v3671_v63, %v3959_v37 }
 0x6da   : > { %v14267_v33 = vpop.f32.mrf.mxu1  ;;  %v3955_v52 = vmul.f32 0.01, %v3667_v0  ;;  %v4098_v50 = vsel %vm3810_vm13, %v3666_v20, %v3954_v59  ;;  %vm3811_vm14 = vcmp.ge.f32.partialorder %v3667_v0, 0.0  ;;  %v4104_v35 = vsel %vm3816_vm5, %v3672_v2, %v3960_v42 }
 0x6db   : > { %v3956_v54 = vmul.f32 0.01, %v3668_v36  ;;  %vm3812_vm15 = vcmp.ge.f32.partialorder %v3668_v36, 0.0  ;;  %vm3817_vm6 = vcmp.ge.f32.partialorder %v3673_v30, 0.0  ;;  %v3962_v23 = vmul.f32 0.01, %v3674_v41 }
 0x6dc   : > { %v9892_v4 = vpop.f32.mrf.mxu1  ;;  %10067 = vmatmul.mubr.msk.f32.gmra.mxu1 %vm2334_vm2, %v4095_v21  ;;  %v4099_v13 = vsel %vm3811_vm14, %v3667_v0, %v3955_v52  ;;  %vm3818_vm7 = vcmp.ge.f32.partialorder %v3674_v41, 0.0  ;;  %v4105_v20 = vsel %vm3817_vm6, %v3673_v30, %v3961_v29  ;;  %v3963_v10 = vmul.f32 0.01, %v3675_v32 }
 0x6dd   : > { %v14275_v6 = vadd.f32 %v9892_v4, %v14202_v40  ;;  %10073 = vmatprep.mubr.msk.f32.mxu1 %vm2334_vm2, %v4096_v38  ;;  %v3670_v40 = vadd.f32 %v14005_v58, %v15866_v47  ;;  %v4100_v22 = vsel %vm3812_vm15, %v3668_v36, %v3956_v54  ;;  %v4106_v58 = vsel %vm3818_vm7, %v3674_v41, %v3962_v23 }
 0x6de   : > { %v14278_v51 = vpop.f32.mrf.mxu1  ;;  %vm3819_vm8 = vcmp.ge.f32.partialorder %v3675_v32, 0.0  ;;  %v4607_v63 = vadd.f32 %v14267_v33, %v14196_v48 }
 0x6df   : > { %v3958_v55 = vmul.f32 0.01, %v3670_v40  ;;  %vm3814_vm3 = vcmp.ge.f32.partialorder %v3670_v40, 0.0  ;;  %v4107_v4 = vsel %vm3819_vm8, %v3675_v32, %v3963_v10 }
 0x6e0   : > { %v9899_v9 = vpop.f32.mrf.mxu1  ;;  %10074 = vmatmul.mubr.msk.f32.vlgmr.msra.gmra.mxu1 %vm2334_vm2, %v4097_v17 }
 0x6e1   : > { %v4776_v43 = vadd.f32 %v9899_v9, %v14215_v53  ;;  %10076 = vmatprep.mubr.msk.f32.mxu1 %vm2334_vm2, %v4098_v50  ;;  %v4102_v5 = vsel %vm3814_vm3, %v3670_v40, %v3958_v55 }
 0x6e2   : > { %v14287_v57 = vpop.f32.mrf.mxu1 }
 0x6e4   : > { %v9902_v62 = vpop.f32.mrf.mxu1  ;;  %10077 = vmatmul.mubr.msk.f32.gmra.mxu1 %vm2334_vm2, %v4099_v13 }
 0x6e5   : > { %v4778_v53 = vadd.f32 %v9902_v62, %v14228_v34  ;;  %10079 = vmatprep.mubr.msk.f32.mxu1 %vm2334_vm2, %v4100_v22  ;;  %v4609_v22 = vadd.f32 %v14278_v51, %v14208_v46 }
 0x6e6   : > { %v14296_v16 = vpop.f32.mrf.mxu1 }
 0x6e8   : > { %v9905_v28 = vpop.f32.mrf.mxu1  ;;  %10080 = vmatmul.mubr.msk.f32.gmra.mxu1 %vm2334_vm2, %v4101_v27 }
 0x6e9   : > { %v4780_v34 = vadd.f32 %v9905_v28, %v14240_v3  ;;  %10082 = vmatprep.mubr.msk.f32.mxu1 %vm2334_vm2, %v4102_v5  ;;  %v4777_v28 = vadd.f32 %v14296_v16, %v14234_v15 }
 0x6ea   : > { %v14305_v45 = vpop.f32.mrf.mxu1 }
 0x6eb   : > { %v4779_v41 = vadd.f32 %v14305_v45, %v14246_v18 }
 0x6ec   : > { %v9908_v8 = vpop.f32.mrf.mxu1  ;;  %10083 = vmatmul.mubr.msk.f32.gmra.mxu1 %vm2334_vm2, %v4103_v25 }
 0x6ed   : > { %v4782_v60 = vadd.f32 %v9908_v8, %v14252_v12  ;;  %10085 = vmatprep.mubr.msk.f32.mxu1 %vm2334_vm2, %v4104_v35 }
 0x6ee   : > { %v4746_v3 = vpop.f32.mrf.mxu1 }
 0x6ef   : > { %v4781_v47 = vadd.f32 %v4746_v3, %v14258_v7  ;;  %v4775_v7 = vadd.f32 %v14287_v57, %v14222_v14 }
 0x6f0   : > { %v9911_v0 = vpop.f32.mrf.mxu1  ;;  %10086 = vmatmul.mubr.msk.f32.gmra.mxu1 %vm2334_vm2, %v4105_v20 }
 0x6f1   : > { %v4784_v26 = vadd.f32 %v9911_v0, %v14264_v19  ;;  %10088 = vmatprep.mubr.msk.f32.mxu1 %vm2334_vm2, %v4106_v58 }
 0x6f2   : > { %v4756_v21 = vpop.f32.mrf.mxu1 }
 0x6f3   : > { %v4783_v24 = vadd.f32 %v4756_v21, %v4607_v63 }
 0x6f4   : > { %v9914_v38 = vpop.f32.mrf.mxu1  ;;  %10089 = vmatmul.mubr.msk.f32.gmra.mxu1 %vm2334_vm2, %v4107_v4 }
 0x6f5   : > { %v4786_v12 = vadd.f32 %v9914_v38, %v14275_v6 }
 0x6f6   : > { %v4766_v59 = vpop.f32.mrf.mxu1 }
 0x6f7   : > { %v4785_v2 = vadd.f32 %v4766_v59, %v4609_v22 }
 0x6f8   : > { %v9921_v61 = vpop.f32.mrf.mxu1 }
 0x6f9   : > { %v4952_v36 = vadd.f32 %v9921_v61, %v4776_v43 }
 0x6fa   : > { %v4892_v11 = vpop.f32.mrf.mxu1 }
 0x6fb   : > { %v4951_v37 = vadd.f32 %v4892_v11, %v4775_v7 }
 0x6fc   : > { %v9924_v31 = vpop.f32.mrf.mxu1 }
 0x6fd   : > { %v4954_v17 = vadd.f32 %v9924_v31, %v4778_v53 }
 0x6fe   : > { %v4902_v52 = vpop.f32.mrf.mxu1 }
 0x6ff   : > { %v4953_v39 = vadd.f32 %v4902_v52, %v4777_v28 }
 0x700   : > { %v9927_v9 = vpop.f32.mrf.mxu1 }
 0x701   : > { %v4956_v50 = vadd.f32 %v9927_v9, %v4780_v34 }
 0x702   : > { %v4912_v54 = vpop.f32.mrf.mxu1 }
 0x703   : > { %v4955_v32 = vadd.f32 %v4912_v54, %v4779_v41 }
 0x704   : > { %v9930_v19 = vpop.f32.mrf.mxu1 }
 0x705   : > { %v4958_v40 = vadd.f32 %v9930_v19, %v4782_v60 }
 0x706   : > { %v4922_v1 = vpop.f32.mrf.mxu1 }
 0x707   : > { %v4957_v13 = vadd.f32 %v4922_v1, %v4781_v47 }
 0x708   : > { %v9933_v6 = vpop.f32.mrf.mxu1 }
 0x709   : > { %v4960_v62 = vadd.f32 %v9933_v6, %v4784_v26 }
 0x70a   : > { %v4932_v43 = vpop.f32.mrf.mxu1 }
 0x70b   : > { %v4959_v55 = vadd.f32 %v4932_v43, %v4783_v24 }
 0x70c   : > { %v9936_v56 = vpop.f32.mrf.mxu1 }
 0x70d   : > { %v4962_v53 = vadd.f32 %v9936_v56, %v4786_v12 }
 0x70e   : > { %v4942_v44 = vpop.f32.mrf.mxu1 }
 0x70f   : > { %v4961_v30 = vadd.f32 %v4942_v44, %v4785_v2 }
 0x710   : > { %v9943_v27 = vpop.f32.mrf.mxu1 }
 0x711   : > { %v5128_v48 = vadd.f32 %v9943_v27, %v4952_v36 }
 0x712   : > { %v5068_v33 = vpop.f32.mrf.mxu1 }
 0x713   : > { %v5127_v5 = vadd.f32 %v5068_v33, %v4951_v37 }
 0x714   : > { %v9946_v42 = vpop.f32.mrf.mxu1 }
 0x715   : > { %v5130_v46 = vadd.f32 %v9946_v42, %v4954_v17 }
 0x716   : > { %v5078_v51 = vpop.f32.mrf.mxu1 }
 0x717   : > { %v5129_v34 = vadd.f32 %v5078_v51, %v4953_v39 }
 0x718   : > { %v9949_v49 = vpop.f32.mrf.mxu1 }
 0x719   : > { %v5132_v14 = vadd.f32 %v9949_v49, %v4956_v50 }
 0x71a   : > { %v5088_v57 = vpop.f32.mrf.mxu1 }
 0x71b   : > { %v5131_v25 = vadd.f32 %v5088_v57, %v4955_v32 }
 0x71c   : > { %v9952_v29 = vpop.f32.mrf.mxu1 }
 0x71d   : > { %v5134_v8 = vadd.f32 %v9952_v29, %v4958_v40 }
 0x71e   : > { %v5098_v35 = vpop.f32.mrf.mxu1 }
 0x71f   : > { %v5133_v23 = vadd.f32 %v5098_v35, %v4957_v13 }
 0x720   : > { %v9955_v60 = vpop.f32.mrf.mxu1 }
 0x721   : > { %v5136_v15 = vadd.f32 %v9955_v60, %v4960_v62 }
 0x722   : > { %v5108_v16 = vpop.f32.mrf.mxu1 }
 0x723   : > { %v5135_v3 = vadd.f32 %v5108_v16, %v4959_v55 }
 0x724   : > { %v9958_v20 = vpop.f32.mrf.mxu1 }
 0x725   : > { %v5138_v10 = vadd.f32 %v9958_v20, %v4962_v53 }
 0x726   : > { %v5118_v0 = vpop.f32.mrf.mxu1 }
 0x727   : > { %v5137_v58 = vadd.f32 %v5118_v0, %v4961_v30 }
 0x728   : > { %v9965_v26 = vpop.f32.mrf.mxu1 }
 0x729   : > { %v5304_v18 = vadd.f32 %v9965_v26, %v5128_v48 }
 0x72a   : > { %v5244_v45 = vpop.f32.mrf.mxu1 }
 0x72b   : > { %v5303_v21 = vadd.f32 %v5244_v45, %v5127_v5 }
 0x72c   : > { %v9968_v4 = vpop.f32.mrf.mxu1 }
 0x72d   : > { %v5306_v38 = vadd.f32 %v9968_v4, %v5130_v46 }
 0x72e   : > { %v5254_v12 = vpop.f32.mrf.mxu1 }
 0x72f   : > { %v5305_v59 = vadd.f32 %v5254_v12, %v5129_v34 }
 0x730   : > { %v9971_v61 = vpop.f32.mrf.mxu1 }
 0x731   : > { %v5308_v36 = vadd.f32 %v9971_v61, %v5132_v14 }
 0x732   : > { %v5264_v11 = vpop.f32.mrf.mxu1 }
 0x733   : > { %v5307_v31 = vadd.f32 %v5264_v11, %v5131_v25 }
 0x734   : > { %v9974_v17 = vpop.f32.mrf.mxu1 }
 0x735   : > { %v5310_v52 = vadd.f32 %v9974_v17, %v5134_v8 }
 0x736   : > { %v5274_v9 = vpop.f32.mrf.mxu1 }
 0x737   : > { %v5309_v50 = vadd.f32 %v5274_v9, %v5133_v23 }
 0x738   : > { %v9977_v54 = vpop.f32.mrf.mxu1 }
 0x739   : > { %v5312_v19 = vadd.f32 %v9977_v54, %v5136_v15 }
 0x73a   : > { %v5284_v47 = vpop.f32.mrf.mxu1 }
 0x73b   : > { %v5311_v40 = vadd.f32 %v5284_v47, %v5135_v3 }
 0x73c   : > { %v9980_v1 = vpop.f32.mrf.mxu1 }
 0x73d   : > { %v5314_v63 = vadd.f32 %v9980_v1, %v5138_v10 }
 0x73e   : > { %v5294_v13 = vpop.f32.mrf.mxu1 }
 0x73f   : > { %v5313_v6 = vadd.f32 %v5294_v13, %v5137_v58 }
 0x740   : > { %v9987_v24 = vpop.f32.mrf.mxu1 }
 0x741   : > { %v5480_v62 = vadd.f32 %v9987_v24, %v5304_v18 }
 0x742   : > { %v5420_v43 = vpop.f32.mrf.mxu1 }
 0x743   : > { %v5479_v22 = vadd.f32 %v5420_v43, %v5303_v21 }
 0x744   : > { %v9990_v55 = vpop.f32.mrf.mxu1 }
 0x745   : > { %v5482_v56 = vadd.f32 %v9990_v55, %v5306_v38 }
 0x746   : > { %v5430_v2 = vpop.f32.mrf.mxu1 }
 0x747   : > { %v5481_v53 = vadd.f32 %v5430_v2, %v5305_v59 }
 0x748   : > { %v9993_v44 = vpop.f32.mrf.mxu1 }
 0x749   : > { %v5484_v7 = vadd.f32 %v9993_v44, %v5308_v36 }
 0x74a   : > { %v5440_v30 = vpop.f32.mrf.mxu1 }
 0x74b   : > { %v5483_v27 = vadd.f32 %v5440_v30, %v5307_v31 }
 0x74c   : > { %v9996_v37 = vpop.f32.mrf.mxu1 }
 0x74d   : > { %v5486_v48 = vadd.f32 %v9996_v37, %v5310_v52 }
 0x74e   : > { %v5450_v33 = vpop.f32.mrf.mxu1 }
 0x74f   : > { %v5485_v28 = vadd.f32 %v5450_v33, %v5309_v50 }
 0x750   : > { %v9999_v5 = vpop.f32.mrf.mxu1 }
 0x751   : > { %v5488_v42 = vadd.f32 %v9999_v5, %v5312_v19 }
 0x752   : > { %v5460_v39 = vpop.f32.mrf.mxu1 }
 0x753   : > { %v5487_v46 = vadd.f32 %v5460_v39, %v5311_v40 }
 0x754   : > { %v10002_v51 = vpop.f32.mrf.mxu1 }
 0x755   : > { %v5490_v41 = vadd.f32 %v10002_v51, %v5314_v63 }
 0x756   : > { %v5470_v34 = vpop.f32.mrf.mxu1 }
 0x757   : > { %v5489_v49 = vadd.f32 %v5470_v34, %v5313_v6 }
 0x758   : > { %v10009_v32 = vpop.f32.mrf.mxu1 }
 0x759   : > { %v5656_v14 = vadd.f32 %v10009_v32, %v5480_v62 }
 0x75a   : > { %v5596_v57 = vpop.f32.mrf.mxu1 }
 0x75b   : > { %v5655_v25 = vadd.f32 %v5596_v57, %v5479_v22 }
 0x75c   : > { %v10012_v29 = vpop.f32.mrf.mxu1 }
 0x75d   : > { %v5658_v8 = vadd.f32 %v10012_v29, %v5482_v56 }
 0x75e   : > { %v5606_v35 = vpop.f32.mrf.mxu1 }
 0x75f   : > { %v5657_v23 = vadd.f32 %v5606_v35, %v5481_v53 }
 0x760   : > { %v10015_v60 = vpop.f32.mrf.mxu1 }
 0x761   : > { %v5660_v15 = vadd.f32 %v10015_v60, %v5484_v7 }
 0x762   : > { %v5616_v16 = vpop.f32.mrf.mxu1 }
 0x763   : > { %v5659_v3 = vadd.f32 %v5616_v16, %v5483_v27 }
 0x764   : > { %v10018_v20 = vpop.f32.mrf.mxu1 }
 0x765   : > { %v5662_v10 = vadd.f32 %v10018_v20, %v5486_v48 }
 0x766   : > { %v5626_v0 = vpop.f32.mrf.mxu1 }
 0x767   : > { %v14328_v58 = vadd.f32 %v5626_v0, %v5485_v28  ;;  %v14347_v28 = vld [vmem:[%s10574_s29] ss:$0 sm:$0xff] }
 0x768   : > { %v10021_v26 = vpop.f32.mrf.mxu1 }
 0x769   : > { %v14330_v18 = vadd.f32 %v10021_v26, %v5488_v42 }
 0x76a   : > { %v5636_v45 = vpop.f32.mrf.mxu1 }
 0x76b   : > { %v14332_v21 = vadd.f32 %v5636_v45, %v5487_v46 }
 0x76c   : > { %v10024_v4 = vpop.f32.mrf.mxu1 }
 0x76d   : > { %v14334_v38 = vadd.f32 %v10024_v4, %v5490_v41 }
 0x76e   : > { %v5646_v12 = vpop.f32.mrf.mxu1 }
 0x76f   : > { %v14336_v59 = vadd.f32 %v5646_v12, %v5489_v49 }
 0x770   : > { %v10031_v61 = vpop.f32.mrf.mxu1 }
 0x771   : > { %v5832_v53 = vadd.f32 %v10031_v61, %v5656_v14 }
 0x772   : > { %v5772_v36 = vpop.f32.mrf.mxu1 }
 0x773   : > { %v5831_v7 = vadd.f32 %v5772_v36, %v5655_v25 }
 0x774   : > { %v10034_v11 = vpop.f32.mrf.mxu1 }
 0x775   : > { %v5834_v37 = vadd.f32 %v10034_v11, %v5658_v8 }
 0x776   : > { %v5782_v31 = vpop.f32.mrf.mxu1 }
 0x777   : > { %v5833_v42 = vadd.f32 %v5782_v31, %v5657_v23 }
 0x778   : > { %v10037_v17 = vpop.f32.mrf.mxu1 }
 0x779   : > { %v5836_v51 = vadd.f32 %v10037_v17, %v5660_v15 }
 0x77a   : > { %v5792_v52 = vpop.f32.mrf.mxu1 }
 0x77b   : > { %v5835_v57 = vadd.f32 %v5792_v52, %v5659_v3 }
 0x77c   : > { %v10040_v9 = vpop.f32.mrf.mxu1 }
 0x77d   : > { %v5838_v23 = vadd.f32 %v10040_v9, %v5662_v10 }
 0x77e   : > { %v5802_v50 = vpop.f32.mrf.mxu1 }
 0x77f   : > { %v5837_v3 = vadd.f32 %v5802_v50, %v14328_v58 }
 0x780   : > { %v10043_v54 = vpop.f32.mrf.mxu1 }
 0x781   : > { %v5840_v36 = vadd.f32 %v10043_v54, %v14330_v18 }
 0x782   : > { %v5812_v19 = vpop.f32.mrf.mxu1 }
 0x784   : > { %v14338_v47 = vpop.f32.mrf.mxu1 }
 0x786   : > { %v14340_v40 = vpop.f32.mrf.mxu1 }
 0x788   : > { %v10053_v1 = vpop.f32.mrf.mxu1 }
 0x789   : > { %v6008_v30 = vadd.f32 %v10053_v1, %v5832_v53  ;;  %v5839_v1 = vadd.f32 %v5812_v19, %v14332_v21 }
 0x78a   : > { %v5948_v63 = vpop.f32.mrf.mxu1 }
 0x78b   : > { %v6007_v48 = vadd.f32 %v5948_v63, %v5831_v7 }
 0x78c   : > { %v10056_v13 = vpop.f32.mrf.mxu1 }
 0x78d   : > { %v6010_v39 = vadd.f32 %v10056_v13, %v5834_v37 }
 0x78e   : > { %v5958_v6 = vpop.f32.mrf.mxu1 }
 0x78f   : > { %v6009_v34 = vadd.f32 %v5958_v6, %v5833_v42 }
 0x790   : > { %v10059_v24 = vpop.f32.mrf.mxu1 }
 0x791   : > { %v6012_v29 = vadd.f32 %v10059_v24, %v5836_v51  ;;  %v5842_v24 = vadd.f32 %v14338_v47, %v14334_v38 }
 0x792   : > { %v5968_v62 = vpop.f32.mrf.mxu1 }
 0x793   : > { %v6011_v60 = vadd.f32 %v5968_v62, %v5835_v57 }
 0x794   : > { %v10062_v43 = vpop.f32.mrf.mxu1 }
 0x795   : > { %v6014_v12 = vadd.f32 %v10062_v43, %v5838_v23  ;;  %v8937_v23 = vld [vmem:[%s10589_s14 + $0x18] sm:$0xff] }
 0x796   : > { %v5978_v22 = vpop.f32.mrf.mxu1  ;;  %10091 = vmatprep.subr.mxu0 %v8937_v23 }
 0x797   : > { %v6013_v11 = vadd.f32 %v5978_v22, %v5837_v3  ;;  %10092 = vmatpush3.msra.mxu0 %v8937_v23 }
 0x798   : > { %v10065_v55 = vpop.f32.mrf.mxu1 }
 0x799   : > { %v6016_v6 = vadd.f32 %v10065_v55, %v5840_v36  ;;  %v5841_v55 = vadd.f32 %v14340_v40, %v14336_v59 }
 0x79a   : > { %v5988_v56 = vpop.f32.mrf.mxu1 }
 0x79b   : > { %v6015_v62 = vadd.f32 %v5988_v56, %v5839_v1 }
 0x79c   : > { %v14342_v2 = vpop.f32.mrf.mxu1 }
 0x79d   : > { %v6018_v37 = vadd.f32 %v14342_v2, %v5842_v24 }
 0x79e   : > { %v14344_v44 = vpop.f32.mrf.mxu1 }
 0x79f   : > { %v6017_v56 = vadd.f32 %v14344_v44, %v5841_v55 }
 0x7a0   : > { %v10075_v27 = vpop.f32.mrf.mxu1 }
 0x7a1   : > { %v6184_v33 = vadd.f32 %v10075_v27, %v6008_v30 }
 0x7a2   : > { %v6124_v5 = vpop.f32.mrf.mxu1 }
 0x7a3   : > { %v6183_v46 = vadd.f32 %v6124_v5, %v6007_v48  ;;  %v14350_v49 = vadd.f32 %v14347_v28, %v6184_v33 }
 0x7a4   : > { %v10078_v41 = vpop.f32.mrf.mxu1 }
 0x7a5   : > { %v14353_v32 = vadd.f32 %v14347_v28, %v6183_v46  ;;  %v6186_v14 = vadd.f32 %v10078_v41, %v6010_v39  ;;  %v6217_v15 = vsel %vm2334_vm2, %v14350_v49, 0.0 }
 0x7a6   : > { %v6134_v25 = vpop.f32.mrf.mxu1 }
 0x7a7   : > { %v6216_v8 = vsel %vm2334_vm2, %v14353_v32, 0.0  ;;  %v6185_v35 = vadd.f32 %v6134_v25, %v6009_v34  ;;  %v14360_v20 = vadd.f32 %v14347_v28, %v6186_v14 }
 0x7a8   : > { %v10081_v16 = vpop.f32.mrf.mxu1  ;;  %v6218_v45 = vadd.f32 %v6217_v15, %v6216_v8 }
 0x7a9   : > { %v14363_v0 = vadd.f32 %v14347_v28, %v6185_v35  ;;  %v6188_v26 = vadd.f32 %v10081_v16, %v6012_v29  ;;  %v6221_v52 = vsel %vm2334_vm2, %v14360_v20, 0.0 }
 0x7aa   : > { %v6144_v4 = vpop.f32.mrf.mxu1 }
 0x7ab   : > { %v6219_v10 = vsel %vm2334_vm2, %v14363_v0, 0.0  ;;  %v6187_v61 = vadd.f32 %v6144_v4, %v6011_v60  ;;  %v14372_v9 = vadd.f32 %v14347_v28, %v6188_v26 }
 0x7ac   : > { %v6220_v31 = vadd.f32 %v6219_v10, %v6218_v45  ;;  %v10084_v17 = vpop.f32.mrf.mxu1 }
 0x7ad   : > { %v14375_v58 = vadd.f32 %v14347_v28, %v6187_v61  ;;  %v6190_v50 = vadd.f32 %v10084_v17, %v6014_v12  ;;  %v6225_v53 = vsel %vm2334_vm2, %v14372_v9, 0.0 }
 0x7ae   : > { %v6222_v63 = vadd.f32 %v6221_v52, %v6220_v31  ;;  %v6154_v13 = vpop.f32.mrf.mxu1 }
 0x7af   : > { %v6223_v18 = vsel %vm2334_vm2, %v14375_v58, 0.0  ;;  %v6189_v54 = vadd.f32 %v6154_v13, %v6013_v11  ;;  %v6209_v7 = vadd.f32 %v14347_v28, %v6190_v50 }
 0x7b0   : > { %v6224_v43 = vadd.f32 %v6223_v18, %v6222_v63  ;;  %v10087_v22 = vpop.f32.mrf.mxu1 }
 0x7b1   : > { %v6208_v21 = vadd.f32 %v14347_v28, %v6189_v54  ;;  %v6192_v19 = vadd.f32 %v10087_v22, %v6016_v6  ;;  %v6229_v5 = vsel %vm2334_vm2, %v6209_v7, 0.0 }
 0x7b2   : > { %v6226_v30 = vadd.f32 %v6225_v53, %v6224_v43  ;;  %v6164_v27 = vpop.f32.mrf.mxu1 }
 0x7b3   : > { %v6227_v38 = vsel %vm2334_vm2, %v6208_v21, 0.0  ;;  %v6191_v47 = vadd.f32 %v6164_v27, %v6015_v62  ;;  %v6211_v42 = vadd.f32 %v14347_v28, %v6192_v19 }
 0x7b4   : > { %v6228_v48 = vadd.f32 %v6227_v38, %v6226_v30  ;;  %v10090_v33 = vpop.f32.mrf.mxu1 }
 0x7b5   : > { %v6210_v39 = vadd.f32 %v14347_v28, %v6191_v47  ;;  %v6194_v46 = vadd.f32 %v10090_v33, %v6018_v37  ;;  %v6233_v34 = vsel %vm2334_vm2, %v6211_v42, 0.0 }
 0x7b6   : > { %v6230_v59 = vadd.f32 %v6229_v5, %v6228_v48  ;;  %v6174_v40 = vpop.f32.mrf.mxu1 }
 0x7b7   : > { %v6231_v51 = vsel %vm2334_vm2, %v6210_v39, 0.0  ;;  %v6193_v2 = vadd.f32 %v6174_v40, %v6017_v56  ;;  %v6213_v44 = vadd.f32 %v14347_v28, %v6194_v46 }
 0x7b8   : > { %v6232_v41 = vadd.f32 %v6231_v51, %v6230_v59 }
 0x7b9   : > { %v6212_v14 = vadd.f32 %v14347_v28, %v6193_v2  ;;  %v6237_v8 = vsel %vm2334_vm2, %v6213_v44, 0.0 }
 0x7ba   : > { %v6234_v57 = vadd.f32 %v6233_v34, %v6232_v41  ;;  %v8936_v34 = vld [vmem:[%s10589_s14 + $0x10] sm:$0xff] }
 0x7bb   : > { %v6235_v25 = vsel %vm2334_vm2, %v6212_v14, 0.0  ;;  %10093 = vmatprep.subr.mxu0 %v8936_v34 }
 0x7bc   : > { %v6236_v29 = vadd.f32 %v6235_v25, %v6234_v57  ;;  %10094 = vmatpush3.msra.mxu0 %v8936_v34 }
 0x7be   : > { %v6238_v35 = vadd.f32 %v6237_v8, %v6236_v29 }
 0x7c0   : > { %6239 = vadd.xlane.f32.xlu1 %v6238_v35 }
 0x849   : > { %v6240_v60 = vpop.xlane.xlu1 %6239 }
 0x84a   : > { %v6241_v16 = vrot.slane %v6240_v60, 4 }
 0x84c   : > { %v6242_v15 = vadd.f32 %v6241_v16, %v6240_v60  ;;  %v6406_v60 = vld [vmem:[%s10589_s14 + $0x8] sm:$0xff]  ;;  %v6405_v16 = vld [vmem:[%s10589_s14] sm:$0xff] }
 0x84d   : > { %10107 = vmatprep.subr.mxu1 %v6406_v60 }
 0x84e   : > { %v6243_v26 = vrot.slane %v6242_v15, 2  ;;  %10108 = vmatpush3.msra.mxu1 %v6406_v60 }
 0x84f   : > { %10109 = vmatprep.subr.mxu1 %v6405_v16 }
 0x850   : > { %v6244_v3 = vadd.f32 %v6243_v26, %v6242_v15  ;;  %10110 = vmatpush3.msra.mxu1 %v6405_v16 }
 0x852   : > { %v6245_v45 = vrot.slane %v6244_v3, 1 }
 0x854   : > { %v6246_v4 = vadd.f32 %v6245_v45, %v6244_v3 }
 0x856   : > { %10374 = vpush %v6246_v4 }
 0x887   : > { %s10375_s16 = spop %10374 }
 0x888   : > { %s6248_s15 = smul.f32 0.0006510417, %s10375_s16 }
 0x88a   : > { %v6249_v28 = vstv %s6248_s15 }
 0x88b   : > { %v14402_v12 = vsub.f32 %v14353_v32, %v6249_v28  ;;  %v14405_v10 = vsub.f32 %v14350_v49, %v6249_v28  ;;  %v14408_v61 = vsub.f32 %v14363_v0, %v6249_v28  ;;  %v14411_v36 = vsub.f32 %v14360_v20, %v6249_v28 }
 0x88c   : > { %v14418_v17 = vsub.f32 %v14375_v58, %v6249_v28  ;;  %v14423_v49 = vsub.f32 %v14372_v9, %v6249_v28  ;;  %v14429_v1 = vsub.f32 %v6208_v21, %v6249_v28  ;;  %v14434_v6 = vsub.f32 %v6209_v7, %v6249_v28 }
 0x88d   : > { %v6262_v11 = vmul.f32 %v14402_v12, %v14402_v12  ;;  %v6263_v31 = vmul.f32 %v14405_v10, %v14405_v10  ;;  %v6264_v32 = vmul.f32 %v14408_v61, %v14408_v61  ;;  %v6265_v0 = vmul.f32 %v14411_v36, %v14411_v36 }
 0x88e   : > { %v6266_v58 = vmul.f32 %v14418_v17, %v14418_v17  ;;  %v6267_v9 = vmul.f32 %v14423_v49, %v14423_v49  ;;  %v14439_v24 = vsub.f32 %v6210_v39, %v6249_v28  ;;  %v6268_v62 = vmul.f32 %v14429_v1, %v14429_v1 }
 0x88f   : > { %v6274_v20 = vsel %vm2334_vm2, %v6262_v11, 0.0  ;;  %v6275_v52 = vsel %vm2334_vm2, %v6263_v31, 0.0  ;;  %v6277_v63 = vsel %vm2334_vm2, %v6264_v32, 0.0  ;;  %v6279_v18 = vsel %vm2334_vm2, %v6265_v0, 0.0  ;;  %v14474_v0 = vld [vmem:[%s10579_s3] ss:$0 sm:$0xff] }
 0x890   : > { %v6276_v50 = vadd.f32 %v6275_v52, %v6274_v20  ;;  %v6281_v43 = vsel %vm2334_vm2, %v6266_v58, 0.0  ;;  %v14444_v53 = vsub.f32 %v6211_v42, %v6249_v28  ;;  %v6269_v7 = vmul.f32 %v14434_v6, %v14434_v6 }
 0x891   : > { %v6283_v21 = vsel %vm2334_vm2, %v6267_v9, 0.0  ;;  %v14449_v55 = vsub.f32 %v6212_v14, %v6249_v28  ;;  %v6270_v30 = vmul.f32 %v14439_v24, %v14439_v24  ;;  %v6285_v27 = vsel %vm2334_vm2, %v6268_v62, 0.0 }
 0x892   : > { %v6278_v13 = vadd.f32 %v6277_v63, %v6276_v50  ;;  %v14454_v38 = vsub.f32 %v6213_v44, %v6249_v28  ;;  %v6271_v47 = vmul.f32 %v14444_v53, %v14444_v53  ;;  %v6287_v56 = vsel %vm2334_vm2, %v6269_v7, 0.0  ;;  %v8955_v28 = vld [vmem:[%s10589_s14 + $0x28] sm:$0xff]  ;;  %v14485_v63 = vld [vmem:[%s10584_s8] ss:$0 sm:$0xff] }
 0x893   : > { %v6272_v33 = vmul.f32 %v14449_v55, %v14449_v55  ;;  %v6289_v5 = vsel %vm2334_vm2, %v6270_v30, 0.0  ;;  %10123 = vmatprep.subr.mxu0 %v8955_v28 }
 0x894   : > { %v6280_v54 = vadd.f32 %v6279_v18, %v6278_v13  ;;  %v6273_v39 = vmul.f32 %v14454_v38, %v14454_v38  ;;  %v6291_v46 = vsel %vm2334_vm2, %v6271_v47, 0.0 }
 0x895   : > { %v6293_v40 = vsel %vm2334_vm2, %v6272_v33, 0.0 }
 0x896   : > { %v6282_v22 = vadd.f32 %v6281_v43, %v6280_v54  ;;  %v6295_v2 = vsel %vm2334_vm2, %v6273_v39, 0.0 }
 0x898   : > { %v6284_v19 = vadd.f32 %v6283_v21, %v6282_v22 }
 0x89a   : > { %v6286_v37 = vadd.f32 %v6285_v27, %v6284_v19 }
 0x89c   : > { %v6288_v48 = vadd.f32 %v6287_v56, %v6286_v37 }
 0x89e   : > { %v6290_v42 = vadd.f32 %v6289_v5, %v6288_v48 }
 0x8a0   : > { %v6292_v59 = vadd.f32 %v6291_v46, %v6290_v42 }
 0x8a2   : > { %v6294_v51 = vadd.f32 %v6293_v40, %v6292_v59  ;;  %v8954_v59 = vld [vmem:[%s10589_s14 + $0x20] sm:$0xff] }
 0x8a4   : > { %v6296_v41 = vadd.f32 %v6295_v2, %v6294_v51 }
 0x8a6   : > { %6297 = vadd.xlane.f32.xlu1 %v6296_v41 }
 0x92f   : > { %v6298_v44 = vpop.xlane.xlu1 %6297 }
 0x930   : > { %v6299_v14 = vrot.slane %v6298_v44, 4 }
 0x932   : > { %v6300_v57 = vadd.f32 %v6299_v14, %v6298_v44 }
 0x934   : > { %v6301_v25 = vrot.slane %v6300_v57, 2 }
 0x936   : > { %v6302_v29 = vadd.f32 %v6301_v25, %v6300_v57 }
 0x938   : > { %v6303_v8 = vrot.slane %v6302_v29, 1 }
 0x93a   : > { %v6304_v35 = vadd.f32 %v6303_v8, %v6302_v29 }
 0x93c   : > { %10376 = vpush %v6304_v35 }
 0x96d   : > { %s10377_s18 = spop %10376 }
 0x96e   : > { %s6306_s0 = smul.f32 0.0006514658, %s10377_s18  ;;  %s15872_s18 = sld [smem:[#allocation3_spill]] }
 0x970   : > { %v6307_v23 = vstv %s6306_s0 }
 0x971   : > { %10468 = vrsqrt.f32 %v6307_v23  ;;  %vm6310_vm9 = vcmp.eq.f32.partialorder %v6307_v23, inf  ;;  %v6313_v3 = vand.u32 2147483648, %v6307_v23  ;;  %vm6312_vm10 = vcmp.eq.f32.partialorder %v6307_v23, 0.0 }
 0x97e   : > { %v10469_v15 = vpop.eup %10468 }
 0x97f   : > { %v6309_v26 = vmul.f32 %v10469_v15, %v6307_v23 }
 0x981   : > { %v6311_v45 = vsel %vm6310_vm9, %v6307_v23, %v6309_v26 }
 0x982   : > { %v6314_v4 = vsel %vm6312_vm10, %v6313_v3, %v6311_v45 }
 0x983   : > { %10378 = vpush %v6314_v4 }
 0x9b4   : > { %s10379_s12 = spop %10378 }
 0x9b5   : > { %s6316_s26 = sadd.f32 1e-05, %s10379_s12 }
 0x9b7   : > { %v6317_v11 = vstv %s6316_s26  ;;  %s15873_s26 = sld [smem:[#allocation6_spill]] }
 0x9b8   : > { %10470 = vrcp.f32 %v6317_v11 }
 0x9c5   : > { %v10471_v31 = vpop.eup %10470 }
 0x9c6   : > { %10380 = vpush %v10471_v31 }
 0x9f7   : > { %s10381_s28 = spop %10380 }
 0x9f8   : > { %v14471_v32 = vstv %s10381_s28 }
 0x9f9   : > { %v6323_v20 = vmul.f32 %v14471_v32, %v14408_v61  ;;  %v6321_v52 = vmul.f32 %v14471_v32, %v14402_v12  ;;  %v6324_v50 = vmul.f32 %v14471_v32, %v14411_v36  ;;  %v6322_v58 = vmul.f32 %v14471_v32, %v14405_v10 }
 0x9fa   : > { %v6325_v13 = vmul.f32 %v14471_v32, %v14418_v17  ;;  %v6326_v9 = vmul.f32 %v14471_v32, %v14423_v49  ;;  %v6327_v61 = vmul.f32 %v14471_v32, %v14429_v1  ;;  %v6328_v12 = vmul.f32 %v14471_v32, %v14434_v6 }
 0x9fb   : > { %v6341_v18 = vmul.f32 %v14474_v0, %v6323_v20  ;;  %v6339_v36 = vmul.f32 %v14474_v0, %v6321_v52  ;;  %v6342_v10 = vmul.f32 %v14474_v0, %v6324_v50  ;;  %v6340_v54 = vmul.f32 %v14474_v0, %v6322_v58 }
 0x9fc   : > { %v6343_v62 = vmul.f32 %v14474_v0, %v6325_v13  ;;  %v6344_v17 = vmul.f32 %v14474_v0, %v6326_v9  ;;  %v6345_v49 = vmul.f32 %v14474_v0, %v6327_v61  ;;  %v6346_v30 = vmul.f32 %v14474_v0, %v6328_v12 }
 0x9fd   : > { %v6359_v43 = vadd.f32 %v14485_v63, %v6341_v18  ;;  %v6357_v1 = vadd.f32 %v14485_v63, %v6339_v36  ;;  %v6360_v6 = vadd.f32 %v14485_v63, %v6342_v10  ;;  %v6358_v22 = vadd.f32 %v14485_v63, %v6340_v54 }
 0x9fe   : > { %v6361_v7 = vadd.f32 %v14485_v63, %v6343_v62  ;;  %v6362_v21 = vadd.f32 %v14485_v63, %v6344_v17  ;;  %v6363_v19 = vadd.f32 %v14485_v63, %v6345_v49  ;;  %v6364_v40 = vadd.f32 %v14485_v63, %v6346_v30 }
 0x9ff   : > { %vm6371_vm11 = vcmp.ge.f32.partialorder %v6359_v43, 0.0  ;;  %v6383_v27 = vmul.f32 0.01, %v6359_v43  ;;  %vm6369_vm12 = vcmp.ge.f32.partialorder %v6357_v1, 0.0  ;;  %v6381_v37 = vmul.f32 0.01, %v6357_v1 }
 0xa00   : > { %vm6372_vm13 = vcmp.ge.f32.partialorder %v6360_v6, 0.0  ;;  %v6384_v47 = vmul.f32 0.01, %v6360_v6  ;;  %vm6370_vm14 = vcmp.ge.f32.partialorder %v6358_v22, 0.0  ;;  %v6382_v56 = vmul.f32 0.01, %v6358_v22 }
 0xa01   : > { %v6395_v48 = vsel %vm6371_vm11, %v6359_v43, %v6383_v27  ;;  %v6393_v33 = vsel %vm6369_vm12, %v6357_v1, %v6381_v37  ;;  %vm6373_vm15 = vcmp.ge.f32.partialorder %v6361_v7, 0.0  ;;  %v6385_v5 = vmul.f32 0.01, %v6361_v7  ;;  %v8964_v43 = vld [vmem:[%s10594_s19] ss:$0 sm:$0xff] }
 0xa02   : > { %10095 = vmatprep.mubr.msk.f32.mxu0 %vm2334_vm2, %v6395_v48  ;;  %10111 = vmatprep.mubr.msk.f32.mxu1 %vm2334_vm2, %v6393_v33  ;;  %v6396_v42 = vsel %vm6372_vm13, %v6360_v6, %v6384_v47  ;;  %v6394_v39 = vsel %vm6370_vm14, %v6358_v22, %v6382_v56  ;;  %v6386_v46 = vmul.f32 0.01, %v6362_v21  ;;  %vm6374_vm1 = vcmp.ge.f32.partialorder %v6362_v21, 0.0 }
 0xa03   : > { %10096 = vmatmul.mubr.msk.f32.vlgmr.msra.gmra.mxu0 %vm2334_vm2, %v6396_v42  ;;  %10112 = vmatmul.mubr.msk.f32.vlgmr.msra.gmra.mxu1 %vm2334_vm2, %v6394_v39  ;;  %v6397_v51 = vsel %vm6373_vm15, %v6361_v7, %v6385_v5  ;;  %v6387_v2 = vmul.f32 0.01, %v6363_v19  ;;  %vm6375_vm3 = vcmp.ge.f32.partialorder %v6363_v19, 0.0  ;;  %v6329_v41 = vmul.f32 %v14471_v32, %v14439_v24 }
 0xa04   : > { %10124 = vmatpush3.msra.mxu0 %v8955_v28  ;;  %10098 = vmatprep.mubr.msk.f32.mxu0 %vm2334_vm2, %v6397_v51  ;;  %v6330_v34 = vmul.f32 %v14471_v32, %v14444_v53  ;;  %v6398_v44 = vsel %vm6374_vm1, %v6362_v21, %v6386_v46  ;;  %v6388_v14 = vmul.f32 0.01, %v6364_v40  ;;  %vm6376_vm4 = vcmp.ge.f32.partialorder %v6364_v40, 0.0 }
 0xa05   : > { %10114 = vmatprep.mubr.msk.f32.mxu1 %vm2334_vm2, %v6395_v48  ;;  %10125 = vmatprep.subr.mxu0 %v8954_v59  ;;  %v6347_v57 = vmul.f32 %v14474_v0, %v6329_v41  ;;  %v6399_v29 = vsel %vm6375_vm3, %v6363_v19, %v6387_v2  ;;  %v6331_v60 = vmul.f32 %v14471_v32, %v14449_v55 }
 0xa06   : > { %10126 = vmatpush3.msra.mxu0 %v8954_v59  ;;  %v6348_v25 = vmul.f32 %v14474_v0, %v6330_v34  ;;  %v6400_v8 = vsel %vm6376_vm4, %v6364_v40, %v6388_v14  ;;  %v6332_v26 = vmul.f32 %v14471_v32, %v14454_v38 }
 0xa07   : > { %10099 = vmatmul.mubr.msk.f32.gmra.mxu0 %vm2334_vm2, %v6398_v44  ;;  %10115 = vmatmul.mubr.msk.f32.gmra.mxu1 %vm2334_vm2, %v6396_v42  ;;  %v6365_v24 = vadd.f32 %v14485_v63, %v6347_v57  ;;  %v6349_v3 = vmul.f32 %v14474_v0, %v6331_v60 }
 0xa08   : > { %10101 = vmatprep.mubr.msk.f32.mxu0 %vm2334_vm2, %v6399_v29  ;;  %10117 = vmatprep.mubr.msk.f32.mxu1 %vm2334_vm2, %v6397_v51  ;;  %v6366_v53 = vadd.f32 %v14485_v63, %v6348_v25  ;;  %v6350_v45 = vmul.f32 %v14474_v0, %v6332_v26 }
 0xa09   : > { %vm6377_vm5 = vcmp.ge.f32.partialorder %v6365_v24, 0.0  ;;  %v6389_v35 = vmul.f32 0.01, %v6365_v24  ;;  %v6367_v55 = vadd.f32 %v14485_v63, %v6349_v3 }
 0xa0a   : > { %v6390_v23 = vmul.f32 0.01, %v6366_v53  ;;  %vm6378_vm6 = vcmp.ge.f32.partialorder %v6366_v53, 0.0  ;;  %v6368_v4 = vadd.f32 %v14485_v63, %v6350_v45 }
 0xa0b   : > { %10102 = vmatmul.mubr.msk.f32.gmra.mxu0 %vm2334_vm2, %v6400_v8  ;;  %10118 = vmatmul.mubr.msk.f32.gmra.mxu1 %vm2334_vm2, %v6398_v44  ;;  %v6401_v16 = vsel %vm6377_vm5, %v6365_v24, %v6389_v35  ;;  %v6391_v38 = vmul.f32 0.01, %v6367_v55  ;;  %vm6379_vm7 = vcmp.ge.f32.partialorder %v6367_v55, 0.0 }
 0xa0c   : > { %10120 = vmatprep.mubr.msk.f32.mxu1 %vm2334_vm2, %v6399_v29  ;;  %10104 = vmatprep.mubr.msk.f32.mxu0 %vm2334_vm2, %v6401_v16  ;;  %v6402_v15 = vsel %vm6378_vm6, %v6366_v53, %v6390_v23  ;;  %v6392_v28 = vmul.f32 0.01, %v6368_v4  ;;  %vm6380_vm8 = vcmp.ge.f32.partialorder %v6368_v4, 0.0 }
 0xa0d   : > { %v6403_v11 = vsel %vm6379_vm7, %v6367_v55, %v6391_v38  ;;  %vm10534_vm7 = vmmov 0  }
 0xa0e   : > { %v6404_v31 = vsel %vm6380_vm8, %v6368_v4, %v6392_v28 }
 0xa0f   : > { %10105 = vmatmul.mubr.msk.f32.gmra.mxu0 %vm2334_vm2, %v6402_v15  ;;  %10121 = vmatmul.mubr.msk.f32.gmra.mxu1 %vm2334_vm2, %v6400_v8 }
 0xa10   : > { %10127 = vmatprep.mubr.msk.f32.mxu0 %vm2334_vm2, %v6397_v51 }
 0xa13   : > { %10128 = vmatmul.mubr.msk.f32.vlgmr.msra.gmra.mxu0 %vm2334_vm2, %v6398_v44 }
 0xa14   : > { %10130 = vmatprep.mubr.msk.f32.mxu0 %vm2334_vm2, %v6399_v29 }
 0xa17   : > { %10131 = vmatmul.mubr.msk.f32.gmra.mxu0 %vm2334_vm2, %v6400_v8 }
 0xa18   : > { %10133 = vmatprep.mubr.msk.f32.mxu0 %vm2334_vm2, %v6401_v16 }
 0xa1b   : > { %10134 = vmatmul.mubr.msk.f32.gmra.mxu0 %vm2334_vm2, %v6402_v15 }
 0xa1c   : > { %10136 = vmatprep.mubr.msk.f32.mxu0 %vm2334_vm2, %v6403_v11 }
 0xa1f   : > { %10137 = vmatmul.mubr.msk.f32.gmra.mxu0 %vm2334_vm2, %v6404_v31  ;;  %vm6789_vm2 = vcmask 523264  }
 0xac3   : > { %v10097_v32 = vpop.f32.mrf.mxu0  ;;  %v10113_v0 = vpop.f32.mrf.mxu1 }
 0xac4   : > { %v6617_v10 = vadd.f32 %v10113_v0, %v10097_v32 }
 0xac5   : > { %v6500_v20 = vpop.f32.mrf.mxu0  ;;  %v6611_v52 = vpop.f32.mrf.mxu1 }
 0xac6   : > { %v6612_v62 = vadd.f32 %v6611_v52, %v6500_v20 }
 0xac7   : > { %v10100_v50 = vpop.f32.mrf.mxu0  ;;  %v10116_v58 = vpop.f32.mrf.mxu1 }
 0xac8   : > { %v6627_v6 = vadd.f32 %v10116_v58, %v10100_v50 }
 0xac9   : > { %v6510_v63 = vpop.f32.mrf.mxu0  ;;  %v6621_v9 = vpop.f32.mrf.mxu1 }
 0xaca   : > { %v6622_v21 = vadd.f32 %v6621_v9, %v6510_v63 }
 0xacb   : > { %v10103_v13 = vpop.f32.mrf.mxu0  ;;  %v10119_v18 = vpop.f32.mrf.mxu1 }
 0xacc   : > { %v6637_v56 = vadd.f32 %v10119_v18, %v10103_v13 }
 0xacd   : > { %v6520_v61 = vpop.f32.mrf.mxu0  ;;  %v6631_v17 = vpop.f32.mrf.mxu1 }
 0xace   : > { %v6632_v5 = vadd.f32 %v6631_v17, %v6520_v61 }
 0xacf   : > { %v10106_v12 = vpop.f32.mrf.mxu0  ;;  %v10122_v19 = vpop.f32.mrf.mxu1 }
 0xad0   : > { %v6647_v34 = vadd.f32 %v10122_v19, %v10106_v12 }
 0xad1   : > { %v6530_v36 = vpop.f32.mrf.mxu0  ;;  %v6641_v39 = vpop.f32.mrf.mxu1 }
 0xad2   : > { %v6642_v57 = vadd.f32 %v6641_v39, %v6530_v36 }
 0xad3   : > { %v10129_v54 = vpop.f32.mrf.mxu0 }
 0xad4   : > { %v6765_v49 = vadd.f32 %v10129_v54, %v6617_v10 }
 0xad5   : > { %v6725_v1 = vpop.f32.mrf.mxu0 }
 0xad6   : > { %v6764_v22 = vadd.f32 %v6725_v1, %v6612_v62  ;;  %v6780_v30 = vadd.f32 %v8964_v43, %v6765_v49 }
 0xad7   : > { %v10132_v7 = vpop.f32.mrf.mxu0 }
 0xad8   : > { %v6779_v27 = vadd.f32 %v8964_v43, %v6764_v22  ;;  %v6767_v37 = vadd.f32 %v10132_v7, %v6627_v6  ;;  %v6791_v46 = vsel %vm6789_vm2, %v6780_v30, 0.0 }
 0xad9   : > { %v6735_v47 = vpop.f32.mrf.mxu0 }
 0xada   : > { %v6790_v48 = vsel %vm6789_vm2, %v6779_v27, 0.0  ;;  %v6766_v33 = vadd.f32 %v6735_v47, %v6622_v21  ;;  %v6782_v59 = vadd.f32 %v8964_v43, %v6767_v37 }
 0xadb   : > { %v10135_v42 = vpop.f32.mrf.mxu0  ;;  %v6792_v2 = vadd.f32 %v6791_v46, %v6790_v48 }
 0xadc   : > { %v6781_v40 = vadd.f32 %v8964_v43, %v6766_v33  ;;  %v6769_v51 = vadd.f32 %v10135_v42, %v6637_v56  ;;  %v6795_v24 = vsel %vm6789_vm2, %v6782_v59, 0.0 }
 0xadd   : > { %v6745_v41 = vpop.f32.mrf.mxu0 }
 0xade   : > { %v6793_v44 = vsel %vm6789_vm2, %v6781_v40, 0.0  ;;  %v6768_v14 = vadd.f32 %v6745_v41, %v6632_v5  ;;  %v6784_v53 = vadd.f32 %v8964_v43, %v6769_v51 }
 0xadf   : > { %v6794_v25 = vadd.f32 %v6793_v44, %v6792_v2  ;;  %v10138_v29 = vpop.f32.mrf.mxu0 }
 0xae0   : > { %v6783_v8 = vadd.f32 %v8964_v43, %v6768_v14  ;;  %v6771_v35 = vadd.f32 %v10138_v29, %v6647_v34  ;;  %v6799_v3 = vsel %vm6789_vm2, %v6784_v53, 0.0  ;;  %v8974_v29 = vld [vmem:[%s10609_s6 + $0x78] sm:$0xff] }
 0xae1   : > { %v6796_v23 = vadd.f32 %v6795_v24, %v6794_v25  ;;  %v6755_v60 = vpop.f32.mrf.mxu0  ;;  %v6938_v24 = vld [vmem:[%s10609_s6 + $0x38] sm:$0xff]  ;;  %10139 = vmatprep.subr.mxu1 %v8974_v29 }
 0xae2   : > { %v6797_v16 = vsel %vm6789_vm2, %v6783_v8, 0.0  ;;  %v6770_v15 = vadd.f32 %v6755_v60, %v6642_v57  ;;  %v6786_v45 = vadd.f32 %v8964_v43, %v6771_v35  ;;  %10158 = vmatprep.subr.mxu0 %v6938_v24  ;;  %10140 = vmatpush3.msra.mxu1 %v8974_v29  ;;  %v8972_v35 = vld [vmem:[%s10609_s6 + $0x68] sm:$0xff] }
 0xae3   : > { %v6798_v26 = vadd.f32 %v6797_v16, %v6796_v23  ;;  %10159 = vmatpush3.msra.mxu0 %v6938_v24  ;;  %v6936_v23 = vld [vmem:[%s10609_s6 + $0x28] sm:$0xff]  ;;  %v8971_v16 = vld [vmem:[%s10609_s6 + $0x60] sm:$0xff] }
 0xae4   : > { %v6785_v55 = vadd.f32 %v8964_v43, %v6770_v15  ;;  %v6803_v11 = vsel %vm6789_vm2, %v6786_v45, 0.0  ;;  %v6935_v15 = vld [vmem:[%s10609_s6 + $0x20] sm:$0xff]  ;;  %v8984_v24 = vld [vmem:[%s10609_s6 + $0xa8] sm:$0xff] }
 0xae5   : > { %v6800_v4 = vadd.f32 %v6799_v3, %v6798_v26  ;;  %v8970_v26 = vld [vmem:[%s10609_s6 + $0x58] sm:$0xff] }
 0xae6   : > { %v6801_v38 = vsel %vm6789_vm2, %v6785_v55, 0.0  ;;  %v6934_v3 = vld [vmem:[%s10609_s6 + $0x18] sm:$0xff] }
 0xae7   : > { %v6802_v28 = vadd.f32 %v6801_v38, %v6800_v4  ;;  %v8968_v4 = vld [vmem:[%s10609_s6 + $0x48] sm:$0xff] }
 0xae8   : > { %v6932_v38 = vld [vmem:[%s10609_s6 + $0x8] sm:$0xff] }
 0xae9   : > { %v6804_v31 = vadd.f32 %v6803_v11, %v6802_v28 }
 0xaeb   : > { %6805 = vadd.xlane.f32.xlu0 %v6804_v31  ;;  %v8967_v31 = vld [vmem:[%s10609_s6 + $0x40] sm:$0xff] }
 0xb74   : > { %v6806_v32 = vpop.xlane.xlu0 %6805 }
 0xb75   : > { %v6807_v0 = vrot.slane %v6806_v32, 4 }
 0xb77   : > { %v6808_v20 = vadd.f32 %v6807_v0, %v6806_v32  ;;  %v6931_v32 = vld [vmem:[%s10609_s6] sm:$0xff] }
 0xb79   : > { %v6809_v52 = vrot.slane %v6808_v20, 2 }
 0xb7b   : > { %v6810_v50 = vadd.f32 %v6809_v52, %v6808_v20 }
 0xb7d   : > { %v6811_v58 = vrot.slane %v6810_v50, 1 }
 0xb7f   : > { %v6812_v63 = vadd.f32 %v6811_v58, %v6810_v50  ;;  %v8986_v50 = vld [vmem:[%s10609_s6 + $0xb8] sm:$0xff] }
 0xb80   : > { %v8996_v58 = vld [vmem:[%s10609_s6 + $0xf8] sm:$0xff] }
 0xb81   : > { %10382 = vpush %v6812_v63 }
 0xbb2   : > { %s10383_s1 = spop %10382 }
 0xbb3   : > { %s6814_s2 = smul.f32 0.00024414063, %s10383_s1 }
 0xbb5   : > { %v6815_v13 = vstv %s6814_s2  ;;  %s15874_s2 = sld [smem:[#allocation4_spill]] }
 0xbb6   : > { %v14561_v9 = vsub.f32 %v6779_v27, %v6815_v13  ;;  %v14563_v61 = vsub.f32 %v6780_v30, %v6815_v13  ;;  %v14565_v12 = vsub.f32 %v6781_v40, %v6815_v13  ;;  %v14567_v18 = vsub.f32 %v6782_v59, %v6815_v13 }
 0xbb7   : > { %v14569_v36 = vsub.f32 %v6783_v8, %v6815_v13  ;;  %v14577_v17 = vsub.f32 %v6784_v53, %v6815_v13  ;;  %v14583_v22 = vsub.f32 %v6785_v55, %v6815_v13  ;;  %v14588_v30 = vsub.f32 %v6786_v45, %v6815_v13  ;;  %v8973_v53 = vld [vmem:[%s10609_s6 + $0x70] sm:$0xff] }
 0xbb8   : > { %v6824_v10 = vmul.f32 %v14561_v9, %v14561_v9  ;;  %v6825_v54 = vmul.f32 %v14563_v61, %v14563_v61  ;;  %v6826_v62 = vmul.f32 %v14565_v12, %v14565_v12  ;;  %v6827_v49 = vmul.f32 %v14567_v18, %v14567_v18  ;;  %v6937_v8 = vld [vmem:[%s10609_s6 + $0x30] sm:$0xff]  ;;  %10141 = vmatprep.subr.mxu1 %v8973_v53 }
 0xbb9   : > { %v6828_v7 = vmul.f32 %v14569_v36, %v14569_v36  ;;  %v6829_v27 = vmul.f32 %v14577_v17, %v14577_v17  ;;  %v6830_v56 = vmul.f32 %v14583_v22, %v14583_v22  ;;  %v6831_v5 = vmul.f32 %v14588_v30, %v14588_v30  ;;  %10160 = vmatprep.subr.mxu0 %v6937_v8  ;;  %v8969_v45 = vld [vmem:[%s10609_s6 + $0x50] sm:$0xff] }
 0xbba   : > { %v6832_v43 = vsel %vm6789_vm2, %v6824_v10, 0.0  ;;  %v6833_v1 = vsel %vm6789_vm2, %v6825_v54, 0.0  ;;  %v6835_v21 = vsel %vm6789_vm2, %v6826_v62, 0.0  ;;  %v6837_v37 = vsel %vm6789_vm2, %v6827_v49, 0.0  ;;  %10142 = vmatpush3.msra.mxu1 %v8973_v53  ;;  %10161 = vmatpush3.msra.mxu0 %v6937_v8  ;;  %v6933_v55 = vld [vmem:[%s10609_s6 + $0x10] sm:$0xff]  ;;  %v8993_v53 = vld [vmem:[%s10609_s6 + $0xe0] sm:$0xff] }
 0xbbb   : > { %v6834_v6 = vadd.f32 %v6833_v1, %v6832_v43  ;;  %v6839_v48 = vsel %vm6789_vm2, %v6828_v7, 0.0  ;;  %v6841_v42 = vsel %vm6789_vm2, %v6829_v27, 0.0  ;;  %v6843_v46 = vsel %vm6789_vm2, %v6830_v56, 0.0  ;;  %10143 = vmatprep.subr.mxu1 %v8972_v35  ;;  %10162 = vmatprep.subr.mxu0 %v6936_v23  ;;  %v8965_v54 = vld [vmem:[%s10599_s24] ss:$0 sm:$0xff] }
 0xbbc   : > { %v6845_v40 = vsel %vm6789_vm2, %v6831_v5, 0.0  ;;  %10144 = vmatpush3.msra.mxu1 %v8972_v35  ;;  %10163 = vmatpush3.msra.mxu0 %v6936_v23  ;;  %v14623_v43 = vld [vmem:[%s10604_s30] ss:$0 sm:$0xff]  ;;  %v8982_v23 = vld [vmem:[%s10609_s6 + $0x98] sm:$0xff] }
 0xbbd   : > { %v6836_v19 = vadd.f32 %v6835_v21, %v6834_v6  ;;  %10145 = vmatprep.subr.mxu1 %v8971_v16  ;;  %10164 = vmatprep.subr.mxu0 %v6935_v15 }
 0xbbe   : > { %10146 = vmatpush3.msra.mxu1 %v8971_v16  ;;  %10165 = vmatpush3.msra.mxu0 %v6935_v15  ;;  %v8981_v16 = vld [vmem:[%s10609_s6 + $0x90] sm:$0xff] }
 0xbbf   : > { %v6838_v47 = vadd.f32 %v6837_v37, %v6836_v19  ;;  %10147 = vmatprep.subr.mxu1 %v8970_v26  ;;  %10166 = vmatprep.subr.mxu0 %v6934_v3  ;;  %v8991_v15 = vld [vmem:[%s10609_s6 + $0xd0] sm:$0xff] }
 0xbc0   : > { %10148 = vmatpush3.msra.mxu1 %v8970_v26  ;;  %10167 = vmatpush3.msra.mxu0 %v6934_v3 }
 0xbc1   : > { %v6840_v33 = vadd.f32 %v6839_v48, %v6838_v47  ;;  %10149 = vmatprep.subr.mxu1 %v8969_v45  ;;  %10168 = vmatprep.subr.mxu0 %v6933_v55 }
 0xbc2   : > { %10150 = vmatpush3.msra.mxu1 %v8969_v45  ;;  %10169 = vmatpush3.msra.mxu0 %v6933_v55  ;;  %v8980_v45 = vld [vmem:[%s10609_s6 + $0x88] sm:$0xff] }
 0xbc3   : > { %v6842_v39 = vadd.f32 %v6841_v42, %v6840_v33  ;;  %10151 = vmatprep.subr.mxu1 %v8968_v4  ;;  %10170 = vmatprep.subr.mxu0 %v6932_v38  ;;  %v8990_v55 = vld [vmem:[%s10609_s6 + $0xc8] sm:$0xff] }
 0xbc4   : > { %10152 = vmatpush3.msra.mxu1 %v8968_v4  ;;  %10171 = vmatpush3.msra.mxu0 %v6932_v38  ;;  %v8979_v4 = vld [vmem:[%s10609_s6 + $0x80] sm:$0xff] }
 0xbc5   : > { %v6844_v59 = vadd.f32 %v6843_v46, %v6842_v39  ;;  %10153 = vmatprep.subr.mxu1 %v8967_v31  ;;  %10172 = vmatprep.subr.mxu0 %v6931_v32  ;;  %v8989_v38 = vld [vmem:[%s10609_s6 + $0xc0] sm:$0xff] }
 0xbc6   : > { %10154 = vmatpush3.msra.mxu1 %v8967_v31  ;;  %10173 = vmatpush3.msra.mxu0 %v6931_v32 }
 0xbc7   : > { %v6846_v51 = vadd.f32 %v6845_v40, %v6844_v59  ;;  %10177 = vmatprep.subr.mxu1 %v8986_v50  ;;  %10196 = vmatprep.subr.mxu0 %v8996_v58 }
 0xbc9   : > { %6847 = vadd.xlane.f32.xlu1 %v6846_v51 }
 0xc52   : > { %v6848_v2 = vpop.xlane.xlu1 %6847 }
 0xc53   : > { %v6849_v41 = vrot.slane %v6848_v2, 4 }
 0xc55   : > { %v6850_v34 = vadd.f32 %v6849_v41, %v6848_v2 }
 0xc57   : > { %v6851_v44 = vrot.slane %v6850_v34, 2 }
 0xc59   : > { %v6852_v14 = vadd.f32 %v6851_v44, %v6850_v34  ;;  %v8985_v34 = vld [vmem:[%s10609_s6 + $0xb0] sm:$0xff] }
 0xc5b   : > { %v6853_v57 = vrot.slane %v6852_v14, 1 }
 0xc5d   : > { %v6854_v25 = vadd.f32 %v6853_v57, %v6852_v14  ;;  %v8995_v57 = vld [vmem:[%s10609_s6 + $0xf0] sm:$0xff] }
 0xc5f   : > { %10384 = vpush %v6854_v25 }
 0xc90   : > { %s10385_s7 = spop %10384 }
 0xc91   : > { %s6856_s10 = smul.f32 0.00024420026, %s10385_s7  ;;  %s15875_s7 = sld [smem:[#allocation5_spill]] }
 0xc93   : > { %v6857_v60 = vstv %s6856_s10 }
 0xc94   : > { %10472 = vrsqrt.f32 %v6857_v60  ;;  %vm6860_vm9 = vcmp.eq.f32.partialorder %v6857_v60, inf  ;;  %v6863_v0 = vand.u32 2147483648, %v6857_v60  ;;  %vm6862_vm10 = vcmp.eq.f32.partialorder %v6857_v60, 0.0 }
 0xca1   : > { %v10473_v28 = vpop.eup %10472 }
 0xca2   : > { %v6859_v11 = vmul.f32 %v10473_v28, %v6857_v60 }
 0xca4   : > { %v6861_v20 = vsel %vm6860_vm9, %v6857_v60, %v6859_v11  ;;  %v8992_v60 = vld [vmem:[%s10609_s6 + $0xd8] sm:$0xff] }
 0xca5   : > { %v6864_v52 = vsel %vm6862_vm10, %v6863_v0, %v6861_v20 }
 0xca6   : > { %10386 = vpush %v6864_v52 }
 0xcd7   : > { %s10387_s11 = spop %10386 }
 0xcd8   : > { %s6866_s16 = sadd.f32 1e-05, %s10387_s11 }
 0xcda   : > { %v6867_v63 = vstv %s6866_s16 }
 0xcdb   : > { %10474 = vrcp.f32 %v6867_v63 }
 0xce8   : > { %v10475_v13 = vpop.eup %10474 }
 0xce9   : > { %10388 = vpush %v10475_v13 }
 0xd1a   : > { %s10389_s15 = spop %10388 }
 0xd1b   : > { %v6870_v10 = vstv %s10389_s15  ;;  %s15876_s15 = sld [smem:[#allocation7_spill]] }
 0xd1c   : > { %v6872_v62 = vmul.f32 %v6870_v10, %v14563_v61  ;;  %v6874_v49 = vmul.f32 %v6870_v10, %v14567_v18  ;;  %v6873_v1 = vmul.f32 %v6870_v10, %v14565_v12  ;;  %v6871_v6 = vmul.f32 %v6870_v10, %v14561_v9 }
 0xd1d   : > { %v6875_v7 = vmul.f32 %v6870_v10, %v14569_v36  ;;  %v6877_v21 = vmul.f32 %v6870_v10, %v14583_v22  ;;  %v6876_v44 = vmul.f32 %v6870_v10, %v14577_v17  ;;  %v6878_v14 = vmul.f32 %v6870_v10, %v14588_v30  ;;  %v8994_v17 = vld [vmem:[%s10609_s6 + $0xe8] sm:$0xff]  ;;  %v8983_v30 = vld [vmem:[%s10609_s6 + $0xa0] sm:$0xff] }
 0xd1e   : > { %v6888_v19 = vmul.f32 %v8965_v54, %v6874_v49  ;;  %v6886_v27 = vmul.f32 %v8965_v54, %v6872_v62  ;;  %v6887_v37 = vmul.f32 %v8965_v54, %v6873_v1  ;;  %v6885_v47 = vmul.f32 %v8965_v54, %v6871_v6  ;;  %v8999_v62 = vld [vmem:[%s15872_s18] ss:$0 sm:$0xff]  ;;  %s15877_s18 = sld [smem:[#allocation10_spill]] }
 0xd1f   : > { %v6889_v56 = vmul.f32 %v8965_v54, %v6875_v7  ;;  %v6891_v48 = vmul.f32 %v8965_v54, %v6877_v21  ;;  %v6890_v8 = vmul.f32 %v8965_v54, %v6876_v44  ;;  %v6892_v35 = vmul.f32 %v8965_v54, %v6878_v14 }
 0xd20   : > { %v6902_v61 = vadd.f32 %v14623_v43, %v6888_v19  ;;  %v6900_v18 = vadd.f32 %v14623_v43, %v6886_v27  ;;  %v6901_v33 = vadd.f32 %v14623_v43, %v6887_v37  ;;  %v6899_v12 = vadd.f32 %v14623_v43, %v6885_v47 }
 0xd21   : > { %v6903_v9 = vadd.f32 %v14623_v43, %v6889_v56  ;;  %v6905_v36 = vadd.f32 %v14623_v43, %v6891_v48  ;;  %v6904_v26 = vadd.f32 %v14623_v43, %v6890_v8  ;;  %v6906_v3 = vadd.f32 %v14623_v43, %v6892_v35 }
 0xd22   : > { %vm6910_vm11 = vcmp.ge.f32.partialorder %v6902_v61, 0.0  ;;  %v6918_v22 = vmul.f32 0.01, %v6902_v61  ;;  %vm6908_vm12 = vcmp.ge.f32.partialorder %v6900_v18, 0.0  ;;  %v6916_v5 = vmul.f32 0.01, %v6900_v18 }
 0xd23   : > { %vm6909_vm13 = vcmp.ge.f32.partialorder %v6901_v33, 0.0  ;;  %v6917_v42 = vmul.f32 0.01, %v6901_v33  ;;  %vm6907_vm14 = vcmp.ge.f32.partialorder %v6899_v12, 0.0  ;;  %v6915_v39 = vmul.f32 0.01, %v6899_v12 }
 0xd24   : > { %v6926_v46 = vsel %vm6910_vm11, %v6902_v61, %v6918_v22  ;;  %v6924_v59 = vsel %vm6908_vm12, %v6900_v18, %v6916_v5  ;;  %v6919_v40 = vmul.f32 0.01, %v6903_v9  ;;  %vm6911_vm15 = vcmp.ge.f32.partialorder %v6903_v9, 0.0 }
 0xd25   : > { %v6925_v51 = vsel %vm6909_vm13, %v6901_v33, %v6917_v42  ;;  %v6923_v2 = vsel %vm6907_vm14, %v6899_v12, %v6915_v39  ;;  %v6921_v41 = vmul.f32 0.01, %v6905_v36  ;;  %vm6913_vm1 = vcmp.ge.f32.partialorder %v6905_v36, 0.0 }
 0xd26   : > { %10155 = vmatprep.mubr.msk.f32.mxu1 %vm6789_vm2, %v6925_v51  ;;  %10174 = vmatprep.mubr.msk.f32.mxu0 %vm6789_vm2, %v6923_v2  ;;  %v6927_v25 = vsel %vm6911_vm15, %v6903_v9, %v6919_v40  ;;  %v6920_v28 = vmul.f32 0.01, %v6904_v26  ;;  %v6922_v11 = vmul.f32 0.01, %v6906_v3  ;;  %vm6912_vm3 = vcmp.ge.f32.partialorder %v6904_v26, 0.0 }
 0xd27   : > { %10156 = vmatmul.mubr.msk.f32.vlgmr.msra.gmra.mxu1 %vm6789_vm2, %v6926_v46  ;;  %10175 = vmatmul.mubr.msk.f32.vlgmr.msra.gmra.mxu0 %vm6789_vm2, %v6924_v59  ;;  %v6929_v29 = vsel %vm6913_vm1, %v6905_v36, %v6921_v41  ;;  %vm6914_vm4 = vcmp.ge.f32.partialorder %v6906_v3, 0.0  ;;  %vm7956_vm11 = vcmask 1042432   ;;  %vm8348_vm15 = vcmask 1040384  }
 0xd28   : > { %10178 = vmatpush3.msra.mxu1 %v8986_v50  ;;  %10197 = vmatpush3.msra.mxu0 %v8996_v58  ;;  %v6928_v31 = vsel %vm6912_vm3, %v6904_v26, %v6920_v28  ;;  %v6930_v32 = vsel %vm6914_vm4, %v6906_v3, %v6922_v11  ;;  %v9007_v26 = vld [vmem:[%s15873_s26 + $0x68] sm:$0xff]  ;;  %v7378_v3 = vld [vmem:[%s15873_s26 + $0x20] sm:$0xff]  ;;  %v9004_v28 = vld [vmem:[%s15873_s26 + $0x50] sm:$0xff] }
 0xd29   : > { %10179 = vmatprep.subr.mxu1 %v8985_v34  ;;  %10193 = vmatprep.mubr.msk.f32.mxu1 %vm6789_vm2, %v6927_v25  ;;  %v7381_v25 = vld [vmem:[%s15873_s26 + $0x38] sm:$0xff]  ;;  %v7375_v11 = vld [vmem:[%s15873_s26 + $0x8] sm:$0xff] }
 0xd2a   : > { %10198 = vmatprep.subr.mxu0 %v8995_v57  ;;  %10212 = vmatprep.mubr.msk.f32.mxu0 %vm6789_vm2, %v6929_v29  ;;  %v9009_v29 = vld [vmem:[%s15873_s26 + $0x78] sm:$0xff] }
 0xd2b   : > { %10180 = vmatpush3.msra.mxu1 %v8985_v34  ;;  %10199 = vmatpush3.msra.mxu0 %v8995_v57 }
 0xd2c   : > { %10181 = vmatprep.subr.mxu1 %v8984_v24  ;;  %10200 = vmatprep.subr.mxu0 %v8994_v17 }
 0xd2d   : > { %10182 = vmatpush3.msra.mxu1 %v8984_v24  ;;  %10201 = vmatpush3.msra.mxu0 %v8994_v17  ;;  %v10533_v24 = vmov 0.0   ;;  %v7380_v17 = vld [vmem:[%s15873_s26 + $0x30] sm:$0xff] }
 0xd2e   : > { %10183 = vmatprep.subr.mxu1 %v8983_v30  ;;  %10202 = vmatprep.subr.mxu0 %v8993_v53 }
 0xd2f   : > { %10184 = vmatpush3.msra.mxu1 %v8983_v30  ;;  %10203 = vmatpush3.msra.mxu0 %v8993_v53  ;;  %v9008_v30 = vld [vmem:[%s15873_s26 + $0x70] sm:$0xff]  ;;  %v7379_v53 = vld [vmem:[%s15873_s26 + $0x28] sm:$0xff] }
 0xd30   : > { %10185 = vmatprep.subr.mxu1 %v8982_v23  ;;  %10204 = vmatprep.subr.mxu0 %v8992_v60 }
 0xd31   : > { %10186 = vmatpush3.msra.mxu1 %v8982_v23  ;;  %10205 = vmatpush3.msra.mxu0 %v8992_v60 }
 0xd32   : > { %10187 = vmatprep.subr.mxu1 %v8981_v16  ;;  %10206 = vmatprep.subr.mxu0 %v8991_v15 }
 0xd33   : > { %10188 = vmatpush3.msra.mxu1 %v8981_v16  ;;  %10207 = vmatpush3.msra.mxu0 %v8991_v15 }
 0xd34   : > { %10189 = vmatprep.subr.mxu1 %v8980_v45  ;;  %10208 = vmatprep.subr.mxu0 %v8990_v55 }
 0xd35   : > { %10190 = vmatpush3.msra.mxu1 %v8980_v45  ;;  %10209 = vmatpush3.msra.mxu0 %v8990_v55  ;;  %v9006_v45 = vld [vmem:[%s15873_s26 + $0x60] sm:$0xff]  ;;  %v7377_v55 = vld [vmem:[%s15873_s26 + $0x18] sm:$0xff] }
 0xd36   : > { %10191 = vmatprep.subr.mxu1 %v8979_v4  ;;  %10210 = vmatprep.subr.mxu0 %v8989_v38 }
 0xd37   : > { %10192 = vmatpush3.msra.mxu1 %v8979_v4  ;;  %10211 = vmatpush3.msra.mxu0 %v8989_v38  ;;  %v9005_v4 = vld [vmem:[%s15873_s26 + $0x58] sm:$0xff]  ;;  %v7376_v38 = vld [vmem:[%s15873_s26 + $0x10] sm:$0xff] }
 0xd38   : > { %10194 = vmatmul.mubr.msk.f32.vlgmr.msra.gmra.mxu1 %vm6789_vm2, %v6928_v31  ;;  %10213 = vmatmul.mubr.msk.f32.vlgmr.msra.gmra.mxu0 %vm6789_vm2, %v6930_v32  ;;  %v9003_v31 = vld [vmem:[%s15873_s26 + $0x48] sm:$0xff]  ;;  %v7374_v32 = vld [vmem:[%s15873_s26] sm:$0xff] }
 0xd39   : > { %10234 = vmatprep.subr.mxu0 %v10533_v24  ;;  %10215 = vmatprep.subr.mxu1 %v10533_v24 }
 0xd3a   : > { %10235 = vmatpush3.msra.mxu0 %v7381_v25  ;;  %10216 = vmatpush3.msra.mxu1 %v9009_v29 }
 0xd3b   : > { %10236 = vmatprep.subr.mxu0 %v10533_v24  ;;  %10217 = vmatprep.subr.mxu1 %v10533_v24 }
 0xd3c   : > { %10237 = vmatpush3.msra.mxu0 %v7380_v17  ;;  %10218 = vmatpush3.msra.mxu1 %v9008_v30  ;;  %v9030_v17 = vld [vmem:[%s15876_s15] ss:$0 sm:$0xff]  ;;  %s15880_s15 = sld [smem:[#allocation11_spill]] }
 0xd3d   : > { %10238 = vmatprep.subr.mxu0 %v10533_v24  ;;  %10219 = vmatprep.subr.mxu1 %v10533_v24 }
 0xd3e   : > { %10239 = vmatpush3.msra.mxu0 %v7379_v53  ;;  %10220 = vmatpush3.msra.mxu1 %v9007_v26 }
 0xd3f   : > { %10240 = vmatprep.subr.mxu0 %v10533_v24  ;;  %10221 = vmatprep.subr.mxu1 %v10533_v24 }
 0xd40   : > { %10241 = vmatpush3.msra.mxu0 %v7378_v3  ;;  %10222 = vmatpush3.msra.mxu1 %v9006_v45 }
 0xd41   : > { %10242 = vmatprep.subr.mxu0 %v10533_v24  ;;  %10223 = vmatprep.subr.mxu1 %v10533_v24 }
 0xd42   : > { %10243 = vmatpush3.msra.mxu0 %v7377_v55  ;;  %10224 = vmatpush3.msra.mxu1 %v9005_v4 }
 0xd43   : > { %10244 = vmatprep.subr.mxu0 %v10533_v24  ;;  %10225 = vmatprep.subr.mxu1 %v10533_v24 }
 0xd44   : > { %10245 = vmatpush3.msra.mxu0 %v7376_v38  ;;  %10226 = vmatpush3.msra.mxu1 %v9004_v28 }
 0xd45   : > { %10246 = vmatprep.subr.mxu0 %v10533_v24  ;;  %10227 = vmatprep.subr.mxu1 %v10533_v24 }
 0xd46   : > { %10247 = vmatpush3.msra.mxu0 %v7375_v11  ;;  %10228 = vmatpush3.msra.mxu1 %v9003_v31 }
 0xd47   : > { %10248 = vmatprep.subr.mxu0 %v10533_v24  ;;  %10229 = vmatprep.subr.mxu1 %v10533_v24 }
 0xd48   : > { %10249 = vmatpush3.msra.mxu0 %v7374_v32  ;;  %10250 = vmatprep.mubr.msk.f32.mxu0 %vm10534_vm7, %v10533_v24 }
 0xd49   : > { %10272 = vmatprep.subr.mxu0 %v10533_v24  ;;  %10231 = vmatprep.mubr.msk.f32.mxu1 %vm10534_vm7, %v10533_v24 }
 0xde7   : > { %v10157_v0 = vpop.f32.mrf.mxu1  ;;  %v10176_v20 = vpop.f32.mrf.mxu0 }
 0xde8   : > { %v7107_v58 = vadd.f32 %v10176_v20, %v10157_v0  ;;  %v9002_v0 = vld [vmem:[%s15873_s26 + $0x40] sm:$0xff] }
 0xde9   : > { %v7020_v52 = vpop.f32.mrf.mxu1  ;;  %v7101_v50 = vpop.f32.mrf.mxu0  ;;  %10230 = vmatpush3.msra.mxu1 %v9002_v0 }
 0xdea   : > { %v7102_v10 = vadd.f32 %v7101_v50, %v7020_v52  ;;  %10253 = vmatprep.subr.mxu1 %v10533_v24  ;;  %v9000_v50 = vld [vmem:[%s15874_s2] ss:$0 sm:$0xff]  ;;  %s15878_s2 = sld [smem:[#allocation8_spill]] }
 0xdf8   : > { %v10195_v63 = vpop.f32.mrf.mxu1  ;;  %v10214_v13 = vpop.f32.mrf.mxu0 }
 0xdf9   : > { %v7201_v54 = vadd.f32 %v10195_v63, %v7107_v58 }
 0xdfa   : > { %v7191_v49 = vpop.f32.mrf.mxu1  ;;  %v7283_v6 = vpop.f32.mrf.mxu0 }
 0xdfb   : > { %v7293_v43 = vadd.f32 %v10214_v13, %v7201_v54  ;;  %v7200_v1 = vadd.f32 %v7191_v49, %v7102_v10  ;;  %v9001_v13 = vld [vmem:[%s15875_s7] ss:$0 sm:$0xff]  ;;  %s15879_s7 = sld [smem:[#allocation9_spill]] }
 0xdfd   : > { %v7302_v7 = vadd.f32 %v8999_v62, %v7293_v43  ;;  %v7292_v21 = vadd.f32 %v7283_v6, %v7200_v1  ;;  %v9028_v43 = vld [vmem:[%s15873_s26 + $0xf8] sm:$0xff] }
 0xdff   : > { %v7301_v19 = vadd.f32 %v8999_v62, %v7292_v21  ;;  %v7306_v37 = vsel %vm6789_vm2, %v7302_v7, 0.0  ;;  %v9019_v21 = vld [vmem:[%s15873_s26 + $0xb8] sm:$0xff] }
 0xe01   : > { %v7305_v27 = vsel %vm6789_vm2, %v7301_v19, 0.0 }
 0xe02   : > { %v7307_v47 = vadd.f32 %v7306_v37, %v7305_v27  ;;  %v9018_v27 = vld [vmem:[%s15873_s26 + $0xb0] sm:$0xff]  ;;  %v9026_v37 = vld [vmem:[%s15873_s26 + $0xe8] sm:$0xff] }
 0xe04   : > { %7308 = vadd.xlane.f32.xlu0 %v7307_v47 }
 0xe8d   : > { %v7309_v56 = vpop.xlane.xlu0 %7308 }
 0xe8e   : > { %v7310_v48 = vrot.slane %v7309_v56, 4 }
 0xe90   : > { %v7311_v61 = vadd.f32 %v7310_v48, %v7309_v56  ;;  %v9017_v56 = vld [vmem:[%s15873_s26 + $0xa8] sm:$0xff]  ;;  %v9025_v48 = vld [vmem:[%s15873_s26 + $0xe0] sm:$0xff] }
 0xe92   : > { %v7312_v18 = vrot.slane %v7311_v61, 2 }
 0xe94   : > { %v7313_v33 = vadd.f32 %v7312_v18, %v7311_v61  ;;  %v9016_v61 = vld [vmem:[%s15873_s26 + $0xa0] sm:$0xff]  ;;  %v9024_v18 = vld [vmem:[%s15873_s26 + $0xd8] sm:$0xff] }
 0xe96   : > { %v7314_v12 = vrot.slane %v7313_v33, 1 }
 0xe98   : > { %v7315_v9 = vadd.f32 %v7314_v12, %v7313_v33  ;;  %v9015_v12 = vld [vmem:[%s15873_s26 + $0x98] sm:$0xff] }
 0xe9a   : > { %10390 = vpush %v7315_v9  ;;  %v9023_v9 = vld [vmem:[%s15873_s26 + $0xd0] sm:$0xff] }
 0xecb   : > { %s10391_s0 = spop %10390 }
 0xecc   : > { %s7317_s12 = smul.f32 0.0009765625, %s10391_s0 }
 0xece   : > { %v7318_v36 = vstv %s7317_s12 }
 0xecf   : > { %v14664_v22 = vsub.f32 %v7301_v19, %v7318_v36  ;;  %v14666_v5 = vsub.f32 %v7302_v7, %v7318_v36  ;;  %v9027_v19 = vld [vmem:[%s15873_s26 + $0xf0] sm:$0xff] }
 0xed0   : > { %v9014_v36 = vld [vmem:[%s15873_s26 + $0x90] sm:$0xff] }
 0xed1   : > { %v7321_v42 = vmul.f32 %v14664_v22, %v14664_v22  ;;  %v7322_v39 = vmul.f32 %v14666_v5, %v14666_v5 }
 0xed3   : > { %v7323_v46 = vsel %vm6789_vm2, %v7321_v42, 0.0  ;;  %v7324_v59 = vsel %vm6789_vm2, %v7322_v39, 0.0  ;;  %v9013_v42 = vld [vmem:[%s15873_s26 + $0x88] sm:$0xff]  ;;  %v9021_v39 = vld [vmem:[%s15873_s26 + $0xc0] sm:$0xff] }
 0xed4   : > { %v7325_v40 = vadd.f32 %v7324_v59, %v7323_v46  ;;  %v9012_v59 = vld [vmem:[%s15873_s26 + $0x80] sm:$0xff] }
 0xed6   : > { %7326 = vadd.xlane.f32.xlu1 %v7325_v40 }
 0xf5f   : > { %v7327_v51 = vpop.xlane.xlu1 %7326 }
 0xf60   : > { %v7328_v2 = vrot.slane %v7327_v51, 4 }
 0xf62   : > { %v7329_v41 = vadd.f32 %v7328_v2, %v7327_v51 }
 0xf64   : > { %v7330_v34 = vrot.slane %v7329_v41, 2 }
 0xf66   : > { %v7331_v44 = vadd.f32 %v7330_v34, %v7329_v41 }
 0xf68   : > { %v7332_v14 = vrot.slane %v7331_v44, 1 }
 0xf6a   : > { %v7333_v57 = vadd.f32 %v7332_v14, %v7331_v44 }
 0xf6c   : > { %10392 = vpush %v7333_v57 }
 0xf9d   : > { %s10393_s28 = spop %10392 }
 0xf9e   : > { %s7335_s1 = smul.f32 0.0009775171, %s10393_s28 }
 0xfa0   : > { %v7336_v8 = vstv %s7335_s1 }
 0xfa1   : > { %10476 = vrsqrt.f32 %v7336_v8  ;;  %vm7339_vm5 = vcmp.eq.f32.partialorder %v7336_v8, inf  ;;  %v7342_v60 = vand.u32 2147483648, %v7336_v8  ;;  %vm7341_vm6 = vcmp.eq.f32.partialorder %v7336_v8, 0.0 }
 0xfae   : > { %v10477_v35 = vpop.eup %10476 }
 0xfaf   : > { %v7338_v23 = vmul.f32 %v10477_v35, %v7336_v8 }
 0xfb1   : > { %v7340_v16 = vsel %vm7339_vm5, %v7336_v8, %v7338_v23  ;;  %vm8533_vm5 = vcmask 0  }
 0xfb2   : > { %v7343_v15 = vsel %vm7341_vm6, %v7342_v60, %v7340_v16 }
 0xfb3   : > { %10394 = vpush %v7343_v15 }
 0xfe4   : > { %s10395_s10 = spop %10394 }
 0xfe5   : > { %s7345_s11 = sadd.f32 1e-05, %s10395_s10 }
 0xfe7   : > { %v7346_v20 = vstv %s7345_s11 }
 0xfe8   : > { %10478 = vrcp.f32 %v7346_v20 }
 0xff5   : > { %v10479_v52 = vpop.eup %10478 }
 0xff6   : > { %10396 = vpush %v10479_v52 }
0x1027   : > { %s10397_s16 = spop %10396 }
0x1028   : > { %v7349_v58 = vstv %s10397_s16 }
0x1029   : > { %v7350_v63 = vmul.f32 %v7349_v58, %v14664_v22  ;;  %v7351_v54 = vmul.f32 %v7349_v58, %v14666_v5  ;;  %v9022_v22 = vld [vmem:[%s15873_s26 + $0xc8] sm:$0xff]  ;;  %v9048_v58 = vld [vmem:[%s15877_s18 + $0xf8] sm:$0xff] }
0x102b   : > { %v7358_v10 = vmul.f32 %v9000_v50, %v7350_v63  ;;  %v7359_v1 = vmul.f32 %v9000_v50, %v7351_v54  ;;  %v7785_v50 = vld [vmem:[%s15877_s18 + $0x78] sm:$0xff]  ;;  %v7784_v63 = vld [vmem:[%s15877_s18 + $0x70] sm:$0xff]  ;;  %v9046_v54 = vld [vmem:[%s15877_s18 + $0xe8] sm:$0xff] }
0x102d   : > { %v7366_v62 = vadd.f32 %v9001_v13, %v7358_v10  ;;  %v7367_v47 = vadd.f32 %v9001_v13, %v7359_v1  ;;  %v9047_v13 = vld [vmem:[%s15877_s18 + $0xf0] sm:$0xff]  ;;  %v7783_v10 = vld [vmem:[%s15877_s18 + $0x68] sm:$0xff]  ;;  %v9044_v1 = vld [vmem:[%s15877_s18 + $0xd8] sm:$0xff] }
0x102f   : > { %vm7368_vm8 = vcmp.ge.f32.partialorder %v7366_v62, 0.0  ;;  %v7370_v49 = vmul.f32 0.01, %v7366_v62  ;;  %v7371_v33 = vmul.f32 0.01, %v7367_v47  ;;  %vm7369_vm9 = vcmp.ge.f32.partialorder %v7367_v47, 0.0 }
0x1031   : > { %v7372_v6 = vsel %vm7368_vm8, %v7366_v62, %v7370_v49  ;;  %v7373_v5 = vsel %vm7369_vm9, %v7367_v47, %v7371_v33  ;;  %v7782_v62 = vld [vmem:[%s15877_s18 + $0x60] sm:$0xff]  ;;  %v7777_v47 = vld [vmem:[%s15877_s18 + $0x38] sm:$0xff] }
0x1032   : > { %v7392_v7 = vrot.slane %v7372_v6, 4  ;;  %10251 = vmatmul.mubr.msk.f32.vlgmr.msra.gmra.mxu0 %vm6789_vm2, %v7372_v6  ;;  %v7629_v46 = vrot.slane %v7373_v5, 4  ;;  %v9045_v49 = vld [vmem:[%s15877_s18 + $0xe0] sm:$0xff]  ;;  %v7780_v6 = vld [vmem:[%s15877_s18 + $0x50] sm:$0xff] }
0x1033   : > { %10273 = vmatpush3.msra.mxu0 %v9028_v43  ;;  %10288 = vmatprep.mubr.msk.f32.mxu0 %vm10534_vm7, %v10533_v24  ;;  %v7781_v43 = vld [vmem:[%s15877_s18 + $0x58] sm:$0xff] }
0x1034   : > { %10274 = vmatprep.subr.mxu0 %v10533_v24  ;;  %10232 = vmatmul.mubr.msk.f32.vlgmr.msra.gmra.mxu1 %vm6789_vm2, %v7392_v7  ;;  %v9043_v7 = vld [vmem:[%s15877_s18 + $0xd0] sm:$0xff] }
0x1035   : > { %10254 = vmatpush3.msra.mxu1 %v9019_v21  ;;  %10275 = vmatpush3.msra.mxu0 %v9027_v19  ;;  %v7779_v21 = vld [vmem:[%s15877_s18 + $0x48] sm:$0xff] }
0x1036   : > { %10255 = vmatprep.subr.mxu1 %v10533_v24  ;;  %10276 = vmatprep.subr.mxu0 %v10533_v24  ;;  %v9042_v19 = vld [vmem:[%s15877_s18 + $0xc8] sm:$0xff] }
0x1037   : > { %10256 = vmatpush3.msra.mxu1 %v9018_v27  ;;  %10277 = vmatpush3.msra.mxu0 %v9026_v37  ;;  %v7778_v27 = vld [vmem:[%s15877_s18 + $0x40] sm:$0xff] }
0x1038   : > { %10257 = vmatprep.subr.mxu1 %v10533_v24  ;;  %10278 = vmatprep.subr.mxu0 %v10533_v24  ;;  %v9041_v37 = vld [vmem:[%s15877_s18 + $0xc0] sm:$0xff] }
0x1039   : > { %10258 = vmatpush3.msra.mxu1 %v9017_v56  ;;  %10279 = vmatpush3.msra.mxu0 %v9025_v48  ;;  %v9040_v56 = vld [vmem:[%s15877_s18 + $0xb8] sm:$0xff]  ;;  %v7776_v48 = vld [vmem:[%s15877_s18 + $0x30] sm:$0xff] }
0x103a   : > { %10259 = vmatprep.subr.mxu1 %v10533_v24  ;;  %10280 = vmatprep.subr.mxu0 %v10533_v24 }
0x103b   : > { %10260 = vmatpush3.msra.mxu1 %v9016_v61  ;;  %10281 = vmatpush3.msra.mxu0 %v9024_v18 }
0x103c   : > { %10261 = vmatprep.subr.mxu1 %v10533_v24  ;;  %10282 = vmatprep.subr.mxu0 %v10533_v24 }
0x103d   : > { %10262 = vmatpush3.msra.mxu1 %v9015_v12  ;;  %10283 = vmatpush3.msra.mxu0 %v9023_v9  ;;  %v9039_v12 = vld [vmem:[%s15877_s18 + $0xb0] sm:$0xff]  ;;  %v7775_v9 = vld [vmem:[%s15877_s18 + $0x28] sm:$0xff] }
0x103e   : > { %10263 = vmatprep.subr.mxu1 %v10533_v24  ;;  %10284 = vmatprep.subr.mxu0 %v10533_v24 }
0x103f   : > { %10264 = vmatpush3.msra.mxu1 %v9014_v36  ;;  %10285 = vmatpush3.msra.mxu0 %v9022_v22  ;;  %v9038_v36 = vld [vmem:[%s15877_s18 + $0xa8] sm:$0xff] }
0x1040   : > { %10265 = vmatprep.subr.mxu1 %v10533_v24  ;;  %10286 = vmatprep.subr.mxu0 %v10533_v24 }
0x1041   : > { %10266 = vmatpush3.msra.mxu1 %v9013_v42  ;;  %10287 = vmatpush3.msra.mxu0 %v9021_v39  ;;  %v9037_v39 = vld [vmem:[%s15877_s18 + $0xa0] sm:$0xff] }
0x1042   : > { %10267 = vmatprep.subr.mxu1 %v10533_v24  ;;  %10289 = vmatmul.mubr.msk.f32.vlgmr.msra.gmra.mxu0 %vm6789_vm2, %v7629_v46  ;;  %v7773_v46 = vld [vmem:[%s15877_s18 + $0x18] sm:$0xff] }
0x1043   : > { %10268 = vmatpush3.msra.mxu1 %v9012_v59  ;;  %10269 = vmatprep.mubr.msk.f32.mxu1 %vm10534_vm7, %v10533_v24 }
0x1044   : > { %10270 = vmatmul.mubr.msk.f32.vlgmr.msra.gmra.mxu1 %vm6789_vm2, %v7373_v5  ;;  %10326 = vmatprep.subr.mxu0 %v10533_v24  ;;  %v7774_v5 = vld [vmem:[%s15877_s18 + $0x20] sm:$0xff] }
0x1045   : > { %10291 = vmatprep.subr.mxu1 %v10533_v24  ;;  %10358 = vmatprep.mubr.msk.f32.mxu0 %vm10534_vm7, %v10533_v24 }
0x1046   : > { %10323 = vmatprep.mubr.msk.f32.mxu1 %vm10534_vm7, %v10533_v24  ;;  %10327 = vmatpush3.msra.mxu0 %v7785_v50 }
0x1047   : > { %10292 = vmatpush3.msra.mxu1 %v9048_v58  ;;  %10328 = vmatprep.subr.mxu0 %v10533_v24 }
0x1048   : > { %10293 = vmatprep.subr.mxu1 %v10533_v24  ;;  %10329 = vmatpush3.msra.mxu0 %v7784_v63 }
0x1049   : > { %10294 = vmatpush3.msra.mxu1 %v9047_v13  ;;  %10330 = vmatprep.subr.mxu0 %v10533_v24 }
0x104a   : > { %10295 = vmatprep.subr.mxu1 %v10533_v24  ;;  %10331 = vmatpush3.msra.mxu0 %v7783_v10 }
0x104b   : > { %10296 = vmatpush3.msra.mxu1 %v9046_v54  ;;  %10332 = vmatprep.subr.mxu0 %v10533_v24 }
0x104c   : > { %10297 = vmatprep.subr.mxu1 %v10533_v24  ;;  %10333 = vmatpush3.msra.mxu0 %v7782_v62 }
0x104d   : > { %10298 = vmatpush3.msra.mxu1 %v9045_v49  ;;  %10334 = vmatprep.subr.mxu0 %v10533_v24 }
0x104e   : > { %10299 = vmatprep.subr.mxu1 %v10533_v24  ;;  %10335 = vmatpush3.msra.mxu0 %v7781_v43 }
0x104f   : > { %10300 = vmatpush3.msra.mxu1 %v9044_v1  ;;  %10336 = vmatprep.subr.mxu0 %v10533_v24 }
0x1050   : > { %10301 = vmatprep.subr.mxu1 %v10533_v24  ;;  %10337 = vmatpush3.msra.mxu0 %v7780_v6 }
0x1051   : > { %10302 = vmatpush3.msra.mxu1 %v9043_v7  ;;  %10338 = vmatprep.subr.mxu0 %v10533_v24 }
0x1052   : > { %10303 = vmatprep.subr.mxu1 %v10533_v24  ;;  %10339 = vmatpush3.msra.mxu0 %v7779_v21 }
0x1053   : > { %10304 = vmatpush3.msra.mxu1 %v9042_v19  ;;  %10340 = vmatprep.subr.mxu0 %v10533_v24 }
0x1054   : > { %10305 = vmatprep.subr.mxu1 %v10533_v24  ;;  %10341 = vmatpush3.msra.mxu0 %v7778_v27 }
0x1055   : > { %10306 = vmatpush3.msra.mxu1 %v9041_v37  ;;  %10342 = vmatprep.subr.mxu0 %v10533_v24 }
0x1056   : > { %10307 = vmatprep.subr.mxu1 %v10533_v24  ;;  %10343 = vmatpush3.msra.mxu0 %v7777_v47 }
0x1057   : > { %10308 = vmatpush3.msra.mxu1 %v9040_v56  ;;  %10344 = vmatprep.subr.mxu0 %v10533_v24 }
0x1058   : > { %10309 = vmatprep.subr.mxu1 %v10533_v24  ;;  %10345 = vmatpush3.msra.mxu0 %v7776_v48 }
0x1059   : > { %10346 = vmatprep.subr.mxu0 %v10533_v24  ;;  %10310 = vmatpush3.msra.mxu1 %v9039_v12 }
0x105a   : > { %10347 = vmatpush3.msra.mxu0 %v7775_v9  ;;  %10311 = vmatprep.subr.mxu1 %v10533_v24 }
0x105b   : > { %10348 = vmatprep.subr.mxu0 %v10533_v24  ;;  %10312 = vmatpush3.msra.mxu1 %v9038_v36 }
0x105c   : > { %10349 = vmatpush3.msra.mxu0 %v7774_v5  ;;  %10313 = vmatprep.subr.mxu1 %v10533_v24 }
0x105d   : > { %10350 = vmatprep.subr.mxu0 %v10533_v24  ;;  %10314 = vmatpush3.msra.mxu1 %v9037_v39 }
0x105e   : > { %10351 = vmatpush3.msra.mxu0 %v7773_v46  ;;  %10315 = vmatprep.subr.mxu1 %v10533_v24 }
0x105f   : > { %10352 = vmatprep.subr.mxu0 %v10533_v24 }
0x10f2   : > { %v7533_v40 = vpop.f32.mrf.mxu0 }
0x10f4   : > { %v7461_v51 = vpop.f32.mrf.mxu1  ;;  %v10252_v2 = vpop.f32.mrf.mxu0 }
0x10f5   : > { %v7534_v44 = vadd.f32 %v7533_v40, %v7461_v51  ;;  %v9036_v40 = vld [vmem:[%s15877_s18 + $0x98] sm:$0xff]  ;;  %v7772_v51 = vld [vmem:[%s15877_s18 + $0x10] sm:$0xff] }
0x10f6   : > { %v10233_v41 = vpop.f32.mrf.mxu1  ;;  %v9035_v2 = vld [vmem:[%s15877_s18 + $0x90] sm:$0xff]  ;;  %10316 = vmatpush3.msra.mxu1 %v9036_v40  ;;  %10353 = vmatpush3.msra.mxu0 %v7772_v51 }
0x10f7   : > { %v7771_v41 = vld [vmem:[%s15877_s18 + $0x8] sm:$0xff]  ;;  %10317 = vmatprep.subr.mxu1 %v10533_v24  ;;  %10354 = vmatprep.subr.mxu0 %v10533_v24 }
0x10f8   : > { %10318 = vmatpush3.msra.mxu1 %v9035_v2  ;;  %10355 = vmatpush3.msra.mxu0 %v7771_v41 }
0x10f9   : > { %10319 = vmatprep.subr.mxu1 %v10533_v24  ;;  %10356 = vmatprep.subr.mxu0 %v10533_v24 }
0x1102   : > { %v7698_v34 = vpop.f32.mrf.mxu0 }
0x1104   : > { %v7615_v14 = vpop.f32.mrf.mxu1  ;;  %v10290_v57 = vpop.f32.mrf.mxu0 }
0x1105   : > { %v7619_v25 = vadd.f32 %v7615_v14, %v7534_v44  ;;  %v7770_v44 = vld [vmem:[%s15877_s18] sm:$0xff] }
0x1106   : > { %v10271_v29 = vpop.f32.mrf.mxu1  ;;  %v9033_v14 = vld [vmem:[%s15877_s18 + $0x80] sm:$0xff]  ;;  %10357 = vmatpush3.msra.mxu0 %v7770_v44 }
0x1107   : > { %v7702_v30 = vadd.f32 %v7698_v34, %v7619_v25  ;;  %v9034_v34 = vld [vmem:[%s15877_s18 + $0x88] sm:$0xff]  ;;  %v9031_v29 = vld [vmem:[%s15878_s2] ss:$0 sm:$0xff] }
0x1108   : > { %10320 = vmatpush3.msra.mxu1 %v9034_v34 }
0x1109   : > { %v7710_v53 = vadd.f32 %v9030_v17, %v7702_v30  ;;  %10321 = vmatprep.subr.mxu1 %v10533_v24 }
0x110a   : > { %10322 = vmatpush3.msra.mxu1 %v9033_v14 }
0x110b   : > { %v7713_v8 = vsel %vm1543_vm0, %v7710_v53, 0.0 }
0x110c   : > { %7714 = vadd.xlane.f32.xlu0 %v7713_v8 }
0x1195   : > { %v7715_v35 = vpop.xlane.xlu0 %7714 }
0x1196   : > { %v7716_v23 = vrot.slane %v7715_v35, 4 }
0x1198   : > { %v7717_v60 = vadd.f32 %v7716_v23, %v7715_v35 }
0x119a   : > { %v7718_v16 = vrot.slane %v7717_v60, 2 }
0x119c   : > { %v7719_v15 = vadd.f32 %v7718_v16, %v7717_v60 }
0x119e   : > { %v7720_v26 = vrot.slane %v7719_v15, 1 }
0x11a0   : > { %v7721_v3 = vadd.f32 %v7720_v26, %v7719_v15 }
0x11a2   : > { %10398 = vpush %v7721_v3 }
0x11d3   : > { %s10399_s0 = spop %10398 }
0x11d4   : > { %s7723_s12 = smul.f32 0.001953125, %s10399_s0  ;;  %s15881_s0 = sld [smem:[#allocation14_spill]] }
0x11d6   : > { %v7724_v45 = vstv %s7723_s12 }
0x11d7   : > { %v14762_v55 = vsub.f32 %v7710_v53, %v7724_v45  ;;  %v9032_v53 = vld [vmem:[%s15879_s7] ss:$0 sm:$0xff]  ;;  %s15882_s7 = sld [smem:[#allocation12_spill]] }
0x11d8   : > { %v9049_v45 = vld [vmem:[%s15880_s15] ss:$0 sm:$0xff] }
0x11d9   : > { %v7726_v4 = vmul.f32 %v14762_v55, %v14762_v55 }
0x11da   : > { %v8045_v21 = vld [vmem:[%s15881_s0 + $0xf8] sm:$0xff]  ;;  %v8044_v27 = vld [vmem:[%s15881_s0 + $0xf0] sm:$0xff]  ;;  %v8043_v47 = vld [vmem:[%s15881_s0 + $0xe8] sm:$0xff] }
0x11db   : > { %v7727_v38 = vsel %vm1543_vm0, %v7726_v4, 0.0  ;;  %v9083_v19 = vld [vmem:[%s15881_s0 + $0x1f8] sm:$0xff]  ;;  %8153 = vmatprep.subr.mxu0 %v8045_v21  ;;  %v9082_v37 = vld [vmem:[%s15881_s0 + $0x1f0] sm:$0xff]  ;;  %v9081_v56 = vld [vmem:[%s15881_s0 + $0x1e8] sm:$0xff] }
0x11dc   : > { %7728 = vadd.xlane.f32.xlu1 %v7727_v38  ;;  %8082 = vmatprep.subr.mxu1 %v9083_v19  ;;  %v8042_v48 = vld [vmem:[%s15881_s0 + $0xe0] sm:$0xff]  ;;  %v8040_v12 = vld [vmem:[%s15881_s0 + $0xd0] sm:$0xff]  ;;  %v8039_v36 = vld [vmem:[%s15881_s0 + $0xc8] sm:$0xff] }
0x11dd   : > { %v9078_v9 = vld [vmem:[%s15881_s0 + $0x1d0] sm:$0xff]  ;;  %v8038_v5 = vld [vmem:[%s15881_s0 + $0xc0] sm:$0xff]  ;;  %v8037_v39 = vld [vmem:[%s15881_s0 + $0xb8] sm:$0xff] }
0x11de   : > { %v9075_v46 = vld [vmem:[%s15881_s0 + $0x1b8] sm:$0xff]  ;;  %v9074_v40 = vld [vmem:[%s15881_s0 + $0x1b0] sm:$0xff]  ;;  %v8035_v51 = vld [vmem:[%s15881_s0 + $0xa8] sm:$0xff] }
0x11df   : > { %v9073_v2 = vld [vmem:[%s15881_s0 + $0x1a8] sm:$0xff]  ;;  %v8034_v41 = vld [vmem:[%s15881_s0 + $0xa0] sm:$0xff]  ;;  %v8033_v44 = vld [vmem:[%s15881_s0 + $0x98] sm:$0xff] }
0x11e0   : > { %v9072_v34 = vld [vmem:[%s15881_s0 + $0x1a0] sm:$0xff]  ;;  %v9071_v14 = vld [vmem:[%s15881_s0 + $0x198] sm:$0xff] }
0x11e1   : > { %v8017_v21 = vld [vmem:[%s15881_s0 + $0x18] sm:$0xff] }
0x11e2   : > { %v9055_v19 = vld [vmem:[%s15881_s0 + $0x118] sm:$0xff] }
0x1265   : > { %v7729_v28 = vpop.xlane.xlu1 %7728 }
0x1266   : > { %v7730_v11 = vrot.slane %v7729_v28, 4 }
0x1268   : > { %v7731_v31 = vadd.f32 %v7730_v11, %v7729_v28 }
0x126a   : > { %v7732_v32 = vrot.slane %v7731_v31, 2 }
0x126c   : > { %v7733_v0 = vadd.f32 %v7732_v32, %v7731_v31 }
0x126e   : > { %v7734_v20 = vrot.slane %v7733_v0, 1 }
0x1270   : > { %v7735_v52 = vadd.f32 %v7734_v20, %v7733_v0 }
0x1272   : > { %10400 = vpush %v7735_v52 }
0x12a3   : > { %s10401_s28 = spop %10400 }
0x12a4   : > { %s7737_s1 = smul.f32 0.0019569471, %s10401_s28 }
0x12a6   : > { %v7738_v61 = vstv %s7737_s1 }
0x12a7   : > { %10480 = vrsqrt.f32 %v7738_v61  ;;  %vm7741_vm0 = vcmp.eq.f32.partialorder %v7738_v61, inf  ;;  %v7744_v22 = vand.u32 2147483648, %v7738_v61  ;;  %vm7743_vm2 = vcmp.eq.f32.partialorder %v7738_v61, 0.0 }
0x12b4   : > { %v10481_v18 = vpop.eup %10480 }
0x12b5   : > { %v7740_v33 = vmul.f32 %v10481_v18, %v7738_v61  ;;  %v8041_v18 = vld [vmem:[%s15881_s0 + $0xd8] sm:$0xff] }
0x12b7   : > { %v7742_v42 = vsel %vm7741_vm0, %v7738_v61, %v7740_v33  ;;  %v9080_v61 = vld [vmem:[%s15881_s0 + $0x1e0] sm:$0xff]  ;;  %v9079_v33 = vld [vmem:[%s15881_s0 + $0x1d8] sm:$0xff] }
0x12b8   : > { %v7745_v59 = vsel %vm7743_vm2, %v7744_v22, %v7742_v42  ;;  %v9077_v22 = vld [vmem:[%s15881_s0 + $0x1c8] sm:$0xff]  ;;  %v9076_v42 = vld [vmem:[%s15881_s0 + $0x1c0] sm:$0xff] }
0x12b9   : > { %10402 = vpush %v7745_v59  ;;  %v8036_v59 = vld [vmem:[%s15881_s0 + $0xb0] sm:$0xff] }
0x12ea   : > { %s10403_s10 = spop %10402 }
0x12eb   : > { %s7747_s11 = sadd.f32 1e-05, %s10403_s10 }
0x12ec   : > { %s15883_s10 = sld [smem:[#allocation13_spill]] }
0x12ed   : > { %v7748_v57 = vstv %s7747_s11 }
0x12ee   : > { %10482 = vrcp.f32 %v7748_v57  ;;  %v8032_v57 = vld [vmem:[%s15881_s0 + $0x90] sm:$0xff] }
0x12fb   : > { %v10483_v25 = vpop.eup %10482 }
0x12fc   : > { %10404 = vpush %v10483_v25  ;;  %v9070_v25 = vld [vmem:[%s15881_s0 + $0x190] sm:$0xff] }
0x132d   : > { %s10405_s16 = spop %10404 }
0x132e   : > { %v7751_v17 = vstv %s10405_s16 }
0x132f   : > { %v7752_v30 = vmul.f32 %v7751_v17, %v14762_v55  ;;  %v9069_v17 = vld [vmem:[%s15881_s0 + $0x188] sm:$0xff] }
0x1331   : > { %v7759_v8 = vmul.f32 %v9031_v29, %v7752_v30  ;;  %v8031_v29 = vld [vmem:[%s15881_s0 + $0x88] sm:$0xff]  ;;  %v8030_v30 = vld [vmem:[%s15881_s0 + $0x80] sm:$0xff] }
0x1333   : > { %v7766_v35 = vadd.f32 %v9032_v53, %v7759_v8  ;;  %v9068_v53 = vld [vmem:[%s15881_s0 + $0x180] sm:$0xff]  ;;  %v8029_v8 = vld [vmem:[%s15881_s0 + $0x78] sm:$0xff] }
0x1335   : > { %v7768_v23 = vmul.f32 0.01, %v7766_v35  ;;  %vm7767_vm10 = vcmp.ge.f32.partialorder %v7766_v35, 0.0 }
0x1337   : > { %v7769_v60 = vsel %vm7767_vm10, %v7766_v35, %v7768_v23  ;;  %v9067_v35 = vld [vmem:[%s15881_s0 + $0x178] sm:$0xff]  ;;  %v8028_v23 = vld [vmem:[%s15881_s0 + $0x70] sm:$0xff] }
0x1338   : > { %v7804_v16 = vrot.slane %v7769_v60, 1  ;;  %10359 = vmatmul.mubr.f32.vlgmr.msra.gmra.mxu0 %v7769_v60  ;;  %v9066_v60 = vld [vmem:[%s15881_s0 + $0x170] sm:$0xff] }
0x1339   : > { %8217 = vmatprep.mubr.f32.mxu0 %v10533_v24  ;;  %8154 = vmatpush1.msra.mxu0 %v8044_v27  ;;  %v8016_v27 = vld [vmem:[%s15881_s0 + $0x10] sm:$0xff] }
0x133a   : > { %10324 = vmatmul.mubr.f32.vlgmr.msra.gmra.mxu1 %v7804_v16  ;;  %8155 = vmatprep.subr.mxu0 %v8043_v47  ;;  %v8027_v16 = vld [vmem:[%s15881_s0 + $0x68] sm:$0xff] }
0x133b   : > { %8146 = vmatprep.mubr.f32.mxu1 %v10533_v24  ;;  %8083 = vmatpush1.msra.mxu1 %v9082_v37  ;;  %v9054_v37 = vld [vmem:[%s15881_s0 + $0x110] sm:$0xff]  ;;  %v8015_v47 = vld [vmem:[%s15881_s0 + $0x8] sm:$0xff] }
0x133c   : > { %8084 = vmatprep.subr.mxu1 %v9081_v56  ;;  %8156 = vmatpush1.msra.mxu0 %v8042_v48  ;;  %v9053_v56 = vld [vmem:[%s15881_s0 + $0x108] sm:$0xff]  ;;  %v8014_v48 = vld [vmem:[%s15881_s0] sm:$0xff] }
0x133d   : > { %8085 = vmatpush1.msra.mxu1 %v9080_v61  ;;  %8157 = vmatprep.subr.mxu0 %v8041_v18  ;;  %v9052_v61 = vld [vmem:[%s15881_s0 + $0x100] sm:$0xff]  ;;  %v9115_v18 = vld [vmem:[%s15881_s0 + $0x2f8] sm:$0xff] }
0x133e   : > { %8086 = vmatprep.subr.mxu1 %v9079_v33  ;;  %8158 = vmatpush1.msra.mxu0 %v8040_v12 }
0x133f   : > { %8087 = vmatpush1.msra.mxu1 %v9078_v9  ;;  %8159 = vmatprep.subr.mxu0 %v8039_v36  ;;  %v9050_v9 = vld [vmem:[%s15882_s7] ss:$0 sm:$0xff] }
0x1340   : > { %8088 = vmatprep.subr.mxu1 %v9077_v22  ;;  %8160 = vmatpush1.msra.mxu0 %v8038_v5  ;;  %v9051_v5 = vld [vmem:[%s15883_s10] ss:$0 sm:$0xff] }
0x1341   : > { %8089 = vmatpush1.msra.mxu1 %v9076_v42  ;;  %8161 = vmatprep.subr.mxu0 %v8037_v39 }
0x1342   : > { %8090 = vmatprep.subr.mxu1 %v9075_v46  ;;  %8162 = vmatpush1.msra.mxu0 %v8036_v59 }
0x1343   : > { %8091 = vmatpush1.msra.mxu1 %v9074_v40  ;;  %8163 = vmatprep.subr.mxu0 %v8035_v51  ;;  %v9114_v51 = vld [vmem:[%s15881_s0 + $0x2f0] sm:$0xff] }
0x1344   : > { %8092 = vmatprep.subr.mxu1 %v9073_v2  ;;  %8164 = vmatpush1.msra.mxu0 %v8034_v41  ;;  %v9113_v2 = vld [vmem:[%s15881_s0 + $0x2e8] sm:$0xff]  ;;  %v9111_v41 = vld [vmem:[%s15881_s0 + $0x2d8] sm:$0xff] }
0x1345   : > { %8093 = vmatpush1.msra.mxu1 %v9072_v34  ;;  %8165 = vmatprep.subr.mxu0 %v8033_v44  ;;  %v9110_v34 = vld [vmem:[%s15881_s0 + $0x2d0] sm:$0xff]  ;;  %v9109_v44 = vld [vmem:[%s15881_s0 + $0x2c8] sm:$0xff] }
0x1346   : > { %8094 = vmatprep.subr.mxu1 %v9071_v14  ;;  %8166 = vmatpush1.msra.mxu0 %v8032_v57  ;;  %v9108_v14 = vld [vmem:[%s15881_s0 + $0x2c0] sm:$0xff]  ;;  %v9107_v57 = vld [vmem:[%s15881_s0 + $0x2b8] sm:$0xff] }
0x1347   : > { %8095 = vmatpush1.msra.mxu1 %v9070_v25  ;;  %8167 = vmatprep.subr.mxu0 %v8031_v29  ;;  %v9106_v25 = vld [vmem:[%s15881_s0 + $0x2b0] sm:$0xff]  ;;  %v9105_v29 = vld [vmem:[%s15881_s0 + $0x2a8] sm:$0xff] }
0x1348   : > { %8096 = vmatprep.subr.mxu1 %v9069_v17  ;;  %8168 = vmatpush1.msra.mxu0 %v8030_v30  ;;  %v9103_v17 = vld [vmem:[%s15881_s0 + $0x298] sm:$0xff]  ;;  %v9102_v30 = vld [vmem:[%s15881_s0 + $0x290] sm:$0xff] }
0x1349   : > { %8097 = vmatpush1.msra.mxu1 %v9068_v53  ;;  %8169 = vmatprep.subr.mxu0 %v8029_v8  ;;  %v9101_v53 = vld [vmem:[%s15881_s0 + $0x288] sm:$0xff]  ;;  %v9100_v8 = vld [vmem:[%s15881_s0 + $0x280] sm:$0xff] }
0x134a   : > { %8098 = vmatprep.subr.mxu1 %v9067_v35  ;;  %8170 = vmatpush1.msra.mxu0 %v8028_v23  ;;  %v9099_v35 = vld [vmem:[%s15881_s0 + $0x278] sm:$0xff]  ;;  %v9098_v23 = vld [vmem:[%s15881_s0 + $0x270] sm:$0xff] }
0x134b   : > { %8099 = vmatpush1.msra.mxu1 %v9066_v60  ;;  %8171 = vmatprep.subr.mxu0 %v8027_v16  ;;  %v9097_v60 = vld [vmem:[%s15881_s0 + $0x268] sm:$0xff]  ;;  %v9096_v16 = vld [vmem:[%s15881_s0 + $0x260] sm:$0xff] }
0x13f8   : > { %v7942_v15 = vpop.f32.mrf.mxu0 }
0x13fa   : > { %v7872_v26 = vpop.f32.mrf.mxu1  ;;  %v10360_v3 = vpop.f32.mrf.mxu0 }
0x13fb   : > { %v7943_v4 = vadd.f32 %v7942_v15, %v7872_v26  ;;  %v9065_v15 = vld [vmem:[%s15881_s0 + $0x168] sm:$0xff]  ;;  %v8026_v26 = vld [vmem:[%s15881_s0 + $0x60] sm:$0xff] }
0x13fc   : > { %v10325_v38 = vpop.f32.mrf.mxu1  ;;  %v9064_v3 = vld [vmem:[%s15881_s0 + $0x160] sm:$0xff]  ;;  %8100 = vmatprep.subr.mxu1 %v9065_v15  ;;  %8172 = vmatpush1.msra.mxu0 %v8026_v26  ;;  %v9095_v15 = vld [vmem:[%s15881_s0 + $0x258] sm:$0xff]  ;;  %v9094_v26 = vld [vmem:[%s15881_s0 + $0x250] sm:$0xff] }
0x13fd   : > { %v7953_v55 = vadd.f32 %v9049_v45, %v7943_v4  ;;  %v8025_v45 = vld [vmem:[%s15881_s0 + $0x58] sm:$0xff]  ;;  %8101 = vmatpush1.msra.mxu1 %v9064_v3  ;;  %v9093_v3 = vld [vmem:[%s15881_s0 + $0x248] sm:$0xff] }
0x13fe   : > { %8173 = vmatprep.subr.mxu0 %v8025_v45  ;;  %v9092_v45 = vld [vmem:[%s15881_s0 + $0x240] sm:$0xff] }
0x13ff   : > { %v7957_v28 = vsel %vm7956_vm11, %v7953_v55, 0.0 }
0x1400   : > { %7958 = vadd.xlane.f32.xlu0 %v7957_v28  ;;  %v9063_v28 = vld [vmem:[%s15881_s0 + $0x158] sm:$0xff] }
0x1401   : > { %8102 = vmatprep.subr.mxu1 %v9063_v28  ;;  %v9088_v28 = vld [vmem:[%s15881_s0 + $0x220] sm:$0xff] }
0x1489   : > { %v7959_v11 = vpop.xlane.xlu0 %7958 }
0x148a   : > { %v7960_v31 = vrot.slane %v7959_v11, 4 }
0x148c   : > { %v7961_v32 = vadd.f32 %v7960_v31, %v7959_v11  ;;  %v8024_v11 = vld [vmem:[%s15881_s0 + $0x50] sm:$0xff] }
0x148d   : > { %v9062_v31 = vld [vmem:[%s15881_s0 + $0x150] sm:$0xff]  ;;  %8174 = vmatpush1.msra.mxu0 %v8024_v11  ;;  %v9087_v11 = vld [vmem:[%s15881_s0 + $0x218] sm:$0xff] }
0x148e   : > { %v7962_v0 = vrot.slane %v7961_v32, 2  ;;  %8103 = vmatpush1.msra.mxu1 %v9062_v31  ;;  %v9086_v31 = vld [vmem:[%s15881_s0 + $0x210] sm:$0xff] }
0x1490   : > { %v7963_v20 = vadd.f32 %v7962_v0, %v7961_v32  ;;  %v8023_v0 = vld [vmem:[%s15881_s0 + $0x48] sm:$0xff] }
0x1491   : > { %8175 = vmatprep.subr.mxu0 %v8023_v0  ;;  %v9084_v0 = vld [vmem:[%s15881_s0 + $0x200] sm:$0xff] }
0x1492   : > { %v7964_v52 = vrot.slane %v7963_v20, 1 }
0x1494   : > { %v7965_v50 = vadd.f32 %v7964_v52, %v7963_v20  ;;  %v9061_v20 = vld [vmem:[%s15881_s0 + $0x148] sm:$0xff]  ;;  %v8022_v52 = vld [vmem:[%s15881_s0 + $0x40] sm:$0xff] }
0x1495   : > { %8104 = vmatprep.subr.mxu1 %v9061_v20  ;;  %8176 = vmatpush1.msra.mxu0 %v8022_v52  ;;  %v8334_v52 = vlaneseq }
0x1496   : > { %10406 = vpush %v7965_v50 }
0x14c7   : > { %s10407_s12 = spop %10406 }
0x14c8   : > { %s7967_s28 = smul.f32 0.0026041667, %s10407_s12  ;;  %s15884_s12 = sld [smem:[#allocation15_spill]] }
0x14ca   : > { %v7968_v58 = vstv %s7967_s28 }
0x14cb   : > { %v14836_v63 = vsub.f32 %v7953_v55, %v7968_v58  ;;  %v9060_v58 = vld [vmem:[%s15881_s0 + $0x140] sm:$0xff] }
0x14cc   : > { %8105 = vmatpush1.msra.mxu1 %v9060_v58 }
0x14cd   : > { %v7970_v13 = vmul.f32 %v14836_v63, %v14836_v63 }
0x14cf   : > { %v7971_v10 = vsel %vm7956_vm11, %v7970_v13, 0.0  ;;  %v8021_v13 = vld [vmem:[%s15881_s0 + $0x38] sm:$0xff] }
0x14d0   : > { %7972 = vadd.xlane.f32.xlu1 %v7971_v10  ;;  %v9059_v10 = vld [vmem:[%s15881_s0 + $0x138] sm:$0xff]  ;;  %8177 = vmatprep.subr.mxu0 %v8021_v13 }
0x14d1   : > { %8106 = vmatprep.subr.mxu1 %v9059_v10 }
0x1559   : > { %v7973_v54 = vpop.xlane.xlu1 %7972 }
0x155a   : > { %v7974_v62 = vrot.slane %v7973_v54, 4 }
0x155c   : > { %v7975_v49 = vadd.f32 %v7974_v62, %v7973_v54  ;;  %v8020_v62 = vld [vmem:[%s15881_s0 + $0x30] sm:$0xff] }
0x155d   : > { %8178 = vmatpush1.msra.mxu0 %v8020_v62 }
0x155e   : > { %v7976_v43 = vrot.slane %v7975_v49, 2 }
0x1560   : > { %v7977_v1 = vadd.f32 %v7976_v43, %v7975_v49  ;;  %v9058_v49 = vld [vmem:[%s15881_s0 + $0x130] sm:$0xff]  ;;  %v8019_v43 = vld [vmem:[%s15881_s0 + $0x28] sm:$0xff] }
0x1561   : > { %8107 = vmatpush1.msra.mxu1 %v9058_v49  ;;  %8179 = vmatprep.subr.mxu0 %v8019_v43 }
0x1562   : > { %v7978_v6 = vrot.slane %v7977_v1, 1 }
0x1564   : > { %v7979_v7 = vadd.f32 %v7978_v6, %v7977_v1  ;;  %v9057_v1 = vld [vmem:[%s15881_s0 + $0x128] sm:$0xff]  ;;  %v8018_v6 = vld [vmem:[%s15881_s0 + $0x20] sm:$0xff] }
0x1565   : > { %8108 = vmatprep.subr.mxu1 %v9057_v1  ;;  %8180 = vmatpush1.msra.mxu0 %v8018_v6 }
0x1566   : > { %10408 = vpush %v7979_v7  ;;  %v9056_v7 = vld [vmem:[%s15881_s0 + $0x120] sm:$0xff]  ;;  %8181 = vmatprep.subr.mxu0 %v8017_v21 }
0x1567   : > { %8109 = vmatpush1.msra.mxu1 %v9056_v7  ;;  %8182 = vmatpush1.msra.mxu0 %v8016_v27 }
0x1568   : > { %8110 = vmatprep.subr.mxu1 %v9055_v19  ;;  %8183 = vmatprep.subr.mxu0 %v8015_v47 }
0x1569   : > { %8111 = vmatpush1.msra.mxu1 %v9054_v37  ;;  %8184 = vmatpush1.msra.mxu0 %v8014_v48 }
0x156a   : > { %8112 = vmatprep.subr.mxu1 %v9053_v56 }
0x156b   : > { %8113 = vmatpush1.msra.mxu1 %v9052_v61 }
0x156c   : > { %8259 = vmatprep.subr.mxu1 %v9115_v18 }
0x1597   : > { %s10409_s1 = spop %10408 }
0x1598   : > { %s7981_s2 = smul.f32 0.002610966, %s10409_s1 }
0x159a   : > { %v7982_v4 = vstv %s7981_s2 }
0x159b   : > { %10484 = vrsqrt.f32 %v7982_v4  ;;  %vm7985_vm12 = vcmp.eq.f32.partialorder %v7982_v4, inf  ;;  %v7988_v32 = vand.u32 2147483648, %v7982_v4  ;;  %vm7987_vm13 = vcmp.eq.f32.partialorder %v7982_v4, 0.0 }
0x15a8   : > { %v10485_v38 = vpop.eup %10484 }
0x15a9   : > { %v7984_v55 = vmul.f32 %v10485_v38, %v7982_v4  ;;  %v9090_v38 = vld [vmem:[%s15881_s0 + $0x230] sm:$0xff] }
0x15ab   : > { %v7986_v50 = vsel %vm7985_vm12, %v7982_v4, %v7984_v55  ;;  %v9091_v4 = vld [vmem:[%s15881_s0 + $0x238] sm:$0xff]  ;;  %v9089_v55 = vld [vmem:[%s15881_s0 + $0x228] sm:$0xff] }
0x15ac   : > { %v7989_v54 = vsel %vm7987_vm13, %v7988_v32, %v7986_v50  ;;  %v9085_v32 = vld [vmem:[%s15881_s0 + $0x208] sm:$0xff]  ;;  %v14946_v50 = vshrl.u32 %v8334_v52, 7 }
0x15ad   : > { %10410 = vpush %v7989_v54  ;;  %v8332_v54 = vld [vmem:[%s15884_s12] sm:$0x3]  ;;  %s956_s12 = scalar_lea.vmem %s10697_s20, %s15887_s23 }
0x15ae   : > { %v8336_v13 = vsub.s32 0, %v14946_v50  ;;  %v8340_v62 = vsub.s32 1, %v14946_v50 }
0x15b0   : > { %v8337_v1 = vrot.slane %v8332_v54, %v8336_v13  ;;  %v8341_v27 = vrot.slane %v8332_v54, %v8340_v62  ;;  %v8426_v54 = vld [vmem:[%s10689_s4 + $0x38] sm:$0xff] }
0x15de   : > { %s10411_s11 = spop %10410 }
0x15df   : > { %s7991_s16 = sadd.f32 1e-05, %s10411_s11 }
0x15e0   : > { %s15885_s11 = sld [smem:[#allocation16_spill]] }
0x15e1   : > { %v7992_v33 = vstv %s7991_s16 }
0x15e2   : > { %10486 = vrcp.f32 %v7992_v33 }
0x15ef   : > { %v10487_v12 = vpop.eup %10486 }
0x15f0   : > { %10412 = vpush %v10487_v12 }
0x1621   : > { %s10413_s15 = spop %10412 }
0x1622   : > { %v7995_v36 = vstv %s10413_s15 }
0x1623   : > { %v7996_v22 = vmul.f32 %v7995_v36, %v14836_v63  ;;  %v9112_v63 = vld [vmem:[%s15881_s0 + $0x2e0] sm:$0xff] }
0x1625   : > { %v8003_v42 = vmul.f32 %v9050_v9, %v7996_v22 }
0x1627   : > { %v8010_v39 = vadd.f32 %v9051_v5, %v8003_v42 }
0x1629   : > { %v8012_v46 = vmul.f32 0.01, %v8010_v39  ;;  %vm8011_vm14 = vcmp.ge.f32.partialorder %v8010_v39, 0.0 }
0x162b   : > { %v14909_v59 = vsel %vm8011_vm14, %v8010_v39, %v8012_v46 }
0x162c   : > { %v8080_v40 = vrot.slane %v14909_v59, 1  ;;  %8218 = vmatmul.mubr.f32.vlgmr.msra.gmra.mxu0 %v14909_v59  ;;  %v8257_v20 = vrot.slane %v14909_v59, 2 }
0x162e   : > { %8147 = vmatmul.mubr.f32.vlgmr.msra.gmra.mxu1 %v8080_v40 }
0x162f   : > { %8260 = vmatpush1.msra.mxu1 %v9114_v51  ;;  %8323 = vmatprep.mubr.f32.mxu1 %v10533_v24  ;;  %v9104_v24 = vld [vmem:[%s15881_s0 + $0x2a0] sm:$0xff] }
0x1630   : > { %8261 = vmatprep.subr.mxu1 %v9113_v2 }
0x1631   : > { %8262 = vmatpush1.msra.mxu1 %v9112_v63 }
0x1632   : > { %8263 = vmatprep.subr.mxu1 %v9111_v41 }
0x1633   : > { %8264 = vmatpush1.msra.mxu1 %v9110_v34 }
0x1634   : > { %8265 = vmatprep.subr.mxu1 %v9109_v44 }
0x1635   : > { %8266 = vmatpush1.msra.mxu1 %v9108_v14 }
0x1636   : > { %8267 = vmatprep.subr.mxu1 %v9107_v57 }
0x1637   : > { %8268 = vmatpush1.msra.mxu1 %v9106_v25 }
0x1638   : > { %8269 = vmatprep.subr.mxu1 %v9105_v29 }
0x1639   : > { %8270 = vmatpush1.msra.mxu1 %v9104_v24 }
0x163a   : > { %8271 = vmatprep.subr.mxu1 %v9103_v17 }
0x163b   : > { %8272 = vmatpush1.msra.mxu1 %v9102_v30  ;;  %v8450_v30 = vld [vmem:[%s10689_s4 + $0xf8] sm:$0xff] }
0x163c   : > { %8273 = vmatprep.subr.mxu1 %v9101_v53  ;;  %v8434_v53 = vld [vmem:[%s10689_s4 + $0x78] sm:$0xff]  ;;  %9572 = vmatprep.subr.mxu0 %v8450_v30 }
0x163d   : > { %8274 = vmatpush1.msra.mxu1 %v9100_v8  ;;  %v8449_v8 = vld [vmem:[%s10689_s4 + $0xf0] sm:$0xff]  ;;  %9573 = vmatpush3.msra.mxu0 %v8434_v53 }
0x163e   : > { %8275 = vmatprep.subr.mxu1 %v9099_v35  ;;  %v8433_v35 = vld [vmem:[%s10689_s4 + $0x70] sm:$0xff]  ;;  %9574 = vmatprep.subr.mxu0 %v8449_v8 }
0x163f   : > { %8276 = vmatpush1.msra.mxu1 %v9098_v23  ;;  %v8448_v23 = vld [vmem:[%s10689_s4 + $0xe8] sm:$0xff]  ;;  %9575 = vmatpush3.msra.mxu0 %v8433_v35 }
0x1640   : > { %8277 = vmatprep.subr.mxu1 %v9097_v60  ;;  %v8432_v60 = vld [vmem:[%s10689_s4 + $0x68] sm:$0xff]  ;;  %9576 = vmatprep.subr.mxu0 %v8448_v23 }
0x1641   : > { %8278 = vmatpush1.msra.mxu1 %v9096_v16  ;;  %v8447_v16 = vld [vmem:[%s10689_s4 + $0xe0] sm:$0xff]  ;;  %9577 = vmatpush3.msra.mxu0 %v8432_v60 }
0x1642   : > { %8279 = vmatprep.subr.mxu1 %v9095_v15  ;;  %v8431_v15 = vld [vmem:[%s10689_s4 + $0x60] sm:$0xff]  ;;  %9578 = vmatprep.subr.mxu0 %v8447_v16 }
0x1643   : > { %8280 = vmatpush1.msra.mxu1 %v9094_v26  ;;  %v8446_v26 = vld [vmem:[%s10689_s4 + $0xd8] sm:$0xff]  ;;  %9579 = vmatpush3.msra.mxu0 %v8431_v15 }
0x1644   : > { %8281 = vmatprep.subr.mxu1 %v9093_v3  ;;  %v8430_v3 = vld [vmem:[%s10689_s4 + $0x58] sm:$0xff]  ;;  %9580 = vmatprep.subr.mxu0 %v8446_v26 }
0x1645   : > { %8282 = vmatpush1.msra.mxu1 %v9092_v45  ;;  %v8445_v45 = vld [vmem:[%s10689_s4 + $0xd0] sm:$0xff]  ;;  %9581 = vmatpush3.msra.mxu0 %v8430_v3 }
0x1646   : > { %8283 = vmatprep.subr.mxu1 %v9091_v4  ;;  %v8429_v4 = vld [vmem:[%s10689_s4 + $0x50] sm:$0xff]  ;;  %9582 = vmatprep.subr.mxu0 %v8445_v45 }
0x1647   : > { %8284 = vmatpush1.msra.mxu1 %v9090_v38  ;;  %9583 = vmatpush3.msra.mxu0 %v8429_v4 }
0x1648   : > { %8285 = vmatprep.subr.mxu1 %v9089_v55 }
0x1649   : > { %8286 = vmatpush1.msra.mxu1 %v9088_v28 }
0x164a   : > { %8287 = vmatprep.subr.mxu1 %v9087_v11 }
0x164b   : > { %8288 = vmatpush1.msra.mxu1 %v9086_v31 }
0x164c   : > { %8289 = vmatprep.subr.mxu1 %v9085_v32  ;;  %v8444_v32 = vld [vmem:[%s10689_s4 + $0xc8] sm:$0xff] }
0x164d   : > { %8290 = vmatpush1.msra.mxu1 %v9084_v0  ;;  %v8428_v0 = vld [vmem:[%s10689_s4 + $0x48] sm:$0xff]  ;;  %9584 = vmatprep.subr.mxu0 %v8444_v32 }
0x164e   : > { %8324 = vmatmul.mubr.f32.vlgmr.msra.gmra.mxu1 %v8257_v20  ;;  %v8443_v20 = vld [vmem:[%s10689_s4 + $0xc0] sm:$0xff]  ;;  %9585 = vmatpush3.msra.mxu0 %v8428_v0 }
0x164f   : > { %9586 = vmatprep.subr.mxu0 %v8443_v20 }
0x16ec   : > { %v8219_v10 = vpop.f32.mrf.mxu0 }
0x16ee   : > { %v8148_v58 = vpop.f32.mrf.mxu1  ;;  %v8221_v6 = vpop.f32.mrf.mxu0 }
0x16ef   : > { %v8220_v43 = vadd.f32 %v8219_v10, %v8148_v58  ;;  %v8427_v58 = vld [vmem:[%s10689_s4 + $0x40] sm:$0xff]  ;;  %v8442_v10 = vld [vmem:[%s10689_s4 + $0xb8] sm:$0xff] }
0x16f0   : > { %v8150_v49 = vpop.f32.mrf.mxu1  ;;  %9587 = vmatpush3.msra.mxu0 %v8427_v58 }
0x16f1   : > { %v8222_v21 = vadd.f32 %v8221_v6, %v8150_v49  ;;  %v8441_v49 = vld [vmem:[%s10689_s4 + $0xb0] sm:$0xff]  ;;  %9588 = vmatprep.subr.mxu0 %v8442_v10  ;;  %v8424_v6 = vld [vmem:[%s10689_s4 + $0x28] sm:$0xff] }
0x16f2   : > { %9589 = vmatpush3.msra.mxu0 %v8426_v54 }
0x16f3   : > { %9590 = vmatprep.subr.mxu0 %v8441_v49 }
0x170e   : > { %v8325_v7 = vpop.f32.mrf.mxu1 }
0x170f   : > { %v8330_v19 = vadd.f32 %v8325_v7, %v8220_v43  ;;  %v8425_v43 = vld [vmem:[%s10689_s4 + $0x30] sm:$0xff]  ;;  %v8439_v7 = vld [vmem:[%s10689_s4 + $0xa0] sm:$0xff] }
0x1710   : > { %v8327_v37 = vpop.f32.mrf.mxu1  ;;  %9591 = vmatpush3.msra.mxu0 %v8425_v43 }
0x1711   : > { %v8344_v47 = vadd.f32 %v8337_v1, %v8330_v19  ;;  %v8331_v56 = vadd.f32 %v8327_v37, %v8222_v21  ;;  %v8440_v1 = vld [vmem:[%s10689_s4 + $0xa8] sm:$0xff]  ;;  %v8423_v21 = vld [vmem:[%s10689_s4 + $0x20] sm:$0xff]  ;;  %v8438_v19 = vld [vmem:[%s10689_s4 + $0x98] sm:$0xff] }
0x1712   : > { %9592 = vmatprep.subr.mxu0 %v8440_v1  ;;  %v8437_v37 = vld [vmem:[%s10689_s4 + $0x90] sm:$0xff] }
0x1713   : > { %v8345_v48 = vadd.f32 %v8341_v27, %v8331_v56  ;;  %v8349_v61 = vsel %vm8348_vm15, %v8344_v47, 0.0  ;;  %9593 = vmatpush3.msra.mxu0 %v8424_v6  ;;  %v8422_v27 = vld [vmem:[%s10689_s4 + $0x18] sm:$0xff]  ;;  %v8436_v56 = vld [vmem:[%s10689_s4 + $0x88] sm:$0xff] }
0x1714   : > { %9594 = vmatprep.subr.mxu0 %v8439_v7 }
0x1715   : > { %v8350_v18 = vsel %vm8348_vm15, %v8345_v48, 0.0  ;;  %9595 = vmatpush3.msra.mxu0 %v8423_v21 }
0x1716   : > { %v8351_v33 = vadd.f32 %v8350_v18, %v8349_v61  ;;  %9596 = vmatprep.subr.mxu0 %v8438_v19  ;;  %v8435_v61 = vld [vmem:[%s10689_s4 + $0x80] sm:$0xff] }
0x1717   : > { %9597 = vmatpush3.msra.mxu0 %v8422_v27  ;;  %v8419_v18 = vld [vmem:[%s10689_s4] sm:$0xff] }
0x1718   : > { %8352 = vadd.xlane.f32.xlu0 %v8351_v33  ;;  %9598 = vmatprep.subr.mxu0 %v8437_v37 }
0x17a1   : > { %v8353_v12 = vpop.xlane.xlu0 %8352 }
0x17a2   : > { %v8354_v9 = vrot.slane %v8353_v12, 4 }
0x17a4   : > { %v8355_v36 = vadd.f32 %v8354_v9, %v8353_v12  ;;  %v10535_v9 = vmov 1966171168  }
0x17a6   : > { %v8356_v22 = vrot.slane %v8355_v36, 2 }
0x17a8   : > { %v8357_v5 = vadd.f32 %v8356_v22, %v8355_v36  ;;  %v8400_v36 = vunpack.c.l.s4 %v10535_v9 }
0x17aa   : > { %v8358_v42 = vrot.slane %v8357_v5, 1  ;;  %v8401_v22 = vunpack.c.0.s8 %v8400_v36 }
0x17ac   : > { %v8359_v39 = vadd.f32 %v8358_v42, %v8357_v5 }
0x17ae   : > { %10414 = vpush %v8359_v39 }
0x17df   : > { %s10415_s28 = spop %10414 }
0x17e0   : > { %s8361_s1 = smul.f32 0.00390625, %s10415_s28 }
0x17e2   : > { %v8362_v46 = vstv %s8361_s1 }
0x17e3   : > { %v14957_v59 = vsub.f32 %v8344_v47, %v8362_v46  ;;  %v14959_v40 = vsub.f32 %v8345_v48, %v8362_v46  ;;  %v8421_v47 = vld [vmem:[%s10689_s4 + $0x10] sm:$0xff]  ;;  %v8420_v48 = vld [vmem:[%s10689_s4 + $0x8] sm:$0xff]  ;;  %v8404_v46 = vsub.s32 %v8401_v22, %v14946_v50 }
0x17e4   : > { %9599 = vmatpush3.msra.mxu0 %v8421_v47 }
0x17e5   : > { %v8365_v51 = vmul.f32 %v14957_v59, %v14957_v59  ;;  %v8366_v2 = vmul.f32 %v14959_v40, %v14959_v40  ;;  %9600 = vmatprep.subr.mxu0 %v8436_v56 }
0x17e6   : > { %9601 = vmatpush3.msra.mxu0 %v8420_v48 }
0x17e7   : > { %v8367_v63 = vsel %vm8348_vm15, %v8365_v51, 0.0  ;;  %v8368_v41 = vsel %vm8348_vm15, %v8366_v2, 0.0  ;;  %9602 = vmatprep.subr.mxu0 %v8435_v61 }
0x17e8   : > { %v8369_v34 = vadd.f32 %v8368_v41, %v8367_v63  ;;  %9603 = vmatpush3.msra.mxu0 %v8419_v18  ;;  %v8346_v63 = vld [vmem:[%s15885_s11] sm:$0x3] }
0x17ea   : > { %8370 = vadd.xlane.f32.xlu1 %v8369_v34  ;;  %v8347_v34 = vld [vmem:[%s10684_s27] sm:$0x3] }
0x1873   : > { %v8371_v44 = vpop.xlane.xlu1 %8370 }
0x1874   : > { %v8372_v14 = vrot.slane %v8371_v44, 4 }
0x1876   : > { %v8373_v57 = vadd.f32 %v8372_v14, %v8371_v44 }
0x1878   : > { %v8374_v25 = vrot.slane %v8373_v57, 2 }
0x187a   : > { %v8375_v29 = vadd.f32 %v8374_v25, %v8373_v57 }
0x187c   : > { %v8376_v24 = vrot.slane %v8375_v29, 1 }
0x187e   : > { %v8377_v17 = vadd.f32 %v8376_v24, %v8375_v29  ;;  %v8451_v24 = vld [vmem:[#allocation2] sm:$0x1] }
0x1880   : > { %10416 = vpush %v8377_v17 }
0x18b1   : > { %s10417_s2 = spop %10416 }
0x18b2   : > { %s8379_s7 = smul.f32 0.003921569, %s10417_s2 }
0x18b4   : > { %v8380_v38 = vstv %s8379_s7 }
0x18b5   : > { %10488 = vrsqrt.f32 %v8380_v38  ;;  %vm8383_vm1 = vcmp.eq.f32.partialorder %v8380_v38, inf  ;;  %v8386_v11 = vand.u32 2147483648, %v8380_v38  ;;  %vm8385_vm3 = vcmp.eq.f32.partialorder %v8380_v38, 0.0 }
0x18c2   : > { %v10489_v55 = vpop.eup %10488 }
0x18c3   : > { %v8382_v28 = vmul.f32 %v10489_v55, %v8380_v38 }
0x18c5   : > { %v8384_v31 = vsel %vm8383_vm1, %v8380_v38, %v8382_v28 }
0x18c6   : > { %v8387_v52 = vsel %vm8385_vm3, %v8386_v11, %v8384_v31 }
0x18c7   : > { %10418 = vpush %v8387_v52 }
0x18f8   : > { %s10419_s10 = spop %10418 }
0x18f9   : > { %s8389_s16 = sadd.f32 1e-05, %s10419_s10 }
0x18fb   : > { %v8390_v33 = vstv %s8389_s16 }
0x18fc   : > { %10490 = vrcp.f32 %v8390_v33 }
0x1909   : > { %v10491_v12 = vpop.eup %10490 }
0x190a   : > { %10420 = vpush %v10491_v12 }
0x193b   : > { %s10421_s15 = spop %10420 }
0x193c   : > { %v8393_v5 = vstv %s10421_s15 }
0x193d   : > { %v8394_v42 = vmul.f32 %v8393_v5, %v14957_v59  ;;  %v8395_v39 = vmul.f32 %v8393_v5, %v14959_v40 }
0x193f   : > { %v8398_v51 = vcombine.low %v8394_v42, %v8395_v39 }
0x1941   : > { %v8405_v2 = vrot.slane %v8398_v51, %v8404_v46 }
0x1943   : > { %v8412_v41 = vrot.slane %v8405_v2, %v8404_v46 }
0x1945   : > { %v8414_v44 = vmul.f32 %v8412_v41, %v8346_v63 }
0x1947   : > { %v8415_v14 = vadd.f32 %v8414_v44, %v8347_v34 }
0x1949   : > { %vm8416_vm4 = vcmp.ge.f32.partialorder %v8415_v14, 0.0  ;;  %v8417_v57 = vmul.f32 0.01, %v8415_v14 }
0x194b   : > { %v8418_v25 = vsel %vm8416_vm4, %v8415_v14, %v8417_v57 }
0x194c   : > { %v8456_v29 = vrot.slane %v8418_v25, %v8336_v13  ;;  %v8460_v59 = vrot.slane %v8418_v25, %v8340_v62 }
0x194e   : > { %8527 = vmatprep.mubr.f32.mxu0 %v8460_v59 }
0x194f   : > { %8528 = vmatmul.mubr.f32.vlgmr.msra.gmra.mxu0 %v8456_v29 }
0x1a0f   : > { %v9604_v40 = vpop.f32.mrf.mxu0 }
0x1a11   : > { %v9605_v17 = vpop.f32.mrf.mxu0 }
0x1a12   : > { %v9606_v30 = vadd.f32 %v9605_v17, %v9604_v40 }
0x1a14   : > { %v8530_v53 = vadd.f32 %v9606_v30, %v8451_v24 }
0x1a16   : > { %8534 = vst.msk [vmem:[%s956_s12] sm:$0x1] %vm8533_vm5, %v8530_v53 }
0x1a17 PF: > { %s75_s22 = sadd.s32 1, %s10500_s22  }
0x1a18   : > { %p72_p4 = scmp.ge.s32.totalorder %s75_s22, 4  }
0x1a1a   :  { %74 = sbr.rel (!%p72_p4) target bundleno = 61 (0x3d), region = 227 }

</bundles_post_ra>
